<compile_context>
chip_gen: v6e
topology: v6e:2x2x1
jax: 0.10.0
libtpu: 0.0.40
codegen_flags: <defaults>
</compile_context>

<pallas_src>
import jax
import jax.numpy as jnp
from jax import lax
from jax.experimental import pallas as pl
from jax.experimental.pallas import tpu as pltpu

BN_EPS = 1e-5
PAD = 3            # max halo radius (7x7 conv in MultiScaleBlock)


def _round_up(x, m):
    return (x + m - 1) // m * m


def _leaky(y):
    return jnp.maximum(y, 0.01 * y)      # nn.LeakyReLU default slope (2 VPU ops)


def _relu(y):
    return jnp.maximum(y, 0.0)


# ----------------------------------------------------------------------------
# Fused kernel: whole Down block for NB lane-packed images per grid step.
#   Canvas buffers are (rows, LTOT) bf16; image b's zero-padded HPxWP canvas is
#   flattened at lanes [S0 + b*P, S0 + b*P + HP*WP).  The compute window is
#   [S0, S0 + LCB) with LCB = NB*P (multiple of 128 -> lane-dense GEMMs).
#   A validity mask zeroes halo / inter-image gap columns so every later conv
#   reads correct zero padding.
# ----------------------------------------------------------------------------
def _build_kernel(C, WP, S0, LCB, LTOT):

    def kernel(x_ref, mask_ref,
               w_ms, b_ms, w_proj, b_proj, w_c0, w_c1, w_loc, w_down, b_down,
               skip_out, down_out,
               cat_ref, cols_ref, ms_ref):
        # Slack lanes outside the compute window must read as exact zeros for
        # the r=1 gathers; the interior is fully overwritten (masked) below.
        cat_ref[:, 0:S0] = jnp.zeros((4 * C, S0), jnp.bfloat16)
        cat_ref[:, S0 + LCB:LTOT] = jnp.zeros((4 * C, LTOT - S0 - LCB),
                                              jnp.bfloat16)

        mask = mask_ref[...]                       # (1, LCB) f32, 1 on real px

        def gather(src_ref, row_lo, rows, r, dst_row):
            """In-VMEM im2col: copy (2r+1)^2 shifted windows into cols_ref."""
            offs = [dy * WP + dx
                    for dy in range(-r, r + 1) for dx in range(-r, r + 1)]
            for t, o in enumerate(offs):
                cols_ref[dst_row + t * rows:dst_row + (t + 1) * rows, :] = \
                    src_ref[row_lo:row_lo + rows, S0 + o:S0 + o + LCB]

        def mxu(w_ref, k):
            # bf16 operands on the MXU, f32 accumulation, f32 epilogue.
            return jnp.dot(w_ref[...], cols_ref[0:k, :],
                           preferred_element_type=jnp.float32)

        # ---- MultiScaleBlock: ONE 49-tap gather + ONE block matmul ----------
        gather(x_ref, 0, C, 3, 0)                  # 49*C rows of cols
        ms = _leaky(mxu(w_ms, 49 * C) + b_ms[...]) * mask
        ms_ref[...] = ms.astype(jnp.bfloat16)      # concat of the 4 branches

        # ---- 1x1 projection 4C -> C, BN+LeakyReLU ---------------------------
        proj = jnp.dot(w_proj[...], ms_ref[...],
                       preferred_element_type=jnp.float32) + b_proj[...]
        ms_out = _leaky(proj) * mask               # zero halo / gap columns
        cat_ref[0:C, S0:S0 + LCB] = ms_out.astype(jnp.bfloat16)

        # ---- RDBlock dense part (concats = adjacent rows of cat_ref) --------
        gather(cat_ref, 0, C, 1, 0)                # conv0: 3x3, C -> C
        out0 = _relu(mxu(w_c0, 9 * C)) * mask
        cat_ref[C:2 * C, S0:S0 + LCB] = out0.astype(jnp.bfloat16)

        # conv1: 3x3, 2C -> 2C.  Reuse conv0's 9 taps of ms_out (cols[0:9C]),
        # gather only the fresh out0 taps into cols[9C:18C]; w_c1 is permuted
        # group-major on the host to match.
        gather(cat_ref, C, C, 1, 9 * C)
        out1 = _relu(mxu(w_c1, 18 * C)) * mask
        cat_ref[2 * C:4 * C, S0:S0 + LCB] = out1.astype(jnp.bfloat16)

        # local 1x1: 4C -> C, ReLU; residual add with ms_out
        local = _relu(jnp.dot(w_loc[...], cat_ref[0:4 * C, S0:S0 + LCB],
                              preferred_element_type=jnp.float32))
        skip = (cat_ref[0:C, S0:S0 + LCB] + local) * mask
        skip_bf = skip.astype(jnp.bfloat16)
        skip_out[...] = skip_bf
        cat_ref[0:C, S0:S0 + LCB] = skip_bf        # skip overwrites ms_out rows

        # ---- Down: 3x3 conv + BN + ReLU (dense; host decimates for stride 2)
        # TODO(synk): with the 2-D canvas layout this becomes a strided in-
        #             kernel stride-2 conv (4x fewer FLOPs / writeback).
        gather(cat_ref, 0, C, 1, 0)
        down = mxu(w_down, 9 * C) + b_down[...]
        down_out[...] = _relu(down).astype(jnp.bfloat16)

    return kernel


# ----------------------------------------------------------------------------
# Wrapper: layout plumbing (pad/flatten/lane-pack canvases), one pallas_call,
# un-pack + stride-2 decimation on the host.
# ----------------------------------------------------------------------------
def down_forward(kp, x_nchw, images_per_step=None):
    N, C, H, W = x_nchw.shape
    COUT = kp["w_down"].shape[0]
    HP, WP = H + 2 * PAD, W + 2 * PAD
    max_off = PAD * WP + PAD                  # largest |tap offset|
    P = _round_up(HP * WP + max_off, 128)     # per-image pitch along lanes

    if images_per_step is None:               # amortise per-step overhead but
        NB = 1                                 # keep >=2 parallel steps (v7x)
        for cand in (8, 4, 2):
            if N % cand == 0 and N // cand >= 2:
                NB = cand
                break
    else:
        NB = images_per_step
    assert N % NB == 0
    G = N // NB                               # grid steps
    LCB = NB * P                              # lane-dense compute width
    S0 = _round_up(max_off, 128)              # slack before first image canvas
    LTOT = _round_up(S0 + LCB + max_off, 128)

    # NCHW -> (G, C, LTOT) bf16: NB zero-padded flattened canvases per step.
    xp = jnp.pad(x_nchw.astype(jnp.bfloat16),
                 ((0, 0), (0, 0), (PAD, PAD), (PAD, PAD)))
    xf = jnp.pad(xp.reshape(N, C, HP * WP), ((0, 0), (0, 0), (0, P - HP * WP)))
    xb = xf.reshape(G, NB, C, P).transpose(0, 2, 1, 3).reshape(G, C, LCB)
    x_buf = jnp.pad(xb, ((0, 0), (0, 0), (S0, LTOT - S0 - LCB)))

    # validity mask over the LCB computed columns (1 = real image pixel)
    j = jnp.arange(LCB)
    p_ = j % P
    h = p_ // WP
    w = p_ % WP
    valid = ((p_ < HP * WP) & (h >= PAD) & (h < PAD + H)
             & (w >= PAD) & (w < PAD + W))
    mask = valid.astype(jnp.float32).reshape(1, LCB)

    w_args = [kp["w_ms"], kp["b_ms"], kp["w_proj"], kp["b_proj"],
              kp["w_c0"], kp["w_c1"], kp["w_loc"], kp["w_down"], kp["b_down"]]

    wmats = [kp[k] for k in ("w_ms", "w_proj", "w_c0", "w_c1", "w_loc",
                             "w_down")]
    flops = 2 * G * LCB * sum(int(m.shape[0]) * int(m.shape[1]) for m in wmats)
    bytes_accessed = int(
        x_buf.size * 2 + mask.size * 4
        + sum(int(a.size) * a.dtype.itemsize for a in w_args)
        + (G * C * LCB + G * COUT * LCB) * 2)

    in_specs = [
        pl.BlockSpec((None, C, LTOT), lambda g: (g, 0, 0)),   # NB images / step
        pl.BlockSpec((1, LCB), lambda g: (0, 0)),             # mask (broadcast)
    ]
    in_specs += [pl.BlockSpec(a.shape, lambda g: (0, 0)) for a in w_args]

    out_specs = [
        pl.BlockSpec((None, C, LCB), lambda g: (g, 0, 0)),    # skip (flattened)
        pl.BlockSpec((None, COUT, LCB), lambda g: (g, 0, 0)), # dense down conv
    ]

    scratch_shapes = [
        pltpu.VMEM((4 * C, LTOT), jnp.bfloat16),   # canvas: ms_out|out0|out1
        pltpu.VMEM((49 * C, LCB), jnp.bfloat16),   # in-VMEM im2col columns
        pltpu.VMEM((4 * C, LCB), jnp.bfloat16),    # multi-scale concat
    ]
    # per-step VMEM footprint ~0.7 MiB at these sizes -> safe on v5e/v6e/v7x.

    kernel = _build_kernel(C, WP, S0, LCB, LTOT)

    skip_flat, down_flat = pl.pallas_call(
        kernel,
        out_shape=(jax.ShapeDtypeStruct((G, C, LCB), jnp.bfloat16),
                   jax.ShapeDtypeStruct((G, COUT, LCB), jnp.bfloat16)),
        grid_spec=pltpu.PrefetchScalarGridSpec(
            num_scalar_prefetch=0,
            grid=(G,),
            in_specs=in_specs,
            out_specs=out_specs,
            scratch_shapes=scratch_shapes),
        compiler_params=pltpu.CompilerParams(
            dimension_semantics=("parallel",),
            vmem_limit_bytes=32 * 1024 * 1024),
        cost_estimate=pl.CostEstimate(flops=flops, transcendentals=0,
                                      bytes_accessed=bytes_accessed),
    )(x_buf, mask, *w_args)

    def unpack(flat, cc):
        y = (flat.reshape(G, cc, NB, P).transpose(0, 2, 1, 3)
             .reshape(N, cc, P)[:, :, :HP * WP].reshape(N, cc, HP, WP))
        return y

    skip = unpack(skip_flat, C)[:, :, PAD:PAD + H, PAD:PAD + W]
    down = unpack(down_flat, COUT)[:, :, PAD:PAD + H:2, PAD:PAD + W:2]
    return down.astype(jnp.float32), skip.astype(jnp.float32)


# ----------------------------------------------------------------------------
# Parameters (deterministic, synthetic), BN folding, kernel weight matrices.
# ----------------------------------------------------------------------------
def _fold_bn(gamma, beta, mean, var):
    s = gamma * lax.rsqrt(var + BN_EPS)
    return s, beta - mean * s


def init_params(key, c_in, c_out_down):
    """Raw parameters in PyTorch layouts (OIHW weights, BN running stats)."""
    keys = iter(jax.random.split(key, 40))

    def w(shape):
        return 0.1 * jax.random.normal(next(keys), shape, jnp.float32)

    def bn(n):
        gamma = 1.0 + 0.1 * jax.random.normal(next(keys), (n,), jnp.float32)
        beta = 0.1 * jax.random.normal(next(keys), (n,), jnp.float32)
        mean = 0.1 * jax.random.normal(next(keys), (n,), jnp.float32)
        var = jnp.abs(jax.random.normal(next(keys), (n,), jnp.float32)) + 0.5
        return gamma, beta, mean, var

    C = c_in
    p = {}
    for i, k in enumerate((1, 3, 5, 7)):
        p[f"ms{i + 1}_w"] = w((C, C, k, k))          # OIHW
        p[f"ms{i + 1}_b"] = w((C,))
    p["ms_bn"] = bn(4 * C)
    p["proj_w"] = w((C, 4 * C, 1, 1))
    p["proj_b"] = w((C,))
    p["proj_bn"] = bn(C)
    p["conv0_w"] = w((C, C, 3, 3))
    p["conv1_w"] = w((2 * C, 2 * C, 3, 3))
    p["local_w"] = w((C, 4 * C, 1, 1))
    p["down_w"] = w((c_out_down, C, 3, 3))
    p["down_bn"] = bn(c_out_down)
    return p


def prepare_kernel_params(p):
    """Fold bias+BN into (Cout, taps*Cin) bf16 weight matrices + f32 shifts."""
    def to_mat(w_oihw, scale=None):
        co, ci, kh, kw = w_oihw.shape
        m = jnp.transpose(w_oihw, (0, 2, 3, 1)).reshape(co, kh * kw * ci)
        if scale is not None:
            m = m * scale[:, None]
        return m.astype(jnp.bfloat16)

    C = p["ms1_w"].shape[0]
    kp = {}

    # MultiScaleBlock: zero-pad the 1/3/5 kernels to 7x7 taps and stack the 4
    # branches into one (4C, 49C) block weight -> one gather + one matmul.
    s_ms, t_ms = _fold_bn(*p["ms_bn"])
    mats, biases = [], []
    for i, ksz in enumerate((1, 3, 5, 7)):
        pad = (7 - ksz) // 2
        w7 = jnp.pad(p[f"ms{i + 1}_w"],
                     ((0, 0), (0, 0), (pad, pad), (pad, pad)))
        s_i = s_ms[i * C:(i + 1) * C]
        t_i = t_ms[i * C:(i + 1) * C]
        mats.append(to_mat(w7, s_i))
        biases.append(t_i + s_i * p[f"ms{i + 1}_b"])
    kp["w_ms"] = jnp.concatenate(mats, axis=0)           # (4C, 49C) bf16
    kp["b_ms"] = jnp.concatenate(biases).reshape(4 * C, 1)

    s_p, t_p = _fold_bn(*p["proj_bn"])
    kp["w_proj"] = to_mat(p["proj_w"], s_p)
    kp["b_proj"] = (t_p + s_p * p["proj_b"]).reshape(C, 1)

    kp["w_c0"] = to_mat(p["conv0_w"])
    # conv1: split input channels into [ms_out | out0] groups so the kernel can
    # reuse conv0's 9-tap gather (group-major cols layout).
    w1 = p["conv1_w"]
    kp["w_c1"] = jnp.concatenate([to_mat(w1[:, :C]), to_mat(w1[:, C:])],
                                 axis=1)                  # (2C, 18C)
    kp["w_loc"] = to_mat(p["local_w"])

    s_d, t_d = _fold_bn(*p["down_bn"])
    kp["w_down"] = to_mat(p["down_w"], s_d)
    kp["b_down"] = t_d.reshape(-1, 1)
    return kp


# ----------------------------------------------------------------------------
# Pure-JAX reference (f32, HIGHEST precision) for correctness checking.
# ----------------------------------------------------------------------------
def ref_forward(p, x):
    def conv(x, w, stride=1, pad=0, bias=None):
        y = lax.conv_general_dilated(
            x, w, (stride, stride), [(pad, pad), (pad, pad)],
            dimension_numbers=("NCHW", "OIHW", "NCHW"),
            precision=lax.Precision.HIGHEST)
        if bias is not None:
            y = y + bias[None, :, None, None]
        return y

    def bn(y, bn_params):
        s, t = _fold_bn(*bn_params)
        return y * s[None, :, None, None] + t[None, :, None, None]

    def leaky(y):
        return jnp.where(y >= 0.0, y, 0.01 * y)

    x = x.astype(jnp.float32)
    ms = [conv(x, p[f"ms{i + 1}_w"], 1, k // 2, p[f"ms{i + 1}_b"])
          for i, k in enumerate((1, 3, 5, 7))]
    ms = leaky(bn(jnp.concatenate(ms, axis=1), p["ms_bn"]))
    ms_out = leaky(bn(conv(ms, p["proj_w"], 1, 0, p["proj_b"]), p["proj_bn"]))

    out0 = _relu(conv(ms_out, p["conv0_w"], 1, 1))
    cat1 = jnp.concatenate([ms_out, out0], axis=1)
    out1 = _relu(conv(cat1, p["conv1_w"], 1, 1))
    cat2 = jnp.concatenate([ms_out, out0, out1], axis=1)
    local = _relu(conv(cat2, p["local_w"], 1, 0))
    skip = ms_out + local
    down = _relu(bn(conv(skip, p["down_w"], 2, 1), p["down_bn"]))
    return down, skip


# ----------------------------------------------------------------------------
if __name__ == "__main__":
    key = jax.random.PRNGKey(0)
    k_param, k_x = jax.random.split(key)

    B, C_in, H, W = 4, 4, 16, 16      # B=4 -> 2 images/step, 2 parallel steps
    C_out = 8
    x = jax.random.normal(k_x, (B, C_in, H, W), jnp.float32)

    raw = init_params(k_param, C_in, C_out)
    kp = prepare_kernel_params(raw)

    down_x, skip = jax.jit(down_forward)(kp, x)
    down_x = jax.block_until_ready(down_x)
    skip = jax.block_until_ready(skip)

    ref_down, ref_skip = ref_forward(raw, x)

    assert down_x.shape == (B, C_out, H // 2, W // 2), down_x.shape
    assert skip.shape == (B, C_in, H, W), skip.shape

    def rel_err(a, b):
        return float(jnp.linalg.norm((a - b).ravel())
                     / (jnp.linalg.norm(b.ravel()) + 1e-12))

    e_d, e_s = rel_err(down_x, ref_down), rel_err(skip, ref_skip)
    # bf16 canvases / MXU operands vs f32 HIGHEST reference: ~1% rel error.
    assert e_d < 5e-2 and e_s < 5e-2, (e_d, e_s)

    print("KERNEL_OK")
</pallas_src>

<mosaic_0001>
module attributes {stable_mosaic.version = 11 : i64} {
  func.func @kernel(%arg0: i32, %arg1: memref<1x4x1536xbf16, #tpu.memory_space<vmem>>, %arg2: memref<1x1280xf32, #tpu.memory_space<vmem>>, %arg3: memref<16x196xbf16, #tpu.memory_space<vmem>>, %arg4: memref<16x1xf32, #tpu.memory_space<vmem>>, %arg5: memref<4x16xbf16, #tpu.memory_space<vmem>>, %arg6: memref<4x1xf32, #tpu.memory_space<vmem>>, %arg7: memref<4x36xbf16, #tpu.memory_space<vmem>>, %arg8: memref<8x72xbf16, #tpu.memory_space<vmem>>, %arg9: memref<4x16xbf16, #tpu.memory_space<vmem>>, %arg10: memref<8x36xbf16, #tpu.memory_space<vmem>>, %arg11: memref<8x1xf32, #tpu.memory_space<vmem>>, %arg12: memref<1x4x1280xbf16, #tpu.memory_space<vmem>>, %arg13: memref<1x8x1280xbf16, #tpu.memory_space<vmem>>, %arg14: memref<16x1536xbf16, #tpu.memory_space<vmem>>, %arg15: memref<196x1280xbf16, #tpu.memory_space<vmem>>, %arg16: memref<16x1280xbf16, #tpu.memory_space<vmem>>) attributes {dimension_semantics = [#tpu.dimension_semantics<parallel>], iteration_bounds = array<i64: 2>, scalar_prefetch = 0 : i64, scratch_operands = 3 : i64, tpu.core_type = #tpu.core_type<tc>, window_params = [{transform_indices = @transform_0, window_bounds = array<i64: 1, 4, 1536>}, {pipeline_mode = #tpu.pipeline_mode<synchronous>, transform_indices = @transform_1, window_bounds = array<i64: 1, 1280>}, {pipeline_mode = #tpu.pipeline_mode<synchronous>, transform_indices = @transform_2, window_bounds = array<i64: 16, 196>}, {pipeline_mode = #tpu.pipeline_mode<synchronous>, transform_indices = @transform_3, window_bounds = array<i64: 16, 1>}, {pipeline_mode = #tpu.pipeline_mode<synchronous>, transform_indices = @transform_4, window_bounds = array<i64: 4, 16>}, {pipeline_mode = #tpu.pipeline_mode<synchronous>, transform_indices = @transform_5, window_bounds = array<i64: 4, 1>}, {pipeline_mode = #tpu.pipeline_mode<synchronous>, transform_indices = @transform_6, window_bounds = array<i64: 4, 36>}, {pipeline_mode = #tpu.pipeline_mode<synchronous>, transform_indices = @transform_7, window_bounds = array<i64: 8, 72>}, {pipeline_mode = #tpu.pipeline_mode<synchronous>, transform_indices = @transform_8, window_bounds = array<i64: 4, 16>}, {pipeline_mode = #tpu.pipeline_mode<synchronous>, transform_indices = @transform_9, window_bounds = array<i64: 8, 36>}, {pipeline_mode = #tpu.pipeline_mode<synchronous>, transform_indices = @transform_10, window_bounds = array<i64: 8, 1>}, {transform_indices = @transform_11, window_bounds = array<i64: 1, 4, 1280>}, {transform_indices = @transform_12, window_bounds = array<i64: 1, 8, 1280>}]} {
    %cst = arith.constant 0.000000e+00 : bf16
    %0 = vector.broadcast %cst : bf16 to vector<16x128xbf16>
    %c0 = arith.constant 0 : index
    %c0_0 = arith.constant 0 : index
    %1 = vector.load %arg14[%c0, %c0_0] : memref<16x1536xbf16, #tpu.memory_space<vmem>>, vector<16x128xbf16>
    tpu.vector_store %arg14[%c0, %c0_0], %0 {strides = array<i32>} : memref<16x1536xbf16, #tpu.memory_space<vmem>>, vector<16x128xbf16>,
    %cst_1 = arith.constant 0.000000e+00 : bf16
    %2 = vector.broadcast %cst_1 : bf16 to vector<16x128xbf16>
    %c0_2 = arith.constant 0 : index
    %c1408 = arith.constant 1408 : index
    %3 = vector.load %arg14[%c0_2, %c1408] : memref<16x1536xbf16, #tpu.memory_space<vmem>>, vector<16x128xbf16>
    tpu.vector_store %arg14[%c0_2, %c1408], %2 {strides = array<i32>} : memref<16x1536xbf16, #tpu.memory_space<vmem>>, vector<16x128xbf16>,
    %c0_3 = arith.constant 0 : index
    %c0_4 = arith.constant 0 : index
    %4 = vector.load %arg2[%c0_3, %c0_4] : memref<1x1280xf32, #tpu.memory_space<vmem>>, vector<1x1280xf32>
    %c0_5 = arith.constant 0 : index
    %c0_6 = arith.constant 0 : index
    %c59 = arith.constant 59 : index
    %5 = vector.load %arg1[%c0_5, %c0_6, %c59] : memref<1x4x1536xbf16, #tpu.memory_space<vmem>>, vector<1x4x1280xbf16>
    %6 = vector.shape_cast %5 : vector<1x4x1280xbf16> to vector<4x1280xbf16>
    %c0_7 = arith.constant 0 : index
    %c0_8 = arith.constant 0 : index
    %7 = vector.load %arg15[%c0_7, %c0_8] : memref<196x1280xbf16, #tpu.memory_space<vmem>>, vector<4x1280xbf16>
    tpu.vector_store %arg15[%c0_7, %c0_8], %6 {strides = array<i32>} : memref<196x1280xbf16, #tpu.memory_space<vmem>>, vector<4x1280xbf16>,
    %c0_9 = arith.constant 0 : index
    %c0_10 = arith.constant 0 : index
    %c60 = arith.constant 60 : index
    %8 = vector.load %arg1[%c0_9, %c0_10, %c60] : memref<1x4x1536xbf16, #tpu.memory_space<vmem>>, vector<1x4x1280xbf16>
    %9 = vector.shape_cast %8 : vector<1x4x1280xbf16> to vector<4x1280xbf16>
    %c4 = arith.constant 4 : index
    %c0_11 = arith.constant 0 : index
    %10 = vector.load %arg15[%c4, %c0_11] : memref<196x1280xbf16, #tpu.memory_space<vmem>>, vector<4x1280xbf16>
    tpu.vector_store %arg15[%c4, %c0_11], %9 {strides = array<i32>} : memref<196x1280xbf16, #tpu.memory_space<vmem>>, vector<4x1280xbf16>,
    %c0_12 = arith.constant 0 : index
    %c0_13 = arith.constant 0 : index
    %c61 = arith.constant 61 : index
    %11 = vector.load %arg1[%c0_12, %c0_13, %c61] : memref<1x4x1536xbf16, #tpu.memory_space<vmem>>, vector<1x4x1280xbf16>
    %12 = vector.shape_cast %11 : vector<1x4x1280xbf16> to vector<4x1280xbf16>
    %c8 = arith.constant 8 : index
    %c0_14 = arith.constant 0 : index
    %13 = vector.load %arg15[%c8, %c0_14] : memref<196x1280xbf16, #tpu.memory_space<vmem>>, vector<4x1280xbf16>
    tpu.vector_store %arg15[%c8, %c0_14], %12 {strides = array<i32>} : memref<196x1280xbf16, #tpu.memory_space<vmem>>, vector<4x1280xbf16>,
    %c0_15 = arith.constant 0 : index
    %c0_16 = arith.constant 0 : index
    %c62 = arith.constant 62 : index
    %14 = vector.load %arg1[%c0_15, %c0_16, %c62] : memref<1x4x1536xbf16, #tpu.memory_space<vmem>>, vector<1x4x1280xbf16>
    %15 = vector.shape_cast %14 : vector<1x4x1280xbf16> to vector<4x1280xbf16>
    %c12 = arith.constant 12 : index
    %c0_17 = arith.constant 0 : index
    %16 = vector.load %arg15[%c12, %c0_17] : memref<196x1280xbf16, #tpu.memory_space<vmem>>, vector<4x1280xbf16>
    tpu.vector_store %arg15[%c12, %c0_17], %15 {strides = array<i32>} : memref<196x1280xbf16, #tpu.memory_space<vmem>>, vector<4x1280xbf16>,
    %c0_18 = arith.constant 0 : index
    %c0_19 = arith.constant 0 : index
    %c63 = arith.constant 63 : index
    %17 = vector.load %arg1[%c0_18, %c0_19, %c63] : memref<1x4x1536xbf16, #tpu.memory_space<vmem>>, vector<1x4x1280xbf16>
    %18 = vector.shape_cast %17 : vector<1x4x1280xbf16> to vector<4x1280xbf16>
    %c16 = arith.constant 16 : index
    %c0_20 = arith.constant 0 : index
    %19 = vector.load %arg15[%c16, %c0_20] : memref<196x1280xbf16, #tpu.memory_space<vmem>>, vector<4x1280xbf16>
    tpu.vector_store %arg15[%c16, %c0_20], %18 {strides = array<i32>} : memref<196x1280xbf16, #tpu.memory_space<vmem>>, vector<4x1280xbf16>,
    %c0_21 = arith.constant 0 : index
    %c0_22 = arith.constant 0 : index
    %c64 = arith.constant 64 : index
    %20 = vector.load %arg1[%c0_21, %c0_22, %c64] : memref<1x4x1536xbf16, #tpu.memory_space<vmem>>, vector<1x4x1280xbf16>
    %21 = vector.shape_cast %20 : vector<1x4x1280xbf16> to vector<4x1280xbf16>
    %c20 = arith.constant 20 : index
    %c0_23 = arith.constant 0 : index
    %22 = vector.load %arg15[%c20, %c0_23] : memref<196x1280xbf16, #tpu.memory_space<vmem>>, vector<4x1280xbf16>
    tpu.vector_store %arg15[%c20, %c0_23], %21 {strides = array<i32>} : memref<196x1280xbf16, #tpu.memory_space<vmem>>, vector<4x1280xbf16>,
    %c0_24 = arith.constant 0 : index
    %c0_25 = arith.constant 0 : index
    %c65 = arith.constant 65 : index
    %23 = vector.load %arg1[%c0_24, %c0_25, %c65] : memref<1x4x1536xbf16, #tpu.memory_space<vmem>>, vector<1x4x1280xbf16>
    %24 = vector.shape_cast %23 : vector<1x4x1280xbf16> to vector<4x1280xbf16>
    %c24 = arith.constant 24 : index
    %c0_26 = arith.constant 0 : index
    %25 = vector.load %arg15[%c24, %c0_26] : memref<196x1280xbf16, #tpu.memory_space<vmem>>, vector<4x1280xbf16>
    tpu.vector_store %arg15[%c24, %c0_26], %24 {strides = array<i32>} : memref<196x1280xbf16, #tpu.memory_space<vmem>>, vector<4x1280xbf16>,
    %c0_27 = arith.constant 0 : index
    %c0_28 = arith.constant 0 : index
    %c81 = arith.constant 81 : index
    %26 = vector.load %arg1[%c0_27, %c0_28, %c81] : memref<1x4x1536xbf16, #tpu.memory_space<vmem>>, vector<1x4x1280xbf16>
    %27 = vector.shape_cast %26 : vector<1x4x1280xbf16> to vector<4x1280xbf16>
    %c28 = arith.constant 28 : index
    %c0_29 = arith.constant 0 : index
    %28 = vector.load %arg15[%c28, %c0_29] : memref<196x1280xbf16, #tpu.memory_space<vmem>>, vector<4x1280xbf16>
    tpu.vector_store %arg15[%c28, %c0_29], %27 {strides = array<i32>} : memref<196x1280xbf16, #tpu.memory_space<vmem>>, vector<4x1280xbf16>,
    %c0_30 = arith.constant 0 : index
    %c0_31 = arith.constant 0 : index
    %c82 = arith.constant 82 : index
    %29 = vector.load %arg1[%c0_30, %c0_31, %c82] : memref<1x4x1536xbf16, #tpu.memory_space<vmem>>, vector<1x4x1280xbf16>
    %30 = vector.shape_cast %29 : vector<1x4x1280xbf16> to vector<4x1280xbf16>
    %c32 = arith.constant 32 : index
    %c0_32 = arith.constant 0 : index
    %31 = vector.load %arg15[%c32, %c0_32] : memref<196x1280xbf16, #tpu.memory_space<vmem>>, vector<4x1280xbf16>
    tpu.vector_store %arg15[%c32, %c0_32], %30 {strides = array<i32>} : memref<196x1280xbf16, #tpu.memory_space<vmem>>, vector<4x1280xbf16>,
    %c0_33 = arith.constant 0 : index
    %c0_34 = arith.constant 0 : index
    %c83 = arith.constant 83 : index
    %32 = vector.load %arg1[%c0_33, %c0_34, %c83] : memref<1x4x1536xbf16, #tpu.memory_space<vmem>>, vector<1x4x1280xbf16>
    %33 = vector.shape_cast %32 : vector<1x4x1280xbf16> to vector<4x1280xbf16>
    %c36 = arith.constant 36 : index
    %c0_35 = arith.constant 0 : index
    %34 = vector.load %arg15[%c36, %c0_35] : memref<196x1280xbf16, #tpu.memory_space<vmem>>, vector<4x1280xbf16>
    tpu.vector_store %arg15[%c36, %c0_35], %33 {strides = array<i32>} : memref<196x1280xbf16, #tpu.memory_space<vmem>>, vector<4x1280xbf16>,
    %c0_36 = arith.constant 0 : index
    %c0_37 = arith.constant 0 : index
    %c84 = arith.constant 84 : index
    %35 = vector.load %arg1[%c0_36, %c0_37, %c84] : memref<1x4x1536xbf16, #tpu.memory_space<vmem>>, vector<1x4x1280xbf16>
    %36 = vector.shape_cast %35 : vector<1x4x1280xbf16> to vector<4x1280xbf16>
    %c40 = arith.constant 40 : index
    %c0_38 = arith.constant 0 : index
    %37 = vector.load %arg15[%c40, %c0_38] : memref<196x1280xbf16, #tpu.memory_space<vmem>>, vector<4x1280xbf16>
    tpu.vector_store %arg15[%c40, %c0_38], %36 {strides = array<i32>} : memref<196x1280xbf16, #tpu.memory_space<vmem>>, vector<4x1280xbf16>,
    %c0_39 = arith.constant 0 : index
    %c0_40 = arith.constant 0 : index
    %c85 = arith.constant 85 : index
    %38 = vector.load %arg1[%c0_39, %c0_40, %c85] : memref<1x4x1536xbf16, #tpu.memory_space<vmem>>, vector<1x4x1280xbf16>
    %39 = vector.shape_cast %38 : vector<1x4x1280xbf16> to vector<4x1280xbf16>
    %c44 = arith.constant 44 : index
    %c0_41 = arith.constant 0 : index
    %40 = vector.load %arg15[%c44, %c0_41] : memref<196x1280xbf16, #tpu.memory_space<vmem>>, vector<4x1280xbf16>
    tpu.vector_store %arg15[%c44, %c0_41], %39 {strides = array<i32>} : memref<196x1280xbf16, #tpu.memory_space<vmem>>, vector<4x1280xbf16>,
    %c0_42 = arith.constant 0 : index
    %c0_43 = arith.constant 0 : index
    %c86 = arith.constant 86 : index
    %41 = vector.load %arg1[%c0_42, %c0_43, %c86] : memref<1x4x1536xbf16, #tpu.memory_space<vmem>>, vector<1x4x1280xbf16>
    %42 = vector.shape_cast %41 : vector<1x4x1280xbf16> to vector<4x1280xbf16>
    %c48 = arith.constant 48 : index
    %c0_44 = arith.constant 0 : index
    %43 = vector.load %arg15[%c48, %c0_44] : memref<196x1280xbf16, #tpu.memory_space<vmem>>, vector<4x1280xbf16>
    tpu.vector_store %arg15[%c48, %c0_44], %42 {strides = array<i32>} : memref<196x1280xbf16, #tpu.memory_space<vmem>>, vector<4x1280xbf16>,
    %c0_45 = arith.constant 0 : index
    %c0_46 = arith.constant 0 : index
    %c87 = arith.constant 87 : index
    %44 = vector.load %arg1[%c0_45, %c0_46, %c87] : memref<1x4x1536xbf16, #tpu.memory_space<vmem>>, vector<1x4x1280xbf16>
    %45 = vector.shape_cast %44 : vector<1x4x1280xbf16> to vector<4x1280xbf16>
    %c52 = arith.constant 52 : index
    %c0_47 = arith.constant 0 : index
    %46 = vector.load %arg15[%c52, %c0_47] : memref<196x1280xbf16, #tpu.memory_space<vmem>>, vector<4x1280xbf16>
    tpu.vector_store %arg15[%c52, %c0_47], %45 {strides = array<i32>} : memref<196x1280xbf16, #tpu.memory_space<vmem>>, vector<4x1280xbf16>,
    %c0_48 = arith.constant 0 : index
    %c0_49 = arith.constant 0 : index
    %c103 = arith.constant 103 : index
    %47 = vector.load %arg1[%c0_48, %c0_49, %c103] : memref<1x4x1536xbf16, #tpu.memory_space<vmem>>, vector<1x4x1280xbf16>
    %48 = vector.shape_cast %47 : vector<1x4x1280xbf16> to vector<4x1280xbf16>
    %c56 = arith.constant 56 : index
    %c0_50 = arith.constant 0 : index
    %49 = vector.load %arg15[%c56, %c0_50] : memref<196x1280xbf16, #tpu.memory_space<vmem>>, vector<4x1280xbf16>
    tpu.vector_store %arg15[%c56, %c0_50], %48 {strides = array<i32>} : memref<196x1280xbf16, #tpu.memory_space<vmem>>, vector<4x1280xbf16>,
    %c0_51 = arith.constant 0 : index
    %c0_52 = arith.constant 0 : index
    %c104 = arith.constant 104 : index
    %50 = vector.load %arg1[%c0_51, %c0_52, %c104] : memref<1x4x1536xbf16, #tpu.memory_space<vmem>>, vector<1x4x1280xbf16>
    %51 = vector.shape_cast %50 : vector<1x4x1280xbf16> to vector<4x1280xbf16>
    %c60_53 = arith.constant 60 : index
    %c0_54 = arith.constant 0 : index
    %52 = vector.load %arg15[%c60_53, %c0_54] : memref<196x1280xbf16, #tpu.memory_space<vmem>>, vector<4x1280xbf16>
    tpu.vector_store %arg15[%c60_53, %c0_54], %51 {strides = array<i32>} : memref<196x1280xbf16, #tpu.memory_space<vmem>>, vector<4x1280xbf16>,
    %c0_55 = arith.constant 0 : index
    %c0_56 = arith.constant 0 : index
    %c105 = arith.constant 105 : index
    %53 = vector.load %arg1[%c0_55, %c0_56, %c105] : memref<1x4x1536xbf16, #tpu.memory_space<vmem>>, vector<1x4x1280xbf16>
    %54 = vector.shape_cast %53 : vector<1x4x1280xbf16> to vector<4x1280xbf16>
    %c64_57 = arith.constant 64 : index
    %c0_58 = arith.constant 0 : index
    %55 = vector.load %arg15[%c64_57, %c0_58] : memref<196x1280xbf16, #tpu.memory_space<vmem>>, vector<4x1280xbf16>
    tpu.vector_store %arg15[%c64_57, %c0_58], %54 {strides = array<i32>} : memref<196x1280xbf16, #tpu.memory_space<vmem>>, vector<4x1280xbf16>,
    %c0_59 = arith.constant 0 : index
    %c0_60 = arith.constant 0 : index
    %c106 = arith.constant 106 : index
    %56 = vector.load %arg1[%c0_59, %c0_60, %c106] : memref<1x4x1536xbf16, #tpu.memory_space<vmem>>, vector<1x4x1280xbf16>
    %57 = vector.shape_cast %56 : vector<1x4x1280xbf16> to vector<4x1280xbf16>
    %c68 = arith.constant 68 : index
    %c0_61 = arith.constant 0 : index
    %58 = vector.load %arg15[%c68, %c0_61] : memref<196x1280xbf16, #tpu.memory_space<vmem>>, vector<4x1280xbf16>
    tpu.vector_store %arg15[%c68, %c0_61], %57 {strides = array<i32>} : memref<196x1280xbf16, #tpu.memory_space<vmem>>, vector<4x1280xbf16>,
    %c0_62 = arith.constant 0 : index
    %c0_63 = arith.constant 0 : index
    %c107 = arith.constant 107 : index
    %59 = vector.load %arg1[%c0_62, %c0_63, %c107] : memref<1x4x1536xbf16, #tpu.memory_space<vmem>>, vector<1x4x1280xbf16>
    %60 = vector.shape_cast %59 : vector<1x4x1280xbf16> to vector<4x1280xbf16>
    %c72 = arith.constant 72 : index
    %c0_64 = arith.constant 0 : index
    %61 = vector.load %arg15[%c72, %c0_64] : memref<196x1280xbf16, #tpu.memory_space<vmem>>, vector<4x1280xbf16>
    tpu.vector_store %arg15[%c72, %c0_64], %60 {strides = array<i32>} : memref<196x1280xbf16, #tpu.memory_space<vmem>>, vector<4x1280xbf16>,
    %c0_65 = arith.constant 0 : index
    %c0_66 = arith.constant 0 : index
    %c108 = arith.constant 108 : index
    %62 = vector.load %arg1[%c0_65, %c0_66, %c108] : memref<1x4x1536xbf16, #tpu.memory_space<vmem>>, vector<1x4x1280xbf16>
    %63 = vector.shape_cast %62 : vector<1x4x1280xbf16> to vector<4x1280xbf16>
    %c76 = arith.constant 76 : index
    %c0_67 = arith.constant 0 : index
    %64 = vector.load %arg15[%c76, %c0_67] : memref<196x1280xbf16, #tpu.memory_space<vmem>>, vector<4x1280xbf16>
    tpu.vector_store %arg15[%c76, %c0_67], %63 {strides = array<i32>} : memref<196x1280xbf16, #tpu.memory_space<vmem>>, vector<4x1280xbf16>,
    %c0_68 = arith.constant 0 : index
    %c0_69 = arith.constant 0 : index
    %c109 = arith.constant 109 : index
    %65 = vector.load %arg1[%c0_68, %c0_69, %c109] : memref<1x4x1536xbf16, #tpu.memory_space<vmem>>, vector<1x4x1280xbf16>
    %66 = vector.shape_cast %65 : vector<1x4x1280xbf16> to vector<4x1280xbf16>
    %c80 = arith.constant 80 : index
    %c0_70 = arith.constant 0 : index
    %67 = vector.load %arg15[%c80, %c0_70] : memref<196x1280xbf16, #tpu.memory_space<vmem>>, vector<4x1280xbf16>
    tpu.vector_store %arg15[%c80, %c0_70], %66 {strides = array<i32>} : memref<196x1280xbf16, #tpu.memory_space<vmem>>, vector<4x1280xbf16>,
    %c0_71 = arith.constant 0 : index
    %c0_72 = arith.constant 0 : index
    %c125 = arith.constant 125 : index
    %68 = vector.load %arg1[%c0_71, %c0_72, %c125] : memref<1x4x1536xbf16, #tpu.memory_space<vmem>>, vector<1x4x1280xbf16>
    %69 = vector.shape_cast %68 : vector<1x4x1280xbf16> to vector<4x1280xbf16>
    %c84_73 = arith.constant 84 : index
    %c0_74 = arith.constant 0 : index
    %70 = vector.load %arg15[%c84_73, %c0_74] : memref<196x1280xbf16, #tpu.memory_space<vmem>>, vector<4x1280xbf16>
    tpu.vector_store %arg15[%c84_73, %c0_74], %69 {strides = array<i32>} : memref<196x1280xbf16, #tpu.memory_space<vmem>>, vector<4x1280xbf16>,
    %c0_75 = arith.constant 0 : index
    %c0_76 = arith.constant 0 : index
    %c126 = arith.constant 126 : index
    %71 = vector.load %arg1[%c0_75, %c0_76, %c126] : memref<1x4x1536xbf16, #tpu.memory_space<vmem>>, vector<1x4x1280xbf16>
    %72 = vector.shape_cast %71 : vector<1x4x1280xbf16> to vector<4x1280xbf16>
    %c88 = arith.constant 88 : index
    %c0_77 = arith.constant 0 : index
    %73 = vector.load %arg15[%c88, %c0_77] : memref<196x1280xbf16, #tpu.memory_space<vmem>>, vector<4x1280xbf16>
    tpu.vector_store %arg15[%c88, %c0_77], %72 {strides = array<i32>} : memref<196x1280xbf16, #tpu.memory_space<vmem>>, vector<4x1280xbf16>,
    %c0_78 = arith.constant 0 : index
    %c0_79 = arith.constant 0 : index
    %c127 = arith.constant 127 : index
    %74 = vector.load %arg1[%c0_78, %c0_79, %c127] : memref<1x4x1536xbf16, #tpu.memory_space<vmem>>, vector<1x4x1280xbf16>
    %75 = vector.shape_cast %74 : vector<1x4x1280xbf16> to vector<4x1280xbf16>
    %c92 = arith.constant 92 : index
    %c0_80 = arith.constant 0 : index
    %76 = vector.load %arg15[%c92, %c0_80] : memref<196x1280xbf16, #tpu.memory_space<vmem>>, vector<4x1280xbf16>
    tpu.vector_store %arg15[%c92, %c0_80], %75 {strides = array<i32>} : memref<196x1280xbf16, #tpu.memory_space<vmem>>, vector<4x1280xbf16>,
    %c0_81 = arith.constant 0 : index
    %c0_82 = arith.constant 0 : index
    %c128 = arith.constant 128 : index
    %77 = vector.load %arg1[%c0_81, %c0_82, %c128] : memref<1x4x1536xbf16, #tpu.memory_space<vmem>>, vector<1x4x1280xbf16>
    %78 = vector.shape_cast %77 : vector<1x4x1280xbf16> to vector<4x1280xbf16>
    %c96 = arith.constant 96 : index
    %c0_83 = arith.constant 0 : index
    %79 = vector.load %arg15[%c96, %c0_83] : memref<196x1280xbf16, #tpu.memory_space<vmem>>, vector<4x1280xbf16>
    tpu.vector_store %arg15[%c96, %c0_83], %78 {strides = array<i32>} : memref<196x1280xbf16, #tpu.memory_space<vmem>>, vector<4x1280xbf16>,
    %c0_84 = arith.constant 0 : index
    %c0_85 = arith.constant 0 : index
    %c129 = arith.constant 129 : index
    %80 = vector.load %arg1[%c0_84, %c0_85, %c129] : memref<1x4x1536xbf16, #tpu.memory_space<vmem>>, vector<1x4x1280xbf16>
    %81 = vector.shape_cast %80 : vector<1x4x1280xbf16> to vector<4x1280xbf16>
    %c100 = arith.constant 100 : index
    %c0_86 = arith.constant 0 : index
    %82 = vector.load %arg15[%c100, %c0_86] : memref<196x1280xbf16, #tpu.memory_space<vmem>>, vector<4x1280xbf16>
    tpu.vector_store %arg15[%c100, %c0_86], %81 {strides = array<i32>} : memref<196x1280xbf16, #tpu.memory_space<vmem>>, vector<4x1280xbf16>,
    %c0_87 = arith.constant 0 : index
    %c0_88 = arith.constant 0 : index
    %c130 = arith.constant 130 : index
    %83 = vector.load %arg1[%c0_87, %c0_88, %c130] : memref<1x4x1536xbf16, #tpu.memory_space<vmem>>, vector<1x4x1280xbf16>
    %84 = vector.shape_cast %83 : vector<1x4x1280xbf16> to vector<4x1280xbf16>
    %c104_89 = arith.constant 104 : index
    %c0_90 = arith.constant 0 : index
    %85 = vector.load %arg15[%c104_89, %c0_90] : memref<196x1280xbf16, #tpu.memory_space<vmem>>, vector<4x1280xbf16>
    tpu.vector_store %arg15[%c104_89, %c0_90], %84 {strides = array<i32>} : memref<196x1280xbf16, #tpu.memory_space<vmem>>, vector<4x1280xbf16>,
    %c0_91 = arith.constant 0 : index
    %c0_92 = arith.constant 0 : index
    %c131 = arith.constant 131 : index
    %86 = vector.load %arg1[%c0_91, %c0_92, %c131] : memref<1x4x1536xbf16, #tpu.memory_space<vmem>>, vector<1x4x1280xbf16>
    %87 = vector.shape_cast %86 : vector<1x4x1280xbf16> to vector<4x1280xbf16>
    %c108_93 = arith.constant 108 : index
    %c0_94 = arith.constant 0 : index
    %88 = vector.load %arg15[%c108_93, %c0_94] : memref<196x1280xbf16, #tpu.memory_space<vmem>>, vector<4x1280xbf16>
    tpu.vector_store %arg15[%c108_93, %c0_94], %87 {strides = array<i32>} : memref<196x1280xbf16, #tpu.memory_space<vmem>>, vector<4x1280xbf16>,
    %c0_95 = arith.constant 0 : index
    %c0_96 = arith.constant 0 : index
    %c147 = arith.constant 147 : index
    %89 = vector.load %arg1[%c0_95, %c0_96, %c147] : memref<1x4x1536xbf16, #tpu.memory_space<vmem>>, vector<1x4x1280xbf16>
    %90 = vector.shape_cast %89 : vector<1x4x1280xbf16> to vector<4x1280xbf16>
    %c112 = arith.constant 112 : index
    %c0_97 = arith.constant 0 : index
    %91 = vector.load %arg15[%c112, %c0_97] : memref<196x1280xbf16, #tpu.memory_space<vmem>>, vector<4x1280xbf16>
    tpu.vector_store %arg15[%c112, %c0_97], %90 {strides = array<i32>} : memref<196x1280xbf16, #tpu.memory_space<vmem>>, vector<4x1280xbf16>,
    %c0_98 = arith.constant 0 : index
    %c0_99 = arith.constant 0 : index
    %c148 = arith.constant 148 : index
    %92 = vector.load %arg1[%c0_98, %c0_99, %c148] : memref<1x4x1536xbf16, #tpu.memory_space<vmem>>, vector<1x4x1280xbf16>
    %93 = vector.shape_cast %92 : vector<1x4x1280xbf16> to vector<4x1280xbf16>
    %c116 = arith.constant 116 : index
    %c0_100 = arith.constant 0 : index
    %94 = vector.load %arg15[%c116, %c0_100] : memref<196x1280xbf16, #tpu.memory_space<vmem>>, vector<4x1280xbf16>
    tpu.vector_store %arg15[%c116, %c0_100], %93 {strides = array<i32>} : memref<196x1280xbf16, #tpu.memory_space<vmem>>, vector<4x1280xbf16>,
    %c0_101 = arith.constant 0 : index
    %c0_102 = arith.constant 0 : index
    %c149 = arith.constant 149 : index
    %95 = vector.load %arg1[%c0_101, %c0_102, %c149] : memref<1x4x1536xbf16, #tpu.memory_space<vmem>>, vector<1x4x1280xbf16>
    %96 = vector.shape_cast %95 : vector<1x4x1280xbf16> to vector<4x1280xbf16>
    %c120 = arith.constant 120 : index
    %c0_103 = arith.constant 0 : index
    %97 = vector.load %arg15[%c120, %c0_103] : memref<196x1280xbf16, #tpu.memory_space<vmem>>, vector<4x1280xbf16>
    tpu.vector_store %arg15[%c120, %c0_103], %96 {strides = array<i32>} : memref<196x1280xbf16, #tpu.memory_space<vmem>>, vector<4x1280xbf16>,
    %c0_104 = arith.constant 0 : index
    %c0_105 = arith.constant 0 : index
    %c150 = arith.constant 150 : index
    %98 = vector.load %arg1[%c0_104, %c0_105, %c150] : memref<1x4x1536xbf16, #tpu.memory_space<vmem>>, vector<1x4x1280xbf16>
    %99 = vector.shape_cast %98 : vector<1x4x1280xbf16> to vector<4x1280xbf16>
    %c124 = arith.constant 124 : index
    %c0_106 = arith.constant 0 : index
    %100 = vector.load %arg15[%c124, %c0_106] : memref<196x1280xbf16, #tpu.memory_space<vmem>>, vector<4x1280xbf16>
    tpu.vector_store %arg15[%c124, %c0_106], %99 {strides = array<i32>} : memref<196x1280xbf16, #tpu.memory_space<vmem>>, vector<4x1280xbf16>,
    %c0_107 = arith.constant 0 : index
    %c0_108 = arith.constant 0 : index
    %c151 = arith.constant 151 : index
    %101 = vector.load %arg1[%c0_107, %c0_108, %c151] : memref<1x4x1536xbf16, #tpu.memory_space<vmem>>, vector<1x4x1280xbf16>
    %102 = vector.shape_cast %101 : vector<1x4x1280xbf16> to vector<4x1280xbf16>
    %c128_109 = arith.constant 128 : index
    %c0_110 = arith.constant 0 : index
    %103 = vector.load %arg15[%c128_109, %c0_110] : memref<196x1280xbf16, #tpu.memory_space<vmem>>, vector<4x1280xbf16>
    tpu.vector_store %arg15[%c128_109, %c0_110], %102 {strides = array<i32>} : memref<196x1280xbf16, #tpu.memory_space<vmem>>, vector<4x1280xbf16>,
    %c0_111 = arith.constant 0 : index
    %c0_112 = arith.constant 0 : index
    %c152 = arith.constant 152 : index
    %104 = vector.load %arg1[%c0_111, %c0_112, %c152] : memref<1x4x1536xbf16, #tpu.memory_space<vmem>>, vector<1x4x1280xbf16>
    %105 = vector.shape_cast %104 : vector<1x4x1280xbf16> to vector<4x1280xbf16>
    %c132 = arith.constant 132 : index
    %c0_113 = arith.constant 0 : index
    %106 = vector.load %arg15[%c132, %c0_113] : memref<196x1280xbf16, #tpu.memory_space<vmem>>, vector<4x1280xbf16>
    tpu.vector_store %arg15[%c132, %c0_113], %105 {strides = array<i32>} : memref<196x1280xbf16, #tpu.memory_space<vmem>>, vector<4x1280xbf16>,
    %c0_114 = arith.constant 0 : index
    %c0_115 = arith.constant 0 : index
    %c153 = arith.constant 153 : index
    %107 = vector.load %arg1[%c0_114, %c0_115, %c153] : memref<1x4x1536xbf16, #tpu.memory_space<vmem>>, vector<1x4x1280xbf16>
    %108 = vector.shape_cast %107 : vector<1x4x1280xbf16> to vector<4x1280xbf16>
    %c136 = arith.constant 136 : index
    %c0_116 = arith.constant 0 : index
    %109 = vector.load %arg15[%c136, %c0_116] : memref<196x1280xbf16, #tpu.memory_space<vmem>>, vector<4x1280xbf16>
    tpu.vector_store %arg15[%c136, %c0_116], %108 {strides = array<i32>} : memref<196x1280xbf16, #tpu.memory_space<vmem>>, vector<4x1280xbf16>,
    %c0_117 = arith.constant 0 : index
    %c0_118 = arith.constant 0 : index
    %c169 = arith.constant 169 : index
    %110 = vector.load %arg1[%c0_117, %c0_118, %c169] : memref<1x4x1536xbf16, #tpu.memory_space<vmem>>, vector<1x4x1280xbf16>
    %111 = vector.shape_cast %110 : vector<1x4x1280xbf16> to vector<4x1280xbf16>
    %c140 = arith.constant 140 : index
    %c0_119 = arith.constant 0 : index
    %112 = vector.load %arg15[%c140, %c0_119] : memref<196x1280xbf16, #tpu.memory_space<vmem>>, vector<4x1280xbf16>
    tpu.vector_store %arg15[%c140, %c0_119], %111 {strides = array<i32>} : memref<196x1280xbf16, #tpu.memory_space<vmem>>, vector<4x1280xbf16>,
    %c0_120 = arith.constant 0 : index
    %c0_121 = arith.constant 0 : index
    %c170 = arith.constant 170 : index
    %113 = vector.load %arg1[%c0_120, %c0_121, %c170] : memref<1x4x1536xbf16, #tpu.memory_space<vmem>>, vector<1x4x1280xbf16>
    %114 = vector.shape_cast %113 : vector<1x4x1280xbf16> to vector<4x1280xbf16>
    %c144 = arith.constant 144 : index
    %c0_122 = arith.constant 0 : index
    %115 = vector.load %arg15[%c144, %c0_122] : memref<196x1280xbf16, #tpu.memory_space<vmem>>, vector<4x1280xbf16>
    tpu.vector_store %arg15[%c144, %c0_122], %114 {strides = array<i32>} : memref<196x1280xbf16, #tpu.memory_space<vmem>>, vector<4x1280xbf16>,
    %c0_123 = arith.constant 0 : index
    %c0_124 = arith.constant 0 : index
    %c171 = arith.constant 171 : index
    %116 = vector.load %arg1[%c0_123, %c0_124, %c171] : memref<1x4x1536xbf16, #tpu.memory_space<vmem>>, vector<1x4x1280xbf16>
    %117 = vector.shape_cast %116 : vector<1x4x1280xbf16> to vector<4x1280xbf16>
    %c148_125 = arith.constant 148 : index
    %c0_126 = arith.constant 0 : index
    %118 = vector.load %arg15[%c148_125, %c0_126] : memref<196x1280xbf16, #tpu.memory_space<vmem>>, vector<4x1280xbf16>
    tpu.vector_store %arg15[%c148_125, %c0_126], %117 {strides = array<i32>} : memref<196x1280xbf16, #tpu.memory_space<vmem>>, vector<4x1280xbf16>,
    %c0_127 = arith.constant 0 : index
    %c0_128 = arith.constant 0 : index
    %c172 = arith.constant 172 : index
    %119 = vector.load %arg1[%c0_127, %c0_128, %c172] : memref<1x4x1536xbf16, #tpu.memory_space<vmem>>, vector<1x4x1280xbf16>
    %120 = vector.shape_cast %119 : vector<1x4x1280xbf16> to vector<4x1280xbf16>
    %c152_129 = arith.constant 152 : index
    %c0_130 = arith.constant 0 : index
    %121 = vector.load %arg15[%c152_129, %c0_130] : memref<196x1280xbf16, #tpu.memory_space<vmem>>, vector<4x1280xbf16>
    tpu.vector_store %arg15[%c152_129, %c0_130], %120 {strides = array<i32>} : memref<196x1280xbf16, #tpu.memory_space<vmem>>, vector<4x1280xbf16>,
    %c0_131 = arith.constant 0 : index
    %c0_132 = arith.constant 0 : index
    %c173 = arith.constant 173 : index
    %122 = vector.load %arg1[%c0_131, %c0_132, %c173] : memref<1x4x1536xbf16, #tpu.memory_space<vmem>>, vector<1x4x1280xbf16>
    %123 = vector.shape_cast %122 : vector<1x4x1280xbf16> to vector<4x1280xbf16>
    %c156 = arith.constant 156 : index
    %c0_133 = arith.constant 0 : index
    %124 = vector.load %arg15[%c156, %c0_133] : memref<196x1280xbf16, #tpu.memory_space<vmem>>, vector<4x1280xbf16>
    tpu.vector_store %arg15[%c156, %c0_133], %123 {strides = array<i32>} : memref<196x1280xbf16, #tpu.memory_space<vmem>>, vector<4x1280xbf16>,
    %c0_134 = arith.constant 0 : index
    %c0_135 = arith.constant 0 : index
    %c174 = arith.constant 174 : index
    %125 = vector.load %arg1[%c0_134, %c0_135, %c174] : memref<1x4x1536xbf16, #tpu.memory_space<vmem>>, vector<1x4x1280xbf16>
    %126 = vector.shape_cast %125 : vector<1x4x1280xbf16> to vector<4x1280xbf16>
    %c160 = arith.constant 160 : index
    %c0_136 = arith.constant 0 : index
    %127 = vector.load %arg15[%c160, %c0_136] : memref<196x1280xbf16, #tpu.memory_space<vmem>>, vector<4x1280xbf16>
    tpu.vector_store %arg15[%c160, %c0_136], %126 {strides = array<i32>} : memref<196x1280xbf16, #tpu.memory_space<vmem>>, vector<4x1280xbf16>,
    %c0_137 = arith.constant 0 : index
    %c0_138 = arith.constant 0 : index
    %c175 = arith.constant 175 : index
    %128 = vector.load %arg1[%c0_137, %c0_138, %c175] : memref<1x4x1536xbf16, #tpu.memory_space<vmem>>, vector<1x4x1280xbf16>
    %129 = vector.shape_cast %128 : vector<1x4x1280xbf16> to vector<4x1280xbf16>
    %c164 = arith.constant 164 : index
    %c0_139 = arith.constant 0 : index
    %130 = vector.load %arg15[%c164, %c0_139] : memref<196x1280xbf16, #tpu.memory_space<vmem>>, vector<4x1280xbf16>
    tpu.vector_store %arg15[%c164, %c0_139], %129 {strides = array<i32>} : memref<196x1280xbf16, #tpu.memory_space<vmem>>, vector<4x1280xbf16>,
    %c0_140 = arith.constant 0 : index
    %c0_141 = arith.constant 0 : index
    %c191 = arith.constant 191 : index
    %131 = vector.load %arg1[%c0_140, %c0_141, %c191] : memref<1x4x1536xbf16, #tpu.memory_space<vmem>>, vector<1x4x1280xbf16>
    %132 = vector.shape_cast %131 : vector<1x4x1280xbf16> to vector<4x1280xbf16>
    %c168 = arith.constant 168 : index
    %c0_142 = arith.constant 0 : index
    %133 = vector.load %arg15[%c168, %c0_142] : memref<196x1280xbf16, #tpu.memory_space<vmem>>, vector<4x1280xbf16>
    tpu.vector_store %arg15[%c168, %c0_142], %132 {strides = array<i32>} : memref<196x1280xbf16, #tpu.memory_space<vmem>>, vector<4x1280xbf16>,
    %c0_143 = arith.constant 0 : index
    %c0_144 = arith.constant 0 : index
    %c192 = arith.constant 192 : index
    %134 = vector.load %arg1[%c0_143, %c0_144, %c192] : memref<1x4x1536xbf16, #tpu.memory_space<vmem>>, vector<1x4x1280xbf16>
    %135 = vector.shape_cast %134 : vector<1x4x1280xbf16> to vector<4x1280xbf16>
    %c172_145 = arith.constant 172 : index
    %c0_146 = arith.constant 0 : index
    %136 = vector.load %arg15[%c172_145, %c0_146] : memref<196x1280xbf16, #tpu.memory_space<vmem>>, vector<4x1280xbf16>
    tpu.vector_store %arg15[%c172_145, %c0_146], %135 {strides = array<i32>} : memref<196x1280xbf16, #tpu.memory_space<vmem>>, vector<4x1280xbf16>,
    %c0_147 = arith.constant 0 : index
    %c0_148 = arith.constant 0 : index
    %c193 = arith.constant 193 : index
    %137 = vector.load %arg1[%c0_147, %c0_148, %c193] : memref<1x4x1536xbf16, #tpu.memory_space<vmem>>, vector<1x4x1280xbf16>
    %138 = vector.shape_cast %137 : vector<1x4x1280xbf16> to vector<4x1280xbf16>
    %c176 = arith.constant 176 : index
    %c0_149 = arith.constant 0 : index
    %139 = vector.load %arg15[%c176, %c0_149] : memref<196x1280xbf16, #tpu.memory_space<vmem>>, vector<4x1280xbf16>
    tpu.vector_store %arg15[%c176, %c0_149], %138 {strides = array<i32>} : memref<196x1280xbf16, #tpu.memory_space<vmem>>, vector<4x1280xbf16>,
    %c0_150 = arith.constant 0 : index
    %c0_151 = arith.constant 0 : index
    %c194 = arith.constant 194 : index
    %140 = vector.load %arg1[%c0_150, %c0_151, %c194] : memref<1x4x1536xbf16, #tpu.memory_space<vmem>>, vector<1x4x1280xbf16>
    %141 = vector.shape_cast %140 : vector<1x4x1280xbf16> to vector<4x1280xbf16>
    %c180 = arith.constant 180 : index
    %c0_152 = arith.constant 0 : index
    %142 = vector.load %arg15[%c180, %c0_152] : memref<196x1280xbf16, #tpu.memory_space<vmem>>, vector<4x1280xbf16>
    tpu.vector_store %arg15[%c180, %c0_152], %141 {strides = array<i32>} : memref<196x1280xbf16, #tpu.memory_space<vmem>>, vector<4x1280xbf16>,
    %c0_153 = arith.constant 0 : index
    %c0_154 = arith.constant 0 : index
    %c195 = arith.constant 195 : index
    %143 = vector.load %arg1[%c0_153, %c0_154, %c195] : memref<1x4x1536xbf16, #tpu.memory_space<vmem>>, vector<1x4x1280xbf16>
    %144 = vector.shape_cast %143 : vector<1x4x1280xbf16> to vector<4x1280xbf16>
    %c184 = arith.constant 184 : index
    %c0_155 = arith.constant 0 : index
    %145 = vector.load %arg15[%c184, %c0_155] : memref<196x1280xbf16, #tpu.memory_space<vmem>>, vector<4x1280xbf16>
    tpu.vector_store %arg15[%c184, %c0_155], %144 {strides = array<i32>} : memref<196x1280xbf16, #tpu.memory_space<vmem>>, vector<4x1280xbf16>,
    %c0_156 = arith.constant 0 : index
    %c0_157 = arith.constant 0 : index
    %c196 = arith.constant 196 : index
    %146 = vector.load %arg1[%c0_156, %c0_157, %c196] : memref<1x4x1536xbf16, #tpu.memory_space<vmem>>, vector<1x4x1280xbf16>
    %147 = vector.shape_cast %146 : vector<1x4x1280xbf16> to vector<4x1280xbf16>
    %c188 = arith.constant 188 : index
    %c0_158 = arith.constant 0 : index
    %148 = vector.load %arg15[%c188, %c0_158] : memref<196x1280xbf16, #tpu.memory_space<vmem>>, vector<4x1280xbf16>
    tpu.vector_store %arg15[%c188, %c0_158], %147 {strides = array<i32>} : memref<196x1280xbf16, #tpu.memory_space<vmem>>, vector<4x1280xbf16>,
    %c0_159 = arith.constant 0 : index
    %c0_160 = arith.constant 0 : index
    %c197 = arith.constant 197 : index
    %149 = vector.load %arg1[%c0_159, %c0_160, %c197] : memref<1x4x1536xbf16, #tpu.memory_space<vmem>>, vector<1x4x1280xbf16>
    %150 = vector.shape_cast %149 : vector<1x4x1280xbf16> to vector<4x1280xbf16>
    %c192_161 = arith.constant 192 : index
    %c0_162 = arith.constant 0 : index
    %151 = vector.load %arg15[%c192_161, %c0_162] : memref<196x1280xbf16, #tpu.memory_space<vmem>>, vector<4x1280xbf16>
    tpu.vector_store %arg15[%c192_161, %c0_162], %150 {strides = array<i32>} : memref<196x1280xbf16, #tpu.memory_space<vmem>>, vector<4x1280xbf16>,
    %c0_163 = arith.constant 0 : index
    %c0_164 = arith.constant 0 : index
    %152 = vector.load %arg3[%c0_163, %c0_164] : memref<16x196xbf16, #tpu.memory_space<vmem>>, vector<16x196xbf16>
    %c0_165 = arith.constant 0 : index
    %c0_166 = arith.constant 0 : index
    %153 = vector.load %arg15[%c0_165, %c0_166] : memref<196x1280xbf16, #tpu.memory_space<vmem>>, vector<196x1280xbf16>
    %cst_167 = arith.constant dense<0.000000e+00> : vector<16x1280xf32>
    %154 = tpu.matmul %152, %153, %cst_167 {dimension_numbers = #tpu.dot_dimension_numbers<[1], [0], [0], [1], [0, 0, 1, 1], [], []>} : vector<16x196xbf16>, vector<196x1280xbf16>, vector<16x1280xf32> -> vector<16x1280xf32>
    %c0_168 = arith.constant 0 : index
    %c0_169 = arith.constant 0 : index
    %155 = vector.load %arg4[%c0_168, %c0_169] : memref<16x1xf32, #tpu.memory_space<vmem>>, vector<16x1xf32>
    %156 = vector.broadcast %155 : vector<16x1xf32> to vector<16x1280xf32>
    %157 = arith.addf %154, %156 : vector<16x1280xf32>
    %cst_170 = arith.constant 0.00999999977 : f32
    %158 = vector.broadcast %cst_170 : f32 to vector<16x1280xf32>
    %159 = arith.mulf %158, %157 : vector<16x1280xf32>
    %160 = arith.maximumf %157, %159 : vector<16x1280xf32>
    %161 = vector.broadcast %4 : vector<1x1280xf32> to vector<16x1280xf32>
    %162 = arith.mulf %160, %161 : vector<16x1280xf32>
    %163 = arith.truncf %162 : vector<16x1280xf32> to vector<16x1280xbf16>
    %c0_171 = arith.constant 0 : index
    %c0_172 = arith.constant 0 : index
    %164 = vector.load %arg16[%c0_171, %c0_172] : memref<16x1280xbf16, #tpu.memory_space<vmem>>, vector<16x1280xbf16>
    tpu.vector_store %arg16[%c0_171, %c0_172], %163 {strides = array<i32>} : memref<16x1280xbf16, #tpu.memory_space<vmem>>, vector<16x1280xbf16>,
    %c0_173 = arith.constant 0 : index
    %c0_174 = arith.constant 0 : index
    %165 = vector.load %arg5[%c0_173, %c0_174] : memref<4x16xbf16, #tpu.memory_space<vmem>>, vector<4x16xbf16>
    %c0_175 = arith.constant 0 : index
    %c0_176 = arith.constant 0 : index
    %166 = vector.load %arg16[%c0_175, %c0_176] : memref<16x1280xbf16, #tpu.memory_space<vmem>>, vector<16x1280xbf16>
    %cst_177 = arith.constant dense<0.000000e+00> : vector<4x1280xf32>
    %167 = tpu.matmul %165, %166, %cst_177 {dimension_numbers = #tpu.dot_dimension_numbers<[1], [0], [0], [1], [0, 0, 1, 1], [], []>} : vector<4x16xbf16>, vector<16x1280xbf16>, vector<4x1280xf32> -> vector<4x1280xf32>
    %c0_178 = arith.constant 0 : index
    %c0_179 = arith.constant 0 : index
    %168 = vector.load %arg6[%c0_178, %c0_179] : memref<4x1xf32, #tpu.memory_space<vmem>>, vector<4x1xf32>
    %169 = vector.broadcast %168 : vector<4x1xf32> to vector<4x1280xf32>
    %170 = arith.addf %167, %169 : vector<4x1280xf32>
    %cst_180 = arith.constant 0.00999999977 : f32
    %171 = vector.broadcast %cst_180 : f32 to vector<4x1280xf32>
    %172 = arith.mulf %171, %170 : vector<4x1280xf32>
    %173 = arith.maximumf %170, %172 : vector<4x1280xf32>
    %174 = vector.broadcast %4 : vector<1x1280xf32> to vector<4x1280xf32>
    %175 = arith.mulf %173, %174 : vector<4x1280xf32>
    %176 = arith.truncf %175 : vector<4x1280xf32> to vector<4x1280xbf16>
    %c0_181 = arith.constant 0 : index
    %c128_182 = arith.constant 128 : index
    %177 = vector.load %arg14[%c0_181, %c128_182] : memref<16x1536xbf16, #tpu.memory_space<vmem>>, vector<4x1280xbf16>
    tpu.vector_store %arg14[%c0_181, %c128_182], %176 {strides = array<i32>} : memref<16x1536xbf16, #tpu.memory_space<vmem>>, vector<4x1280xbf16>,
    %c0_183 = arith.constant 0 : index
    %c105_184 = arith.constant 105 : index
    %178 = vector.load %arg14[%c0_183, %c105_184] : memref<16x1536xbf16, #tpu.memory_space<vmem>>, vector<4x1280xbf16>
    %c0_185 = arith.constant 0 : index
    %c0_186 = arith.constant 0 : index
    %179 = vector.load %arg15[%c0_185, %c0_186] : memref<196x1280xbf16, #tpu.memory_space<vmem>>, vector<4x1280xbf16>
    tpu.vector_store %arg15[%c0_185, %c0_186], %178 {strides = array<i32>} : memref<196x1280xbf16, #tpu.memory_space<vmem>>, vector<4x1280xbf16>,
    %c0_187 = arith.constant 0 : index
    %c106_188 = arith.constant 106 : index
    %180 = vector.load %arg14[%c0_187, %c106_188] : memref<16x1536xbf16, #tpu.memory_space<vmem>>, vector<4x1280xbf16>
    %c4_189 = arith.constant 4 : index
    %c0_190 = arith.constant 0 : index
    %181 = vector.load %arg15[%c4_189, %c0_190] : memref<196x1280xbf16, #tpu.memory_space<vmem>>, vector<4x1280xbf16>
    tpu.vector_store %arg15[%c4_189, %c0_190], %180 {strides = array<i32>} : memref<196x1280xbf16, #tpu.memory_space<vmem>>, vector<4x1280xbf16>,
    %c0_191 = arith.constant 0 : index
    %c107_192 = arith.constant 107 : index
    %182 = vector.load %arg14[%c0_191, %c107_192] : memref<16x1536xbf16, #tpu.memory_space<vmem>>, vector<4x1280xbf16>
    %c8_193 = arith.constant 8 : index
    %c0_194 = arith.constant 0 : index
    %183 = vector.load %arg15[%c8_193, %c0_194] : memref<196x1280xbf16, #tpu.memory_space<vmem>>, vector<4x1280xbf16>
    tpu.vector_store %arg15[%c8_193, %c0_194], %182 {strides = array<i32>} : memref<196x1280xbf16, #tpu.memory_space<vmem>>, vector<4x1280xbf16>,
    %c0_195 = arith.constant 0 : index
    %c127_196 = arith.constant 127 : index
    %184 = vector.load %arg14[%c0_195, %c127_196] : memref<16x1536xbf16, #tpu.memory_space<vmem>>, vector<4x1280xbf16>
    %c12_197 = arith.constant 12 : index
    %c0_198 = arith.constant 0 : index
    %185 = vector.load %arg15[%c12_197, %c0_198] : memref<196x1280xbf16, #tpu.memory_space<vmem>>, vector<4x1280xbf16>
    tpu.vector_store %arg15[%c12_197, %c0_198], %184 {strides = array<i32>} : memref<196x1280xbf16, #tpu.memory_space<vmem>>, vector<4x1280xbf16>,
    %c0_199 = arith.constant 0 : index
    %c128_200 = arith.constant 128 : index
    %186 = vector.load %arg14[%c0_199, %c128_200] : memref<16x1536xbf16, #tpu.memory_space<vmem>>, vector<4x1280xbf16>
    %c16_201 = arith.constant 16 : index
    %c0_202 = arith.constant 0 : index
    %187 = vector.load %arg15[%c16_201, %c0_202] : memref<196x1280xbf16, #tpu.memory_space<vmem>>, vector<4x1280xbf16>
    tpu.vector_store %arg15[%c16_201, %c0_202], %186 {strides = array<i32>} : memref<196x1280xbf16, #tpu.memory_space<vmem>>, vector<4x1280xbf16>,
    %c0_203 = arith.constant 0 : index
    %c129_204 = arith.constant 129 : index
    %188 = vector.load %arg14[%c0_203, %c129_204] : memref<16x1536xbf16, #tpu.memory_space<vmem>>, vector<4x1280xbf16>
    %c20_205 = arith.constant 20 : index
    %c0_206 = arith.constant 0 : index
    %189 = vector.load %arg15[%c20_205, %c0_206] : memref<196x1280xbf16, #tpu.memory_space<vmem>>, vector<4x1280xbf16>
    tpu.vector_store %arg15[%c20_205, %c0_206], %188 {strides = array<i32>} : memref<196x1280xbf16, #tpu.memory_space<vmem>>, vector<4x1280xbf16>,
    %c0_207 = arith.constant 0 : index
    %c149_208 = arith.constant 149 : index
    %190 = vector.load %arg14[%c0_207, %c149_208] : memref<16x1536xbf16, #tpu.memory_space<vmem>>, vector<4x1280xbf16>
    %c24_209 = arith.constant 24 : index
    %c0_210 = arith.constant 0 : index
    %191 = vector.load %arg15[%c24_209, %c0_210] : memref<196x1280xbf16, #tpu.memory_space<vmem>>, vector<4x1280xbf16>
    tpu.vector_store %arg15[%c24_209, %c0_210], %190 {strides = array<i32>} : memref<196x1280xbf16, #tpu.memory_space<vmem>>, vector<4x1280xbf16>,
    %c0_211 = arith.constant 0 : index
    %c150_212 = arith.constant 150 : index
    %192 = vector.load %arg14[%c0_211, %c150_212] : memref<16x1536xbf16, #tpu.memory_space<vmem>>, vector<4x1280xbf16>
    %c28_213 = arith.constant 28 : index
    %c0_214 = arith.constant 0 : index
    %193 = vector.load %arg15[%c28_213, %c0_214] : memref<196x1280xbf16, #tpu.memory_space<vmem>>, vector<4x1280xbf16>
    tpu.vector_store %arg15[%c28_213, %c0_214], %192 {strides = array<i32>} : memref<196x1280xbf16, #tpu.memory_space<vmem>>, vector<4x1280xbf16>,
    %c0_215 = arith.constant 0 : index
    %c151_216 = arith.constant 151 : index
    %194 = vector.load %arg14[%c0_215, %c151_216] : memref<16x1536xbf16, #tpu.memory_space<vmem>>, vector<4x1280xbf16>
    %c32_217 = arith.constant 32 : index
    %c0_218 = arith.constant 0 : index
    %195 = vector.load %arg15[%c32_217, %c0_218] : memref<196x1280xbf16, #tpu.memory_space<vmem>>, vector<4x1280xbf16>
    tpu.vector_store %arg15[%c32_217, %c0_218], %194 {strides = array<i32>} : memref<196x1280xbf16, #tpu.memory_space<vmem>>, vector<4x1280xbf16>,
    %c0_219 = arith.constant 0 : index
    %c0_220 = arith.constant 0 : index
    %196 = vector.load %arg7[%c0_219, %c0_220] : memref<4x36xbf16, #tpu.memory_space<vmem>>, vector<4x36xbf16>
    %c0_221 = arith.constant 0 : index
    %c0_222 = arith.constant 0 : index
    %197 = vector.load %arg15[%c0_221, %c0_222] : memref<196x1280xbf16, #tpu.memory_space<vmem>>, vector<36x1280xbf16>
    %cst_223 = arith.constant dense<0.000000e+00> : vector<4x1280xf32>
    %198 = tpu.matmul %196, %197, %cst_223 {dimension_numbers = #tpu.dot_dimension_numbers<[1], [0], [0], [1], [0, 0, 1, 1], [], []>} : vector<4x36xbf16>, vector<36x1280xbf16>, vector<4x1280xf32> -> vector<4x1280xf32>
    %cst_224 = arith.constant 0.000000e+00 : f32
    %199 = vector.broadcast %cst_224 : f32 to vector<4x1280xf32>
    %200 = arith.maximumf %198, %199 : vector<4x1280xf32>
    %201 = vector.broadcast %4 : vector<1x1280xf32> to vector<4x1280xf32>
    %202 = arith.mulf %200, %201 : vector<4x1280xf32>
    %203 = arith.truncf %202 : vector<4x1280xf32> to vector<4x1280xbf16>
    %c4_225 = arith.constant 4 : index
    %c128_226 = arith.constant 128 : index
    %204 = vector.load %arg14[%c4_225, %c128_226] : memref<16x1536xbf16, #tpu.memory_space<vmem>>, vector<4x1280xbf16>
    tpu.vector_store %arg14[%c4_225, %c128_226], %203 {strides = array<i32>} : memref<16x1536xbf16, #tpu.memory_space<vmem>>, vector<4x1280xbf16>,
    %c4_227 = arith.constant 4 : index
    %c105_228 = arith.constant 105 : index
    %205 = vector.load %arg14[%c4_227, %c105_228] : memref<16x1536xbf16, #tpu.memory_space<vmem>>, vector<4x1280xbf16>
    %c36_229 = arith.constant 36 : index
    %c0_230 = arith.constant 0 : index
    %206 = vector.load %arg15[%c36_229, %c0_230] : memref<196x1280xbf16, #tpu.memory_space<vmem>>, vector<4x1280xbf16>
    tpu.vector_store %arg15[%c36_229, %c0_230], %205 {strides = array<i32>} : memref<196x1280xbf16, #tpu.memory_space<vmem>>, vector<4x1280xbf16>,
    %c4_231 = arith.constant 4 : index
    %c106_232 = arith.constant 106 : index
    %207 = vector.load %arg14[%c4_231, %c106_232] : memref<16x1536xbf16, #tpu.memory_space<vmem>>, vector<4x1280xbf16>
    %c40_233 = arith.constant 40 : index
    %c0_234 = arith.constant 0 : index
    %208 = vector.load %arg15[%c40_233, %c0_234] : memref<196x1280xbf16, #tpu.memory_space<vmem>>, vector<4x1280xbf16>
    tpu.vector_store %arg15[%c40_233, %c0_234], %207 {strides = array<i32>} : memref<196x1280xbf16, #tpu.memory_space<vmem>>, vector<4x1280xbf16>,
    %c4_235 = arith.constant 4 : index
    %c107_236 = arith.constant 107 : index
    %209 = vector.load %arg14[%c4_235, %c107_236] : memref<16x1536xbf16, #tpu.memory_space<vmem>>, vector<4x1280xbf16>
    %c44_237 = arith.constant 44 : index
    %c0_238 = arith.constant 0 : index
    %210 = vector.load %arg15[%c44_237, %c0_238] : memref<196x1280xbf16, #tpu.memory_space<vmem>>, vector<4x1280xbf16>
    tpu.vector_store %arg15[%c44_237, %c0_238], %209 {strides = array<i32>} : memref<196x1280xbf16, #tpu.memory_space<vmem>>, vector<4x1280xbf16>,
    %c4_239 = arith.constant 4 : index
    %c127_240 = arith.constant 127 : index
    %211 = vector.load %arg14[%c4_239, %c127_240] : memref<16x1536xbf16, #tpu.memory_space<vmem>>, vector<4x1280xbf16>
    %c48_241 = arith.constant 48 : index
    %c0_242 = arith.constant 0 : index
    %212 = vector.load %arg15[%c48_241, %c0_242] : memref<196x1280xbf16, #tpu.memory_space<vmem>>, vector<4x1280xbf16>
    tpu.vector_store %arg15[%c48_241, %c0_242], %211 {strides = array<i32>} : memref<196x1280xbf16, #tpu.memory_space<vmem>>, vector<4x1280xbf16>,
    %c4_243 = arith.constant 4 : index
    %c128_244 = arith.constant 128 : index
    %213 = vector.load %arg14[%c4_243, %c128_244] : memref<16x1536xbf16, #tpu.memory_space<vmem>>, vector<4x1280xbf16>
    %c52_245 = arith.constant 52 : index
    %c0_246 = arith.constant 0 : index
    %214 = vector.load %arg15[%c52_245, %c0_246] : memref<196x1280xbf16, #tpu.memory_space<vmem>>, vector<4x1280xbf16>
    tpu.vector_store %arg15[%c52_245, %c0_246], %213 {strides = array<i32>} : memref<196x1280xbf16, #tpu.memory_space<vmem>>, vector<4x1280xbf16>,
    %c4_247 = arith.constant 4 : index
    %c129_248 = arith.constant 129 : index
    %215 = vector.load %arg14[%c4_247, %c129_248] : memref<16x1536xbf16, #tpu.memory_space<vmem>>, vector<4x1280xbf16>
    %c56_249 = arith.constant 56 : index
    %c0_250 = arith.constant 0 : index
    %216 = vector.load %arg15[%c56_249, %c0_250] : memref<196x1280xbf16, #tpu.memory_space<vmem>>, vector<4x1280xbf16>
    tpu.vector_store %arg15[%c56_249, %c0_250], %215 {strides = array<i32>} : memref<196x1280xbf16, #tpu.memory_space<vmem>>, vector<4x1280xbf16>,
    %c4_251 = arith.constant 4 : index
    %c149_252 = arith.constant 149 : index
    %217 = vector.load %arg14[%c4_251, %c149_252] : memref<16x1536xbf16, #tpu.memory_space<vmem>>, vector<4x1280xbf16>
    %c60_253 = arith.constant 60 : index
    %c0_254 = arith.constant 0 : index
    %218 = vector.load %arg15[%c60_253, %c0_254] : memref<196x1280xbf16, #tpu.memory_space<vmem>>, vector<4x1280xbf16>
    tpu.vector_store %arg15[%c60_253, %c0_254], %217 {strides = array<i32>} : memref<196x1280xbf16, #tpu.memory_space<vmem>>, vector<4x1280xbf16>,
    %c4_255 = arith.constant 4 : index
    %c150_256 = arith.constant 150 : index
    %219 = vector.load %arg14[%c4_255, %c150_256] : memref<16x1536xbf16, #tpu.memory_space<vmem>>, vector<4x1280xbf16>
    %c64_257 = arith.constant 64 : index
    %c0_258 = arith.constant 0 : index
    %220 = vector.load %arg15[%c64_257, %c0_258] : memref<196x1280xbf16, #tpu.memory_space<vmem>>, vector<4x1280xbf16>
    tpu.vector_store %arg15[%c64_257, %c0_258], %219 {strides = array<i32>} : memref<196x1280xbf16, #tpu.memory_space<vmem>>, vector<4x1280xbf16>,
    %c4_259 = arith.constant 4 : index
    %c151_260 = arith.constant 151 : index
    %221 = vector.load %arg14[%c4_259, %c151_260] : memref<16x1536xbf16, #tpu.memory_space<vmem>>, vector<4x1280xbf16>
    %c68_261 = arith.constant 68 : index
    %c0_262 = arith.constant 0 : index
    %222 = vector.load %arg15[%c68_261, %c0_262] : memref<196x1280xbf16, #tpu.memory_space<vmem>>, vector<4x1280xbf16>
    tpu.vector_store %arg15[%c68_261, %c0_262], %221 {strides = array<i32>} : memref<196x1280xbf16, #tpu.memory_space<vmem>>, vector<4x1280xbf16>,
    %c0_263 = arith.constant 0 : index
    %c0_264 = arith.constant 0 : index
    %223 = vector.load %arg8[%c0_263, %c0_264] : memref<8x72xbf16, #tpu.memory_space<vmem>>, vector<8x72xbf16>
    %c0_265 = arith.constant 0 : index
    %c0_266 = arith.constant 0 : index
    %224 = vector.load %arg15[%c0_265, %c0_266] : memref<196x1280xbf16, #tpu.memory_space<vmem>>, vector<72x1280xbf16>
    %cst_267 = arith.constant dense<0.000000e+00> : vector<8x1280xf32>
    %225 = tpu.matmul %223, %224, %cst_267 {dimension_numbers = #tpu.dot_dimension_numbers<[1], [0], [0], [1], [0, 0, 1, 1], [], []>} : vector<8x72xbf16>, vector<72x1280xbf16>, vector<8x1280xf32> -> vector<8x1280xf32>
    %cst_268 = arith.constant 0.000000e+00 : f32
    %226 = vector.broadcast %cst_268 : f32 to vector<8x1280xf32>
    %227 = arith.maximumf %225, %226 : vector<8x1280xf32>
    %228 = vector.broadcast %4 : vector<1x1280xf32> to vector<8x1280xf32>
    %229 = arith.mulf %227, %228 : vector<8x1280xf32>
    %230 = arith.truncf %229 : vector<8x1280xf32> to vector<8x1280xbf16>
    %c8_269 = arith.constant 8 : index
    %c128_270 = arith.constant 128 : index
    %231 = vector.load %arg14[%c8_269, %c128_270] : memref<16x1536xbf16, #tpu.memory_space<vmem>>, vector<8x1280xbf16>
    tpu.vector_store %arg14[%c8_269, %c128_270], %230 {strides = array<i32>} : memref<16x1536xbf16, #tpu.memory_space<vmem>>, vector<8x1280xbf16>,
    %c0_271 = arith.constant 0 : index
    %c0_272 = arith.constant 0 : index
    %232 = vector.load %arg9[%c0_271, %c0_272] : memref<4x16xbf16, #tpu.memory_space<vmem>>, vector<4x16xbf16>
    %c0_273 = arith.constant 0 : index
    %c128_274 = arith.constant 128 : index
    %233 = vector.load %arg14[%c0_273, %c128_274] : memref<16x1536xbf16, #tpu.memory_space<vmem>>, vector<16x1280xbf16>
    %cst_275 = arith.constant dense<0.000000e+00> : vector<4x1280xf32>
    %234 = tpu.matmul %232, %233, %cst_275 {dimension_numbers = #tpu.dot_dimension_numbers<[1], [0], [0], [1], [0, 0, 1, 1], [], []>} : vector<4x16xbf16>, vector<16x1280xbf16>, vector<4x1280xf32> -> vector<4x1280xf32>
    %cst_276 = arith.constant 0.000000e+00 : f32
    %235 = vector.broadcast %cst_276 : f32 to vector<4x1280xf32>
    %236 = arith.maximumf %234, %235 : vector<4x1280xf32>
    %c0_277 = arith.constant 0 : index
    %c128_278 = arith.constant 128 : index
    %237 = vector.load %arg14[%c0_277, %c128_278] : memref<16x1536xbf16, #tpu.memory_space<vmem>>, vector<4x1280xbf16>
    %238 = arith.extf %237 : vector<4x1280xbf16> to vector<4x1280xf32>
    %239 = arith.addf %238, %236 : vector<4x1280xf32>
    %240 = vector.broadcast %4 : vector<1x1280xf32> to vector<4x1280xf32>
    %241 = arith.mulf %239, %240 : vector<4x1280xf32>
    %242 = arith.truncf %241 : vector<4x1280xf32> to vector<4x1280xbf16>
    %c0_279 = arith.constant 0 : index
    %c0_280 = arith.constant 0 : index
    %c0_281 = arith.constant 0 : index
    %243 = vector.load %arg12[%c0_279, %c0_280, %c0_281] : memref<1x4x1280xbf16, #tpu.memory_space<vmem>>, vector<1x4x1280xbf16>
    %244 = vector.shape_cast %243 : vector<1x4x1280xbf16> to vector<4x1280xbf16>
    %245 = vector.shape_cast %242 : vector<4x1280xbf16> to vector<1x4x1280xbf16>
    tpu.vector_store %arg12[%c0_279, %c0_280, %c0_281], %245 {strides = array<i32>} : memref<1x4x1280xbf16, #tpu.memory_space<vmem>>, vector<1x4x1280xbf16>,
    %c0_282 = arith.constant 0 : index
    %c128_283 = arith.constant 128 : index
    %246 = vector.load %arg14[%c0_282, %c128_283] : memref<16x1536xbf16, #tpu.memory_space<vmem>>, vector<4x1280xbf16>
    tpu.vector_store %arg14[%c0_282, %c128_283], %242 {strides = array<i32>} : memref<16x1536xbf16, #tpu.memory_space<vmem>>, vector<4x1280xbf16>,
    %c0_284 = arith.constant 0 : index
    %c105_285 = arith.constant 105 : index
    %247 = vector.load %arg14[%c0_284, %c105_285] : memref<16x1536xbf16, #tpu.memory_space<vmem>>, vector<4x1280xbf16>
    %c0_286 = arith.constant 0 : index
    %c0_287 = arith.constant 0 : index
    %248 = vector.load %arg15[%c0_286, %c0_287] : memref<196x1280xbf16, #tpu.memory_space<vmem>>, vector<4x1280xbf16>
    tpu.vector_store %arg15[%c0_286, %c0_287], %247 {strides = array<i32>} : memref<196x1280xbf16, #tpu.memory_space<vmem>>, vector<4x1280xbf16>,
    %c0_288 = arith.constant 0 : index
    %c106_289 = arith.constant 106 : index
    %249 = vector.load %arg14[%c0_288, %c106_289] : memref<16x1536xbf16, #tpu.memory_space<vmem>>, vector<4x1280xbf16>
    %c4_290 = arith.constant 4 : index
    %c0_291 = arith.constant 0 : index
    %250 = vector.load %arg15[%c4_290, %c0_291] : memref<196x1280xbf16, #tpu.memory_space<vmem>>, vector<4x1280xbf16>
    tpu.vector_store %arg15[%c4_290, %c0_291], %249 {strides = array<i32>} : memref<196x1280xbf16, #tpu.memory_space<vmem>>, vector<4x1280xbf16>,
    %c0_292 = arith.constant 0 : index
    %c107_293 = arith.constant 107 : index
    %251 = vector.load %arg14[%c0_292, %c107_293] : memref<16x1536xbf16, #tpu.memory_space<vmem>>, vector<4x1280xbf16>
    %c8_294 = arith.constant 8 : index
    %c0_295 = arith.constant 0 : index
    %252 = vector.load %arg15[%c8_294, %c0_295] : memref<196x1280xbf16, #tpu.memory_space<vmem>>, vector<4x1280xbf16>
    tpu.vector_store %arg15[%c8_294, %c0_295], %251 {strides = array<i32>} : memref<196x1280xbf16, #tpu.memory_space<vmem>>, vector<4x1280xbf16>,
    %c0_296 = arith.constant 0 : index
    %c127_297 = arith.constant 127 : index
    %253 = vector.load %arg14[%c0_296, %c127_297] : memref<16x1536xbf16, #tpu.memory_space<vmem>>, vector<4x1280xbf16>
    %c12_298 = arith.constant 12 : index
    %c0_299 = arith.constant 0 : index
    %254 = vector.load %arg15[%c12_298, %c0_299] : memref<196x1280xbf16, #tpu.memory_space<vmem>>, vector<4x1280xbf16>
    tpu.vector_store %arg15[%c12_298, %c0_299], %253 {strides = array<i32>} : memref<196x1280xbf16, #tpu.memory_space<vmem>>, vector<4x1280xbf16>,
    %c0_300 = arith.constant 0 : index
    %c128_301 = arith.constant 128 : index
    %255 = vector.load %arg14[%c0_300, %c128_301] : memref<16x1536xbf16, #tpu.memory_space<vmem>>, vector<4x1280xbf16>
    %c16_302 = arith.constant 16 : index
    %c0_303 = arith.constant 0 : index
    %256 = vector.load %arg15[%c16_302, %c0_303] : memref<196x1280xbf16, #tpu.memory_space<vmem>>, vector<4x1280xbf16>
    tpu.vector_store %arg15[%c16_302, %c0_303], %255 {strides = array<i32>} : memref<196x1280xbf16, #tpu.memory_space<vmem>>, vector<4x1280xbf16>,
    %c0_304 = arith.constant 0 : index
    %c129_305 = arith.constant 129 : index
    %257 = vector.load %arg14[%c0_304, %c129_305] : memref<16x1536xbf16, #tpu.memory_space<vmem>>, vector<4x1280xbf16>
    %c20_306 = arith.constant 20 : index
    %c0_307 = arith.constant 0 : index
    %258 = vector.load %arg15[%c20_306, %c0_307] : memref<196x1280xbf16, #tpu.memory_space<vmem>>, vector<4x1280xbf16>
    tpu.vector_store %arg15[%c20_306, %c0_307], %257 {strides = array<i32>} : memref<196x1280xbf16, #tpu.memory_space<vmem>>, vector<4x1280xbf16>,
    %c0_308 = arith.constant 0 : index
    %c149_309 = arith.constant 149 : index
    %259 = vector.load %arg14[%c0_308, %c149_309] : memref<16x1536xbf16, #tpu.memory_space<vmem>>, vector<4x1280xbf16>
    %c24_310 = arith.constant 24 : index
    %c0_311 = arith.constant 0 : index
    %260 = vector.load %arg15[%c24_310, %c0_311] : memref<196x1280xbf16, #tpu.memory_space<vmem>>, vector<4x1280xbf16>
    tpu.vector_store %arg15[%c24_310, %c0_311], %259 {strides = array<i32>} : memref<196x1280xbf16, #tpu.memory_space<vmem>>, vector<4x1280xbf16>,
    %c0_312 = arith.constant 0 : index
    %c150_313 = arith.constant 150 : index
    %261 = vector.load %arg14[%c0_312, %c150_313] : memref<16x1536xbf16, #tpu.memory_space<vmem>>, vector<4x1280xbf16>
    %c28_314 = arith.constant 28 : index
    %c0_315 = arith.constant 0 : index
    %262 = vector.load %arg15[%c28_314, %c0_315] : memref<196x1280xbf16, #tpu.memory_space<vmem>>, vector<4x1280xbf16>
    tpu.vector_store %arg15[%c28_314, %c0_315], %261 {strides = array<i32>} : memref<196x1280xbf16, #tpu.memory_space<vmem>>, vector<4x1280xbf16>,
    %c0_316 = arith.constant 0 : index
    %c151_317 = arith.constant 151 : index
    %263 = vector.load %arg14[%c0_316, %c151_317] : memref<16x1536xbf16, #tpu.memory_space<vmem>>, vector<4x1280xbf16>
    %c32_318 = arith.constant 32 : index
    %c0_319 = arith.constant 0 : index
    %264 = vector.load %arg15[%c32_318, %c0_319] : memref<196x1280xbf16, #tpu.memory_space<vmem>>, vector<4x1280xbf16>
    tpu.vector_store %arg15[%c32_318, %c0_319], %263 {strides = array<i32>} : memref<196x1280xbf16, #tpu.memory_space<vmem>>, vector<4x1280xbf16>,
    %c0_320 = arith.constant 0 : index
    %c0_321 = arith.constant 0 : index
    %265 = vector.load %arg10[%c0_320, %c0_321] : memref<8x36xbf16, #tpu.memory_space<vmem>>, vector<8x36xbf16>
    %c0_322 = arith.constant 0 : index
    %c0_323 = arith.constant 0 : index
    %266 = vector.load %arg15[%c0_322, %c0_323] : memref<196x1280xbf16, #tpu.memory_space<vmem>>, vector<36x1280xbf16>
    %cst_324 = arith.constant dense<0.000000e+00> : vector<8x1280xf32>
    %267 = tpu.matmul %265, %266, %cst_324 {dimension_numbers = #tpu.dot_dimension_numbers<[1], [0], [0], [1], [0, 0, 1, 1], [], []>} : vector<8x36xbf16>, vector<36x1280xbf16>, vector<8x1280xf32> -> vector<8x1280xf32>
    %c0_325 = arith.constant 0 : index
    %c0_326 = arith.constant 0 : index
    %268 = vector.load %arg11[%c0_325, %c0_326] : memref<8x1xf32, #tpu.memory_space<vmem>>, vector<8x1xf32>
    %269 = vector.broadcast %268 : vector<8x1xf32> to vector<8x1280xf32>
    %270 = arith.addf %267, %269 : vector<8x1280xf32>
    %cst_327 = arith.constant 0.000000e+00 : f32
    %271 = vector.broadcast %cst_327 : f32 to vector<8x1280xf32>
    %272 = arith.maximumf %270, %271 : vector<8x1280xf32>
    %273 = arith.truncf %272 : vector<8x1280xf32> to vector<8x1280xbf16>
    %c0_328 = arith.constant 0 : index
    %c0_329 = arith.constant 0 : index
    %c0_330 = arith.constant 0 : index
    %274 = vector.load %arg13[%c0_328, %c0_329, %c0_330] : memref<1x8x1280xbf16, #tpu.memory_space<vmem>>, vector<1x8x1280xbf16>
    %275 = vector.shape_cast %274 : vector<1x8x1280xbf16> to vector<8x1280xbf16>
    %276 = vector.shape_cast %273 : vector<8x1280xbf16> to vector<1x8x1280xbf16>
    tpu.vector_store %arg13[%c0_328, %c0_329, %c0_330], %276 {strides = array<i32>} : memref<1x8x1280xbf16, #tpu.memory_space<vmem>>, vector<1x8x1280xbf16>,
    return
  }
  func.func @transform_0(%arg0: i32) -> (i32, i32, i32) {
    %c0_i32 = arith.constant 0 : i32
    %c0_i32_0 = arith.constant 0 : i32
    %c0_i32_1 = arith.constant 0 : i32
    return %arg0, %c0_i32, %c0_i32_0 : i32, i32, i32
  }
  func.func @transform_1(%arg0: i32) -> (i32, i32) {
    %c0_i32 = arith.constant 0 : i32
    %c0_i32_0 = arith.constant 0 : i32
    %c0_i32_1 = arith.constant 0 : i32
    return %c0_i32, %c0_i32_0 : i32, i32
  }
  func.func @transform_2(%arg0: i32) -> (i32, i32) {
    %c0_i32 = arith.constant 0 : i32
    %c0_i32_0 = arith.constant 0 : i32
    %c0_i32_1 = arith.constant 0 : i32
    return %c0_i32, %c0_i32_0 : i32, i32
  }
  func.func @transform_3(%arg0: i32) -> (i32, i32) {
    %c0_i32 = arith.constant 0 : i32
    %c0_i32_0 = arith.constant 0 : i32
    %c0_i32_1 = arith.constant 0 : i32
    return %c0_i32, %c0_i32_0 : i32, i32
  }
  func.func @transform_4(%arg0: i32) -> (i32, i32) {
    %c0_i32 = arith.constant 0 : i32
    %c0_i32_0 = arith.constant 0 : i32
    %c0_i32_1 = arith.constant 0 : i32
    return %c0_i32, %c0_i32_0 : i32, i32
  }
  func.func @transform_5(%arg0: i32) -> (i32, i32) {
    %c0_i32 = arith.constant 0 : i32
    %c0_i32_0 = arith.constant 0 : i32
    %c0_i32_1 = arith.constant 0 : i32
    return %c0_i32, %c0_i32_0 : i32, i32
  }
  func.func @transform_6(%arg0: i32) -> (i32, i32) {
    %c0_i32 = arith.constant 0 : i32
    %c0_i32_0 = arith.constant 0 : i32
    %c0_i32_1 = arith.constant 0 : i32
    return %c0_i32, %c0_i32_0 : i32, i32
  }
  func.func @transform_7(%arg0: i32) -> (i32, i32) {
    %c0_i32 = arith.constant 0 : i32
    %c0_i32_0 = arith.constant 0 : i32
    %c0_i32_1 = arith.constant 0 : i32
    return %c0_i32, %c0_i32_0 : i32, i32
  }
  func.func @transform_8(%arg0: i32) -> (i32, i32) {
    %c0_i32 = arith.constant 0 : i32
    %c0_i32_0 = arith.constant 0 : i32
    %c0_i32_1 = arith.constant 0 : i32
    return %c0_i32, %c0_i32_0 : i32, i32
  }
  func.func @transform_9(%arg0: i32) -> (i32, i32) {
    %c0_i32 = arith.constant 0 : i32
    %c0_i32_0 = arith.constant 0 : i32
    %c0_i32_1 = arith.constant 0 : i32
    return %c0_i32, %c0_i32_0 : i32, i32
  }
  func.func @transform_10(%arg0: i32) -> (i32, i32) {
    %c0_i32 = arith.constant 0 : i32
    %c0_i32_0 = arith.constant 0 : i32
    %c0_i32_1 = arith.constant 0 : i32
    return %c0_i32, %c0_i32_0 : i32, i32
  }
  func.func @transform_11(%arg0: i32) -> (i32, i32, i32) {
    %c0_i32 = arith.constant 0 : i32
    %c0_i32_0 = arith.constant 0 : i32
    %c0_i32_1 = arith.constant 0 : i32
    return %arg0, %c0_i32, %c0_i32_0 : i32, i32, i32
  }
  func.func @transform_12(%arg0: i32) -> (i32, i32, i32) {
    %c0_i32 = arith.constant 0 : i32
    %c0_i32_0 = arith.constant 0 : i32
    %c0_i32_1 = arith.constant 0 : i32
    return %arg0, %c0_i32, %c0_i32_0 : i32, i32, i32
  }
}

</mosaic_0001>

<bundles_post_ra>
// kernel: down_forward.1
= control target key start
LH: loop header
LB: loop body
LE: loop exit
PB: predicated region body
PF: predicated region fallthrough
CT: control target
= control target key end

     0   :  { %s10679_s21 = smov 0   ;;  %s14889_s0 = inlined_call_operand.vmem [shape: bf16[2,4,1536], index: 0, kind: input, shape index: {}]   ;;  %s14890_s1 = inlined_call_operand.vmem [shape: f32[1,1280], index: 1, kind: input, shape index: {}]   ;;  %s14891_s2 = inlined_call_operand.vmem [shape: bf16[16,196], index: 2, kind: input, shape index: {}]   ;;  %s14892_s3 = inlined_call_operand.vmem [shape: f32[16,1], index: 3, kind: input, shape index: {}]   ;;  %s14893_s4 = inlined_call_operand.vmem [shape: bf16[4,16], index: 4, kind: input, shape index: {}]   ;;  %s14894_s5 = inlined_call_operand.vmem [shape: f32[4,1], index: 5, kind: input, shape index: {}]   ;;  %s14895_s6 = inlined_call_operand.vmem [shape: bf16[4,36], index: 6, kind: input, shape index: {}]   ;;  %s14896_s7 = inlined_call_operand.vmem [shape: bf16[8,72], index: 7, kind: input, shape index: {}]   ;;  %s14897_s8 = inlined_call_operand.vmem [shape: bf16[4,16], index: 8, kind: input, shape index: {}]   ;;  %s14898_s9 = inlined_call_operand.vmem [shape: bf16[8,36], index: 9, kind: input, shape index: {}]   ;;  %s14899_s10 = inlined_call_operand.vmem [shape: f32[8,1], index: 10, kind: input, shape index: {}]   ;;  %s14900_s11 = inlined_call_operand.vmem [shape: bf16[2,4,1280], index: 11, kind: output, shape index: {0}]   ;;  %s14901_s12 = inlined_call_operand.vmem [shape: bf16[2,8,1280], index: 12, kind: output, shape index: {1}]  }
   0x1   :  { %15269 = sst [smem:[#allocation31_spill]] %s14889_s0 }
   0x2   :  { %15270 = sst [smem:[#allocation32_spill]] %s14890_s1 }
   0x3   :  { %15271 = sst [smem:[#allocation33_spill]] %s14891_s2 }
   0x4   :  { %15272 = sst [smem:[#allocation34_spill]] %s14892_s3 }
   0x5   :  { %15273 = sst [smem:[#allocation35_spill]] %s14893_s4 }
   0x6   :  { %15274 = sst [smem:[#allocation36_spill]] %s14894_s5 }
   0x7   :  { %15275 = sst [smem:[#allocation37_spill]] %s14895_s6 }
   0x8   :  { %15276 = sst [smem:[#allocation38_spill]] %s14896_s7 }
   0x9   :  { %15277 = sst [smem:[#allocation39_spill]] %s14897_s8 }
   0xa   :  { %15278 = sst [smem:[#allocation40_spill]] %s14898_s9 }
   0xb   :  { %15279 = sst [smem:[#allocation41_spill]] %s14899_s10 }
   0xc   :  { %15280 = sst [smem:[#allocation42_spill]] %s14900_s11 }
   0xd   :  { %15281 = sst [smem:[#allocation43_spill]] %s14901_s12 }
   0xe LB: > { %15282 = sst [smem:[#allocation5_spill]] %s10565_s21  ;;  %s9668_s22 = sadd.s32 4294967295, %s10565_s21   ;;  %s10565_s21 = sphi %s10679_s21, %s23_s21  }
   0xf   : > { %p9672_p0 = scmp.ge.s32.totalorder %s10565_s21, 1  ;;  %p365_p1 = scmp.lt.s32.totalorder %s10565_s21, 3 }
  0x11   : > { %p366_p2 = pnand %p9672_p0, %p365_p1 }
  0x13   : > { %369 = sbr.rel (%p366_p2) target bundleno = 2500 (0x9c4), region = 64 }
  0x18   : > { %p412_p3 = scmp.lt.s32.totalorder %s9668_s22, 1  ;;  %v444_v0 = vlaneseq  ;;  %v10567_v1 = vmov 1983009808   ;;  %s15285_s0 = sld [smem:[#allocation31_spill]]  ;;  %vm503_vm0 = vcmask 1043456   ;;  %vm3078_vm1 = vcmask 883712  }
  0x19   : > { %v442_v2 = vunpack.c.l.s4 %v10567_v1  ;;  %s15027_s27 = smov 108   ;;  %s14998_s28 = smov 109   ;;  %vm2988_vm2 = vcmask 891904   ;;  %vm3168_vm3 = vcmask 875520   ;;  %vm3258_vm4 = vcmask 867328  }
  0x1a   : > { %s15789_s22 = smov (!%p412_p3, %s9668_s22), 1  ;;  %v10689_v3 = vshrl.u32 %v444_v0, 7  ;;  %s15013_s29 = smov 106   ;;  %vm2718_vm5 = vcmask 1039360   ;;  %vm2808_vm6 = vcmask 1031168   ;;  %vm2898_vm7 = vcmask 1022976  }
  0x1b   : > { %15283 = sst [smem:[#allocation6_spill]] %s15789_s22  ;;  %v443_v4 = vunpack.c.0.s8 %v442_v2  ;;  %s10105_s23 = smul.u32 24, %s15789_s22  ;;  %vm2305_vm8 = vcmask 154624   ;;  %vm2395_vm9 = vcmask 23552   ;;  %vm2485_vm10 = vcmask 15360  }
  0x1c   : > { %15284 = vst [vmem:[#allocation7_spill] sm:$0xff] %v10689_v3  ;;  %s15003_s30 = smov 107   ;;  %s15025_s13 = smov 127   ;;  %vm14995_vm11 = vcmask 7168   ;;  %vm14991_vm12 = vcmask 187392   ;;  %vm14985_vm13 = vcmask 179200  }
  0x1d   : > { %v10693_v5 = vsub.s32 %v443_v4, %v10689_v3  ;;  %s15019_s14 = smov 126   ;;  %s15021_s15 = smov 125   ;;  %vm14948_vm14 = vcmask 171008   ;;  %vm14951_vm15 = vcmask 162816  }
  0x1e   : > { %s10698_s26 = scalar_lea.vmem %s15285_s0, %s10105_s23  ;;  %s15000_s16 = smov 19  }
  0x1f   : > { %v3008_v6 = vld [vmem:[%s10698_s26 + $0x2] sm:$0xff]  ;;  %s14930_s17 = smov 3   ;;  %s14928_s18 = smov 2   ;;  %v10894_v47 = vld [vmem:[%s10698_s26 + $0xa] sm:$0xff] }
  0x20   : > { %v10702_v7 = vrot.slane %v3008_v6, %v10693_v5  ;;  %9677 = vst.sshfl [vmem:[#allocation3 + $0x1e0] sm:$0xf pattern:$0x76325410] %v3008_v6  ;;  %v3014_v8 = vcombine.low %v3008_v6, %v3008_v6  ;;  %v10708_v9 = vcombine.high %v3008_v6, %v3008_v6  ;;  %v2235_v12 = vld [vmem:[%s10698_s26] sm:$0xff]  ;;  %s14926_s19 = smov 1   ;;  %v3029_v53 = vcombine.low %v10894_v47, %v10894_v47 }
  0x21   : > { %v2241_v13 = vcombine.high %v2235_v12, %v2235_v12  ;;  %v10743_v14 = vrot.slane %v2235_v12, %v10693_v5  ;;  %v2331_v16 = vcombine.low %v2235_v12, %v2235_v12  ;;  %s14902_s20 = smov 23   ;;  %s14904_s23 = smov 22   ;;  %v10919_v62 = vrot.slane %v10894_v47, %v10693_v5 }
  0x22   : > { %3061 = vrot.lane.b32.xlu1 %v10702_v7, %s15027_s27  ;;  %2969 = vrot.lane.b32.xlu0 %v10702_v7, %s14998_s28  ;;  %v10715_v10 = vrot.slane %v3014_v8, %v10693_v5  ;;  %v10719_v11 = vrot.slane %v10708_v9, %v10693_v5  ;;  %s14906_s24 = smov 21   ;;  %s14908_s25 = smov 20   ;;  %v10922_v63 = vrot.slane %v3029_v53, %v10693_v5 }
  0x23   : > { %v10746_v15 = vrot.slane %v2241_v13, %v10693_v5  ;;  %v10753_v17 = vrot.slane %v2331_v16, %v10693_v5  ;;  %9678 = vst.sshfl [vmem:[#allocation3 + $0x1e8] sm:$0xf pattern:$0x76325410] %v10708_v9  ;;  %s15293_s2 = sld [smem:[#allocation33_spill]]  ;;  %s15302_s0 = smov 19  }
  0x24   : > { %s15303_s21 = smov 65   ;;  %s15304_s12 = smov 64  }
  0x25   : > { %s15305_s9 = smov 63   ;;  %s15306_s10 = smov 47  }
  0x26   : > { %3241 = vrot.lane.b32.xlu1 %v10702_v7, %s15013_s29  ;;  %3149 = vrot.lane.b32.xlu0 %v10702_v7, %s15003_s30  ;;  %s15307_s11 = smov 69   ;;  %s15308_s22 = smov 68  }
  0x27   : > { %s15309_s8 = smov 67   ;;  %s15310_s7 = smov 66  }
  0x28   : > { %s15311_s6 = smov 59   ;;  %s15314_s4 = smov 62  }
  0x29   : > { %s15315_s1 = smov 61   ;;  %s15319_s5 = smov 60  }
  0x2a   : > { %3059 = vrot.lane.b32.xlu1 %v10715_v10, %s15027_s27  ;;  %2971 = vrot.lane.b32.xlu0 %v10719_v11, %s14998_s28  ;;  %s15322_s3 = smov 82  }
  0x2e   : > { %3151 = vrot.lane.b32.xlu1 %v10719_v11, %s15003_s30  ;;  %3239 = vrot.lane.b32.xlu0 %v10715_v10, %s15013_s29 }
  0x32   : > { %2701 = vrot.lane.b32.xlu1 %v10702_v7, %s15025_s13  ;;  %2699 = vrot.lane.b32.xlu0 %v10715_v10, %s15025_s13 }
  0x36   : > { %2791 = vrot.lane.b32.xlu1 %v10719_v11, %s15019_s14  ;;  %2789 = vrot.lane.b32.xlu0 %v10702_v7, %s15019_s14 }
  0x3a   : > { %2881 = vrot.lane.b32.xlu1 %v10702_v7, %s15021_s15  ;;  %2879 = vrot.lane.b32.xlu0 %v10715_v10, %s15021_s15 }
  0x3e   : > { %2286 = vrot.lane.b32.xlu0 %v10743_v14, %s15000_s16  ;;  %2288 = vrot.lane.b32.xlu1 %v10746_v15, %s15000_s16 }
  0x42   : > { %2376 = vrot.lane.b32.xlu0 %v10753_v17, %s14930_s17  ;;  %2378 = vrot.lane.b32.xlu1 %v10743_v14, %s14930_s17  ;;  %s14934_s17 = smov 67  }
  0x46   : > { %2466 = vrot.lane.b32.xlu0 %v10743_v14, %s14928_s18  ;;  %2468 = vrot.lane.b32.xlu1 %v10746_v15, %s14928_s18  ;;  %s14964_s18 = smov 68  }
  0x4a   : > { %2556 = vrot.lane.b32.xlu0 %v10753_v17, %s14926_s19  ;;  %2558 = vrot.lane.b32.xlu1 %v10743_v14, %s14926_s19  ;;  %s14932_s19 = smov 69  }
  0x4e   : > { %1926 = vrot.lane.b32.xlu0 %v10743_v14, %s14902_s20  ;;  %1928 = vrot.lane.b32.xlu1 %v10746_v15, %s14902_s20  ;;  %s14910_s20 = smov 42  }
  0x52   : > { %2016 = vrot.lane.b32.xlu0 %v10753_v17, %s14904_s23  ;;  %2018 = vrot.lane.b32.xlu1 %v10743_v14, %s14904_s23  ;;  %s14912_s23 = smov 41  }
  0x56   : > { %2106 = vrot.lane.b32.xlu0 %v10743_v14, %s14906_s24  ;;  %2108 = vrot.lane.b32.xlu1 %v10746_v15, %s14906_s24  ;;  %s14914_s24 = smov 25  }
  0x5a   : > { %2196 = vrot.lane.b32.xlu0 %v10753_v17, %s14908_s25  ;;  %2198 = vrot.lane.b32.xlu1 %v10743_v14, %s14908_s25  ;;  %s14916_s25 = smov 24  }
  0x5e   : > { %1566 = vrot.lane.b32.xlu0 %v10743_v14, %s14910_s20  ;;  %1568 = vrot.lane.b32.xlu1 %v10746_v15, %s14910_s20  ;;  %s14918_s20 = smov 46  }
  0x62   : > { %1656 = vrot.lane.b32.xlu0 %v10753_v17, %s14912_s23  ;;  %1658 = vrot.lane.b32.xlu1 %v10743_v14, %s14912_s23  ;;  %s14920_s23 = smov 45  }
  0x66   : > { %1746 = vrot.lane.b32.xlu0 %v10743_v14, %s14914_s24  ;;  %1748 = vrot.lane.b32.xlu1 %v10746_v15, %s14914_s24  ;;  %s14922_s24 = smov 44  }
  0x6a   : > { %1836 = vrot.lane.b32.xlu0 %v10753_v17, %s14916_s25  ;;  %1838 = vrot.lane.b32.xlu1 %v10743_v14, %s14916_s25  ;;  %s14924_s25 = smov 43  }
  0x6e   : > { %1206 = vrot.lane.b32.xlu0 %v10743_v14, %s14918_s20  ;;  %1208 = vrot.lane.b32.xlu1 %v10746_v15, %s14918_s20  ;;  %s14993_s20 = smov 65  }
  0x72   : > { %1296 = vrot.lane.b32.xlu0 %v10753_v17, %s14920_s23  ;;  %1298 = vrot.lane.b32.xlu1 %v10743_v14, %s14920_s23  ;;  %s14988_s23 = smov 64  }
  0x76   : > { %1386 = vrot.lane.b32.xlu0 %v10743_v14, %s14922_s24  ;;  %1388 = vrot.lane.b32.xlu1 %v10746_v15, %s14922_s24  ;;  %s14970_s24 = smov 63  }
  0x7a   : > { %1476 = vrot.lane.b32.xlu0 %v10753_v17, %s14924_s25  ;;  %1478 = vrot.lane.b32.xlu1 %v10743_v14, %s14924_s25  ;;  %s14966_s25 = smov 47  }
  0x7e   : > { %846 = vrot.lane.b32.xlu0 %v10743_v14, %s14993_s20  ;;  %848 = vrot.lane.b32.xlu1 %v10746_v15, %s14993_s20 }
  0x82   : > { %936 = vrot.lane.b32.xlu0 %v10753_v17, %s14988_s23  ;;  %938 = vrot.lane.b32.xlu1 %v10743_v14, %s14988_s23 }
  0x86   : > { %1026 = vrot.lane.b32.xlu0 %v10743_v14, %s14970_s24  ;;  %1028 = vrot.lane.b32.xlu1 %v10746_v15, %s14970_s24 }
  0x8a   : > { %1116 = vrot.lane.b32.xlu0 %v10753_v17, %s14966_s25  ;;  %1118 = vrot.lane.b32.xlu1 %v10743_v14, %s14966_s25  ;;  %s14973_s25 = smov 105  }
  0x8e   : > { %485 = vrot.lane.b32.xlu0 %v10743_v14, %s14932_s19  ;;  %487 = vrot.lane.b32.xlu1 %v10746_v15, %s14932_s19  ;;  %s14938_s19 = smov 66  }
  0x92   : > { %576 = vrot.lane.b32.xlu0 %v10753_v17, %s14964_s18  ;;  %578 = vrot.lane.b32.xlu1 %v10743_v14, %s14964_s18  ;;  %s15288_s18 = smov 1  }
  0x94   : > { %v10839_v18 = vpop.permute.xlu1 %3061  ;;  %v2970_v19 = vpop.permute.xlu0 %2969 }
  0x95   : > { %v3072_v24 = vrot.slane %v10839_v18, 4  ;;  %v2981_v25 = vrot.slane %v2970_v19, 4 }
  0x96   : > { %666 = vrot.lane.b32.xlu0 %v10743_v14, %s14934_s17  ;;  %668 = vrot.lane.b32.xlu1 %v10746_v15, %s14934_s17  ;;  %s14936_s17 = smov 59  }
  0x98   : > { %v10845_v20 = vpop.permute.xlu1 %3241  ;;  %v3150_v21 = vpop.permute.xlu0 %3149 }
  0x99   : > { %v3252_v34 = vrot.slane %v10845_v20, 4  ;;  %v3161_v35 = vrot.slane %v3150_v21, 4 }
  0x9a   : > { %756 = vrot.lane.b32.xlu0 %v10753_v17, %s14938_s19  ;;  %758 = vrot.lane.b32.xlu1 %v10743_v14, %s14938_s19  ;;  %s14940_s19 = smov 61  }
  0x9c   : > { %v3060_v22 = vpop.permute.xlu1 %3059  ;;  %v10851_v23 = vpop.permute.xlu0 %2971 }
  0x9d   : > { %v3071_v26 = vrot.slane %v3060_v22, 4  ;;  %v2982_v27 = vrot.slane %v10851_v23, 4 }
  0x9e   : > { %4766 = vrot.lane.b32.xlu0 %v10702_v7, %s14936_s17  ;;  %4768 = vrot.lane.b32.xlu1 %v10719_v11, %s14936_s17  ;;  %s14944_s17 = smov 62  }
  0x9f   : > { %v3077_v28 = vsel %vm503_vm0, %v3071_v26, %v3072_v24  ;;  %v2987_v29 = vsel %vm503_vm0, %v2981_v25, %v2982_v27 }
  0xa0   : > { %v3079_v30 = vsel %vm3078_vm1, %v3060_v22, %v3077_v28  ;;  %v2989_v31 = vsel %vm2988_vm2, %v2970_v19, %v2987_v29  ;;  %v10867_v32 = vpop.permute.xlu1 %3151  ;;  %v3240_v33 = vpop.permute.xlu0 %3239 }
  0xa1   : > { %3093 = vst [vmem:[#allocation3 + $0x230] sm:$0xcc] %v3079_v30  ;;  %3003 = vst [vmem:[#allocation3 + $0x230] sm:$0x33] %v2989_v31  ;;  %v3162_v36 = vrot.slane %v10867_v32, 4  ;;  %v3251_v37 = vrot.slane %v3240_v33, 4 }
  0xa2   : > { %4407 = vrot.lane.b32.xlu0 %v10702_v7, %s14970_s24  ;;  %4409 = vrot.lane.b32.xlu1 %v10719_v11, %s14970_s24  ;;  %s14976_s24 = smov 104  }
  0xa3   : > { %v3167_v38 = vsel %vm503_vm0, %v3161_v35, %v3162_v36  ;;  %v3257_v39 = vsel %vm503_vm0, %v3251_v37, %v3252_v34 }
  0xa4   : > { %v3169_v40 = vsel %vm3168_vm3, %v3150_v21, %v3167_v38  ;;  %v3259_v41 = vsel %vm3258_vm4, %v3240_v33, %v3257_v39  ;;  %v10883_v42 = vpop.permute.xlu1 %2701  ;;  %v2700_v43 = vpop.permute.xlu0 %2699 }
  0xa5   : > { %3183 = vst [vmem:[#allocation3 + $0x258] sm:$0x33] %v3169_v40  ;;  %3273 = vst [vmem:[#allocation3 + $0x258] sm:$0xcc] %v3259_v41  ;;  %v2712_v44 = vrot.slane %v10883_v42, 4  ;;  %v2711_v45 = vrot.slane %v2700_v43, 4 }
  0xa6   : > { %4496 = vrot.lane.b32.xlu0 %v10715_v10, %s14944_s17  ;;  %4498 = vrot.lane.b32.xlu1 %v10702_v7, %s14944_s17  ;;  %s14946_s17 = smov 81  }
  0xa7   : > { %v2717_v46 = vsel %vm503_vm0, %v2711_v45, %v2712_v44 }
  0xa8   : > { %v2719_v48 = vsel %vm2718_vm5, %v2700_v43, %v2717_v46  ;;  %v10897_v49 = vpop.permute.xlu1 %2791  ;;  %v2790_v50 = vpop.permute.xlu0 %2789 }
  0xa9   : > { %2733 = vst [vmem:[#allocation3 + $0x1e0] sm:$0xcc] %v2719_v48  ;;  %v2802_v51 = vrot.slane %v10897_v49, 4  ;;  %v2801_v52 = vrot.slane %v2790_v50, 4 }
  0xaa   : > { %4586 = vrot.lane.b32.xlu0 %v10702_v7, %s14940_s19  ;;  %4588 = vrot.lane.b32.xlu1 %v10719_v11, %s14940_s19  ;;  %s14942_s19 = smov 60  }
  0xab   : > { %v2807_v54 = vsel %vm503_vm0, %v2801_v52, %v2802_v51 }
  0xac   : > { %v2809_v55 = vsel %vm2808_vm6, %v2790_v50, %v2807_v54  ;;  %v10910_v56 = vpop.permute.xlu1 %2881  ;;  %v2880_v57 = vpop.permute.xlu0 %2879  ;;  %v10169_v58 = vld [vmem:[#allocation3 + $0x234] ss:$40 sps:$4 sm:$0xff]   ;;  %v10171_v59 = vld [vmem:[#allocation3 + $0x230] ss:$40 sps:$4 sm:$0xff]  }
  0xad   : > { %2823 = vst [vmem:[#allocation3 + $0x208] sm:$0x33] %v2809_v55  ;;  %v2892_v60 = vrot.slane %v10910_v56, 4  ;;  %v2891_v61 = vrot.slane %v2880_v57, 4  ;;  %5613 = vmatprep.subr.bf16.mxu0 %v10169_v58 }
  0xae   : > { %4676 = vrot.lane.b32.xlu0 %v10715_v10, %s14942_s19  ;;  %4678 = vrot.lane.b32.xlu1 %v10702_v7, %s14942_s19  ;;  %s14949_s19 = smov 82  }
  0xaf   : > { %v2897_v0 = vsel %vm503_vm0, %v2891_v61, %v2892_v60  ;;  %5614 = vmatpush1.bf16.msra.mxu0 %v10171_v59 }
  0xb0   : > { %v2899_v1 = vsel %vm2898_vm7, %v2880_v57, %v2897_v0  ;;  %v2287_v2 = vpop.permute.xlu0 %2286  ;;  %v10928_v4 = vpop.permute.xlu1 %2288 }
  0xb1   : > { %2913 = vst [vmem:[#allocation3 + $0x208] sm:$0xcc] %v2899_v1  ;;  %v2298_v6 = vrot.slane %v2287_v2, 4  ;;  %v2299_v8 = vrot.slane %v10928_v4, 4 }
  0xb2   : > { %2973 = vrot.lane.b32.xlu0 %v10919_v62, %s14998_s28  ;;  %3063 = vrot.lane.b32.xlu1 %v10922_v63, %s15027_s27 }
  0xb3   : > { %v2304_v12 = vsel %vm503_vm0, %v2298_v6, %v2299_v8 }
  0xb4   : > { %v2306_v13 = vsel %vm2305_vm8, %v2287_v2, %v2304_v12  ;;  %v2377_v14 = vpop.permute.xlu0 %2376  ;;  %v10939_v15 = vpop.permute.xlu1 %2378 }
  0xb5   : > { %2320 = vst [vmem:[#allocation3 + $0x190] sm:$0x33] %v2306_v13  ;;  %v2388_v16 = vrot.slane %v2377_v14, 4  ;;  %v15062_v17 = vrot.slane %v10939_v15, 4 }
  0xb6   : > { %3153 = vrot.lane.b32.xlu0 %v10919_v62, %s15003_s30  ;;  %3243 = vrot.lane.b32.xlu1 %v10922_v63, %s15013_s29 }
  0xb7   : > { %v2394_v19 = vsel %vm503_vm0, %v2388_v16, %v15062_v17 }
  0xb8   : > { %v2396_v21 = vsel %vm2395_vm9, %v2377_v14, %v2394_v19  ;;  %v2467_v22 = vpop.permute.xlu0 %2466  ;;  %v10950_v25 = vpop.permute.xlu1 %2468  ;;  %v10174_v26 = vld [vmem:[#allocation3 + $0x1e4] ss:$40 sps:$4 sm:$0xff]   ;;  %v10176_v28 = vld [vmem:[#allocation3 + $0x1e0] ss:$40 sps:$4 sm:$0xff]  }
  0xb9   : > { %2410 = vst [vmem:[#allocation3 + $0x190] sm:$0xcc] %v2396_v21  ;;  %v2478_v29 = vrot.slane %v2467_v22, 4  ;;  %v15035_v30 = vrot.slane %v10950_v25, 4  ;;  %5615 = vmatprep.subr.bf16.mxu0 %v10174_v26  ;;  %v11009_v19 = vld [vmem:[%s10698_s26 + $0xa] sm:$0xff] }
  0xba   : > { %4049 = vrot.lane.b32.xlu0 %v10702_v7, %s14949_s19  ;;  %4051 = vrot.lane.b32.xlu1 %v10719_v11, %s14949_s19  ;;  %9679 = vst.sshfl [vmem:[#allocation3 + $0x1f0] sm:$0xf pattern:$0x76325410] %v11009_v19  ;;  %s14955_s19 = smov 85  }
  0xbb   : > { %v2484_v31 = vsel %vm503_vm0, %v2478_v29, %v15035_v30  ;;  %5616 = vmatpush1.bf16.msra.mxu0 %v10176_v28 }
  0xbc   : > { %v2486_v33 = vsel %vm2485_vm10, %v2467_v22, %v2484_v31  ;;  %v2557_v35 = vpop.permute.xlu0 %2556  ;;  %v10961_v37 = vpop.permute.xlu1 %2558 }
  0xbd   : > { %2500 = vst [vmem:[#allocation3 + $0x1b8] sm:$0x33] %v2486_v33  ;;  %v2568_v38 = vrot.slane %v2557_v35, 4  ;;  %v15034_v39 = vrot.slane %v10961_v37, 4 }
  0xbe   : > { %4139 = vrot.lane.b32.xlu0 %v10715_v10, %s14946_s17  ;;  %4141 = vrot.lane.b32.xlu1 %v10702_v7, %s14946_s17  ;;  %s14952_s17 = smov 86  }
  0xbf   : > { %v2574_v40 = vsel %vm503_vm0, %v2568_v38, %v15034_v39 }
  0xc0   : > { %v2576_v41 = vsel %vm14995_vm11, %v2557_v35, %v2574_v40  ;;  %v1927_v43 = vpop.permute.xlu0 %1926  ;;  %v10972_v45 = vpop.permute.xlu1 %1928  ;;  %vm15008_vm11 = vcmask 564224  }
  0xc1   : > { %2590 = vst [vmem:[#allocation3 + $0x1b8] sm:$0xcc] %v2576_v41  ;;  %v1938_v46 = vrot.slane %v1927_v43, 4  ;;  %v15033_v48 = vrot.slane %v10972_v45, 4 }
  0xc2   : > { %4229 = vrot.lane.b32.xlu0 %v10702_v7, %s14993_s20  ;;  %4231 = vrot.lane.b32.xlu1 %v10719_v11, %s14993_s20  ;;  %s15292_s20 = smov 20  }
  0xc3   : > { %v1944_v50 = vsel %vm503_vm0, %v1938_v46, %v15033_v48 }
  0xc4   : > { %v1946_v52 = vsel %vm14991_vm12, %v1927_v43, %v1944_v50  ;;  %v2017_v53 = vpop.permute.xlu0 %2016  ;;  %v10984_v54 = vpop.permute.xlu1 %2018  ;;  %vm14996_vm12 = vcmask 384000  }
  0xc5   : > { %1960 = vst [vmem:[#allocation3 + $0x140] sm:$0x33] %v1946_v52  ;;  %v2028_v55 = vrot.slane %v2017_v53, 4  ;;  %v15031_v57 = vrot.slane %v10984_v54, 4  ;;  %v11043_v52 = vld [vmem:[%s10698_s26 + $0x8] sm:$0xff] }
  0xc6   : > { %4318 = vrot.lane.b32.xlu0 %v10715_v10, %s14988_s23  ;;  %4320 = vrot.lane.b32.xlu1 %v10702_v7, %s14988_s23  ;;  %s15291_s23 = smov 21  }
  0xc7   : > { %v2034_v9 = vsel %vm503_vm0, %v2028_v55, %v15031_v57 }
  0xc8   : > { %v2036_v58 = vsel %vm14985_vm13, %v2017_v53, %v2034_v9  ;;  %v2107_v59 = vpop.permute.xlu0 %2106  ;;  %v10995_v61 = vpop.permute.xlu1 %2108  ;;  %v10177_v0 = vld [vmem:[#allocation3 + $0x194] ss:$40 sps:$4 sm:$0xff]   ;;  %v10179_v1 = vld [vmem:[#allocation3 + $0x190] ss:$40 sps:$4 sm:$0xff]   ;;  %vm15032_vm13 = vcmask 515072  }
  0xc9   : > { %2050 = vst [vmem:[#allocation3 + $0x140] sm:$0xcc] %v2036_v58  ;;  %v2118_v2 = vrot.slane %v2107_v59, 4  ;;  %v15018_v6 = vrot.slane %v10995_v61, 4  ;;  %5617 = vmatprep.subr.bf16.mxu0 %v10177_v0 }
  0xca   : > { %2703 = vrot.lane.b32.xlu0 %v10922_v63, %s15025_s13  ;;  %2793 = vrot.lane.b32.xlu1 %v10919_v62, %s15019_s14 }
  0xcb   : > { %v2124_v12 = vsel %vm503_vm0, %v2118_v2, %v15018_v6  ;;  %5618 = vmatpush1.bf16.msra.mxu0 %v10179_v1  ;;  %v11055_v2 = vrot.slane %v11043_v52, %v10693_v5  ;;  %v2256_v6 = vcombine.high %v11043_v52, %v11043_v52 }
  0xcc   : > { %v2126_v13 = vsel %vm14948_vm14, %v2107_v59, %v2124_v12  ;;  %v2197_v14 = vpop.permute.xlu0 %2196  ;;  %v11006_v16 = vpop.permute.xlu1 %2198  ;;  %vm14954_vm14 = vcmask 343040   ;;  %v2346_v12 = vcombine.low %v11043_v52, %v11043_v52 }
  0xcd   : > { %2140 = vst [vmem:[#allocation3 + $0x168] sm:$0x33] %v2126_v13  ;;  %v2208_v21 = vrot.slane %v2197_v14, 4  ;;  %v15012_v22 = vrot.slane %v11006_v16, 4 }
  0xce   : > { %2883 = vrot.lane.b32.xlu0 %v10922_v63, %s15021_s15  ;;  %3689 = vrot.lane.b32.xlu1 %v10702_v7, %s14952_s17 }
  0xcf   : > { %v2214_v26 = vsel %vm503_vm0, %v2208_v21, %v15012_v22 }
  0xd0   : > { %v2216_v28 = vsel %vm14951_vm15, %v2197_v14, %v2214_v26  ;;  %v1567_v29 = vpop.permute.xlu0 %1566  ;;  %v11021_v31 = vpop.permute.xlu1 %1568  ;;  %vm14957_vm15 = vcmask 334848  }
  0xd1   : > { %2230 = vst [vmem:[#allocation3 + $0x168] sm:$0xcc] %v2216_v28  ;;  %v1578_v33 = vrot.slane %v1567_v29, 4  ;;  %v15009_v35 = vrot.slane %v11021_v31, 4  ;;  %v11071_v28 = vrot.slane %v2346_v12, %v10693_v5 }
  0xd2   : > { %3691 = vrot.lane.b32.xlu0 %v10719_v11, %s14952_s17  ;;  %3779 = vrot.lane.b32.xlu1 %v10715_v10, %s14955_s19  ;;  %s14961_s17 = smov 84  }
  0xd3   : > { %v1584_v63 = vsel %vm503_vm0, %v1578_v33, %v15009_v35  ;;  %v3278_v33 = vld [vmem:[%s10698_s26 + $0x2] sm:$0xff] }
  0xd4   : > { %v1586_v38 = vsel %vm14954_vm14, %v1567_v29, %v1584_v63  ;;  %v1657_v40 = vpop.permute.xlu0 %1656  ;;  %v11032_v41 = vpop.permute.xlu1 %1658  ;;  %vm14958_vm14 = vcmask 203776  }
  0xd5   : > { %1600 = vst [vmem:[#allocation3 + $0xf0] sm:$0x33] %v1586_v38  ;;  %v1668_v43 = vrot.slane %v1657_v40, 4  ;;  %v15007_v46 = vrot.slane %v11032_v41, 4 }
  0xd6   : > { %3781 = vrot.lane.b32.xlu0 %v10702_v7, %s14955_s19  ;;  %3869 = vrot.lane.b32.xlu1 %v10702_v7, %s14961_s17  ;;  %s14959_s19 = smov 83  }
  0xd7   : > { %v1674_v50 = vsel %vm503_vm0, %v1668_v43, %v15007_v46 }
  0xd8   : > { %v1676_v53 = vsel %vm14957_vm15, %v1657_v40, %v1674_v50  ;;  %v1747_v55 = vpop.permute.xlu0 %1746  ;;  %v11046_v9 = vpop.permute.xlu1 %1748  ;;  %v10180_v58 = vld [vmem:[#allocation3 + $0x144] ss:$40 sps:$4 sm:$0xff]   ;;  %v10182_v59 = vld [vmem:[#allocation3 + $0x140] ss:$40 sps:$4 sm:$0xff]   ;;  %vm14963_vm15 = vcmask 195584   ;;  %v3291_v50 = vrot.slane %v3278_v33, %v10693_v5 }
  0xd9   : > { %1690 = vst [vmem:[#allocation3 + $0xf0] sm:$0xcc] %v1676_v53  ;;  %v1758_v0 = vrot.slane %v1747_v55, 4  ;;  %v15006_v1 = vrot.slane %v11046_v9, 4  ;;  %5619 = vmatprep.subr.bf16.mxu0 %v10180_v58  ;;  %v3284_v53 = vcombine.high %v3278_v33, %v3278_v33 }
  0xda   : > { %3871 = vrot.lane.b32.xlu0 %v10719_v11, %s14961_s17  ;;  %3959 = vrot.lane.b32.xlu1 %v10715_v10, %s14959_s19  ;;  %s15287_s17 = smov 2  }
  0xdb   : > { %v1764_v13 = vsel %vm503_vm0, %v1758_v0, %v15006_v1  ;;  %5620 = vmatpush1.bf16.msra.mxu0 %v10182_v59 }
  0xdc   : > { %v1766_v14 = vsel %vm14958_vm14, %v1747_v55, %v1764_v13  ;;  %v1837_v11 = vpop.permute.xlu0 %1836  ;;  %v11063_v21 = vpop.permute.xlu1 %1838  ;;  %vm14968_vm14 = vcmask 375808   ;;  %v3374_v55 = vcombine.low %v3278_v33, %v3278_v33 }
  0xdd   : > { %1780 = vst [vmem:[#allocation3 + $0x118] sm:$0x33] %v1766_v14  ;;  %v1848_v10 = vrot.slane %v1837_v11, 4  ;;  %v14992_v26 = vrot.slane %v11063_v21, 4 }
  0xde   : > { %3961 = vrot.lane.b32.xlu0 %v10702_v7, %s14959_s19  ;;  %2290 = vrot.lane.b32.xlu1 %v11055_v2, %s15000_s16  ;;  %s15286_s19 = smov 3   ;;  %s15296_s16 = smov 25  }
  0xdf   : > { %v1854_v29 = vsel %vm503_vm0, %v1848_v10, %v14992_v26  ;;  %v3381_v10 = vrot.slane %v3374_v55, %v10693_v5 }
  0xe0   : > { %v1856_v63 = vsel %vm14963_vm15, %v1837_v11, %v1854_v29  ;;  %v1207_v38 = vpop.permute.xlu0 %1206  ;;  %v11078_v40 = vpop.permute.xlu1 %1208  ;;  %vm14972_vm15 = vcmask 367616   ;;  %v3298_v11 = vrot.slane %v3284_v53, %v10693_v5 }
  0xe1   : > { %1870 = vst [vmem:[#allocation3 + $0x118] sm:$0xcc] %v1856_v63  ;;  %v1218_v43 = vrot.slane %v1207_v38, 4  ;;  %v14969_v7 = vrot.slane %v11078_v40, 4 }
  0xe2   : > { %2380 = vrot.lane.b32.xlu0 %v11071_v28, %s15286_s19  ;;  %2470 = vrot.lane.b32.xlu1 %v11055_v2, %s15287_s17 }
  0xe3   : > { %v1224_v58 = vsel %vm503_vm0, %v1218_v43, %v14969_v7 }
  0xe4   : > { %v1226_v59 = vsel %vm14968_vm14, %v1207_v38, %v1224_v58  ;;  %v1297_v0 = vpop.permute.xlu0 %1296  ;;  %v11090_v12 = vpop.permute.xlu1 %1298  ;;  %vm14975_vm14 = vcmask 359424  }
  0xe5   : > { %1240 = vst [vmem:[#allocation3 + $0xa0] sm:$0x33] %v1226_v59  ;;  %v1308_v13 = vrot.slane %v1297_v0, 4  ;;  %v14984_v14 = vrot.slane %v11090_v12, 4 }
  0xe6   : > { %2560 = vrot.lane.b32.xlu0 %v11071_v28, %s15288_s18  ;;  %3329 = vrot.lane.b32.xlu1 %v3291_v50, %s14973_s25 }
  0xe7   : > { %v1314_v29 = vsel %vm503_vm0, %v1308_v13, %v14984_v14 }
  0xe8   : > { %v1316_v33 = vsel %vm14972_vm15, %v1297_v0, %v1314_v29  ;;  %v1387_v63 = vpop.permute.xlu0 %1386  ;;  %v11102_v38 = vpop.permute.xlu1 %1388  ;;  %v10187_v43 = vld [vmem:[#allocation3 + $0xf4] ss:$40 sps:$4 sm:$0xff]   ;;  %v10189_v58 = vld [vmem:[#allocation3 + $0xf0] ss:$40 sps:$4 sm:$0xff]   ;;  %vm14979_vm15 = vcmask 351232  }
  0xe9   : > { %1330 = vst [vmem:[#allocation3 + $0xa0] sm:$0xcc] %v1316_v33  ;;  %v1398_v59 = vrot.slane %v1387_v63, 4  ;;  %v14978_v7 = vrot.slane %v11102_v38, 4  ;;  %5621 = vmatprep.subr.bf16.mxu0 %v10187_v43 }
  0xea   : > { %3331 = vrot.lane.b32.xlu0 %v3298_v11, %s14973_s25  ;;  %3419 = vrot.lane.b32.xlu1 %v3381_v10, %s14976_s24  ;;  %s14981_s25 = smov 103  }
  0xeb   : > { %v1404_v53 = vsel %vm503_vm0, %v1398_v59, %v14978_v7  ;;  %5622 = vmatpush1.bf16.msra.mxu0 %v10189_v58 }
  0xec   : > { %v1406_v55 = vsel %vm14975_vm14, %v1387_v63, %v1404_v53  ;;  %v1477_v0 = vpop.permute.xlu0 %1476  ;;  %v11111_v13 = vpop.permute.xlu1 %1478  ;;  %vm865_vm14 = vcmask 531456  }
  0xed   : > { %1420 = vst [vmem:[#allocation3 + $0xc8] sm:$0x33] %v1406_v55  ;;  %v1488_v29 = vrot.slane %v1477_v0, 4  ;;  %v14980_v33 = vrot.slane %v11111_v13, 4 }
  0xee   : > { %3421 = vrot.lane.b32.xlu0 %v3291_v50, %s14976_s24  ;;  %3509 = vrot.lane.b32.xlu1 %v3291_v50, %s14981_s25  ;;  %s14986_s24 = smov 87  }
  0xef   : > { %v1494_v43 = vsel %vm503_vm0, %v1488_v29, %v14980_v33 }
  0xf0   : > { %v1496_v63 = vsel %vm14979_vm15, %v1477_v0, %v1494_v43  ;;  %v847_v58 = vpop.permute.xlu0 %846  ;;  %v11120_v59 = vpop.permute.xlu1 %848  ;;  %vm955_vm15 = vcmask 523264  }
  0xf1   : > { %1510 = vst [vmem:[#allocation3 + $0xc8] sm:$0xcc] %v1496_v63  ;;  %v858_v53 = vrot.slane %v847_v58, 4  ;;  %v14983_v55 = vrot.slane %v11120_v59, 4 }
  0xf2   : > { %3511 = vrot.lane.b32.xlu0 %v3298_v11, %s14981_s25  ;;  %3599 = vrot.lane.b32.xlu1 %v3381_v10, %s14986_s24  ;;  %v2939_v11 = vcombine.high %v10894_v47, %v10894_v47  ;;  %s15289_s25 = smov 23  }
  0xf3   : > { %v864_v7 = vsel %vm503_vm0, %v858_v53, %v14983_v55 }
  0xf4   : > { %v866_v29 = vsel %vm865_vm14, %v847_v58, %v864_v7  ;;  %v937_v0 = vpop.permute.xlu0 %936  ;;  %v11129_v43 = vpop.permute.xlu1 %938 }
  0xf5   : > { %880 = vst [vmem:[#allocation3 + $0x50] sm:$0x33] %v866_v29  ;;  %v948_v63 = vrot.slane %v937_v0, 4  ;;  %v14990_v33 = vrot.slane %v11129_v43, 4 }
  0xf6   : > { %3601 = vrot.lane.b32.xlu0 %v3291_v50, %s14986_s24  ;;  %1930 = vrot.lane.b32.xlu1 %v11055_v2, %s15289_s25  ;;  %s15290_s24 = smov 22   ;;  %v11149_v50 = vrot.slane %v2939_v11, %v10693_v5 }
  0xf7   : > { %v954_v7 = vsel %vm503_vm0, %v948_v63, %v14990_v33 }
  0xf8   : > { %v956_v10 = vsel %vm955_vm15, %v937_v0, %v954_v7  ;;  %v1027_v58 = vpop.permute.xlu0 %1026  ;;  %v11141_v53 = vpop.permute.xlu1 %1028  ;;  %v10190_v29 = vld [vmem:[#allocation3 + $0xa4] ss:$40 sps:$4 sm:$0xff]   ;;  %v10192_v55 = vld [vmem:[#allocation3 + $0xa0] ss:$40 sps:$4 sm:$0xff]  }
  0xf9   : > { %970 = vst [vmem:[#allocation3 + $0x50] sm:$0xcc] %v956_v10  ;;  %v1038_v14 = vrot.slane %v1027_v58, 4  ;;  %v15002_v47 = vrot.slane %v11141_v53, 4  ;;  %5623 = vmatprep.subr.bf16.mxu0 %v10190_v29 }
  0xfa   : > { %2020 = vrot.lane.b32.xlu0 %v11071_v28, %s15290_s24  ;;  %2110 = vrot.lane.b32.xlu1 %v11055_v2, %s15291_s23 }
  0xfb   : > { %v1044_v0 = vsel %vm503_vm0, %v1038_v14, %v15002_v47  ;;  %5624 = vmatpush1.bf16.msra.mxu0 %v10192_v55  ;;  %v11183_v47 = vld [vmem:[%s15293_s2 + $0x4] ss:$8 sps:$4 sm:$0xff]  }
  0xfc   : > { %v1046_v63 = vsel %vm15032_vm13, %v1027_v58, %v1044_v0  ;;  %v1117_v7 = vpop.permute.xlu0 %1116  ;;  %v11155_v10 = vpop.permute.xlu1 %1118 }
  0xfd   : > { %1060 = vst [vmem:[#allocation3 + $0x78] sm:$0x33] %v1046_v63  ;;  %v1128_v33 = vrot.slane %v1117_v7, 4  ;;  %v14997_v26 = vrot.slane %v11155_v10, 4 }
  0xfe   : > { %2200 = vrot.lane.b32.xlu0 %v11071_v28, %s15292_s20  ;;  %2975 = vrot.lane.b32.xlu1 %v11149_v50, %s14998_s28  ;;  %s15295_s28 = smov 41  }
  0xff   : > { %v1134_v14 = vsel %vm503_vm0, %v1128_v33, %v14997_v26 }
 0x100   : > { %v1136_v55 = vsel %vm14996_vm12, %v1117_v7, %v1134_v14  ;;  %v486_v11 = vpop.permute.xlu0 %485  ;;  %v11166_v58 = vpop.permute.xlu1 %487  ;;  %vm15011_vm12 = vcmask 556032  }
 0x101   : > { %1150 = vst [vmem:[#allocation3 + $0x78] sm:$0xcc] %v1136_v55  ;;  %v497_v29 = vrot.slane %v486_v11, 4  ;;  %v15005_v0 = vrot.slane %v11166_v58, 4  ;;  %9814 = vmatprep.mubr.msk.bf16.mxu0 %vm15011_vm12, %v11183_v47  ;;  %9816 = vmatprep.mubr.msk.bf16.mxu1 %vm15011_vm12, %v11183_v47 }
 0x102   : > { %3065 = vrot.lane.b32.xlu0 %v10919_v62, %s15027_s27  ;;  %3155 = vrot.lane.b32.xlu1 %v11149_v50, %s15003_s30  ;;  %s15294_s30 = smov 42   ;;  %s15301_s27 = smov 43  }
 0x103   : > { %v504_v33 = vsel %vm503_vm0, %v497_v29, %v15005_v0 }
 0x104   : > { %v506_v63 = vsel %vm15008_vm11, %v486_v11, %v504_v33  ;;  %v577_v7 = vpop.permute.xlu0 %576  ;;  %v11177_v14 = vpop.permute.xlu1 %578  ;;  %vm15015_vm11 = vcmask 547840  }
 0x105   : > { %520 = vst [vmem:[#allocation3] sm:$0x33] %v506_v63  ;;  %v588_v55 = vrot.slane %v577_v7, 4  ;;  %v15010_v26 = vrot.slane %v11177_v14, 4 }
 0x106   : > { %3245 = vrot.lane.b32.xlu0 %v10919_v62, %s15013_s29  ;;  %1570 = vrot.lane.b32.xlu1 %v11055_v2, %s15294_s30  ;;  %s15297_s29 = smov 24  }
 0x107   : > { %v594_v11 = vsel %vm503_vm0, %v588_v55, %v15010_v26 }
 0x108   : > { %v596_v29 = vsel %vm15011_vm12, %v577_v7, %v594_v11  ;;  %v667_v33 = vpop.permute.xlu0 %666  ;;  %v11197_v63 = vpop.permute.xlu1 %668  ;;  %v10193_v0 = vld [vmem:[#allocation3 + $0x54] ss:$40 sps:$4 sm:$0xff]   ;;  %v10195_v1 = vld [vmem:[#allocation3 + $0x50] ss:$40 sps:$4 sm:$0xff]   ;;  %vm15029_vm12 = vcmask 539648  }
 0x109   : > { %610 = vst [vmem:[#allocation3] sm:$0xcc] %v596_v29  ;;  %v678_v46 = vrot.slane %v667_v33, 4  ;;  %v15017_v35 = vrot.slane %v11197_v63, 4  ;;  %5625 = vmatprep.subr.bf16.mxu0 %v10193_v0 }
 0x10a   : > { %1660 = vrot.lane.b32.xlu0 %v11071_v28, %s15295_s28  ;;  %1750 = vrot.lane.b32.xlu1 %v11055_v2, %s15296_s16 }
 0x10b   : > { %v684_v7 = vsel %vm503_vm0, %v678_v46, %v15017_v35  ;;  %5626 = vmatpush1.bf16.msra.mxu0 %v10195_v1 }
 0x10c   : > { %v686_v55 = vsel %vm15015_vm11, %v667_v33, %v684_v7  ;;  %v757_v11 = vpop.permute.xlu0 %756  ;;  %v11208_v29 = vpop.permute.xlu1 %758  ;;  %vm15024_vm11 = vcmask 482304  }
 0x10d   : > { %700 = vst [vmem:[#allocation3 + $0x28] sm:$0x33] %v686_v55  ;;  %v768_v26 = vrot.slane %v757_v11, 4  ;;  %v15016_v22 = vrot.slane %v11208_v29, 4 }
 0x10e   : > { %1840 = vrot.lane.b32.xlu0 %v11071_v28, %s15297_s29  ;;  %2705 = vrot.lane.b32.xlu1 %v10919_v62, %s15025_s13  ;;  %s15300_s13 = smov 44  }
 0x10f   : > { %v774_v46 = vsel %vm503_vm0, %v768_v26, %v15016_v22 }
 0x110   : > { %v776_v1 = vsel %vm15029_vm12, %v757_v11, %v774_v46  ;;  %v4767_v0 = vpop.permute.xlu0 %4766  ;;  %v11219_v33 = vpop.permute.xlu1 %4768  ;;  %vm15043_vm12 = vcmask 498688  }
 0x111   : > { %790 = vst [vmem:[#allocation3 + $0x28] sm:$0xcc] %v776_v1  ;;  %v4778_v7 = vrot.slane %v4767_v0, 4  ;;  %v15023_v55 = vrot.slane %v11219_v33, 4 }
 0x112   : > { %2795 = vrot.lane.b32.xlu0 %v11149_v50, %s15019_s14  ;;  %2885 = vrot.lane.b32.xlu1 %v10919_v62, %s15021_s15  ;;  %s15298_s14 = smov 46   ;;  %s15299_s15 = smov 45  }
 0x113   : > { %v4784_v26 = vsel %vm503_vm0, %v4778_v7, %v15023_v55 }
 0x114   : > { %v4786_v11 = vsel %vm15024_vm11, %v4767_v0, %v4784_v26  ;;  %v4408_v46 = vpop.permute.xlu0 %4407  ;;  %v11230_v22 = vpop.permute.xlu1 %4409  ;;  %vm15036_vm11 = vcmask 506880  }
 0x115   : > { %4800 = vst [vmem:[#allocation3 + $0x3c0] sm:$0x33] %v4786_v11  ;;  %v4419_v1 = vrot.slane %v4408_v46, 4  ;;  %v15030_v35 = vrot.slane %v11230_v22, 4 }
 0x116   : > { %1210 = vrot.lane.b32.xlu0 %v11055_v2, %s15298_s14  ;;  %1300 = vrot.lane.b32.xlu1 %v11071_v28, %s15299_s15 }
 0x117   : > { %v4425_v62 = vsel %vm503_vm0, %v4419_v1, %v15030_v35  ;;  %v11251_v1 = vrot.slane %v2256_v6, %v10693_v5 }
 0x118   : > { %v4426_v50 = vsel %vm15032_vm13, %v4408_v46, %v4425_v62  ;;  %v4497_v0 = vpop.permute.xlu0 %4496  ;;  %v11243_v7 = vpop.permute.xlu1 %4498  ;;  %v10196_v26 = vld [vmem:[#allocation3 + $0x4] ss:$40 sps:$4 sm:$0xff]   ;;  %v10198_v11 = vld [vmem:[#allocation3] ss:$40 sps:$4 sm:$0xff]   ;;  %vm5582_vm13 = vcmask 1041408  }
 0x119   : > { %4440 = vst [vmem:[#allocation3 + $0x370] sm:$0x33] %v4426_v50  ;;  %v4508_v55 = vrot.slane %v4497_v0, 4  ;;  %v15040_v52 = vrot.slane %v11243_v7, 4  ;;  %5627 = vmatprep.subr.bf16.mxu0 %v10196_v26 }
 0x11a   : > { %1390 = vrot.lane.b32.xlu0 %v11055_v2, %s15300_s13  ;;  %1480 = vrot.lane.b32.xlu1 %v11071_v28, %s15301_s27 }
 0x11b   : > { %v4514_v46 = vsel %vm503_vm0, %v4508_v55, %v15040_v52  ;;  %5628 = vmatpush1.bf16.msra.mxu0 %v10198_v11 }
 0x11c   : > { %v4516_v62 = vsel %vm15036_vm11, %v4497_v0, %v4514_v46  ;;  %v4587_v50 = vpop.permute.xlu0 %4586  ;;  %v11257_v35 = vpop.permute.xlu1 %4588  ;;  %v4927_v57 = vld [vmem:[#allocation3 + $0x3c0] sm:$0x33]  ;;  %vm15041_vm11 = vcmask 490496  }
 0x11d   : > { %4530 = vst [vmem:[#allocation3 + $0x370] sm:$0xcc] %v4516_v62  ;;  %v4598_v48 = vrot.slane %v4587_v50, 4  ;;  %v15039_v39 = vrot.slane %v11257_v35, 4  ;;  %v9804_v6 = vcombine.high %v4927_v57, %v4927_v57  ;;  %v9803_v30 = vcombine.low %v4927_v57, %v4927_v57 }
 0x11e   : > { %2292 = vrot.lane.b32.xlu0 %v11251_v1, %s15302_s0  ;;  %2382 = vrot.lane.b32.xlu1 %v11055_v2, %s15286_s19 }
 0x11f   : > { %v4604_v55 = vsel %vm503_vm0, %v4598_v48, %v15039_v39  ;;  %9813 = vmatprep.subr.msk.bf16.mxu0 %vm5582_vm13, %v9804_v6  ;;  %v5584_v0 = vsel %vm5582_vm13, %v9803_v30, 0 }
 0x120   : > { %v4606_v26 = vsel %vm15043_vm12, %v4587_v50, %v4604_v55  ;;  %v4677_v11 = vpop.permute.xlu0 %4676  ;;  %5636 = vmatpush2.bf16.msra.mxu0 %v5584_v0  ;;  %v11270_v46 = vpop.permute.xlu1 %4678  ;;  %vm15051_vm12 = vcmask 662528  }
 0x121   : > { %4620 = vst [vmem:[#allocation3 + $0x398] sm:$0x33] %v4606_v26  ;;  %v4688_v57 = vrot.slane %v4677_v11, 4  ;;  %v15038_v62 = vrot.slane %v11270_v46, 4 }
 0x122   : > { %2472 = vrot.lane.b32.xlu0 %v11251_v1, %s15287_s17  ;;  %2562 = vrot.lane.b32.xlu1 %v11055_v2, %s15288_s18 }
 0x123   : > { %v4694_v30 = vsel %vm503_vm0, %v4688_v57, %v15038_v62 }
 0x124   : > { %v4696_v48 = vsel %vm15041_vm11, %v4677_v11, %v4694_v30  ;;  %v11281_v50 = vpop.permute.xlu0 %2973  ;;  %v11283_v6 = vpop.permute.xlu1 %3063  ;;  %vm15053_vm11 = vcmask 670720  }
 0x125   : > { %4710 = vst [vmem:[#allocation3 + $0x398] sm:$0xcc] %v4696_v48  ;;  %v15061_v55 = vrot.slane %v11281_v50, 4  ;;  %v15058_v0 = vrot.slane %v11283_v6, 4 }
 0x126   : > { %850 = vrot.lane.b32.xlu0 %v11055_v2, %s15303_s21  ;;  %940 = vrot.lane.b32.xlu1 %v11071_v28, %s15304_s12 }
 0x127   : > { %v2990_v26 = vsel %vm503_vm0, %v2982_v27, %v15061_v55  ;;  %v3080_v11 = vsel %vm503_vm0, %v3072_v24, %v15058_v0 }
 0x128   : > { %v2991_v57 = vsel %vm2988_vm2, %v10851_v23, %v2990_v26  ;;  %v3081_v30 = vsel %vm3078_vm1, %v10839_v18, %v3080_v11  ;;  %v11305_v48 = vpop.permute.xlu0 %3153  ;;  %v11307_v62 = vpop.permute.xlu1 %3243 }
 0x129   : > { %3004 = vst [vmem:[#allocation3 + $0x238] sm:$0x33] %v2991_v57  ;;  %3094 = vst [vmem:[#allocation3 + $0x238] sm:$0xcc] %v3081_v30  ;;  %v15042_v27 = vrot.slane %v11305_v48, 4  ;;  %v15048_v39 = vrot.slane %v11307_v62, 4 }
 0x12a   : > { %1030 = vrot.lane.b32.xlu0 %v11055_v2, %s15305_s9  ;;  %1120 = vrot.lane.b32.xlu1 %v11071_v28, %s15306_s10 }
 0x12b   : > { %v3170_v18 = vsel %vm503_vm0, %v3162_v36, %v15042_v27  ;;  %v3260_v23 = vsel %vm503_vm0, %v3252_v34, %v15048_v39 }
 0x12c   : > { %v3171_v24 = vsel %vm3168_vm3, %v10867_v32, %v3170_v18  ;;  %v3261_v26 = vsel %vm3258_vm4, %v10845_v20, %v3260_v23  ;;  %v4050_v11 = vpop.permute.xlu0 %4049  ;;  %v11329_v57 = vpop.permute.xlu1 %4051  ;;  %v10201_v30 = vld [vmem:[#allocation3 + $0x374] ss:$40 sps:$4 sm:$0xff]   ;;  %v10203_v52 = vld [vmem:[#allocation3 + $0x370] ss:$40 sps:$4 sm:$0xff]  }
 0x12d   : > { %3184 = vst [vmem:[#allocation3 + $0x260] sm:$0x33] %v3171_v24  ;;  %3274 = vst [vmem:[#allocation3 + $0x260] sm:$0xcc] %v3261_v26  ;;  %v4061_v36 = vrot.slane %v4050_v11, 4  ;;  %v15044_v27 = vrot.slane %v11329_v57, 4  ;;  %5637 = vmatprep.subr.bf16.mxu0 %v10201_v30 }
 0x12e   : > { %1932 = vrot.lane.b32.xlu0 %v11251_v1, %s15289_s25  ;;  %2022 = vrot.lane.b32.xlu1 %v11055_v2, %s15290_s24 }
 0x12f   : > { %v4067_v20 = vsel %vm503_vm0, %v4061_v36, %v15044_v27  ;;  %5638 = vmatpush2.bf16.msra.mxu0 %v10203_v52 }
 0x130   : > { %v4069_v32 = vsel %vm15053_vm11, %v4050_v11, %v4067_v20  ;;  %v4140_v34 = vpop.permute.xlu0 %4139  ;;  %v11340_v18 = vpop.permute.xlu1 %4141  ;;  %vm15060_vm11 = vcmask 695296  }
 0x131   : > { %4083 = vst [vmem:[#allocation3 + $0x320] sm:$0x33] %v4069_v32  ;;  %v4151_v23 = vrot.slane %v4140_v34, 4  ;;  %v15047_v24 = vrot.slane %v11340_v18, 4 }
 0x132   : > { %2112 = vrot.lane.b32.xlu0 %v11251_v1, %s15291_s23  ;;  %2202 = vrot.lane.b32.xlu1 %v11055_v2, %s15292_s20 }
 0x133   : > { %v4157_v26 = vsel %vm503_vm0, %v4151_v23, %v15047_v24 }
 0x134   : > { %v4159_v11 = vsel %vm15051_vm12, %v4140_v34, %v4157_v26  ;;  %v4230_v52 = vpop.permute.xlu0 %4229  ;;  %v11351_v30 = vpop.permute.xlu1 %4231  ;;  %v10204_v36 = vld [vmem:[#allocation3 + $0x23c] ss:$40 sps:$4 sm:$0xff]   ;;  %v10206_v20 = vld [vmem:[#allocation3 + $0x238] ss:$40 sps:$4 sm:$0xff]   ;;  %vm15057_vm12 = vcmask 703488  }
 0x135   : > { %4173 = vst [vmem:[#allocation3 + $0x320] sm:$0xcc] %v4159_v11  ;;  %v4241_v32 = vrot.slane %v4230_v52, 4  ;;  %v15050_v27 = vrot.slane %v11351_v30, 4  ;;  %5656 = vmatprep.subr.bf16.mxu1 %v10204_v36 }
 0x136   : > { %489 = vrot.lane.b32.xlu0 %v11055_v2, %s15307_s11  ;;  %580 = vrot.lane.b32.xlu1 %v11071_v28, %s15308_s22 }
 0x137   : > { %v4247_v23 = vsel %vm503_vm0, %v4241_v32, %v15050_v27  ;;  %5657 = vmatpush1.bf16.msra.mxu1 %v10206_v20 }
 0x138   : > { %v4248_v34 = vsel %vm865_vm14, %v4230_v52, %v4247_v23  ;;  %v4319_v26 = vpop.permute.xlu0 %4318  ;;  %v11362_v24 = vpop.permute.xlu1 %4320 }
 0x139   : > { %4262 = vst [vmem:[#allocation3 + $0x348] sm:$0x33] %v4248_v34  ;;  %v4330_v11 = vrot.slane %v4319_v26, 4  ;;  %v15049_v39 = vrot.slane %v11362_v24, 4 }
 0x13a   : > { %670 = vrot.lane.b32.xlu0 %v11055_v2, %s15309_s8  ;;  %760 = vrot.lane.b32.xlu1 %v11071_v28, %s15310_s7 }
 0x13b   : > { %v4336_v36 = vsel %vm503_vm0, %v4330_v11, %v15049_v39 }
 0x13c   : > { %v4337_v52 = vsel %vm955_vm15, %v4319_v26, %v4336_v36  ;;  %v11373_v32 = vpop.permute.xlu0 %2703  ;;  %v11375_v20 = vpop.permute.xlu1 %2793 }
 0x13d   : > { %4351 = vst [vmem:[#allocation3 + $0x348] sm:$0xcc] %v4337_v52  ;;  %v15056_v23 = vrot.slane %v11373_v32, 4  ;;  %v15054_v34 = vrot.slane %v11375_v20, 4 }
 0x13e   : > { %1572 = vrot.lane.b32.xlu0 %v11251_v1, %s15294_s30  ;;  %1662 = vrot.lane.b32.xlu1 %v11055_v2, %s15295_s28 }
 0x13f   : > { %v2720_v28 = vsel %vm503_vm0, %v2712_v44, %v15056_v23  ;;  %v2810_v26 = vsel %vm503_vm0, %v2802_v51, %v15054_v34 }
 0x140   : > { %v2721_v11 = vsel %vm2718_vm5, %v10883_v42, %v2720_v28  ;;  %v2811_v36 = vsel %vm2808_vm6, %v10897_v49, %v2810_v26  ;;  %v11397_v52 = vpop.permute.xlu0 %2883  ;;  %v3690_v39 = vpop.permute.xlu1 %3689 }
 0x141   : > { %2734 = vst [vmem:[#allocation3 + $0x1e8] sm:$0xcc] %v2721_v11  ;;  %2824 = vst [vmem:[#allocation3 + $0x210] sm:$0x33] %v2811_v36  ;;  %v15052_v27 = vrot.slane %v11397_v52, 4  ;;  %v3701_v11 = vrot.slane %v3690_v39, 4 }
 0x142   : > { %1752 = vrot.lane.b32.xlu0 %v11251_v1, %s15296_s16  ;;  %1842 = vrot.lane.b32.xlu1 %v11055_v2, %s15297_s29 }
 0x143   : > { %v2900_v42 = vsel %vm503_vm0, %v2892_v60, %v15052_v27 }
 0x144   : > { %v2901_v44 = vsel %vm2898_vm7, %v10910_v56, %v2900_v42  ;;  %v11411_v49 = vpop.permute.xlu0 %3691  ;;  %v3780_v51 = vpop.permute.xlu1 %3779  ;;  %v10207_v28 = vld [vmem:[#allocation3 + $0x324] ss:$40 sps:$4 sm:$0xff]   ;;  %v10209_v26 = vld [vmem:[#allocation3 + $0x320] ss:$40 sps:$4 sm:$0xff]  }
 0x145   : > { %2914 = vst [vmem:[#allocation3 + $0x210] sm:$0xcc] %v2901_v44  ;;  %v15055_v36 = vrot.slane %v11411_v49, 4  ;;  %5639 = vmatprep.subr.bf16.mxu0 %v10207_v28  ;;  %v3791_v27 = vrot.slane %v3780_v51, 4  ;;  %v11431_v28 = vrot.slane %v11009_v19, %v10693_v5 }
 0x146   : > { %1212 = vrot.lane.b32.xlu0 %v11251_v1, %s15298_s14  ;;  %1302 = vrot.lane.b32.xlu1 %v11055_v2, %s15299_s15 }
 0x147   : > { %v3707_v56 = vsel %vm503_vm0, %v3701_v11, %v15055_v36  ;;  %5640 = vmatpush2.bf16.msra.mxu0 %v10209_v26 }
 0x148   : > { %v3709_v60 = vsel %vm15057_vm12, %v3690_v39, %v3707_v56  ;;  %v11422_v42 = vpop.permute.xlu0 %3781  ;;  %v3870_v44 = vpop.permute.xlu1 %3869  ;;  %vm15070_vm12 = vcmask 687104  }
 0x149   : > { %3723 = vst [vmem:[#allocation3 + $0x2d0] sm:$0x33] %v3709_v60  ;;  %v15059_v34 = vrot.slane %v11422_v42, 4  ;;  %v3881_v23 = vrot.slane %v3870_v44, 4 }
 0x14a   : > { %1392 = vrot.lane.b32.xlu0 %v11251_v1, %s15300_s13  ;;  %1482 = vrot.lane.b32.xlu1 %v11055_v2, %s15301_s27  ;;  %s15344_s27 = smov 104   ;;  %s15349_s13 = smov 103  }
 0x14b   : > { %v3797_v39 = vsel %vm503_vm0, %v3791_v27, %v15059_v34 }
 0x14c   : > { %v3799_v26 = vsel %vm15060_vm11, %v3780_v51, %v3797_v39  ;;  %v11437_v11 = vpop.permute.xlu0 %3871  ;;  %v3960_v56 = vpop.permute.xlu1 %3959  ;;  %v10210_v60 = vld [vmem:[#allocation3 + $0x1ec] ss:$40 sps:$4 sm:$0xff]   ;;  %v10212_v36 = vld [vmem:[#allocation3 + $0x1e8] ss:$40 sps:$4 sm:$0xff]   ;;  %vm15069_vm11 = vcmask 678912  }
 0x14d   : > { %3813 = vst [vmem:[#allocation3 + $0x2d0] sm:$0xcc] %v3799_v26  ;;  %v15063_v0 = vrot.slane %v11437_v11, 4  ;;  %5658 = vmatprep.subr.bf16.mxu1 %v10210_v60  ;;  %v3971_v34 = vrot.slane %v3960_v56, 4 }
 0x14e   : > { %4770 = vrot.lane.b32.xlu0 %v11431_v28, %s15311_s6  ;;  %852 = vrot.lane.b32.xlu1 %v11251_v1, %s15303_s21 }
 0x14f   : > { %v3887_v27 = vsel %vm503_vm0, %v3881_v23, %v15063_v0  ;;  %5659 = vmatpush1.bf16.msra.mxu1 %v10212_v36  ;;  %v4466_v23 = vcombine.low %v11009_v19, %v11009_v19 }
 0x150   : > { %v3889_v51 = vsel %vm15070_vm12, %v3870_v44, %v3887_v27  ;;  %v11448_v39 = vpop.permute.xlu0 %3961  ;;  %v11450_v26 = vpop.permute.xlu1 %2290  ;;  %vm15075_vm12 = vcmask 859136  }
 0x151   : > { %3903 = vst [vmem:[#allocation3 + $0x2f8] sm:$0x33] %v3889_v51  ;;  %v15066_v55 = vrot.slane %v11448_v39, 4  ;;  %v15067_v17 = vrot.slane %v11450_v26, 4 }
 0x152   : > { %942 = vrot.lane.b32.xlu0 %v11055_v2, %s15304_s12  ;;  %1032 = vrot.lane.b32.xlu1 %v11251_v1, %s15305_s9 }
 0x153   : > { %v3977_v36 = vsel %vm503_vm0, %v3971_v34, %v15066_v55  ;;  %v2307_v44 = vsel %vm503_vm0, %v2299_v8, %v15067_v17  ;;  %v11482_v8 = vrot.slane %v4466_v23, %v10693_v5 }
 0x154   : > { %v3979_v60 = vsel %vm15069_vm11, %v3960_v56, %v3977_v36  ;;  %v2308_v27 = vsel %vm2305_vm8, %v10928_v4, %v2307_v44  ;;  %v11471_v51 = vpop.permute.xlu0 %2380  ;;  %v11473_v0 = vpop.permute.xlu1 %2470  ;;  %v15312_v4 = vrot.slane %v10939_v15, 4  ;;  %v15313_v36 = vrot.slane %v10950_v25, 4 }
 0x155   : > { %3993 = vst [vmem:[#allocation3 + $0x2f8] sm:$0xcc] %v3979_v60  ;;  %2321 = vst [vmem:[#allocation3 + $0x198] sm:$0x33] %v2308_v27  ;;  %v15073_v3 = vrot.slane %v11471_v51, 4  ;;  %v15071_v34 = vrot.slane %v11473_v0, 4 }
 0x156   : > { %1122 = vrot.lane.b32.xlu0 %v11055_v2, %s15306_s10  ;;  %4411 = vrot.lane.b32.xlu1 %v11431_v28, %s15305_s9  ;;  %vm15317_vm11 = vcmask 7168   ;;  %s15339_s10 = smov 83  }
 0x157   : > { %v2397_v56 = vsel %vm503_vm0, %v15312_v4, %v15073_v3  ;;  %v2487_v44 = vsel %vm503_vm0, %v15313_v36, %v15071_v34 }
 0x158   : > { %v2398_v60 = vsel %vm2395_vm9, %v10939_v15, %v2397_v56  ;;  %v2488_v27 = vsel %vm2485_vm10, %v10950_v25, %v2487_v44  ;;  %v11498_v23 = vpop.permute.xlu0 %2560  ;;  %v3330_v55 = vpop.permute.xlu1 %3329  ;;  %v15316_v15 = vrot.slane %v10961_v37, 4 }
 0x159   : > { %2411 = vst [vmem:[#allocation3 + $0x198] sm:$0xcc] %v2398_v60  ;;  %2501 = vst [vmem:[#allocation3 + $0x1c0] sm:$0x33] %v2488_v27  ;;  %v15072_v17 = vrot.slane %v11498_v23, 4  ;;  %v3341_v27 = vrot.slane %v3330_v55, 4 }
 0x15a   : > { %4500 = vrot.lane.b32.xlu0 %v11482_v8, %s15314_s4  ;;  %4590 = vrot.lane.b32.xlu1 %v11431_v28, %s15315_s1 }
 0x15b   : > { %v2577_v4 = vsel %vm503_vm0, %v15316_v15, %v15072_v17 }
 0x15c   : > { %v2578_v25 = vsel %vm15317_vm11, %v10961_v37, %v2577_v4  ;;  %v11512_v56 = vpop.permute.xlu0 %3331  ;;  %v3420_v36 = vpop.permute.xlu1 %3419  ;;  %v10213_v44 = vld [vmem:[#allocation3 + $0x2d4] ss:$40 sps:$4 sm:$0xff]   ;;  %v10215_v60 = vld [vmem:[#allocation3 + $0x2d0] ss:$40 sps:$4 sm:$0xff]   ;;  %vm15079_vm11 = vcmask 850944  }
 0x15d   : > { %15318 = vst [vmem:[#allocation8_spill] sm:$0xff] %v11512_v56  ;;  %2591 = vst [vmem:[#allocation3 + $0x1c0] sm:$0xcc] %v2578_v25  ;;  %v15074_v34 = vrot.slane %v11512_v56, 4  ;;  %5641 = vmatprep.subr.bf16.mxu0 %v10213_v44  ;;  %v3431_v17 = vrot.slane %v3420_v36, 4 }
 0x15e   : > { %4680 = vrot.lane.b32.xlu0 %v11482_v8, %s15319_s5  ;;  %491 = vrot.lane.b32.xlu1 %v11251_v1, %s15307_s11  ;;  %s15333_s11 = smov 84  }
 0x15f   : > { %v3347_v37 = vsel %vm503_vm0, %v3341_v27, %v15074_v34  ;;  %5642 = vmatpush2.bf16.msra.mxu0 %v10215_v60 }
 0x160   : > { %v3349_v15 = vsel %vm15075_vm12, %v3330_v55, %v3347_v37  ;;  %v11523_v4 = vpop.permute.xlu0 %3421  ;;  %v3510_v25 = vpop.permute.xlu1 %3509  ;;  %vm15082_vm12 = vcmask 842752  }
 0x161   : > { %15320 = vst [vmem:[#allocation9_spill] sm:$0xff] %v11523_v4  ;;  %3363 = vst [vmem:[#allocation3 + $0x280] sm:$0x33] %v3349_v15  ;;  %v15080_v3 = vrot.slane %v11523_v4, 4  ;;  %v3521_v34 = vrot.slane %v3510_v25, 4 }
 0x162   : > { %582 = vrot.lane.b32.xlu0 %v11055_v2, %s15308_s22  ;;  %672 = vrot.lane.b32.xlu1 %v11251_v1, %s15309_s8  ;;  %s15327_s8 = smov 86   ;;  %s15332_s22 = smov 85  }
 0x163   : > { %v3437_v44 = vsel %vm503_vm0, %v3431_v17, %v15080_v3 }
 0x164   : > { %v3439_v55 = vsel %vm15079_vm11, %v3420_v36, %v3437_v44  ;;  %v11534_v27 = vpop.permute.xlu0 %3511  ;;  %v3600_v60 = vpop.permute.xlu1 %3599  ;;  %v10216_v37 = vld [vmem:[#allocation3 + $0x19c] ss:$40 sps:$4 sm:$0xff]   ;;  %v10218_v15 = vld [vmem:[#allocation3 + $0x198] ss:$40 sps:$4 sm:$0xff]   ;;  %vm15087_vm11 = vcmask 711680  }
 0x165   : > { %15321 = vst [vmem:[#allocation10_spill] sm:$0xff] %v11534_v27  ;;  %3453 = vst [vmem:[#allocation3 + $0x280] sm:$0xcc] %v3439_v55  ;;  %v15083_v56 = vrot.slane %v11534_v27, 4  ;;  %5660 = vmatprep.subr.bf16.mxu1 %v10216_v37  ;;  %v3611_v55 = vrot.slane %v3600_v60, 4 }
 0x166   : > { %762 = vrot.lane.b32.xlu0 %v11055_v2, %s15310_s7  ;;  %4053 = vrot.lane.b32.xlu1 %v11431_v28, %s15322_s3  ;;  %s15324_s7 = smov 81  }
 0x167   : > { %v3527_v17 = vsel %vm503_vm0, %v3521_v34, %v15083_v56  ;;  %5661 = vmatpush1.bf16.msra.mxu1 %v10218_v15 }
 0x168   : > { %v3529_v1 = vsel %vm15082_vm12, %v3510_v25, %v3527_v17  ;;  %v11545_v36 = vpop.permute.xlu0 %3601  ;;  %v11547_v44 = vpop.permute.xlu1 %1930  ;;  %v15325_v25 = vrot.slane %v10972_v45, 4  ;;  %vm15326_vm12 = vcmask 187392  }
 0x169   : > { %15323 = vst [vmem:[#allocation11_spill] sm:$0xff] %v11545_v36  ;;  %3543 = vst [vmem:[#allocation3 + $0x2a8] sm:$0x33] %v3529_v1  ;;  %v15088_v2 = vrot.slane %v11545_v36, 4  ;;  %v15093_v3 = vrot.slane %v11547_v44, 4 }
 0x16a   : > { %4143 = vrot.lane.b32.xlu0 %v11482_v8, %s15324_s7  ;;  %4233 = vrot.lane.b32.xlu1 %v11431_v28, %s15303_s21 }
 0x16b   : > { %v3617_v34 = vsel %vm503_vm0, %v3611_v55, %v15088_v2  ;;  %v1947_v37 = vsel %vm503_vm0, %v15325_v25, %v15093_v3  ;;  %v15329_v25 = vrot.slane %v10995_v61, 4 }
 0x16c   : > { %v3619_v15 = vsel %vm15087_vm11, %v3600_v60, %v3617_v34  ;;  %v1948_v17 = vsel %vm15326_vm12, %v10972_v45, %v1947_v37  ;;  %v11566_v1 = vpop.permute.xlu0 %2020  ;;  %v11568_v56 = vpop.permute.xlu1 %2110  ;;  %v11578_v60 = vcombine.high %v11009_v19, %v11009_v19  ;;  %v15328_v45 = vrot.slane %v10984_v54, 4 }
 0x16d   : > { %3633 = vst [vmem:[#allocation3 + $0x2a8] sm:$0xcc] %v3619_v15  ;;  %1961 = vst [vmem:[#allocation3 + $0x148] sm:$0x33] %v1948_v17  ;;  %v15089_v36 = vrot.slane %v11566_v1, 4  ;;  %v15092_v55 = vrot.slane %v11568_v56, 4 }
 0x16e   : > { %4322 = vrot.lane.b32.xlu0 %v11482_v8, %s15304_s12  ;;  %3693 = vrot.lane.b32.xlu1 %v11431_v28, %s15327_s8  ;;  %vm15330_vm12 = vcmask 179200   ;;  %vm15331_vm11 = vcmask 171008   ;;  %9680 = vst.sshfl [vmem:[#allocation3 + $0x1f8] sm:$0xf pattern:$0x76325410] %v11578_v60 }
 0x16f   : > { %v2037_v34 = vsel %vm503_vm0, %v15328_v45, %v15089_v36  ;;  %v2127_v37 = vsel %vm503_vm0, %v15329_v25, %v15092_v55  ;;  %v15335_v25 = vrot.slane %v11281_v50, 4 }
 0x170   : > { %v2038_v15 = vsel %vm15330_vm12, %v10984_v54, %v2037_v34  ;;  %v2128_v17 = vsel %vm15331_vm11, %v10995_v61, %v2127_v37  ;;  %v11594_v19 = vpop.permute.xlu0 %2200  ;;  %v11596_v2 = vpop.permute.xlu1 %2975  ;;  %v11606_v54 = vrot.slane %v11578_v60, %v10693_v5  ;;  %v15334_v61 = vrot.slane %v11006_v16, 4 }
 0x171   : > { %2051 = vst [vmem:[#allocation3 + $0x148] sm:$0xcc] %v2038_v15  ;;  %2141 = vst [vmem:[#allocation3 + $0x170] sm:$0x33] %v2128_v17  ;;  %v15098_v45 = vrot.slane %v11594_v19, 4  ;;  %v15102_v36 = vrot.slane %v11596_v2, 4 }
 0x172   : > { %3783 = vrot.lane.b32.xlu0 %v11482_v8, %s15332_s22  ;;  %3873 = vrot.lane.b32.xlu1 %v11431_v28, %s15333_s11  ;;  %vm15336_vm11 = vcmask 162816   ;;  %vm15347_vm12 = vcmask 343040  }
 0x173   : > { %v2217_v34 = vsel %vm503_vm0, %v15334_v61, %v15098_v45  ;;  %v2992_v37 = vsel %vm503_vm0, %v15335_v25, %v15102_v36 }
 0x174   : > { %v2218_v15 = vsel %vm15336_vm11, %v11006_v16, %v2217_v34  ;;  %v2993_v17 = vsel %vm2988_vm2, %v11281_v50, %v2992_v37  ;;  %v11622_v55 = vpop.permute.xlu0 %3065  ;;  %v11624_v3 = vpop.permute.xlu1 %3155  ;;  %v10219_v27 = vld [vmem:[#allocation3 + $0x284] ss:$40 sps:$4 sm:$0xff]   ;;  %v10221_v4 = vld [vmem:[#allocation3 + $0x280] ss:$40 sps:$4 sm:$0xff]   ;;  %v15340_v16 = vrot.slane %v11283_v6, 4  ;;  %v15341_v34 = vrot.slane %v11305_v48, 4 }
 0x175   : > { %15337 = vst [vmem:[#allocation12_spill] sm:$0xff] %v11622_v55  ;;  %15338 = vst [vmem:[#allocation13_spill] sm:$0xff] %v11624_v3  ;;  %v15105_v61 = vrot.slane %v11622_v55, 4  ;;  %v15104_v45 = vrot.slane %v11624_v3, 4  ;;  %5643 = vmatprep.subr.bf16.mxu0 %v10219_v27  ;;  %v10230_v37 = vld [vmem:[%s15293_s2] ss:$8 sps:$4 sm:$0xff]  }
 0x176   : > { %2231 = vst [vmem:[#allocation3 + $0x170] sm:$0xcc] %v2218_v15  ;;  %3005 = vst [vmem:[#allocation3 + $0x240] sm:$0x33] %v2993_v17  ;;  %3963 = vrot.lane.b32.xlu0 %v11482_v8, %s15339_s10  ;;  %4772 = vrot.lane.b32.xlu1 %v11606_v54, %s15311_s6  ;;  %s15343_s6 = smov 105   ;;  %vm15348_vm11 = vcmask 556032  }
 0x177   : > { %v3082_v50 = vsel %vm503_vm0, %v15340_v16, %v15105_v61  ;;  %v3172_v25 = vsel %vm503_vm0, %v15341_v34, %v15104_v45  ;;  %5644 = vmatpush2.bf16.msra.mxu0 %v10221_v4  ;;  %v15346_v4 = vrot.slane %v11021_v31, 4  ;;  %s15350_s2 = smov 87  }
 0x178   : > { %v3083_v15 = vsel %vm3078_vm1, %v11283_v6, %v3082_v50  ;;  %v3173_v17 = vsel %vm3168_vm3, %v11305_v48, %v3172_v25  ;;  %v11649_v36 = vpop.permute.xlu0 %3245  ;;  %v11651_v16 = vpop.permute.xlu1 %1570  ;;  %v15345_v6 = vrot.slane %v11307_v62, 4 }
 0x179   : > { %15342 = vst [vmem:[#allocation14_spill] sm:$0xff] %v11649_v36  ;;  %3095 = vst [vmem:[#allocation3 + $0x240] sm:$0xcc] %v3083_v15  ;;  %v15107_v34 = vrot.slane %v11649_v36, 4  ;;  %v15111_v27 = vrot.slane %v11651_v16, 4 }
 0x17a   : > { %3185 = vst [vmem:[#allocation3 + $0x268] sm:$0x33] %v3173_v17  ;;  %3333 = vrot.lane.b32.xlu0 %v11431_v28, %s15343_s6  ;;  %3423 = vrot.lane.b32.xlu1 %v11482_v8, %s15344_s27  ;;  %v11760_v36 = vld [vmem:[%s10698_s26 + $0x12] sm:$0x3f] }
 0x17b   : > { %v3262_v48 = vsel %vm503_vm0, %v15345_v6, %v15107_v34  ;;  %v1587_v50 = vsel %vm503_vm0, %v15346_v4, %v15111_v27  ;;  %5646 = vmatmul.mubr.bf16.vlgmr.msra.gmra.mxu0 %v10230_v37 }
 0x17c   : > { %v3263_v25 = vsel %vm3258_vm4, %v11307_v62, %v3262_v48  ;;  %v1588_v15 = vsel %vm15347_vm12, %v11021_v31, %v1587_v50  ;;  %v11673_v17 = vpop.permute.xlu0 %1660  ;;  %v11675_v45 = vpop.permute.xlu1 %1750  ;;  %9818 = vmatprep.mubr.msk.bf16.mxu0 %vm15348_vm11, %v11183_v47  ;;  %v15351_v31 = vrot.slane %v11032_v41, 4  ;;  %v15352_v47 = vrot.slane %v11046_v9, 4  ;;  %v11696_v50 = vld [vmem:[%s10698_s26 + $0x12] sm:$0x3f] }
 0x17d   : > { %v10222_v61 = vld [vmem:[#allocation3 + $0x14c] ss:$40 sps:$4 sm:$0xff]   ;;  %v10224_v6 = vld [vmem:[#allocation3 + $0x148] ss:$40 sps:$4 sm:$0xff]   ;;  %3275 = vst [vmem:[#allocation3 + $0x268] sm:$0xcc] %v3263_v25 }
 0x17e   : > { %1601 = vst [vmem:[#allocation3 + $0xf8] sm:$0x33] %v1588_v15  ;;  %v15109_v37 = vrot.slane %v11673_v17, 4  ;;  %v15108_v4 = vrot.slane %v11675_v45, 4  ;;  %3513 = vrot.lane.b32.xlu0 %v11431_v28, %s15349_s13  ;;  %3603 = vrot.lane.b32.xlu1 %v11482_v8, %s15350_s2  ;;  %vm15353_vm12 = vcmask 334848   ;;  %vm15354_vm11 = vcmask 203776  }
 0x17f   : > { %5662 = vmatprep.subr.bf16.mxu1 %v10222_v61 }
 0x180   : > { %v1677_v62 = vsel %vm503_vm0, %v15351_v31, %v15109_v37  ;;  %v1767_v48 = vsel %vm503_vm0, %v15352_v47, %v15108_v4  ;;  %v11702_v15 = vpop.permute.xlu0 %1840  ;;  %5663 = vmatpush1.bf16.msra.mxu1 %v10224_v6  ;;  %v11704_v31 = vpop.permute.xlu1 %2705 }
 0x181   : > { %v1678_v8 = vsel %vm15353_vm12, %v11032_v41, %v1677_v62  ;;  %v1768_v25 = vsel %vm15354_vm11, %v11046_v9, %v1767_v48  ;;  %15355 = vst [vmem:[#allocation15_spill] sm:$0xff] %v11704_v31  ;;  %v15110_v47 = vrot.slane %v11702_v15, 4  ;;  %v15112_v61 = vrot.slane %v11704_v31, 4 }
 0x182   : > { %1691 = vst [vmem:[#allocation3 + $0xf8] sm:$0xcc] %v1678_v8  ;;  %1781 = vst [vmem:[#allocation3 + $0x120] sm:$0x33] %v1768_v25  ;;  %4413 = vrot.lane.b32.xlu0 %v11606_v54, %s15305_s9  ;;  %4502 = vrot.lane.b32.xlu1 %v11431_v28, %s15314_s4  ;;  %v3044_v41 = vcombine.low %v11696_v50, %v11696_v50  ;;  %v15356_v9 = vrot.slane %v11063_v21, 4  ;;  %v15357_v62 = vrot.slane %v11373_v32, 4 }
 0x183   : > { %v11725_v8 = vld [vmem:[%s10698_s26 + $0x12] sm:$0x3f]  ;;  %vm15358_vm12 = vcmask 195584   ;;  %vm15366_vm11 = vcmask 375808   ;;  %s15368_s4 = smov 107   ;;  %s15369_s9 = smov 106  }
 0x184   : > { %v1857_v6 = vsel %vm503_vm0, %v15356_v9, %v15110_v47  ;;  %v2722_v48 = vsel %vm503_vm0, %v15357_v62, %v15112_v61  ;;  %v11728_v25 = vld [vmem:[%s10698_s26 + $0x12] sm:$0x3f]  ;;  %v11734_v37 = vpop.permute.xlu0 %2795  ;;  %v11736_v9 = vpop.permute.xlu1 %2885  ;;  %v10227_v47 = vld [vmem:[#allocation3 + $0x240] ss:$40 sps:$4 sm:$0xff]   ;;  %v10229_v27 = vld [vmem:[#allocation3 + $0x244] ss:$40 sps:$4 sm:$0xff]  }
 0x185   : > { %v1858_v34 = vsel %vm15358_vm12, %v11063_v21, %v1857_v6  ;;  %v2723_v4 = vsel %vm2718_vm5, %v11373_v32, %v2722_v48  ;;  %15359 = vst [vmem:[#allocation16_spill] sm:$0xff] %v11734_v37  ;;  %v15126_v62 = vrot.slane %v11734_v37, 4  ;;  %v15125_v61 = vrot.slane %v11736_v9, 4  ;;  %5699 = vmatprep.subr.bf16.mxu0 %v10229_v27 }
 0x186   : > { %1871 = vst [vmem:[#allocation3 + $0x120] sm:$0xcc] %v1858_v34  ;;  %2735 = vst [vmem:[#allocation3 + $0x1f0] sm:$0xcc] %v2723_v4  ;;  %4592 = vrot.lane.b32.xlu0 %v11606_v54, %s15315_s1  ;;  %4682 = vrot.lane.b32.xlu1 %v11431_v28, %s15319_s5  ;;  %v2961_v21 = vrot.slane %v11725_v8, %v10693_v5  ;;  %v3051_v32 = vrot.slane %v3044_v41, %v10693_v5  ;;  %v15360_v34 = vrot.slane %v11375_v20, 4  ;;  %s15362_s5 = smov 109  }
 0x187   : > { %v3224_v6 = vcombine.low %v11728_v25, %v11728_v25  ;;  %v15361_v48 = vrot.slane %v11397_v52, 4  ;;  %5700 = vmatpush1.bf16.msra.mxu0 %v10227_v47  ;;  %s15363_s1 = smov 108   ;;  %v15364_v27 = vrot.slane %v11078_v40, 4  ;;  %vm15367_vm12 = vcmask 367616  }
 0x188   : > { %v2812_v4 = vsel %vm503_vm0, %v15360_v34, %v15126_v62  ;;  %v11766_v37 = vpop.permute.xlu0 %1210  ;;  %v11768_v55 = vpop.permute.xlu1 %1300 }
 0x189   : > { %v2902_v31 = vsel %vm503_vm0, %v15361_v48, %v15125_v61  ;;  %v2813_v41 = vsel %vm2808_vm6, %v11375_v20, %v2812_v4  ;;  %v15134_v34 = vrot.slane %v11766_v37, 4  ;;  %v15131_v48 = vrot.slane %v11768_v55, 4 }
 0x18a   : > { %v2903_v3 = vsel %vm2898_vm7, %v11397_v52, %v2902_v31  ;;  %2825 = vst [vmem:[#allocation3 + $0x218] sm:$0x33] %v2813_v41  ;;  %2977 = vrot.lane.b32.xlu0 %v2961_v21, %s15362_s5  ;;  %3067 = vrot.lane.b32.xlu1 %v3051_v32, %s15363_s1  ;;  %v3141_v20 = vrot.slane %v11760_v36, %v10693_v5 }
 0x18b   : > { %2915 = vst [vmem:[#allocation3 + $0x218] sm:$0xcc] %v2903_v3  ;;  %v3231_v52 = vrot.slane %v3224_v6, %v10693_v5  ;;  %v1227_v31 = vsel %vm503_vm0, %v15364_v27, %v15134_v34  ;;  %v15365_v3 = vrot.slane %v11090_v12, 4 }
 0x18c   : > { %v1228_v21 = vsel %vm15366_vm11, %v11078_v40, %v1227_v31  ;;  %v11791_v6 = vpop.permute.xlu0 %1390  ;;  %v11793_v4 = vpop.permute.xlu1 %1480  ;;  %v15370_v40 = vrot.slane %v11102_v38, 4  ;;  %v15371_v31 = vrot.slane %v11111_v13, 4  ;;  %vm15372_vm11 = vcmask 359424  }
 0x18d   : > { %v1317_v47 = vsel %vm503_vm0, %v15365_v3, %v15131_v48  ;;  %v10233_v41 = vld [vmem:[#allocation3 + $0xfc] ss:$40 sps:$4 sm:$0xff]   ;;  %v10235_v61 = vld [vmem:[#allocation3 + $0xf8] ss:$40 sps:$4 sm:$0xff]   ;;  %1241 = vst [vmem:[#allocation3 + $0xa8] sm:$0x33] %v1228_v21 }
 0x18e   : > { %v1318_v32 = vsel %vm15367_vm12, %v11090_v12, %v1317_v47  ;;  %v15129_v27 = vrot.slane %v11791_v6, 4  ;;  %v15130_v62 = vrot.slane %v11793_v4, 4  ;;  %3157 = vrot.lane.b32.xlu0 %v3141_v20, %s15368_s4  ;;  %3247 = vrot.lane.b32.xlu1 %v3231_v52, %s15369_s9  ;;  %v11810_v47 = vld [vmem:[%s10698_s26 + $0x12] sm:$0x3f]  ;;  %vm15373_vm12 = vcmask 351232  }
 0x18f   : > { %1331 = vst [vmem:[#allocation3 + $0xa8] sm:$0xcc] %v1318_v32  ;;  %5664 = vmatprep.subr.bf16.mxu1 %v10233_v41 }
 0x190   : > { %v1407_v12 = vsel %vm503_vm0, %v15370_v40, %v15129_v27  ;;  %v1497_v3 = vsel %vm503_vm0, %v15371_v31, %v15130_v62  ;;  %v11816_v21 = vpop.permute.xlu0 %2292  ;;  %5665 = vmatpush1.bf16.msra.mxu1 %v10235_v61  ;;  %v11818_v32 = vpop.permute.xlu1 %2382 }
 0x191   : > { %v1408_v20 = vsel %vm15372_vm11, %v11102_v38, %v1407_v12  ;;  %v1498_v52 = vsel %vm15373_vm12, %v11111_v13, %v1497_v3  ;;  %15374 = vst [vmem:[#allocation17_spill] sm:$0xff] %v11818_v32  ;;  %v15133_v41 = vrot.slane %v11816_v21, 4  ;;  %v15132_v31 = vrot.slane %v11818_v32, 4 }
 0x192   : > { %v10236_v40 = vld [vmem:[#allocation3 + $0x1f0] ss:$40 sps:$4 sm:$0xff]   ;;  %v10238_v27 = vld [vmem:[#allocation3 + $0x1f4] ss:$40 sps:$4 sm:$0xff]   ;;  %1421 = vst [vmem:[#allocation3 + $0xd0] sm:$0x33] %v1408_v20  ;;  %4055 = vrot.lane.b32.xlu0 %v11606_v54, %s15322_s3  ;;  %4145 = vrot.lane.b32.xlu1 %v11431_v28, %s15324_s7  ;;  %v2684_v38 = vcombine.low %v11810_v47, %v11810_v47 }
 0x193   : > { %1511 = vst [vmem:[#allocation3 + $0xd0] sm:$0xcc] %v1498_v52  ;;  %v15375_v13 = vrot.slane %v11450_v26, 4  ;;  %v15376_v12 = vrot.slane %v11471_v51, 4  ;;  %5701 = vmatprep.subr.bf16.mxu0 %v10238_v27  ;;  %v11840_v20 = vld [vmem:[%s10698_s26 + $0x12] sm:$0x3f] }
 0x194   : > { %v11843_v52 = vld [vmem:[%s10698_s26 + $0x12] sm:$0x3f]  ;;  %v11849_v48 = vpop.permute.xlu0 %2472  ;;  %5702 = vmatpush1.bf16.msra.mxu0 %v10236_v40  ;;  %vm15381_vm11 = vcmask 7168   ;;  %s15382_s7 = smov 127   ;;  %s15383_s3 = smov 126   ;;  %vm15389_vm12 = vcmask 515072  }
 0x195   : > { %v2309_v61 = vsel %vm503_vm0, %v15375_v13, %v15133_v41  ;;  %v2399_v3 = vsel %vm503_vm0, %v15376_v12, %v15132_v31  ;;  %15377 = vst [vmem:[#allocation18_spill] sm:$0xff] %v11849_v48  ;;  %v11851_v13 = vpop.permute.xlu1 %2562  ;;  %v15139_v12 = vrot.slane %v11849_v48, 4  ;;  %v2864_v40 = vcombine.low %v11843_v52, %v11843_v52 }
 0x196   : > { %v2310_v60 = vsel %vm2305_vm8, %v11450_v26, %v2309_v61  ;;  %v2400_v62 = vsel %vm2395_vm9, %v11471_v51, %v2399_v3  ;;  %15378 = vst [vmem:[#allocation19_spill] sm:$0xff] %v11851_v13  ;;  %v15143_v27 = vrot.slane %v11851_v13, 4  ;;  %4235 = vrot.lane.b32.xlu0 %v11606_v54, %s15303_s21  ;;  %4324 = vrot.lane.b32.xlu1 %v11431_v28, %s15304_s12  ;;  %v15380_v3 = vrot.slane %v11498_v23, 4  ;;  %s15386_s12 = smov 125  }
 0x197   : > { %2322 = vst [vmem:[#allocation3 + $0x1a0] sm:$0x33] %v2310_v60  ;;  %2412 = vst [vmem:[#allocation3 + $0x1a0] sm:$0xcc] %v2400_v62  ;;  %v2691_v26 = vrot.slane %v2684_v38, %v10693_v5  ;;  %v2781_v51 = vrot.slane %v11840_v20, %v10693_v5  ;;  %v15379_v62 = vrot.slane %v11473_v0, 4 }
 0x198   : > { %v2579_v60 = vsel %vm503_vm0, %v15380_v3, %v15143_v27  ;;  %v11878_v41 = vpop.permute.xlu0 %850 }
 0x199   : > { %v2489_v61 = vsel %vm503_vm0, %v15379_v62, %v15139_v12  ;;  %v2580_v31 = vsel %vm15381_vm11, %v11498_v23, %v2579_v60  ;;  %v11880_v34 = vpop.permute.xlu1 %940  ;;  %v15147_v62 = vrot.slane %v11878_v41, 4  ;;  %v15384_v23 = vrot.slane %v11120_v59, 4 }
 0x19a   : > { %v2490_v38 = vsel %vm2485_vm10, %v11473_v0, %v2489_v61  ;;  %v10240_v48 = vld [vmem:[#allocation3 + $0xac] ss:$40 sps:$4 sm:$0xff]   ;;  %v10242_v32 = vld [vmem:[#allocation3 + $0xa8] ss:$40 sps:$4 sm:$0xff]   ;;  %2592 = vst [vmem:[#allocation3 + $0x1c8] sm:$0xcc] %v2580_v31  ;;  %2707 = vrot.lane.b32.xlu0 %v2691_v26, %s15382_s7  ;;  %2797 = vrot.lane.b32.xlu1 %v2781_v51, %s15383_s3  ;;  %v2871_v0 = vrot.slane %v2864_v40, %v10693_v5 }
 0x19b   : > { %2502 = vst [vmem:[#allocation3 + $0x1c8] sm:$0x33] %v2490_v38  ;;  %v15146_v12 = vrot.slane %v11880_v34, 4  ;;  %v867_v61 = vsel %vm503_vm0, %v15384_v23, %v15147_v62  ;;  %v15385_v31 = vrot.slane %v11129_v43, 4  ;;  %5666 = vmatprep.subr.bf16.mxu1 %v10240_v48  ;;  %v15388_v48 = vrot.slane %v11155_v10, 4 }
 0x19c   : > { %v868_v26 = vsel %vm865_vm14, %v11120_v59, %v867_v61  ;;  %v11901_v40 = vpop.permute.xlu0 %1030  ;;  %5667 = vmatpush1.bf16.msra.mxu1 %v10242_v32  ;;  %v15387_v59 = vrot.slane %v11141_v53, 4  ;;  %v11921_v61 = vld [vmem:[%s10698_s26 + $0x10] sm:$0x3f]  ;;  %vm15390_vm11 = vcmask 384000  }
 0x19d   : > { %v957_v3 = vsel %vm503_vm0, %v15385_v31, %v15146_v12  ;;  %v11903_v60 = vpop.permute.xlu1 %1120  ;;  %881 = vst [vmem:[#allocation3 + $0x58] sm:$0x33] %v868_v26  ;;  %v15145_v38 = vrot.slane %v11901_v40, 4  ;;  %v11924_v31 = vld [vmem:[%s10698_s26 + $0x10] sm:$0x3f] }
 0x19e   : > { %v958_v51 = vsel %vm955_vm15, %v11129_v43, %v957_v3  ;;  %v15144_v23 = vrot.slane %v11903_v60, 4  ;;  %2887 = vrot.lane.b32.xlu0 %v2871_v0, %s15386_s12  ;;  %3695 = vrot.lane.b32.xlu1 %v11606_v54, %s15327_s8  ;;  %v11958_v12 = vld [vmem:[%s10698_s26 + $0x10] sm:$0x3f] }
 0x19f   : > { %971 = vst [vmem:[#allocation3 + $0x58] sm:$0xcc] %v958_v51  ;;  %v1047_v43 = vsel %vm503_vm0, %v15387_v59, %v15145_v38  ;;  %v11955_v38 = vld [vmem:[%s10698_s26 + $0x10] sm:$0x3f] }
 0x1a0   : > { %v1137_v32 = vsel %vm503_vm0, %v15388_v48, %v15144_v23  ;;  %v1048_v0 = vsel %vm15389_vm12, %v11141_v53, %v1047_v43  ;;  %v11930_v26 = vpop.permute.xlu0 %1932  ;;  %v2278_v53 = vrot.slane %v11921_v61, %v10693_v5  ;;  %v15393_v43 = vrot.slane %v11547_v44, 4 }
 0x1a1   : > { %v1138_v3 = vsel %vm15390_vm11, %v11155_v10, %v1137_v32  ;;  %15391 = vst [vmem:[#allocation20_spill] sm:$0xff] %v11930_v26  ;;  %v11932_v51 = vpop.permute.xlu1 %2022  ;;  %1061 = vst [vmem:[#allocation3 + $0x80] sm:$0x33] %v1048_v0  ;;  %v15153_v48 = vrot.slane %v11930_v26, 4  ;;  %v2361_v10 = vcombine.low %v11924_v31, %v11924_v31  ;;  %v15394_v0 = vrot.slane %v11566_v1, 4 }
 0x1a2   : > { %15392 = vst [vmem:[#allocation21_spill] sm:$0xff] %v11932_v51  ;;  %v10244_v59 = vld [vmem:[#allocation3 + $0x1a0] ss:$40 sps:$4 sm:$0xff]   ;;  %v10246_v27 = vld [vmem:[#allocation3 + $0x1a4] ss:$40 sps:$4 sm:$0xff]   ;;  %v15152_v23 = vrot.slane %v11932_v51, 4  ;;  %3785 = vrot.lane.b32.xlu0 %v11431_v28, %s15332_s22  ;;  %3875 = vrot.lane.b32.xlu1 %v11606_v54, %s15333_s11 }
 0x1a3   : > { %1151 = vst [vmem:[#allocation3 + $0x80] sm:$0xcc] %v1138_v3  ;;  %v1949_v32 = vsel %vm503_vm0, %v15393_v43, %v15153_v48  ;;  %5703 = vmatprep.subr.bf16.mxu0 %v10246_v27  ;;  %vm15395_vm12 = vcmask 187392   ;;  %vm15396_vm11 = vcmask 179200  }
 0x1a4   : > { %v2039_v3 = vsel %vm503_vm0, %v15394_v0, %v15152_v23  ;;  %v1950_v62 = vsel %vm15395_vm12, %v11547_v44, %v1949_v32  ;;  %v11964_v13 = vpop.permute.xlu0 %2112  ;;  %5704 = vmatpush1.bf16.msra.mxu0 %v10244_v59  ;;  %v2368_v44 = vrot.slane %v2361_v10, %v10693_v5  ;;  %v2541_v59 = vcombine.low %v11958_v12, %v11958_v12 }
 0x1a5   : > { %v2040_v26 = vsel %vm15396_vm11, %v11566_v1, %v2039_v3  ;;  %15397 = vst [vmem:[#allocation22_spill] sm:$0xff] %v11964_v13  ;;  %v11966_v43 = vpop.permute.xlu1 %2202  ;;  %1962 = vst [vmem:[#allocation3 + $0x150] sm:$0x33] %v1950_v62  ;;  %v15158_v0 = vrot.slane %v11964_v13, 4  ;;  %v2458_v1 = vrot.slane %v11955_v38, %v10693_v5  ;;  %v15398_v62 = vrot.slane %v11568_v56, 4 }
 0x1a6   : > { %2052 = vst [vmem:[#allocation3 + $0x150] sm:$0xcc] %v2040_v26  ;;  %v15159_v27 = vrot.slane %v11966_v43, 4  ;;  %3965 = vrot.lane.b32.xlu0 %v11431_v28, %s15339_s10  ;;  %2294 = vrot.lane.b32.xlu1 %v2278_v53, %s15302_s0  ;;  %v15399_v32 = vrot.slane %v11594_v19, 4  ;;  %vm15400_vm12 = vcmask 171008   ;;  %vm15401_vm11 = vcmask 162816  }
 0x1a7   : > { %v2129_v26 = vsel %vm503_vm0, %v15398_v62, %v15158_v0 }
 0x1a8   : > { %v2219_v53 = vsel %vm503_vm0, %v15399_v32, %v15159_v27  ;;  %v2130_v10 = vsel %vm15400_vm12, %v11568_v56, %v2129_v26  ;;  %v11992_v23 = vpop.permute.xlu0 %489  ;;  %v2548_v56 = vrot.slane %v2541_v59, %v10693_v5  ;;  %v15403_v32 = vrot.slane %v11177_v14, 4 }
 0x1a9   : > { %v2220_v3 = vsel %vm15401_vm11, %v11594_v19, %v2219_v53  ;;  %v11994_v48 = vpop.permute.xlu1 %580  ;;  %2142 = vst [vmem:[#allocation3 + $0x178] sm:$0x33] %v2130_v10  ;;  %v15163_v62 = vrot.slane %v11992_v23, 4  ;;  %v15402_v19 = vrot.slane %v11166_v58, 4  ;;  %vm15404_vm12 = vcmask 564224  }
 0x1aa   : > { %v10248_v13 = vld [vmem:[#allocation3 + $0x5c] ss:$40 sps:$4 sm:$0xff]   ;;  %v10250_v51 = vld [vmem:[#allocation3 + $0x58] ss:$40 sps:$4 sm:$0xff]   ;;  %2232 = vst [vmem:[#allocation3 + $0x178] sm:$0xcc] %v2220_v3  ;;  %2384 = vrot.lane.b32.xlu0 %v2368_v44, %s15286_s19  ;;  %2474 = vrot.lane.b32.xlu1 %v2458_v1, %s15287_s17 }
 0x1ab   : > { %v15162_v0 = vrot.slane %v11994_v48, 4  ;;  %v507_v26 = vsel %vm503_vm0, %v15402_v19, %v15163_v62  ;;  %5668 = vmatprep.subr.bf16.mxu1 %v10248_v13  ;;  %vm15405_vm11 = vcmask 556032  }
 0x1ac   : > { %v508_v44 = vsel %vm15404_vm12, %v11166_v58, %v507_v26  ;;  %v12015_v59 = vpop.permute.xlu0 %670  ;;  %5669 = vmatpush1.bf16.msra.mxu1 %v10250_v51  ;;  %v12025_v58 = vld [vmem:[%s10698_s26 + $0x10] sm:$0x3f]  ;;  %v15407_v51 = vrot.slane %v11208_v29, 4  ;;  %vm15408_vm12 = vcmask 547840  }
 0x1ad   : > { %v597_v53 = vsel %vm503_vm0, %v15403_v32, %v15162_v0  ;;  %v12017_v10 = vpop.permute.xlu1 %760  ;;  %521 = vst [vmem:[#allocation3 + $0x8] sm:$0x33] %v508_v44  ;;  %v15161_v3 = vrot.slane %v12015_v59, 4  ;;  %v12038_v32 = vld [vmem:[%s10698_s26 + $0x10] sm:$0x3f] }
 0x1ae   : > { %v598_v1 = vsel %vm15405_vm11, %v11177_v14, %v597_v53  ;;  %v15160_v19 = vrot.slane %v12017_v10, 4  ;;  %2564 = vrot.lane.b32.xlu0 %v2548_v56, %s15288_s18  ;;  %3335 = vrot.lane.b32.xlu1 %v11606_v54, %s15343_s6  ;;  %v15406_v14 = vrot.slane %v11197_v63, 4  ;;  %vm15409_vm11 = vcmask 539648   ;;  %v12072_v0 = vld [vmem:[%s10698_s26 + $0x10] sm:$0x3f] }
 0x1af   : > { %611 = vst [vmem:[#allocation3 + $0x8] sm:$0xcc] %v598_v1 }
 0x1b0   : > { %v687_v13 = vsel %vm503_vm0, %v15406_v14, %v15161_v3  ;;  %v777_v26 = vsel %vm503_vm0, %v15407_v51, %v15160_v19  ;;  %v12044_v44 = vpop.permute.xlu0 %1572  ;;  %v12069_v3 = vld [vmem:[%s10698_s26 + $0x10] sm:$0x3f] }
 0x1b1   : > { %v688_v56 = vsel %vm15408_vm12, %v11197_v63, %v687_v13  ;;  %v778_v53 = vsel %vm15409_vm11, %v11208_v29, %v777_v26  ;;  %15410 = vst [vmem:[#allocation23_spill] sm:$0xff] %v12044_v44  ;;  %v12046_v1 = vpop.permute.xlu1 %1662  ;;  %v10252_v14 = vld [vmem:[#allocation3 + $0x150] ss:$40 sps:$4 sm:$0xff]   ;;  %v10254_v27 = vld [vmem:[#allocation3 + $0x154] ss:$40 sps:$4 sm:$0xff]   ;;  %v15167_v51 = vrot.slane %v12044_v44, 4  ;;  %v2001_v63 = vcombine.low %v12025_v58, %v12025_v58 }
 0x1b2   : > { %701 = vst [vmem:[#allocation3 + $0x30] sm:$0x33] %v688_v56  ;;  %791 = vst [vmem:[#allocation3 + $0x30] sm:$0xcc] %v778_v53  ;;  %v15166_v19 = vrot.slane %v12046_v1, 4  ;;  %3425 = vrot.lane.b32.xlu0 %v11431_v28, %s15344_s27  ;;  %3515 = vrot.lane.b32.xlu1 %v11606_v54, %s15349_s13  ;;  %v1918_v29 = vrot.slane %v12038_v32, %v10693_v5  ;;  %v15411_v13 = vrot.slane %v11651_v16, 4 }
 0x1b3   : > { %v15412_v56 = vrot.slane %v11673_v17, 4  ;;  %5705 = vmatprep.subr.bf16.mxu0 %v10254_v27  ;;  %vm15413_vm12 = vcmask 343040   ;;  %vm15414_vm11 = vcmask 334848  }
 0x1b4   : > { %v1589_v26 = vsel %vm503_vm0, %v15411_v13, %v15167_v51  ;;  %v12078_v44 = vpop.permute.xlu0 %1752  ;;  %5706 = vmatpush1.bf16.msra.mxu0 %v10252_v14  ;;  %v15416_v14 = vrot.slane %v11675_v45, 4 }
 0x1b5   : > { %v1679_v53 = vsel %vm503_vm0, %v15412_v56, %v15166_v19  ;;  %v1590_v54 = vsel %vm15413_vm12, %v11651_v16, %v1589_v26  ;;  %15415 = vst [vmem:[#allocation24_spill] sm:$0xff] %v12078_v44  ;;  %v12080_v13 = vpop.permute.xlu1 %1842  ;;  %v15170_v56 = vrot.slane %v12078_v44, 4  ;;  %v2008_v19 = vrot.slane %v2001_v63, %v10693_v5 }
 0x1b6   : > { %v1680_v62 = vsel %vm15414_vm11, %v11673_v17, %v1679_v53  ;;  %1602 = vst [vmem:[#allocation3 + $0x100] sm:$0x33] %v1590_v54  ;;  %v15176_v27 = vrot.slane %v12080_v13, 4  ;;  %3605 = vrot.lane.b32.xlu0 %v11431_v28, %s15350_s2  ;;  %1934 = vrot.lane.b32.xlu1 %v1918_v29, %s15289_s25  ;;  %v2098_v16 = vrot.slane %v12069_v3, %v10693_v5  ;;  %v15417_v28 = vrot.slane %v11702_v15, 4 }
 0x1b7   : > { %1692 = vst [vmem:[#allocation3 + $0x100] sm:$0xcc] %v1680_v62  ;;  %v2181_v17 = vcombine.low %v12072_v0, %v12072_v0  ;;  %v2954_v62 = vcombine.high %v11725_v8, %v11725_v8  ;;  %v1769_v63 = vsel %vm503_vm0, %v15416_v14, %v15170_v56  ;;  %vm15418_vm12 = vcmask 203776  }
 0x1b8   : > { %v1859_v29 = vsel %vm503_vm0, %v15417_v28, %v15176_v27  ;;  %v1770_v26 = vsel %vm15418_vm12, %v11675_v45, %v1769_v63  ;;  %vm15419_vm11 = vcmask 195584   ;;  %v12108_v54 = vpop.permute.xlu0 %1212  ;;  %v3134_v63 = vcombine.high %v11760_v36, %v11760_v36 }
 0x1b9   : > { %v1860_v53 = vsel %vm15419_vm11, %v11702_v15, %v1859_v29  ;;  %v12110_v8 = vpop.permute.xlu1 %1302  ;;  %v10256_v51 = vld [vmem:[#allocation3 + $0xc] ss:$40 sps:$4 sm:$0xff]   ;;  %v10258_v44 = vld [vmem:[#allocation3 + $0x8] ss:$40 sps:$4 sm:$0xff]   ;;  %1782 = vst [vmem:[#allocation3 + $0x128] sm:$0x33] %v1770_v26  ;;  %v2188_v45 = vrot.slane %v2181_v17, %v10693_v5  ;;  %v2968_v15 = vrot.slane %v2954_v62, %v10693_v5 }
 0x1ba   : > { %1872 = vst [vmem:[#allocation3 + $0x128] sm:$0xcc] %v1860_v53  ;;  %v15174_v14 = vrot.slane %v12108_v54, 4  ;;  %v15173_v56 = vrot.slane %v12110_v8, 4  ;;  %2024 = vrot.lane.b32.xlu0 %v2008_v19, %s15290_s24  ;;  %2114 = vrot.lane.b32.xlu1 %v2098_v16, %s15291_s23  ;;  %v15420_v28 = vrot.slane %v11766_v37, 4  ;;  %v15421_v26 = vrot.slane %v11768_v55, 4 }
 0x1bb   : > { %5670 = vmatprep.subr.bf16.mxu1 %v10256_v51  ;;  %vm15422_vm12 = vcmask 375808   ;;  %vm15423_vm11 = vcmask 367616  }
 0x1bc   : > { %v1229_v29 = vsel %vm503_vm0, %v15420_v28, %v15174_v14  ;;  %v1319_v19 = vsel %vm503_vm0, %v15421_v26, %v15173_v56  ;;  %v12134_v17 = vpop.permute.xlu0 %1392  ;;  %5671 = vmatpush1.bf16.msra.mxu1 %v10258_v44  ;;  %v15424_v44 = vrot.slane %v11791_v6, 4 }
 0x1bd   : > { %v1230_v16 = vsel %vm15422_vm12, %v11766_v37, %v1229_v29  ;;  %v1320_v36 = vsel %vm15423_vm11, %v11768_v55, %v1319_v19  ;;  %v12136_v62 = vpop.permute.xlu1 %1482  ;;  %v15172_v53 = vrot.slane %v12134_v17, 4  ;;  %v3058_v37 = vrot.slane %v11696_v50, %v10693_v5 }
 0x1be   : > { %1242 = vst [vmem:[#allocation3 + $0xb0] sm:$0x33] %v1230_v16  ;;  %1332 = vst [vmem:[#allocation3 + $0xb0] sm:$0xcc] %v1320_v36  ;;  %v15171_v28 = vrot.slane %v12136_v62, 4  ;;  %2204 = vrot.lane.b32.xlu0 %v2188_v45, %s15292_s20  ;;  %2979 = vrot.lane.b32.xlu1 %v2968_v15, %s15362_s5  ;;  %v3148_v55 = vrot.slane %v3134_v63, %v10693_v5  ;;  %v15425_v29 = vrot.slane %v11793_v4, 4 }
 0x1bf   : > { %v1409_v51 = vsel %vm503_vm0, %v15424_v44, %v15172_v53  ;;  %v12156_v45 = vld [vmem:[%s10698_s26 + $0x10] sm:$0x3f]  ;;  %vm15426_vm12 = vcmask 359424   ;;  %vm15427_vm11 = vcmask 351232   ;;  %s15472_s5 = smov 63  }
 0x1c0   : > { %v1499_v26 = vsel %vm503_vm0, %v15425_v29, %v15171_v28  ;;  %v12159_v15 = vld [vmem:[%s10698_s26 + $0x10] sm:$0x3f]  ;;  %v1410_v50 = vsel %vm15426_vm12, %v11791_v6, %v1409_v51  ;;  %v12165_v19 = vpop.permute.xlu0 %4770  ;;  %v3238_v6 = vrot.slane %v11728_v25, %v10693_v5  ;;  %vm15430_vm12 = vcmask 482304  }
 0x1c1   : > { %v1500_v63 = vsel %vm15427_vm11, %v11793_v4, %v1499_v26  ;;  %v12167_v16 = vpop.permute.xlu1 %852  ;;  %v10260_v36 = vld [vmem:[#allocation3 + $0x104] ss:$40 sps:$4 sm:$0xff]   ;;  %v10262_v44 = vld [vmem:[#allocation3 + $0x100] ss:$40 sps:$4 sm:$0xff]   ;;  %1422 = vst [vmem:[#allocation3 + $0xd8] sm:$0x33] %v1410_v50  ;;  %v1558_v4 = vrot.slane %v12156_v45, %v10693_v5  ;;  %v1641_v51 = vcombine.low %v12159_v15, %v12159_v15 }
 0x1c2   : > { %1512 = vst [vmem:[#allocation3 + $0xd8] sm:$0xcc] %v1500_v63  ;;  %v15177_v29 = vrot.slane %v12165_v19, 4  ;;  %v15175_v28 = vrot.slane %v12167_v16, 4  ;;  %3069 = vrot.lane.b32.xlu0 %v3058_v37, %s15363_s1  ;;  %3159 = vrot.lane.b32.xlu1 %v3148_v55, %s15368_s4  ;;  %v15428_v26 = vrot.slane %v11219_v33, 4  ;;  %v15429_v37 = vrot.slane %v11878_v41, 4 }
 0x1c3   : > { %5707 = vmatprep.subr.bf16.mxu0 %v10260_v36  ;;  %v12190_v25 = vld [vmem:[%s10698_s26 + $0x10] sm:$0x3f]  ;;  %vm15433_vm11 = vcmask 515072   ;;  %s15454_s1 = smov 44  }
 0x1c4   : > { %v4787_v50 = vsel %vm503_vm0, %v15428_v26, %v15177_v29  ;;  %v869_v55 = vsel %vm503_vm0, %v15429_v37, %v15175_v28  ;;  %v12193_v63 = vld [vmem:[%s10698_s26 + $0x10] sm:$0x3f]  ;;  %v12199_v14 = vpop.permute.xlu0 %942  ;;  %5708 = vmatpush1.bf16.msra.mxu0 %v10262_v44 }
 0x1c5   : > { %v4788_v53 = vsel %vm15430_vm12, %v11219_v33, %v4787_v50  ;;  %v870_v56 = vsel %vm865_vm14, %v11878_v41, %v869_v55  ;;  %v12201_v26 = vpop.permute.xlu1 %1032  ;;  %v15178_v37 = vrot.slane %v12199_v14, 4  ;;  %v9676_v28 = vld.sshfl [vmem:[%s10698_s26 + $0x12] sm:$0x33 pattern:$0x76325410]  ;;  %v1648_v33 = vrot.slane %v1641_v51, %v10693_v5 }
 0x1c6   : > { %4801 = vst [vmem:[#allocation3 + $0x3c8] sm:$0x33] %v4788_v53  ;;  %882 = vst [vmem:[#allocation3 + $0x60] sm:$0x33] %v870_v56  ;;  %v15180_v36 = vrot.slane %v12201_v26, 4  ;;  %3249 = vrot.lane.b32.xlu0 %v3238_v6, %s15369_s9  ;;  %1574 = vrot.lane.b32.xlu1 %v1558_v4, %s15294_s30  ;;  %v1738_v41 = vrot.slane %v12190_v25, %v10693_v5  ;;  %v1821_v44 = vcombine.low %v12193_v63, %v12193_v63  ;;  %vm15437_vm12 = vcmask 384000  }
 0x1c7   : > { %2647 = vst [vmem:[#allocation3 + $0x200] sm:$0x33] %v9676_v28  ;;  %v15431_v56 = vrot.slane %v11880_v34, 4  ;;  %v15432_v6 = vrot.slane %v11901_v40, 4 }
 0x1c8   : > { %v12227_v55 = vpop.permute.xlu0 %1122 }
 0x1c9   : > { %v959_v53 = vsel %vm503_vm0, %v15431_v56, %v15178_v37  ;;  %v1049_v4 = vsel %vm503_vm0, %v15432_v6, %v15180_v36  ;;  %15434 = vst [vmem:[#allocation25_spill] sm:$0xff] %v12227_v55  ;;  %v12229_v28 = vpop.permute.xlu1 %4411  ;;  %v10264_v27 = vld [vmem:[#allocation3 + $0xb4] ss:$40 sps:$4 sm:$0xff]   ;;  %v10266_v29 = vld [vmem:[#allocation3 + $0xb0] ss:$40 sps:$4 sm:$0xff]   ;;  %v15179_v56 = vrot.slane %v12227_v55, 4 }
 0x1ca   : > { %v960_v51 = vsel %vm955_vm15, %v11880_v34, %v959_v53  ;;  %v1050_v50 = vsel %vm15433_vm11, %v11901_v40, %v1049_v4  ;;  %v15183_v37 = vrot.slane %v12229_v28, 4  ;;  %1664 = vrot.lane.b32.xlu0 %v1648_v33, %s15295_s28  ;;  %1754 = vrot.lane.b32.xlu1 %v1738_v41, %s15296_s16  ;;  %v1828_v34 = vrot.slane %v1821_v44, %v10693_v5  ;;  %v12251_v44 = vld [vmem:[%s10698_s26 + $0x10] sm:$0x3f] }
 0x1cb   : > { %972 = vst [vmem:[#allocation3 + $0x60] sm:$0xcc] %v960_v51  ;;  %1062 = vst [vmem:[#allocation3 + $0x88] sm:$0x33] %v1050_v50  ;;  %v2698_v40 = vrot.slane %v11810_v47, %v10693_v5  ;;  %v2774_v53 = vcombine.high %v11840_v20, %v11840_v20  ;;  %v15435_v6 = vrot.slane %v11903_v60, 4  ;;  %v15436_v33 = vrot.slane %v11230_v22, 4  ;;  %5709 = vmatprep.subr.bf16.mxu0 %v10264_v27 }
 0x1cc   : > { %v12257_v51 = vpop.permute.xlu0 %4500  ;;  %5710 = vmatpush1.bf16.msra.mxu0 %v10266_v29  ;;  %v1281_v29 = vcombine.low %v12251_v44, %v12251_v44 }
 0x1cd   : > { %v1139_v4 = vsel %vm503_vm0, %v15435_v6, %v15179_v56  ;;  %v4427_v41 = vsel %vm503_vm0, %v15436_v33, %v15183_v37  ;;  %v12259_v50 = vpop.permute.xlu1 %4590  ;;  %v4928_v6 = vld [vmem:[#allocation3 + $0x3c8] sm:$0x33]  ;;  %v15181_v27 = vrot.slane %v12257_v51, 4 }
 0x1ce   : > { %v1140_v47 = vsel %vm15437_vm12, %v11903_v60, %v1139_v4  ;;  %v4428_v20 = vsel %vm15433_vm11, %v11230_v22, %v4427_v41  ;;  %v15182_v33 = vrot.slane %v12259_v50, 4  ;;  %v9806_v56 = vcombine.high %v4928_v6, %v4928_v6  ;;  %1844 = vrot.lane.b32.xlu0 %v1828_v34, %s15297_s29  ;;  %2709 = vrot.lane.b32.xlu1 %v2698_v40, %s15382_s7 }
 0x1cf   : > { %1152 = vst [vmem:[#allocation3 + $0x88] sm:$0xcc] %v1140_v47  ;;  %4441 = vst [vmem:[#allocation3 + $0x378] sm:$0x33] %v4428_v20  ;;  %v9805_v36 = vcombine.low %v4928_v6, %v4928_v6  ;;  %v2788_v22 = vrot.slane %v2774_v53, %v10693_v5  ;;  %v2878_v60 = vrot.slane %v11843_v52, %v10693_v5  ;;  %v15438_v4 = vrot.slane %v11243_v7, 4 }
 0x1d0   : > { %v15439_v34 = vrot.slane %v11257_v35, 4  ;;  %9815 = vmatprep.subr.msk.bf16.mxu1 %vm5582_vm13, %v9806_v56  ;;  %v12283_v52 = vld [vmem:[%s10698_s26 + $0x10] sm:$0x3f]  ;;  %vm15440_vm12 = vcmask 506880   ;;  %vm15441_vm11 = vcmask 498688  }
 0x1d1   : > { %v4517_v41 = vsel %vm503_vm0, %v15438_v4, %v15181_v27  ;;  %v5590_v53 = vsel %vm5582_vm13, %v9805_v36, 0  ;;  %v12286_v47 = vld [vmem:[%s10698_s26 + $0x10] sm:$0x3f]  ;;  %v12292_v4 = vpop.permute.xlu0 %4680  ;;  %v12294_v27 = vpop.permute.xlu1 %491 }
 0x1d2   : > { %v4607_v40 = vsel %vm503_vm0, %v15439_v34, %v15182_v33  ;;  %v4518_v20 = vsel %vm15440_vm12, %v11243_v7, %v4517_v41  ;;  %5679 = vmatpush2.bf16.msra.mxu1 %v5590_v53  ;;  %15442 = vst [vmem:[#allocation26_spill] sm:$0xff] %v12294_v27  ;;  %v15184_v36 = vrot.slane %v12292_v4, 4  ;;  %v15185_v56 = vrot.slane %v12294_v27, 4  ;;  %2799 = vrot.lane.b32.xlu0 %v2788_v22, %s15383_s3  ;;  %v12316_v53 = vld [vmem:[%s10698_s26 + $0x10] sm:$0x3f]  ;;  %s15455_s3 = smov 43  }
 0x1d3   : > { %v4608_v6 = vsel %vm15441_vm11, %v11257_v35, %v4607_v40  ;;  %4531 = vst [vmem:[#allocation3 + $0x378] sm:$0xcc] %v4518_v20  ;;  %2889 = vrot.lane.b32.xlu1 %v2878_v60, %s15386_s12  ;;  %v1198_v7 = vrot.slane %v12283_v52, %v10693_v5  ;;  %v1288_v35 = vrot.slane %v1281_v29, %v10693_v5  ;;  %v15443_v34 = vrot.slane %v11270_v46, 4  ;;  %s15473_s12 = smov 47  }
 0x1d4   : > { %4621 = vst [vmem:[#allocation3 + $0x3a0] sm:$0x33] %v4608_v6  ;;  %v1461_v41 = vcombine.low %v12286_v47, %v12286_v47  ;;  %v15444_v22 = vrot.slane %v11992_v23, 4  ;;  %vm15445_vm12 = vcmask 490496   ;;  %vm15446_vm11 = vcmask 564224  }
 0x1d5   : > { %v4697_v40 = vsel %vm503_vm0, %v15443_v34, %v15184_v36  ;;  %v12322_v6 = vpop.permute.xlu0 %582  ;;  %v12324_v33 = vpop.permute.xlu1 %672 }
 0x1d6   : > { %v509_v60 = vsel %vm503_vm0, %v15444_v22, %v15185_v56  ;;  %v4698_v29 = vsel %vm15445_vm12, %v11270_v46, %v4697_v40  ;;  %15447 = vst [vmem:[#allocation27_spill] sm:$0xff] %v12322_v6  ;;  %15448 = vst [vmem:[#allocation28_spill] sm:$0xff] %v12324_v33  ;;  %v10272_v37 = vld [vmem:[#allocation3 + $0x64] ss:$40 sps:$4 sm:$0xff]   ;;  %v10274_v34 = vld [vmem:[#allocation3 + $0x60] ss:$40 sps:$4 sm:$0xff]   ;;  %1214 = vrot.lane.b32.xlu0 %v1198_v7, %s15298_s14  ;;  %v1378_v46 = vrot.slane %v12316_v53, %v10693_v5 }
 0x1d7   : > { %v510_v20 = vsel %vm15446_vm11, %v11992_v23, %v509_v60  ;;  %4711 = vst [vmem:[#allocation3 + $0x3a0] sm:$0xcc] %v4698_v29  ;;  %v15186_v36 = vrot.slane %v12322_v6, 4  ;;  %v15188_v22 = vrot.slane %v12324_v33, 4  ;;  %1304 = vrot.lane.b32.xlu1 %v1288_v35, %s15299_s15  ;;  %v1468_v23 = vrot.slane %v1461_v41, %v10693_v5  ;;  %5711 = vmatprep.subr.bf16.mxu0 %v10272_v37 }
 0x1d8   : > { %522 = vst [vmem:[#allocation3 + $0x10] sm:$0x33] %v510_v20  ;;  %v2271_v40 = vcombine.high %v11921_v61, %v11921_v61  ;;  %v15449_v60 = vrot.slane %v11994_v48, 4  ;;  %v15450_v7 = vrot.slane %v12015_v59, 4  ;;  %vm15451_vm12 = vcmask 556032   ;;  %5712 = vmatpush1.bf16.msra.mxu0 %v10274_v34 }
 0x1d9   : > { %vm15452_vm11 = vcmask 547840   ;;  %v12349_v41 = vpop.permute.xlu0 %762  ;;  %v12351_v56 = vpop.permute.xlu1 %4053  ;;  %v2451_v37 = vcombine.high %v11955_v38, %v11955_v38  ;;  %v15456_v34 = vrot.slane %v12017_v10, 4 }
 0x1da   : > { %v599_v29 = vsel %vm503_vm0, %v15449_v60, %v15186_v36  ;;  %v689_v35 = vsel %vm503_vm0, %v15450_v7, %v15188_v22  ;;  %15453 = vst [vmem:[#allocation29_spill] sm:$0xff] %v12349_v41  ;;  %v15187_v60 = vrot.slane %v12349_v41, 4  ;;  %v15192_v36 = vrot.slane %v12351_v56, 4  ;;  %1394 = vrot.lane.b32.xlu0 %v1378_v46, %s15454_s1  ;;  %v12373_v7 = vld [vmem:[%s10698_s26 + $0x10] sm:$0x3f] }
 0x1db   : > { %v600_v20 = vsel %vm15451_vm12, %v11994_v48, %v599_v29  ;;  %v690_v61 = vsel %vm15452_vm11, %v12015_v59, %v689_v35  ;;  %1484 = vrot.lane.b32.xlu1 %v1468_v23, %s15455_s3  ;;  %v2285_v48 = vrot.slane %v2271_v40, %v10693_v5  ;;  %v2375_v59 = vrot.slane %v11924_v31, %v10693_v5 }
 0x1dc   : > { %612 = vst [vmem:[#allocation3 + $0x10] sm:$0xcc] %v600_v20  ;;  %702 = vst [vmem:[#allocation3 + $0x38] sm:$0x33] %v690_v61  ;;  %v779_v29 = vsel %vm503_vm0, %v15456_v34, %v15187_v60  ;;  %v15457_v46 = vrot.slane %v11329_v57, 4  ;;  %vm15458_vm12 = vcmask 539648  }
 0x1dd   : > { %v780_v31 = vsel %vm15458_vm12, %v12017_v10, %v779_v29  ;;  %vm15459_vm11 = vcmask 670720   ;;  %v12379_v40 = vpop.permute.xlu0 %4143  ;;  %v12381_v35 = vpop.permute.xlu1 %4233  ;;  %v2555_v10 = vrot.slane %v11958_v12, %v10693_v5  ;;  %v921_v29 = vcombine.low %v12373_v7, %v12373_v7 }
 0x1de   : > { %v4070_v23 = vsel %vm503_vm0, %v15457_v46, %v15192_v36  ;;  %v10277_v20 = vld [vmem:[#allocation3 + $0x37c] ss:$40 sps:$4 sm:$0xff]   ;;  %v10279_v61 = vld [vmem:[#allocation3 + $0x378] ss:$40 sps:$4 sm:$0xff]   ;;  %792 = vst [vmem:[#allocation3 + $0x38] sm:$0xcc] %v780_v31  ;;  %2296 = vrot.lane.b32.xlu0 %v2285_v48, %s15302_s0 }
 0x1df   : > { %v4071_v38 = vsel %vm15459_vm11, %v11329_v57, %v4070_v23  ;;  %v15190_v34 = vrot.slane %v12379_v40, 4  ;;  %v15189_v46 = vrot.slane %v12381_v35, 4  ;;  %2386 = vrot.lane.b32.xlu1 %v2375_v59, %s15286_s19  ;;  %v2465_v57 = vrot.slane %v2451_v37, %v10693_v5  ;;  %5680 = vmatprep.subr.bf16.mxu1 %v10277_v20  ;;  %v12403_v37 = vld [vmem:[%s10698_s26 + $0x10] sm:$0x3f]  ;;  %s15466_s0 = smov 64   ;;  %s15491_s19 = smov 68  }
 0x1e0   : > { %4084 = vst [vmem:[#allocation3 + $0x328] sm:$0x33] %v4071_v38  ;;  %v15460_v23 = vrot.slane %v11340_v18, 4  ;;  %v15461_v48 = vrot.slane %v11351_v30, 4  ;;  %v12406_v38 = vld [vmem:[%s10698_s26 + $0x10] sm:$0x3f]  ;;  %5681 = vmatpush2.bf16.msra.mxu1 %v10279_v61 }
 0x1e1   : > { %vm15462_vm12 = vcmask 662528   ;;  %v12412_v22 = vpop.permute.xlu0 %4322  ;;  %v1101_v61 = vcombine.low %v12406_v38, %v12406_v38  ;;  %vm15465_vm11 = vcmask 703488  }
 0x1e2   : > { %v4160_v31 = vsel %vm503_vm0, %v15460_v23, %v15190_v34  ;;  %v4249_v59 = vsel %vm503_vm0, %v15461_v48, %v15189_v46  ;;  %v12414_v23 = vpop.permute.xlu1 %3693  ;;  %v15191_v20 = vrot.slane %v12412_v22, 4  ;;  %2476 = vrot.lane.b32.xlu0 %v2465_v57, %s15287_s17  ;;  %s15490_s17 = smov 69  }
 0x1e3   : > { %v4161_v12 = vsel %vm15462_vm12, %v11340_v18, %v4160_v31  ;;  %v4250_v60 = vsel %vm865_vm14, %v11351_v30, %v4249_v59  ;;  %v15193_v48 = vrot.slane %v12414_v23, 4  ;;  %2566 = vrot.lane.b32.xlu1 %v2555_v10, %s15288_s18  ;;  %v838_v18 = vrot.slane %v12403_v37, %v10693_v5  ;;  %v12438_v59 = vld [vmem:[%s10698_s26 + $0x10] sm:$0x3f]  ;;  %s15497_s18 = smov 66  }
 0x1e4   : > { %4174 = vst [vmem:[#allocation3 + $0x328] sm:$0xcc] %v4161_v12  ;;  %4263 = vst [vmem:[#allocation3 + $0x350] sm:$0x33] %v4250_v60  ;;  %v928_v30 = vrot.slane %v921_v29, %v10693_v5  ;;  %v15194_v31 = vmov 0   ;;  %v15463_v60 = vrot.slane %v11362_v24, 4 }
 0x1e5   : > { %428 = vst [vmem:[#allocation2] sm:$0xf] %v15194_v31  ;;  %430 = vst [vmem:[#allocation2 + $0x2c] sm:$0xf] %v15194_v31  ;;  %v15464_v10 = vrot.slane %v11411_v49, 4  ;;  %10164 = vset.pattern.permute.xlu1 %v15194_v31  ;;  %10163 = vset.pattern.permute.xlu0 %v15194_v31  ;;  %v12446_v34 = vpop.permute.xlu0 %3783  ;;  %vm15469_vm12 = vcmask 695296  }
 0x1e6   : > { %v4338_v57 = vsel %vm503_vm0, %v15463_v60, %v15191_v20  ;;  %v12448_v60 = vpop.permute.xlu1 %3873  ;;  %v10282_v20 = vld [vmem:[#allocation3 + $0x14] ss:$40 sps:$4 sm:$0xff]   ;;  %v10284_v36 = vld [vmem:[#allocation3 + $0x10] ss:$40 sps:$4 sm:$0xff]   ;;  %854 = vrot.lane.b32.xlu0 %v838_v18, %s15303_s21  ;;  %v15468_v18 = vrot.slane %v11437_v11, 4 }
 0x1e7   : > { %v3710_v29 = vsel %vm503_vm0, %v15464_v10, %v15193_v48  ;;  %v4339_v12 = vsel %vm955_vm15, %v11362_v24, %v4338_v57  ;;  %v15196_v10 = vrot.slane %v12446_v34, 4  ;;  %v15199_v48 = vrot.slane %v12448_v60, 4  ;;  %944 = vrot.lane.b32.xlu1 %v928_v30, %s15466_s0  ;;  %5713 = vmatprep.subr.bf16.mxu0 %v10282_v20 }
 0x1e8   : > { %v3711_v46 = vsel %vm15465_vm11, %v11411_v49, %v3710_v29  ;;  %4352 = vst [vmem:[#allocation3 + $0x350] sm:$0xcc] %v4339_v12  ;;  %v1018_v24 = vrot.slane %v12438_v59, %v10693_v5  ;;  %v1108_v49 = vrot.slane %v1101_v61, %v10693_v5  ;;  %v1911_v57 = vcombine.high %v12038_v32, %v12038_v32 }
 0x1e9   : > { %3724 = vst [vmem:[#allocation3 + $0x2d8] sm:$0x33] %v3711_v46  ;;  %v15467_v46 = vrot.slane %v11422_v42, 4  ;;  %v3890_v30 = vsel %vm503_vm0, %v15468_v18, %v15199_v48  ;;  %vm15470_vm11 = vcmask 687104   ;;  %v12473_v61 = vpop.permute.xlu0 %3963  ;;  %5714 = vmatpush1.bf16.msra.mxu0 %v10284_v36  ;;  %v2091_v36 = vcombine.high %v12069_v3, %v12069_v3  ;;  %v12497_v18 = vld [vmem:[%s10698_s26 + $0x10] sm:$0x3f] }
 0x1ea   : > { %v3891_v32 = vsel %vm15470_vm11, %v11437_v11, %v3890_v30  ;;  %v12475_v31 = vpop.permute.xlu1 %4772  ;;  %1034 = vrot.lane.b32.xlu0 %v1018_v24, %s15472_s5  ;;  %v2015_v11 = vrot.slane %v12025_v58, %v10693_v5  ;;  %v15474_v20 = vrot.slane %v11448_v39, 4  ;;  %v15475_v24 = vrot.slane %v12165_v19, 4 }
 0x1eb   : > { %v3800_v29 = vsel %vm503_vm0, %v15467_v46, %v15196_v10  ;;  %15471 = vst [vmem:[#allocation30_spill] sm:$0xff] %v12475_v31  ;;  %3904 = vst [vmem:[#allocation3 + $0x300] sm:$0x33] %v3891_v32  ;;  %v15198_v46 = vrot.slane %v12473_v61, 4  ;;  %v15197_v10 = vrot.slane %v12475_v31, 4  ;;  %1124 = vrot.lane.b32.xlu1 %v1108_v49, %s15473_s12  ;;  %vm15477_vm11 = vcmask 482304  }
 0x1ec   : > { %v3801_v12 = vsel %vm15469_vm12, %v11422_v42, %v3800_v29  ;;  %v1925_v42 = vrot.slane %v1911_v57, %v10693_v5  ;;  %vm15476_vm12 = vcmask 678912  }
 0x1ed   : > { %3814 = vst [vmem:[#allocation3 + $0x2d8] sm:$0xcc] %v3801_v12  ;;  %v3980_v29 = vsel %vm503_vm0, %v15474_v20, %v15198_v46  ;;  %v4789_v49 = vsel %vm503_vm0, %v15475_v24, %v15197_v10  ;;  %v12503_v57 = vpop.permute.xlu0 %3333  ;;  %v15480_v10 = vld [vmem:[#allocation9_spill] sm:$0xff]  ;;  %v12530_v46 = vld [vmem:[%s10698_s26 + $0x10] sm:$0x3f] }
 0x1ee   : > { %v3981_v58 = vsel %vm15476_vm12, %v11448_v39, %v3980_v29  ;;  %v4790_v3 = vsel %vm15477_vm11, %v12165_v19, %v4789_v49  ;;  %v12505_v30 = vpop.permute.xlu1 %3423  ;;  %v15203_v20 = vrot.slane %v12503_v57, 4  ;;  %1936 = vrot.lane.b32.xlu0 %v1925_v42, %s15289_s25  ;;  %v2105_v39 = vrot.slane %v2091_v36, %v10693_v5  ;;  %v15478_v49 = vld [vmem:[#allocation8_spill] sm:$0xff] }
 0x1ef   : > { %v10287_v12 = vld [vmem:[#allocation3 + $0x32c] ss:$40 sps:$4 sm:$0xff]   ;;  %v10289_v32 = vld [vmem:[#allocation3 + $0x328] ss:$40 sps:$4 sm:$0xff]   ;;  %3994 = vst [vmem:[#allocation3 + $0x300] sm:$0xcc] %v3981_v58  ;;  %2026 = vrot.lane.b32.xlu1 %v2015_v11, %s15290_s24  ;;  %v2195_v19 = vrot.slane %v12072_v0, %v10693_v5  ;;  %v561_v29 = vcombine.low %v12497_v18, %v12497_v18 }
 0x1f0   : > { %4802 = vst [vmem:[#allocation3 + $0x3d0] sm:$0x33] %v4790_v3  ;;  %v15202_v24 = vrot.slane %v12505_v30, 4  ;;  %v15479_v58 = vrot.slane %v15478_v49, 4  ;;  %v15481_v42 = vrot.slane %v15480_v10, 4  ;;  %5682 = vmatprep.subr.bf16.mxu1 %v10287_v12  ;;  %vm15482_vm12 = vcmask 859136  }
 0x1f1   : > { %v12527_v36 = vld [vmem:[%s10698_s26 + $0x10] sm:$0x3f]  ;;  %vm15483_vm11 = vcmask 850944   ;;  %v12536_v31 = vpop.permute.xlu0 %3513  ;;  %5683 = vmatpush2.bf16.msra.mxu1 %v10289_v32  ;;  %v741_v32 = vcombine.low %v12530_v46, %v12530_v46  ;;  %s15536_s24 = smov 61  }
 0x1f2   : > { %v3350_v3 = vsel %vm503_vm0, %v15479_v58, %v15203_v20  ;;  %v3440_v11 = vsel %vm503_vm0, %v15481_v42, %v15202_v24  ;;  %v12538_v58 = vpop.permute.xlu1 %3603  ;;  %v15210_v12 = vrot.slane %v12536_v31, 4  ;;  %2116 = vrot.lane.b32.xlu0 %v2105_v39, %s15291_s23  ;;  %v12560_v24 = vld [vmem:[%s10698_s26 + $0x10] sm:$0x3f] }
 0x1f3   : > { %v3351_v0 = vsel %vm15482_vm12, %v15478_v49, %v3350_v3  ;;  %v3441_v48 = vsel %vm15483_vm11, %v15480_v10, %v3440_v11  ;;  %v15211_v42 = vrot.slane %v12538_v58, 4  ;;  %2206 = vrot.lane.b32.xlu1 %v2195_v19, %s15292_s20  ;;  %v477_v49 = vrot.slane %v12527_v36, %v10693_v5  ;;  %v15484_v3 = vld [vmem:[#allocation10_spill] sm:$0xff]  ;;  %s15496_s20 = smov 67  }
 0x1f4   : > { %3364 = vst [vmem:[#allocation3 + $0x288] sm:$0x33] %v3351_v0  ;;  %3454 = vst [vmem:[#allocation3 + $0x288] sm:$0xcc] %v3441_v48  ;;  %v568_v10 = vrot.slane %v561_v29, %v10693_v5  ;;  %v15485_v48 = vrot.slane %v15484_v3, 4  ;;  %v15486_v0 = vld [vmem:[#allocation11_spill] sm:$0xff] }
 0x1f5   : > { %v15487_v39 = vrot.slane %v15486_v0, 4  ;;  %vm15488_vm12 = vcmask 842752   ;;  %vm15489_vm11 = vcmask 711680   ;;  %v12566_v41 = vpop.permute.xlu0 %4413 }
 0x1f6   : > { %v3530_v11 = vsel %vm503_vm0, %v15485_v48, %v15210_v12  ;;  %v12568_v33 = vpop.permute.xlu1 %4502  ;;  %v10292_v6 = vld [vmem:[#allocation3 + $0x2dc] ss:$40 sps:$4 sm:$0xff]   ;;  %v15221_v12 = vrot.slane %v12566_v41, 4  ;;  %v10295_v27 = vld [vmem:[#allocation3 + $0x2d8] ss:$40 sps:$4 sm:$0xff]   ;;  %493 = vrot.lane.b32.xlu0 %v477_v49, %s15490_s17  ;;  %v15493_v49 = vrot.slane %v12257_v51, 4 }
 0x1f7   : > { %v3620_v19 = vsel %vm503_vm0, %v15487_v39, %v15211_v42  ;;  %v3531_v29 = vsel %vm15488_vm12, %v15484_v3, %v3530_v11  ;;  %v4929_v48 = vld [vmem:[#allocation3 + $0x3d0] sm:$0x33]  ;;  %v15220_v39 = vrot.slane %v12568_v33, 4  ;;  %584 = vrot.lane.b32.xlu1 %v568_v10, %s15491_s19  ;;  %v658_v3 = vrot.slane %v12560_v24, %v10693_v5  ;;  %5684 = vmatprep.subr.bf16.mxu1 %v10292_v6 }
 0x1f8   : > { %v3621_v20 = vsel %vm15489_vm11, %v15486_v0, %v3620_v19  ;;  %3544 = vst [vmem:[#allocation3 + $0x2b0] sm:$0x33] %v3531_v29  ;;  %v9808_v42 = vcombine.high %v4929_v48, %v4929_v48  ;;  %v9807_v55 = vcombine.low %v4929_v48, %v4929_v48  ;;  %v748_v11 = vrot.slane %v741_v32, %v10693_v5 }
 0x1f9   : > { %3634 = vst [vmem:[#allocation3 + $0x2b0] sm:$0xcc] %v3621_v20  ;;  %v1551_v0 = vcombine.high %v12156_v45, %v12156_v45  ;;  %v15492_v20 = vrot.slane %v12229_v28, 4  ;;  %v4519_v10 = vsel %vm503_vm0, %v15493_v49, %v15220_v39  ;;  %vm15494_vm12 = vcmask 515072   ;;  %v12595_v48 = vpop.permute.xlu0 %4592  ;;  %5685 = vmatpush2.bf16.msra.mxu1 %v10295_v27 }
 0x1fa   : > { %9817 = vmatprep.subr.msk.bf16.mxu0 %vm5582_vm13, %v9808_v42  ;;  %v5596_v32 = vsel %vm5582_vm13, %v9807_v55, 0  ;;  %vm15495_vm11 = vcmask 506880   ;;  %v15219_v6 = vrot.slane %v12595_v48, 4  ;;  %674 = vrot.lane.b32.xlu0 %v658_v3, %s15496_s20  ;;  %v15498_v27 = vrot.slane %v12259_v50, 4 }
 0x1fb   : > { %v4429_v19 = vsel %vm503_vm0, %v15492_v20, %v15221_v12  ;;  %v4520_v29 = vsel %vm15495_vm11, %v12257_v51, %v4519_v10  ;;  %5722 = vmatpush2.bf16.msra.mxu0 %v5596_v32  ;;  %v12597_v20 = vpop.permute.xlu1 %4682  ;;  %764 = vrot.lane.b32.xlu1 %v748_v11, %s15497_s18  ;;  %v1565_v55 = vrot.slane %v1551_v0, %v10693_v5  ;;  %v15499_v3 = vrot.slane %v12292_v4, 4 }
 0x1fc   : > { %v4430_v45 = vsel %vm15494_vm12, %v12229_v28, %v4429_v19  ;;  %4532 = vst [vmem:[#allocation3 + $0x380] sm:$0xcc] %v4520_v29  ;;  %v15218_v42 = vrot.slane %v12597_v20, 4  ;;  %v1655_v28 = vrot.slane %v12159_v15, %v10693_v5  ;;  %v1731_v51 = vcombine.high %v12190_v25, %v12190_v25 }
 0x1fd   : > { %4442 = vst [vmem:[#allocation3 + $0x380] sm:$0x33] %v4430_v45  ;;  %v4609_v19 = vsel %vm503_vm0, %v15498_v27, %v15219_v6  ;;  %vm15500_vm12 = vcmask 498688   ;;  %vm15501_vm11 = vcmask 490496   ;;  %v12622_v49 = vpop.permute.xlu0 %2977  ;;  %v1191_v27 = vcombine.high %v12283_v52, %v12283_v52 }
 0x1fe   : > { %v4699_v11 = vsel %vm503_vm0, %v15499_v3, %v15218_v42  ;;  %v4610_v0 = vsel %vm15500_vm12, %v12259_v50, %v4609_v19  ;;  %v15240_v45 = vrot.slane %v12622_v49, 4  ;;  %1576 = vrot.lane.b32.xlu0 %v1565_v55, %s15294_s30  ;;  %v1745_v50 = vrot.slane %v1731_v51, %v10693_v5 }
 0x1ff   : > { %v4700_v15 = vsel %vm15501_vm11, %v12292_v4, %v4699_v11  ;;  %v12624_v25 = vpop.permute.xlu1 %3067  ;;  %4622 = vst [vmem:[#allocation3 + $0x3a8] sm:$0x33] %v4610_v0  ;;  %1666 = vrot.lane.b32.xlu1 %v1655_v28, %s15295_s28  ;;  %v1835_v4 = vrot.slane %v12193_v63, %v10693_v5  ;;  %v15502_v19 = vrot.slane %v11596_v2, 4  ;;  %v15503_v11 = vld [vmem:[#allocation12_spill] sm:$0xff]  ;;  %s15509_s28 = sld [smem:[#allocation33_spill]]  ;;  %vm15510_vm12 = vcmask 556032  }
 0x200   : > { %v10299_v10 = vld [vmem:[#allocation3 + $0x28c] ss:$40 sps:$4 sm:$0xff]   ;;  %v10301_v32 = vld [vmem:[#allocation3 + $0x288] ss:$40 sps:$4 sm:$0xff]   ;;  %4712 = vst [vmem:[#allocation3 + $0x3a8] sm:$0xcc] %v4700_v15  ;;  %v831_v6 = vcombine.high %v12403_v37, %v12403_v37 }
 0x201   : > { %v15232_v29 = vrot.slane %v12624_v25, 4  ;;  %v2994_v3 = vsel %vm503_vm0, %v15502_v19, %v15240_v45  ;;  %v15504_v55 = vrot.slane %v15503_v11, 4  ;;  %5686 = vmatprep.subr.bf16.mxu1 %v10299_v10  ;;  %v12649_v52 = vpop.permute.xlu0 %3157  ;;  %v1295_v10 = vrot.slane %v12251_v44, %v10693_v5 }
 0x202   : > { %v2995_v51 = vsel %vm2988_vm2, %v11596_v2, %v2994_v3  ;;  %5687 = vmatpush2.bf16.msra.mxu1 %v10301_v32  ;;  %v15231_v15 = vrot.slane %v12649_v52, 4  ;;  %1756 = vrot.lane.b32.xlu0 %v1745_v50, %s15296_s16  ;;  %v1205_v2 = vrot.slane %v1191_v27, %v10693_v5  ;;  %v1371_v32 = vcombine.high %v12316_v53, %v12316_v53  ;;  %v15505_v3 = vld [vmem:[#allocation13_spill] sm:$0xff]  ;;  %s15709_s16 = smov 22  }
 0x203   : > { %v3084_v28 = vsel %vm503_vm0, %v15504_v55, %v15232_v29  ;;  %v12651_v0 = vpop.permute.xlu1 %3247  ;;  %3006 = vst [vmem:[#allocation3 + $0x248] sm:$0x33] %v2995_v51  ;;  %1846 = vrot.lane.b32.xlu1 %v1835_v4, %s15297_s29  ;;  %vm15513_vm11 = vcmask 670720   ;;  %s15708_s29 = sld [smem:[#allocation35_spill]] }
 0x204   : > { %v3085_v63 = vsel %vm3078_vm1, %v15503_v11, %v3084_v28  ;;  %v15228_v19 = vrot.slane %v12651_v0, 4  ;;  %v15506_v11 = vrot.slane %v15505_v3, 4  ;;  %v15507_v28 = vld [vmem:[#allocation14_spill] sm:$0xff] }
 0x205   : > { %3096 = vst [vmem:[#allocation3 + $0x248] sm:$0xcc] %v3085_v63  ;;  %v15508_v50 = vrot.slane %v15507_v28, 4  ;;  %v12675_v27 = vld [vmem:[%s15509_s28] ss:$8 sps:$4 sm:$0xff]   ;;  %v12682_v51 = vpop.permute.xlu0 %4055 }
 0x206   : > { %v3174_v55 = vsel %vm503_vm0, %v15506_v11, %v15231_v15  ;;  %5689 = vmatmul.mubr.bf16.vlgmr.msra.gmra.mxu1 %v12675_v27  ;;  %v12689_v42 = vld [vmem:[%s15509_s28 + $0x4] ss:$8 sps:$4 sm:$0xff]   ;;  %1216 = vrot.lane.b32.xlu0 %v1205_v2, %s15298_s14  ;;  %v15512_v2 = vrot.slane %v12379_v40, 4  ;;  %s15519_s14 = smov 59  }
 0x207   : > { %v3264_v4 = vsel %vm503_vm0, %v15508_v50, %v15228_v19  ;;  %v3175_v44 = vsel %vm3168_vm3, %v15505_v3, %v3174_v55  ;;  %v12684_v63 = vpop.permute.xlu1 %4145  ;;  %v10304_v11 = vld [vmem:[#allocation3 + $0x380] ss:$40 sps:$4 sm:$0xff]   ;;  %v10306_v50 = vld [vmem:[#allocation3 + $0x384] ss:$40 sps:$4 sm:$0xff]   ;;  %9820 = vmatprep.mubr.msk.bf16.mxu1 %vm15510_vm12, %v12689_v42  ;;  %v15225_v3 = vrot.slane %v12682_v51, 4  ;;  %1306 = vrot.lane.b32.xlu1 %v1295_v10, %s15299_s15  ;;  %vm15514_vm12 = vcmask 662528  }
 0x208   : > { %v3265_v53 = vsel %vm3258_vm4, %v15507_v28, %v3264_v4  ;;  %3186 = vst [vmem:[#allocation3 + $0x270] sm:$0x33] %v3175_v44  ;;  %v15223_v55 = vrot.slane %v12684_v63, 4  ;;  %v1385_v28 = vrot.slane %v1371_v32, %v10693_v5  ;;  %v1475_v4 = vrot.slane %v12286_v47, %v10693_v5  ;;  %5723 = vmatprep.subr.bf16.mxu0 %v10306_v50  ;;  %v12713_v32 = vld [vmem:[%s10698_s26 + $0x12] sm:$0x3f]  ;;  %s15535_s15 = smov 62  }
 0x209   : > { %3276 = vst [vmem:[#allocation3 + $0x270] sm:$0xcc] %v3265_v53  ;;  %v15511_v44 = vrot.slane %v12351_v56, 4  ;;  %v12719_v39 = vpop.permute.xlu0 %4235  ;;  %5724 = vmatpush2.bf16.msra.mxu0 %v10304_v11  ;;  %v1011_v11 = vcombine.high %v12438_v59, %v12438_v59  ;;  %v15517_v50 = vrot.slane %v12381_v35, 4 }
 0x20a   : > { %v4162_v10 = vsel %vm503_vm0, %v15512_v2, %v15223_v55  ;;  %15515 = vst [vmem:[#allocation8_spill] sm:$0xff] %v12719_v39  ;;  %1396 = vrot.lane.b32.xlu0 %v1385_v28, %s15454_s1  ;;  %v15518_v28 = vrot.slane %v12412_v22, 4  ;;  %s15540_s1 = smov 60  }
 0x20b   : > { %v4072_v53 = vsel %vm503_vm0, %v15511_v44, %v15225_v3  ;;  %v4163_v37 = vsel %vm15514_vm12, %v12379_v40, %v4162_v10  ;;  %v12721_v12 = vpop.permute.xlu1 %4324  ;;  %v15222_v44 = vrot.slane %v12719_v39, 4  ;;  %1486 = vrot.lane.b32.xlu1 %v1475_v4, %s15455_s3  ;;  %v845_v40 = vrot.slane %v831_v6, %v10693_v5  ;;  %s15553_s3 = smov 82  }
 0x20c   : > { %v4073_v47 = vsel %vm15513_vm11, %v12351_v56, %v4072_v53  ;;  %15516 = vst [vmem:[#allocation9_spill] sm:$0xff] %v12721_v12  ;;  %4175 = vst [vmem:[#allocation3 + $0x330] sm:$0xcc] %v4163_v37  ;;  %v15224_v2 = vrot.slane %v12721_v12, 4  ;;  %v4758_v56 = vrot.slane %v12713_v32, %v10693_v5  ;;  %vm15527_vm11 = vcmask 703488  }
 0x20d   : > { %4085 = vst [vmem:[#allocation3 + $0x330] sm:$0x33] %v4073_v47  ;;  %v4251_v53 = vsel %vm503_vm0, %v15517_v50, %v15222_v44  ;;  %v12746_v59 = vpop.permute.xlu0 %2707  ;;  %vm15532_vm12 = vcmask 695296  }
 0x20e   : > { %v4340_v4 = vsel %vm503_vm0, %v15518_v28, %v15224_v2  ;;  %v4252_v10 = vsel %vm865_vm14, %v12381_v35, %v4251_v53  ;;  %v15227_v44 = vrot.slane %v12746_v59, 4  ;;  %4774 = vrot.lane.b32.xlu0 %v4758_v56, %s15519_s14  ;;  %v1025_v35 = vrot.slane %v1011_v11, %v10693_v5  ;;  %v12758_v53 = vld [vmem:[%s10698_s26 + $0x12] sm:$0x3f]  ;;  %v15520_v28 = vld [vmem:[#allocation15_spill] sm:$0xff] }
 0x20f   : > { %v4341_v6 = vsel %vm955_vm15, %v12412_v22, %v4340_v4  ;;  %v12748_v47 = vpop.permute.xlu1 %2797  ;;  %4264 = vst [vmem:[#allocation3 + $0x358] sm:$0x33] %v4252_v10  ;;  %856 = vrot.lane.b32.xlu1 %v845_v40, %s15303_s21  ;;  %v935_v22 = vrot.slane %v12373_v7, %v10693_v5  ;;  %v15521_v4 = vrot.slane %v15520_v28, 4  ;;  %v12771_v40 = vld [vmem:[%s10698_s26 + $0x12] sm:$0x3f] }
 0x210   : > { %v10309_v37 = vld [vmem:[#allocation3 + $0x248] ss:$40 sps:$4 sm:$0xff]   ;;  %v10311_v50 = vld [vmem:[#allocation3 + $0x24c] ss:$40 sps:$4 sm:$0xff]   ;;  %4353 = vst [vmem:[#allocation3 + $0x358] sm:$0xcc] %v4341_v6 }
 0x211   : > { %v15226_v55 = vrot.slane %v12748_v47, 4  ;;  %v2724_v10 = vsel %vm503_vm0, %v15521_v4, %v15227_v44  ;;  %v15522_v6 = vld [vmem:[#allocation16_spill] sm:$0xff]  ;;  %5742 = vmatprep.subr.bf16.mxu1 %v10311_v50  ;;  %v12777_v3 = vpop.permute.xlu0 %2887 }
 0x212   : > { %v15523_v2 = vrot.slane %v15522_v6, 4  ;;  %v2725_v7 = vsel %vm2718_vm5, %v15520_v28, %v2724_v10  ;;  %5743 = vmatpush1.bf16.msra.mxu1 %v10309_v37  ;;  %946 = vrot.lane.b32.xlu0 %v935_v22, %s15466_s0  ;;  %v1115_v28 = vrot.slane %v12406_v38, %v10693_v5  ;;  %v4399_v37 = vrot.slane %v12771_v40, %v10693_v5 }
 0x213   : > { %v12779_v4 = vpop.permute.xlu1 %3695  ;;  %2736 = vst [vmem:[#allocation3 + $0x1f8] sm:$0xcc] %v2725_v7  ;;  %1036 = vrot.lane.b32.xlu1 %v1025_v35, %s15472_s5  ;;  %v15525_v10 = vrot.slane %v11736_v9, 4  ;;  %v12802_v7 = vld [vmem:[%s10698_s26 + $0x12] sm:$0x3f] }
 0x214   : > { %v2814_v56 = vsel %vm503_vm0, %v15523_v2, %v15226_v55  ;;  %15524 = vst [vmem:[#allocation10_spill] sm:$0xff] %v12779_v4  ;;  %v15229_v2 = vrot.slane %v12777_v3, 4  ;;  %v15230_v50 = vrot.slane %v12779_v4, 4  ;;  %v4481_v55 = vcombine.low %v12758_v53, %v12758_v53  ;;  %v12805_v35 = vld [vmem:[%s10698_s26 + $0x12] sm:$0x3f] }
 0x215   : > { %v2815_v11 = vsel %vm2808_vm6, %v15522_v6, %v2814_v56  ;;  %v15526_v56 = vrot.slane %v12414_v23, 4  ;;  %v12811_v44 = vpop.permute.xlu0 %3785 }
 0x216   : > { %2826 = vst [vmem:[#allocation3 + $0x220] sm:$0x33] %v2815_v11  ;;  %v2904_v6 = vsel %vm503_vm0, %v15525_v10, %v15229_v2  ;;  %15528 = vst [vmem:[#allocation11_spill] sm:$0xff] %v12811_v44  ;;  %v4488_v15 = vrot.slane %v4481_v55, %v10693_v5  ;;  %1126 = vrot.lane.b32.xlu0 %v1115_v28, %s15473_s12  ;;  %v15531_v55 = vrot.slane %v12448_v60, 4 }
 0x217   : > { %v3712_v22 = vsel %vm503_vm0, %v15526_v56, %v15230_v50  ;;  %v2905_v38 = vsel %vm2898_vm7, %v11736_v9, %v2904_v6  ;;  %v12813_v19 = vpop.permute.xlu1 %3875  ;;  %v10313_v10 = vld [vmem:[#allocation3 + $0x330] ss:$40 sps:$4 sm:$0xff]   ;;  %v10315_v2 = vld [vmem:[#allocation3 + $0x334] ss:$40 sps:$4 sm:$0xff]   ;;  %v15233_v56 = vrot.slane %v12811_v44, 4  ;;  %4415 = vrot.lane.b32.xlu1 %v4399_v37, %s15472_s5  ;;  %v4578_v9 = vrot.slane %v12802_v7, %v10693_v5 }
 0x218   : > { %v3713_v11 = vsel %vm15527_vm11, %v12414_v23, %v3712_v22  ;;  %15529 = vst [vmem:[#allocation12_spill] sm:$0xff] %v12813_v19  ;;  %2916 = vst [vmem:[#allocation3 + $0x220] sm:$0xcc] %v2905_v38  ;;  %v15235_v50 = vrot.slane %v12813_v19, 4  ;;  %v4661_v23 = vcombine.low %v12805_v35, %v12805_v35  ;;  %v470_v6 = vcombine.high %v12527_v36, %v12527_v36  ;;  %v13023_v44 = vld [vmem:[%s10698_s26 + $0x12] sm:$0x3f] }
 0x219   : > { %3725 = vst [vmem:[#allocation3 + $0x2e0] sm:$0x33] %v3713_v11  ;;  %v15530_v22 = vrot.slane %v12446_v34, 4  ;;  %5725 = vmatprep.subr.bf16.mxu0 %v10315_v2  ;;  %vm15533_vm11 = vcmask 687104   ;;  %v12840_v36 = vpop.permute.xlu0 %3965 }
 0x21a   : > { %v3892_v28 = vsel %vm503_vm0, %v15531_v55, %v15235_v50  ;;  %15534 = vst [vmem:[#allocation13_spill] sm:$0xff] %v12840_v36  ;;  %5726 = vmatpush2.bf16.msra.mxu0 %v10313_v10  ;;  %4504 = vrot.lane.b32.xlu0 %v4488_v15, %s15535_s15  ;;  %v484_v2 = vrot.slane %v470_v6, %v10693_v5  ;;  %v15537_v10 = vrot.slane %v12473_v61, 4  ;;  %v15538_v55 = vrot.slane %v11816_v21, 4 }
 0x21b   : > { %v3802_v38 = vsel %vm503_vm0, %v15530_v22, %v15233_v56  ;;  %v3893_v11 = vsel %vm15533_vm11, %v12448_v60, %v3892_v28  ;;  %v12842_v29 = vpop.permute.xlu1 %2294  ;;  %v15234_v22 = vrot.slane %v12840_v36, 4  ;;  %4594 = vrot.lane.b32.xlu1 %v4578_v9, %s15536_s24  ;;  %v651_v60 = vcombine.high %v12560_v24, %v12560_v24 }
 0x21c   : > { %v3803_v37 = vsel %vm15532_vm12, %v12446_v34, %v3802_v38  ;;  %3905 = vst [vmem:[#allocation3 + $0x308] sm:$0x33] %v3893_v11  ;;  %v15238_v56 = vrot.slane %v12842_v29, 4  ;;  %v4668_v34 = vrot.slane %v4661_v23, %v10693_v5  ;;  %vm15539_vm12 = vcmask 678912  }
 0x21d   : > { %3815 = vst [vmem:[#allocation3 + $0x2e0] sm:$0xcc] %v3803_v37  ;;  %v3982_v38 = vsel %vm503_vm0, %v15537_v10, %v15234_v22  ;;  %v12866_v24 = vpop.permute.xlu0 %2384  ;;  %vm15549_vm11 = vcmask 7168  }
 0x21e   : > { %v2311_v15 = vsel %vm503_vm0, %v15538_v55, %v15238_v56  ;;  %v3983_v9 = vsel %vm15539_vm12, %v12473_v61, %v3982_v38  ;;  %v15237_v11 = vrot.slane %v12866_v24, 4  ;;  %4684 = vrot.lane.b32.xlu0 %v4668_v34, %s15540_s1  ;;  %v665_v61 = vrot.slane %v651_v60, %v10693_v5  ;;  %v15541_v38 = vld [vmem:[#allocation17_spill] sm:$0xff]  ;;  %v12888_v34 = vld [vmem:[%s10698_s26 + $0x12] sm:$0x3f] }
 0x21f   : > { %v2312_v23 = vsel %vm2305_vm8, %v11816_v21, %v2311_v15  ;;  %v12868_v6 = vpop.permute.xlu1 %2474  ;;  %v10319_v28 = vld [vmem:[#allocation3 + $0x1f8] ss:$40 sps:$4 sm:$0xff]   ;;  %v10321_v37 = vld [vmem:[#allocation3 + $0x1fc] ss:$40 sps:$4 sm:$0xff]   ;;  %3995 = vst [vmem:[#allocation3 + $0x308] sm:$0xcc] %v3983_v9  ;;  %495 = vrot.lane.b32.xlu1 %v484_v2, %s15490_s17  ;;  %v575_v21 = vrot.slane %v12497_v18, %v10693_v5 }
 0x220   : > { %2323 = vst [vmem:[#allocation3 + $0x1a8] sm:$0x33] %v2312_v23  ;;  %v15236_v10 = vrot.slane %v12868_v6, 4  ;;  %v15542_v55 = vrot.slane %v15541_v38, 4  ;;  %v15543_v9 = vld [vmem:[#allocation18_spill] sm:$0xff]  ;;  %5744 = vmatprep.subr.bf16.mxu1 %v10321_v37  ;;  %vm15550_vm12 = vcmask 859136  }
 0x221   : > { %v15544_v23 = vrot.slane %v15543_v9, 4  ;;  %v12891_v2 = vld [vmem:[%s10698_s26 + $0x12] sm:$0x3f]  ;;  %5745 = vmatpush1.bf16.msra.mxu1 %v10319_v28  ;;  %s15707_s17 = sld [smem:[#allocation32_spill]] }
 0x222   : > { %v2401_v15 = vsel %vm503_vm0, %v15542_v55, %v15237_v11  ;;  %v12897_v55 = vpop.permute.xlu0 %2564  ;;  %586 = vrot.lane.b32.xlu0 %v575_v21, %s15491_s19  ;;  %v4124_v28 = vcombine.low %v12891_v2, %v12891_v2  ;;  %v15548_v21 = vrot.slane %v12503_v57, 4 }
 0x223   : > { %v2491_v22 = vsel %vm503_vm0, %v15544_v23, %v15236_v10  ;;  %v2402_v18 = vsel %vm2395_vm9, %v15541_v38, %v2401_v15  ;;  %v12899_v50 = vpop.permute.xlu1 %3335  ;;  %v15239_v37 = vrot.slane %v12897_v55, 4  ;;  %676 = vrot.lane.b32.xlu1 %v665_v61, %s15496_s20  ;;  %v755_v38 = vrot.slane %v12530_v46, %v10693_v5  ;;  %v15546_v15 = vld [vmem:[#allocation19_spill] sm:$0xff]  ;;  %v12925_v46 = vld [vmem:[%s10698_s26 + $0x12] sm:$0x3f] }
 0x224   : > { %v2492_v60 = vsel %vm2485_vm10, %v15543_v9, %v2491_v22  ;;  %15545 = vst [vmem:[#allocation14_spill] sm:$0xff] %v12899_v50  ;;  %2413 = vst [vmem:[#allocation3 + $0x1a8] sm:$0xcc] %v2402_v18  ;;  %v15241_v23 = vrot.slane %v12899_v50, 4  ;;  %v4041_v22 = vrot.slane %v12888_v34, %v10693_v5  ;;  %v15547_v9 = vrot.slane %v15546_v15, 4 }
 0x225   : > { %2503 = vst [vmem:[#allocation3 + $0x1d0] sm:$0x33] %v2492_v60  ;;  %v12922_v60 = vld [vmem:[%s10698_s26 + $0x12] sm:$0x3f] }
 0x226   : > { %v2581_v18 = vsel %vm503_vm0, %v15547_v9, %v15239_v37  ;;  %v3352_v61 = vsel %vm503_vm0, %v15548_v21, %v15241_v23  ;;  %v12931_v56 = vpop.permute.xlu0 %3425  ;;  %v10322_v37 = vld [vmem:[#allocation3 + $0x2e0] ss:$40 sps:$4 sm:$0xff]   ;;  %v10324_v45 = vld [vmem:[#allocation3 + $0x2e4] ss:$40 sps:$4 sm:$0xff]   ;;  %766 = vrot.lane.b32.xlu0 %v755_v38, %s15497_s18  ;;  %v15555_v38 = vrot.slane %v12536_v31, 4  ;;  %s15559_s18 = smov 81  }
 0x227   : > { %v2582_v10 = vsel %vm15549_vm11, %v15546_v15, %v2581_v18  ;;  %v3353_v11 = vsel %vm15550_vm12, %v12503_v57, %v3352_v61  ;;  %15551 = vst [vmem:[#allocation15_spill] sm:$0xff] %v12931_v56  ;;  %v12933_v9 = vpop.permute.xlu1 %3515  ;;  %v15249_v21 = vrot.slane %v12931_v56, 4  ;;  %4057 = vrot.lane.b32.xlu1 %v4041_v22, %s15553_s3  ;;  %v4131_v15 = vrot.slane %v4124_v28, %v10693_v5  ;;  %v12945_v61 = vld [vmem:[%s10698_s26 + $0x12] sm:$0x3f] }
 0x228   : > { %15552 = vst [vmem:[#allocation16_spill] sm:$0xff] %v12933_v9  ;;  %2593 = vst [vmem:[#allocation3 + $0x1d0] sm:$0xcc] %v2582_v10  ;;  %v15248_v23 = vrot.slane %v12933_v9, 4  ;;  %v4221_v57 = vrot.slane %v12922_v60, %v10693_v5  ;;  %v4303_v18 = vcombine.low %v12925_v46, %v12925_v46  ;;  %5727 = vmatprep.subr.bf16.mxu0 %v10324_v45  ;;  %v12958_v28 = vld [vmem:[%s10698_s26 + $0x12] sm:$0x3f] }
 0x229   : > { %3365 = vst [vmem:[#allocation3 + $0x290] sm:$0x33] %v3353_v11  ;;  %v15554_v11 = vrot.slane %v12505_v30, 4  ;;  %vm15556_vm11 = vcmask 850944   ;;  %vm15557_vm12 = vcmask 842752   ;;  %5728 = vmatpush2.bf16.msra.mxu0 %v10322_v37  ;;  %v15561_v37 = vld [vmem:[#allocation20_spill] sm:$0xff] }
 0x22a   : > { %v3532_v22 = vsel %vm503_vm0, %v15555_v38, %v15248_v23  ;;  %v12964_v36 = vpop.permute.xlu0 %3605  ;;  %v3764_v23 = vcombine.low %v12945_v61, %v12945_v61  ;;  %4147 = vrot.lane.b32.xlu0 %v4131_v15, %s15559_s18  ;;  %v12988_v15 = vld [vmem:[%s10698_s26 + $0x12] sm:$0x3f] }
 0x22b   : > { %v3442_v10 = vsel %vm503_vm0, %v15554_v11, %v15249_v21  ;;  %v3533_v56 = vsel %vm15557_vm12, %v12536_v31, %v3532_v22  ;;  %15558 = vst [vmem:[#allocation17_spill] sm:$0xff] %v12964_v36  ;;  %v12966_v11 = vpop.permute.xlu1 %1934  ;;  %v15254_v38 = vrot.slane %v12964_v36, 4  ;;  %4237 = vrot.lane.b32.xlu1 %v4221_v57, %s15303_s21  ;;  %v4310_v31 = vrot.slane %v4303_v18, %v10693_v5  ;;  %v12991_v57 = vld [vmem:[%s10698_s26 + $0x12] sm:$0x3f] }
 0x22c   : > { %v3443_v50 = vsel %vm15556_vm11, %v12505_v30, %v3442_v10  ;;  %3545 = vst [vmem:[#allocation3 + $0x2b8] sm:$0x33] %v3533_v56  ;;  %v15255_v45 = vrot.slane %v12966_v11, 4  ;;  %v3681_v30 = vrot.slane %v12958_v28, %v10693_v5  ;;  %v15562_v10 = vrot.slane %v15561_v37, 4 }
 0x22d   : > { %3455 = vst [vmem:[#allocation3 + $0x290] sm:$0xcc] %v3443_v50  ;;  %v15560_v50 = vrot.slane %v12538_v58, 4  ;;  %vm15563_vm11 = vcmask 711680   ;;  %vm15564_vm12 = vcmask 187392   ;;  %v3771_v19 = vrot.slane %v3764_v23, %v10693_v5  ;;  %v15567_v23 = vld [vmem:[#allocation22_spill] sm:$0xff] }
 0x22e   : > { %v1951_v22 = vsel %vm503_vm0, %v15562_v10, %v15255_v45  ;;  %v12997_v36 = vpop.permute.xlu0 %2024  ;;  %4326 = vrot.lane.b32.xlu0 %v4310_v31, %s15466_s0  ;;  %v15568_v31 = vrot.slane %v15567_v23, 4 }
 0x22f   : > { %v3622_v56 = vsel %vm503_vm0, %v15560_v50, %v15254_v38  ;;  %v1952_v21 = vsel %vm15564_vm12, %v15561_v37, %v1951_v22  ;;  %v12999_v9 = vpop.permute.xlu1 %2114  ;;  %v10327_v50 = vld [vmem:[#allocation3 + $0x1a8] ss:$40 sps:$4 sm:$0xff]   ;;  %v10329_v38 = vld [vmem:[#allocation3 + $0x1ac] ss:$40 sps:$4 sm:$0xff]   ;;  %v15264_v10 = vrot.slane %v12997_v36, 4  ;;  %3697 = vrot.lane.b32.xlu1 %v3681_v30, %s15327_s8  ;;  %v4751_v37 = vcombine.high %v12713_v32, %v12713_v32 }
 0x230   : > { %v3623_v18 = vsel %vm15563_vm11, %v12538_v58, %v3622_v56  ;;  %1963 = vst [vmem:[#allocation3 + $0x158] sm:$0x33] %v1952_v21  ;;  %v15265_v45 = vrot.slane %v12999_v9, 4  ;;  %v3861_v58 = vrot.slane %v12988_v15, %v10693_v5  ;;  %v3944_v56 = vcombine.low %v12991_v57, %v12991_v57  ;;  %v15565_v21 = vld [vmem:[#allocation21_spill] sm:$0xff]  ;;  %5746 = vmatprep.subr.bf16.mxu1 %v10329_v38 }
 0x231   : > { %3635 = vst [vmem:[#allocation3 + $0x2b8] sm:$0xcc] %v3623_v18  ;;  %v15566_v22 = vrot.slane %v15565_v21, 4  ;;  %vm15569_vm11 = vcmask 179200   ;;  %vm15570_vm12 = vcmask 171008   ;;  %5747 = vmatpush1.bf16.msra.mxu1 %v10327_v50  ;;  %v15571_v50 = vrot.slane %v11966_v43, 4 }
 0x232   : > { %v2131_v30 = vsel %vm503_vm0, %v15568_v31, %v15265_v45  ;;  %v13029_v12 = vpop.permute.xlu0 %2204  ;;  %3787 = vrot.lane.b32.xlu0 %v3771_v19, %s15332_s22  ;;  %v3951_v38 = vrot.slane %v3944_v56, %v10693_v5  ;;  %v13047_v19 = vld [vmem:[%s10698_s26 + $0x12] sm:$0x3f] }
 0x233   : > { %v2041_v18 = vsel %vm503_vm0, %v15566_v22, %v15264_v10  ;;  %v2132_v32 = vsel %vm15570_vm12, %v15567_v23, %v2131_v30  ;;  %v2980_v22 = vpop.permute.xlu1 %2979  ;;  %v15268_v10 = vrot.slane %v13029_v12, 4  ;;  %3877 = vrot.lane.b32.xlu1 %v3861_v58, %s15333_s11  ;;  %v15572_v23 = vrot.slane %v12622_v49, 4  ;;  %v13050_v58 = vld [vmem:[%s10698_s26 + $0x12] sm:$0x3f] }
 0x234   : > { %v2042_v4 = vsel %vm15569_vm11, %v15565_v21, %v2041_v18  ;;  %2143 = vst [vmem:[#allocation3 + $0x180] sm:$0x33] %v2132_v32  ;;  %v2986_v31 = vrot.slane %v2980_v22, 4  ;;  %v4765_v21 = vrot.slane %v4751_v37, %v10693_v5  ;;  %v3404_v18 = vcombine.low %v13023_v44, %v13023_v44 }
 0x235   : > { %2053 = vst [vmem:[#allocation3 + $0x158] sm:$0xcc] %v2042_v4  ;;  %v2221_v4 = vsel %vm503_vm0, %v15571_v50, %v15268_v10  ;;  %vm15573_vm11 = vcmask 162816   ;;  %vm15584_vm12 = vcmask 334848  }
 0x236   : > { %v2996_v30 = vsel %vm503_vm0, %v15572_v23, %v2986_v31  ;;  %v2222_v56 = vsel %vm15573_vm11, %v11966_v43, %v2221_v4  ;;  %v3070_v32 = vpop.permute.xlu0 %3069  ;;  %3967 = vrot.lane.b32.xlu0 %v3951_v38, %s15339_s10  ;;  %v3321_v31 = vrot.slane %v13047_v19, %v10693_v5  ;;  %v3411_v43 = vrot.slane %v3404_v18, %v10693_v5  ;;  %v13070_v38 = vld [vmem:[%s10698_s26 + $0x12] sm:$0x3f] }
 0x237   : > { %v2997_v37 = vsel %vm2988_vm2, %v12622_v49, %v2996_v30  ;;  %v3160_v22 = vpop.permute.xlu1 %3159  ;;  %2233 = vst [vmem:[#allocation3 + $0x180] sm:$0xcc] %v2222_v56  ;;  %v3076_v50 = vrot.slane %v3070_v32, 4  ;;  %4776 = vrot.lane.b32.xlu1 %v4765_v21, %s15519_s14  ;;  %v3584_v49 = vcombine.low %v13050_v58, %v13050_v58  ;;  %v15574_v4 = vrot.slane %v12624_v25, 4  ;;  %s15710_s14 = smov 1  }
 0x238   : > { %v10332_v45 = vld [vmem:[#allocation3 + $0x290] ss:$40 sps:$4 sm:$0xff]   ;;  %v10334_v39 = vld [vmem:[#allocation3 + $0x294] ss:$40 sps:$4 sm:$0xff]   ;;  %3007 = vst [vmem:[#allocation3 + $0x250] sm:$0x33] %v2997_v37 }
 0x239   : > { %v3166_v10 = vrot.slane %v3160_v22, 4  ;;  %v3086_v23 = vsel %vm503_vm0, %v15574_v4, %v3076_v50  ;;  %v15575_v30 = vrot.slane %v12649_v52, 4  ;;  %5729 = vmatprep.subr.bf16.mxu0 %v10334_v39  ;;  %v3501_v39 = vrot.slane %v13070_v38, %v10693_v5  ;;  %v15577_v4 = vld [vmem:[#allocation23_spill] sm:$0xff] }
 0x23a   : > { %v3087_v21 = vsel %vm3078_vm1, %v12624_v25, %v3086_v23  ;;  %v3250_v37 = vpop.permute.xlu0 %3249  ;;  %5730 = vmatpush2.bf16.msra.mxu0 %v10332_v45  ;;  %3337 = vrot.lane.b32.xlu0 %v3321_v31, %s15343_s6  ;;  %v3591_v25 = vrot.slane %v3584_v49, %v10693_v5  ;;  %v15576_v45 = vrot.slane %v12651_v0, 4  ;;  %v15578_v23 = vrot.slane %v15577_v4, 4 }
 0x23b   : > { %v3176_v56 = vsel %vm503_vm0, %v15575_v30, %v3166_v10  ;;  %v13076_v32 = vpop.permute.xlu1 %1574  ;;  %3097 = vst [vmem:[#allocation3 + $0x250] sm:$0xcc] %v3087_v21  ;;  %v3256_v22 = vrot.slane %v3250_v37, 4  ;;  %3427 = vrot.lane.b32.xlu1 %v3411_v43, %s15344_s27  ;;  %vm15579_vm1 = vcmask 343040   ;;  %vm15580_vm2 = vcmask 556032  }
 0x23c   : > { %v3177_v18 = vsel %vm3168_vm3, %v12649_v52, %v3176_v56  ;;  %v1582_v50 = vrot.slane %v13076_v32, 4  ;;  %v4392_v52 = vcombine.high %v12771_v40, %v12771_v40  ;;  %v4495_v37 = vrot.slane %v12758_v53, %v10693_v5 }
 0x23d   : > { %3187 = vst [vmem:[#allocation3 + $0x278] sm:$0x33] %v3177_v18  ;;  %v3266_v10 = vsel %vm503_vm0, %v15576_v45, %v3256_v22  ;;  %5732 = vmatmul.mubr.bf16.vlgmr.msra.gmra.mxu0 %v12675_v27  ;;  %v4571_v22 = vcombine.high %v12802_v7, %v12802_v7  ;;  %vm15585_vm11 = vcmask 203776  }
 0x23e   : > { %v1591_v31 = vsel %vm503_vm0, %v15578_v23, %v1582_v50  ;;  %v3267_v43 = vsel %vm3258_vm4, %v12651_v0, %v3266_v10  ;;  %v13099_v30 = vpop.permute.xlu0 %1664  ;;  %v10337_v56 = vld [vmem:[#allocation3 + $0x158] ss:$40 sps:$4 sm:$0xff]   ;;  %v10339_v21 = vld [vmem:[#allocation3 + $0x15c] ss:$40 sps:$4 sm:$0xff]   ;;  %9822 = vmatprep.mubr.msk.bf16.mxu0 %vm15580_vm2, %v12689_v42  ;;  %3517 = vrot.lane.b32.xlu0 %v3501_v39, %s15349_s13  ;;  %v4406_v0 = vrot.slane %v4392_v52, %v10693_v5  ;;  %v15581_v42 = vrot.slane %v12046_v1, 4  ;;  %v15582_v10 = vld [vmem:[#allocation24_spill] sm:$0xff] }
 0x23f   : > { %v1592_v49 = vsel %vm15579_vm1, %v15577_v4, %v1591_v31  ;;  %v13101_v40 = vpop.permute.xlu1 %1754  ;;  %3277 = vst [vmem:[#allocation3 + $0x278] sm:$0xcc] %v3267_v43  ;;  %v1672_v18 = vrot.slane %v13099_v30, 4  ;;  %3607 = vrot.lane.b32.xlu1 %v3591_v25, %s15350_s2  ;;  %v15583_v39 = vrot.slane %v15582_v10, 4  ;;  %5748 = vmatprep.subr.bf16.mxu1 %v10339_v21  ;;  %v4585_v43 = vrot.slane %v4571_v22, %v10693_v5 }
 0x240   : > { %1603 = vst [vmem:[#allocation3 + $0x108] sm:$0x33] %v1592_v49  ;;  %v1762_v27 = vrot.slane %v13101_v40, 4  ;;  %5749 = vmatpush1.bf16.msra.mxu1 %v10337_v56  ;;  %v4034_v49 = vcombine.high %v12888_v34, %v12888_v34  ;;  %v15586_v56 = vrot.slane %v12080_v13, 4  ;;  %vm15588_vm1 = vcmask 195584  }
 0x241   : > { %v1681_v45 = vsel %vm503_vm0, %v15581_v42, %v1672_v18  ;;  %v15587_v42 = vrot.slane %v12746_v59, 4  ;;  %vm15597_vm2 = vcmask 359424  }
 0x242   : > { %v1771_v25 = vsel %vm503_vm0, %v15583_v39, %v1762_v27  ;;  %v1682_v52 = vsel %vm15584_vm12, %v12046_v1, %v1681_v45  ;;  %v13128_v7 = vpop.permute.xlu0 %1844  ;;  %4417 = vrot.lane.b32.xlu0 %v4406_v0, %s15472_s5  ;;  %v4675_v1 = vrot.slane %v12805_v35, %v10693_v5  ;;  %vm15598_vm12 = vcmask 351232  }
 0x243   : > { %v1772_v53 = vsel %vm15585_vm11, %v15582_v10, %v1771_v25  ;;  %v2710_v4 = vpop.permute.xlu1 %2709  ;;  %1693 = vst [vmem:[#allocation3 + $0x108] sm:$0xcc] %v1682_v52  ;;  %v1852_v23 = vrot.slane %v13128_v7, 4  ;;  %4506 = vrot.lane.b32.xlu1 %v4495_v37, %s15535_s15  ;;  %v4048_v52 = vrot.slane %v4034_v49, %v10693_v5  ;;  %vm15615_vm11 = vcmask 187392  }
 0x244   : > { %1783 = vst [vmem:[#allocation3 + $0x130] sm:$0x33] %v1772_v53  ;;  %v2716_v31 = vrot.slane %v2710_v4, 4  ;;  %v15589_v53 = vrot.slane %v12748_v47, 4 }
 0x245   : > { %v1861_v21 = vsel %vm503_vm0, %v15586_v56, %v1852_v23 }
 0x246   : > { %v2726_v0 = vsel %vm503_vm0, %v15587_v42, %v2716_v31  ;;  %v1862_v37 = vsel %vm15588_vm1, %v12080_v13, %v1861_v21  ;;  %v2800_v35 = vpop.permute.xlu0 %2799  ;;  %v10340_v10 = vld [vmem:[#allocation3 + $0x250] ss:$40 sps:$4 sm:$0xff]   ;;  %v10342_v34 = vld [vmem:[#allocation3 + $0x254] ss:$40 sps:$4 sm:$0xff]   ;;  %4596 = vrot.lane.b32.xlu0 %v4585_v43, %s15536_s24  ;;  %v4138_v13 = vrot.slane %v12891_v2, %v10693_v5  ;;  %v15590_v31 = vrot.slane %v12777_v3, 4 }
 0x247   : > { %v2727_v22 = vsel %vm2718_vm5, %v12746_v59, %v2726_v0  ;;  %v2890_v45 = vpop.permute.xlu1 %2889  ;;  %1873 = vst [vmem:[#allocation3 + $0x130] sm:$0xcc] %v1862_v37  ;;  %v2806_v39 = vrot.slane %v2800_v35, 4  ;;  %4686 = vrot.lane.b32.xlu1 %v4675_v1, %s15540_s1  ;;  %v4214_v59 = vcombine.high %v12922_v60, %v12922_v60  ;;  %5785 = vmatprep.subr.bf16.mxu0 %v10342_v34  ;;  %v15591_v0 = vrot.slane %v12108_v54, 4  ;;  %s15718_s1 = sld [smem:[#allocation37_spill]] }
 0x248   : > { %2737 = vst [vmem:[#allocation3 + $0x200] sm:$0xcc] %v2727_v22  ;;  %v2896_v25 = vrot.slane %v2890_v45, 4  ;;  %5786 = vmatpush1.bf16.msra.mxu0 %v10340_v10  ;;  %v3674_v42 = vcombine.high %v12958_v28, %v12958_v28  ;;  %v15592_v22 = vrot.slane %v12110_v8, 4  ;;  %vm15616_vm1 = vcmask 179200  }
 0x249   : > { %v2816_v4 = vsel %vm503_vm0, %v15589_v53, %v2806_v39 }
 0x24a   : > { %v2906_v56 = vsel %vm503_vm0, %v15590_v31, %v2896_v25  ;;  %v2817_v43 = vsel %vm2808_vm6, %v12748_v47, %v2816_v4  ;;  %v13167_v49 = vpop.permute.xlu0 %1214  ;;  %4059 = vrot.lane.b32.xlu0 %v4048_v52, %s15553_s3  ;;  %v4228_v47 = vrot.slane %v4214_v59, %v10693_v5  ;;  %vm15593_vm6 = vcmask 375808  }
 0x24b   : > { %v2907_v1 = vsel %vm2898_vm7, %v12777_v3, %v2906_v56  ;;  %v13169_v2 = vpop.permute.xlu1 %1304  ;;  %2827 = vst [vmem:[#allocation3 + $0x228] sm:$0x33] %v2817_v43  ;;  %v1222_v60 = vrot.slane %v13167_v49, 4  ;;  %4149 = vrot.lane.b32.xlu1 %v4138_v13, %s15559_s18  ;;  %v4317_v3 = vrot.slane %v12925_v46, %v10693_v5  ;;  %vm15594_vm7 = vcmask 367616  }
 0x24c   : > { %2917 = vst [vmem:[#allocation3 + $0x228] sm:$0xcc] %v2907_v1  ;;  %v1312_v21 = vrot.slane %v13169_v2, 4  ;;  %v3854_v13 = vcombine.high %v12988_v15, %v12988_v15  ;;  %v15595_v59 = vrot.slane %v12134_v17, 4  ;;  %v15596_v4 = vrot.slane %v12136_v62, 4 }
 0x24d   : > { %v1231_v37 = vsel %vm503_vm0, %v15591_v0, %v1222_v60 }
 0x24e   : > { %v1321_v35 = vsel %vm503_vm0, %v15592_v22, %v1312_v21  ;;  %v1232_v45 = vsel %vm15593_vm6, %v12108_v54, %v1231_v37  ;;  %v13194_v10 = vpop.permute.xlu0 %1394  ;;  %v10345_v34 = vld [vmem:[#allocation3 + $0x10c] ss:$40 sps:$4 sm:$0xff]   ;;  %v10347_v39 = vld [vmem:[#allocation3 + $0x108] ss:$40 sps:$4 sm:$0xff]   ;;  %4239 = vrot.lane.b32.xlu0 %v4228_v47, %s15303_s21  ;;  %v3688_v54 = vrot.slane %v3674_v42, %v10693_v5  ;;  %v3868_v0 = vrot.slane %v3854_v13, %v10693_v5 }
 0x24f   : > { %v1322_v46 = vsel %vm15594_vm7, %v12110_v8, %v1321_v35  ;;  %v13196_v28 = vpop.permute.xlu1 %1484  ;;  %1243 = vst [vmem:[#allocation3 + $0xb8] sm:$0x33] %v1232_v45  ;;  %v1402_v25 = vrot.slane %v13194_v10, 4  ;;  %4328 = vrot.lane.b32.xlu1 %v4317_v3, %s15466_s0  ;;  %v3778_v8 = vrot.slane %v12945_v61, %v10693_v5  ;;  %5750 = vmatprep.subr.bf16.mxu1 %v10345_v34  ;;  %v15599_v37 = vrot.slane %v12842_v29, 4  ;;  %s15760_s0 = sld [smem:[#allocation42_spill]] }
 0x250   : > { %1333 = vst [vmem:[#allocation3 + $0xb8] sm:$0xcc] %v1322_v46  ;;  %v1492_v52 = vrot.slane %v13196_v28, 4  ;;  %5751 = vmatpush1.bf16.msra.mxu1 %v10347_v39  ;;  %v15600_v35 = vrot.slane %v12866_v24, 4  ;;  %v3418_v13 = vrot.slane %v13023_v44, %v10693_v5  ;;  %vm15619_vm6 = vcmask 171008  }
 0x251   : > { %v1411_v53 = vsel %vm503_vm0, %v15595_v59, %v1402_v25  ;;  %vm15620_vm7 = vcmask 162816  }
 0x252   : > { %v1501_v31 = vsel %vm503_vm0, %v15596_v4, %v1492_v52  ;;  %v1412_v56 = vsel %vm15597_vm2, %v12134_v17, %v1411_v53  ;;  %v2297_v15 = vpop.permute.xlu0 %2296  ;;  %3699 = vrot.lane.b32.xlu0 %v3688_v54, %s15327_s8  ;;  %v3958_v17 = vrot.slane %v12991_v57, %v10693_v5  ;;  %v15602_v53 = vrot.slane %v12897_v55, 4  ;;  %s15739_s8 = sld [smem:[#allocation38_spill]] }
 0x253   : > { %v1502_v61 = vsel %vm15598_vm12, %v12136_v62, %v1501_v31  ;;  %v2387_v43 = vpop.permute.xlu1 %2386  ;;  %v10349_v1 = vld [vmem:[#allocation3 + $0x200] ss:$40 sps:$4 sm:$0xff]   ;;  %v10351_v47 = vld [vmem:[#allocation3 + $0x204] ss:$40 sps:$4 sm:$0xff]   ;;  %1423 = vst [vmem:[#allocation3 + $0xe0] sm:$0x33] %v1412_v56  ;;  %3789 = vrot.lane.b32.xlu1 %v3778_v8, %s15332_s22  ;;  %v3314_v62 = vcombine.high %v13047_v19, %v13047_v19 }
 0x254   : > { %1513 = vst [vmem:[#allocation3 + $0xe0] sm:$0xcc] %v1502_v61  ;;  %v2303_v3 = vrot.slane %v2297_v15, 4  ;;  %v2393_v42 = vrot.slane %v2387_v43, 4  ;;  %5787 = vmatprep.subr.bf16.mxu0 %v10351_v47  ;;  %v15604_v47 = vrot.slane %v12167_v16, 4  ;;  %vm15625_vm2 = vcmask 564224  }
 0x255   : > { %5788 = vmatpush1.bf16.msra.mxu0 %v10349_v1  ;;  %v3328_v8 = vrot.slane %v3314_v62, %v10693_v5  ;;  %vm15626_vm12 = vcmask 556032   ;;  %s15758_s22 = sld [smem:[#allocation39_spill]] }
 0x256   : > { %v2313_v22 = vsel %vm503_vm0, %v15599_v37, %v2303_v3  ;;  %v2403_v45 = vsel %vm503_vm0, %v15600_v35, %v2393_v42  ;;  %v2477_v39 = vpop.permute.xlu0 %2476  ;;  %3879 = vrot.lane.b32.xlu0 %v3868_v0, %s15333_s11  ;;  %v15605_v42 = vrot.slane %v12199_v14, 4  ;;  %s15609_s11 = sld [smem:[#allocation34_spill]] }
 0x257   : > { %v2314_v46 = vsel %vm2305_vm8, %v12842_v29, %v2313_v22  ;;  %v2404_v34 = vsel %vm2395_vm9, %v12866_v24, %v2403_v45  ;;  %v2567_v57 = vpop.permute.xlu1 %2566  ;;  %v2483_v19 = vrot.slane %v2477_v39, 4  ;;  %3969 = vrot.lane.b32.xlu1 %v3958_v17, %s15339_s10  ;;  %v3494_v29 = vcombine.high %v13070_v38, %v13070_v38  ;;  %v15607_v45 = vld [vmem:[#allocation25_spill] sm:$0xff] }
 0x258   : > { %2324 = vst [vmem:[#allocation3 + $0x1b0] sm:$0x33] %v2314_v46  ;;  %2414 = vst [vmem:[#allocation3 + $0x1b0] sm:$0xcc] %v2404_v34  ;;  %v2573_v54 = vrot.slane %v2567_v57, 4  ;;  %v15601_v24 = vrot.slane %v12868_v6, 4 }
 0x259   : > { %vm15603_vm8 = vcmask 7168   ;;  %v15608_v46 = vrot.slane %v15607_v45, 4  ;;  %vm15610_vm9 = vcmask 515072  }
 0x25a   : > { %v2493_v59 = vsel %vm503_vm0, %v15601_v24, %v2483_v19  ;;  %v2583_v4 = vsel %vm503_vm0, %v15602_v53, %v2573_v54  ;;  %v13255_v61 = vpop.permute.xlu0 %854  ;;  %3339 = vrot.lane.b32.xlu0 %v3328_v8, %s15343_s6 }
 0x25b   : > { %v2494_v31 = vsel %vm2485_vm10, %v12868_v6, %v2493_v59  ;;  %v2584_v56 = vsel %vm15603_vm8, %v12897_v55, %v2583_v4  ;;  %v13257_v44 = vpop.permute.xlu1 %944  ;;  %v10354_v15 = vld [vmem:[#allocation3 + $0xbc] ss:$40 sps:$4 sm:$0xff]   ;;  %v10356_v38 = vld [vmem:[#allocation3 + $0xb8] ss:$40 sps:$4 sm:$0xff]   ;;  %v862_v43 = vrot.slane %v13255_v61, 4  ;;  %3429 = vrot.lane.b32.xlu1 %v3418_v13, %s15344_s27  ;;  %v3508_v6 = vrot.slane %v3494_v29, %v10693_v5  ;;  %s15614_s27 = sld [smem:[#allocation36_spill]] }
 0x25c   : > { %2504 = vst [vmem:[#allocation3 + $0x1d8] sm:$0x33] %v2494_v31  ;;  %2594 = vst [vmem:[#allocation3 + $0x1d8] sm:$0xcc] %v2584_v56  ;;  %v952_v1 = vrot.slane %v13257_v44, 4  ;;  %v3598_v55 = vrot.slane %v13050_v58, %v10693_v5  ;;  %5752 = vmatprep.subr.bf16.mxu1 %v10354_v15  ;;  %v4932_v39 = vld [vmem:[%s15609_s11] sm:$0xff] }
 0x25d   : > { %v871_v3 = vsel %vm503_vm0, %v15604_v47, %v862_v43  ;;  %5753 = vmatpush1.bf16.msra.mxu1 %v10356_v38  ;;  %v4933_v57 = vld [vmem:[%s15609_s11 + $0x8] sm:$0xff]  ;;  %vm15611_vm10 = vcmask 384000   ;;  %v15612_v4 = vrot.slane %v12966_v11, 4  ;;  %v15613_v56 = vrot.slane %v12997_v36, 4 }
 0x25e   : > { %v961_v0 = vsel %vm503_vm0, %v15605_v42, %v952_v1  ;;  %v872_v17 = vsel %vm865_vm14, %v12167_v16, %v871_v3  ;;  %v13280_v58 = vpop.permute.xlu0 %1034  ;;  %3519 = vrot.lane.b32.xlu0 %v3508_v6, %s15349_s13  ;;  %v15606_v16 = vrot.slane %v12201_v26, 4  ;;  %vm15631_vm8 = vcmask 547840  }
 0x25f   : > { %v962_v62 = vsel %vm955_vm15, %v12199_v14, %v961_v0  ;;  %v13282_v37 = vpop.permute.xlu1 %1124  ;;  %883 = vst [vmem:[#allocation3 + $0x68] sm:$0x33] %v872_v17  ;;  %v1042_v22 = vrot.slane %v13280_v58, 4  ;;  %3609 = vrot.lane.b32.xlu1 %v3598_v55, %s15350_s2  ;;  %v15617_v0 = vrot.slane %v12999_v9, 4  ;;  %s15759_s2 = sld [smem:[#allocation6_spill]] }
 0x260   : > { %973 = vst [vmem:[#allocation3 + $0x68] sm:$0xcc] %v962_v62  ;;  %v1132_v35 = vrot.slane %v13282_v37, 4  ;;  %v15618_v62 = vrot.slane %v13029_v12, 4 }
 0x261   : > { %v1051_v14 = vsel %vm503_vm0, %v15606_v16, %v1042_v22  ;;  %v6021_v15 = vld [vmem:[%s15614_s27] sm:$0xf] }
 0x262   : > { %v1141_v34 = vsel %vm503_vm0, %v15608_v46, %v1132_v35  ;;  %v1052_v19 = vsel %vm15610_vm9, %v12201_v26, %v1051_v14  ;;  %v1937_v8 = vpop.permute.xlu0 %1936  ;;  %4936 = vperm.xlu0 %10163, %v4932_v39   ;;  %vm15632_vm9 = vcmask 539648  }
 0x263   : > { %v1142_v54 = vsel %vm15611_vm10, %v15607_v45, %v1141_v34  ;;  %v2027_v13 = vpop.permute.xlu1 %2026  ;;  %v10358_v29 = vld [vmem:[#allocation3 + $0x1b0] ss:$40 sps:$4 sm:$0xff]   ;;  %v10360_v24 = vld [vmem:[#allocation3 + $0x1b4] ss:$40 sps:$4 sm:$0xff]   ;;  %1063 = vst [vmem:[#allocation3 + $0x90] sm:$0x33] %v1052_v19  ;;  %4941 = vperm.xlu1 %10164, %v4933_v57  }
 0x264   : > { %1153 = vst [vmem:[#allocation3 + $0x90] sm:$0xcc] %v1142_v54  ;;  %v1943_v59 = vrot.slane %v1937_v8, 4  ;;  %v2033_v53 = vrot.slane %v2027_v13, 4  ;;  %5789 = vmatprep.subr.bf16.mxu0 %v10360_v24  ;;  %v15621_v19 = vld [vmem:[#allocation26_spill] sm:$0xff]  ;;  %vm15633_vm10 = vcmask 343040  }
 0x265   : > { %5790 = vmatpush1.bf16.msra.mxu0 %v10358_v29  ;;  %s10106_s26 = smul.u32 20, %s15759_s2 }
 0x266   : > { %v1953_v31 = vsel %vm503_vm0, %v15612_v4, %v1943_v59  ;;  %v2043_v26 = vsel %vm503_vm0, %v15613_v56, %v2033_v53  ;;  %v2117_v55 = vpop.permute.xlu0 %2116  ;;  %v15627_v56 = vld [vmem:[#allocation28_spill] sm:$0xff]  ;;  %s10107_s12 = smul.u32 40, %s15759_s2 }
 0x267   : > { %v1954_v38 = vsel %vm15615_vm11, %v12966_v11, %v1953_v31  ;;  %v2044_v6 = vsel %vm15616_vm1, %v12997_v36, %v2043_v26  ;;  %v2207_v47 = vpop.permute.xlu1 %2206  ;;  %v2123_v3 = vrot.slane %v2117_v55, 4  ;;  %6024 = vperm.xlu1 %10164, %v6021_v15   ;;  %v15628_v26 = vrot.slane %v15627_v56, 4  ;;  %s14571_s5 = scalar_lea.vmem %s15760_s0, %s10106_s26 }
 0x268   : > { %1964 = vst [vmem:[#allocation3 + $0x160] sm:$0x33] %v1954_v38  ;;  %2054 = vst [vmem:[#allocation3 + $0x160] sm:$0xcc] %v2044_v6  ;;  %v2213_v42 = vrot.slane %v2207_v47, 4  ;;  %v15629_v38 = vld [vmem:[#allocation29_spill] sm:$0xff] }
 0x269   : > { %v2133_v17 = vsel %vm503_vm0, %v15617_v0, %v2123_v3  ;;  %v15630_v6 = vrot.slane %v15629_v38, 4  ;;  %vm15634_vm11 = vcmask 334848   ;;  %vm15635_vm1 = vcmask 203776  }
 0x26a   : > { %v2223_v16 = vsel %vm503_vm0, %v15618_v62, %v2213_v42  ;;  %v2134_v11 = vsel %vm15619_vm6, %v12999_v9, %v2133_v17  ;;  %v13331_v14 = vpop.permute.xlu0 %493  ;;  %v15622_v9 = vrot.slane %v15621_v19, 4  ;;  %vm15636_vm6 = vcmask 195584  }
 0x26b   : > { %v2224_v36 = vsel %vm15620_vm7, %v13029_v12, %v2223_v16  ;;  %v13333_v45 = vpop.permute.xlu1 %584  ;;  %v10361_v46 = vld [vmem:[#allocation3 + $0x6c] ss:$40 sps:$4 sm:$0xff]   ;;  %v10363_v34 = vld [vmem:[#allocation3 + $0x68] ss:$40 sps:$4 sm:$0xff]   ;;  %2144 = vst [vmem:[#allocation3 + $0x188] sm:$0x33] %v2134_v11 }
 0x26c   : > { %2234 = vst [vmem:[#allocation3 + $0x188] sm:$0xcc] %v2224_v36  ;;  %v501_v39 = vrot.slane %v13331_v14, 4  ;;  %v592_v57 = vrot.slane %v13333_v45, 4  ;;  %5754 = vmatprep.subr.bf16.mxu1 %v10361_v46  ;;  %v15623_v12 = vld [vmem:[#allocation27_spill] sm:$0xff]  ;;  %vm15637_vm7 = vcmask 375808  }
 0x26d   : > { %v15624_v8 = vrot.slane %v15623_v12, 4  ;;  %5755 = vmatpush1.bf16.msra.mxu1 %v10363_v34 }
 0x26e   : > { %v511_v54 = vsel %vm503_vm0, %v15622_v9, %v501_v39  ;;  %v13351_v59 = vpop.permute.xlu0 %674 }
 0x26f   : > { %v601_v13 = vsel %vm503_vm0, %v15624_v8, %v592_v57  ;;  %v512_v29 = vsel %vm15625_vm2, %v15621_v19, %v511_v54  ;;  %v13353_v53 = vpop.permute.xlu1 %764  ;;  %v682_v4 = vrot.slane %v13351_v59, 4  ;;  %vm15638_vm2 = vcmask 367616  }
 0x270   : > { %v602_v24 = vsel %vm15626_vm12, %v15623_v12, %v601_v13  ;;  %523 = vst [vmem:[#allocation3 + $0x18] sm:$0x33] %v512_v29  ;;  %v772_v31 = vrot.slane %v13353_v53, 4  ;;  %vm15639_vm12 = vcmask 359424  }
 0x271   : > { %613 = vst [vmem:[#allocation3 + $0x18] sm:$0xcc] %v602_v24  ;;  %v691_v15 = vsel %vm503_vm0, %v15628_v26, %v682_v4 }
 0x272   : > { %v781_v55 = vsel %vm503_vm0, %v15630_v6, %v772_v31  ;;  %v692_v47 = vsel %vm15631_vm8, %v15627_v56, %v691_v15  ;;  %v1577_v42 = vpop.permute.xlu0 %1576  ;;  %vm15640_vm8 = vcmask 351232  }
 0x273   : > { %v782_v3 = vsel %vm15632_vm9, %v15629_v38, %v781_v55  ;;  %v1667_v0 = vpop.permute.xlu1 %1666  ;;  %v10364_v17 = vld [vmem:[#allocation3 + $0x160] ss:$40 sps:$4 sm:$0xff]   ;;  %v10366_v62 = vld [vmem:[#allocation3 + $0x164] ss:$40 sps:$4 sm:$0xff]   ;;  %703 = vst [vmem:[#allocation3 + $0x40] sm:$0x33] %v692_v47 }
 0x274   : > { %793 = vst [vmem:[#allocation3 + $0x40] sm:$0xcc] %v782_v3  ;;  %v1583_v16 = vrot.slane %v1577_v42, 4  ;;  %v1673_v11 = vrot.slane %v1667_v0, 4  ;;  %5791 = vmatprep.subr.bf16.mxu0 %v10366_v62  ;;  %vm15643_vm9 = vcmask 482304  }
 0x275   : > { %5792 = vmatpush1.bf16.msra.mxu0 %v10364_v17 }
 0x276   : > { %v1593_v36 = vsel %vm503_vm0, %v1582_v50, %v1583_v16  ;;  %v1683_v46 = vsel %vm503_vm0, %v1672_v18, %v1673_v11  ;;  %v1757_v9 = vpop.permute.xlu0 %1756 }
 0x277   : > { %v1594_v34 = vsel %vm15633_vm10, %v13076_v32, %v1593_v36  ;;  %v1684_v19 = vsel %vm15634_vm11, %v13099_v30, %v1683_v46  ;;  %v1847_v54 = vpop.permute.xlu1 %1846  ;;  %v1763_v12 = vrot.slane %v1757_v9, 4  ;;  %vm15644_vm10 = vcmask 515072  }
 0x278   : > { %1604 = vst [vmem:[#allocation3 + $0x110] sm:$0x33] %v1594_v34  ;;  %1694 = vst [vmem:[#allocation3 + $0x110] sm:$0xcc] %v1684_v19  ;;  %v1853_v8 = vrot.slane %v1847_v54, 4  ;;  %vm15646_vm11 = vcmask 384000  }
 0x279   : > { %v1773_v50 = vsel %vm503_vm0, %v1762_v27, %v1763_v12 }
 0x27a   : > { %v1863_v18 = vsel %vm503_vm0, %v1852_v23, %v1853_v8  ;;  %v1774_v32 = vsel %vm15635_vm1, %v13101_v40, %v1773_v50  ;;  %v1217_v13 = vpop.permute.xlu0 %1216  ;;  %vm15647_vm1 = vmmov %vm15644_vm10 }
 0x27b   : > { %v1864_v30 = vsel %vm15636_vm6, %v13128_v7, %v1863_v18  ;;  %v1307_v29 = vpop.permute.xlu1 %1306  ;;  %v10367_v24 = vld [vmem:[#allocation3 + $0x1c] ss:$40 sps:$4 sm:$0xff]   ;;  %v10369_v56 = vld [vmem:[#allocation3 + $0x18] ss:$40 sps:$4 sm:$0xff]   ;;  %1784 = vst [vmem:[#allocation3 + $0x138] sm:$0x33] %v1774_v32 }
 0x27c   : > { %1874 = vst [vmem:[#allocation3 + $0x138] sm:$0xcc] %v1864_v30  ;;  %v1223_v26 = vrot.slane %v1217_v13, 4  ;;  %v1313_v15 = vrot.slane %v1307_v29, 4  ;;  %5756 = vmatprep.subr.bf16.mxu1 %v10367_v24  ;;  %vm15650_vm6 = vcmask 506880  }
 0x27d   : > { %5757 = vmatpush1.bf16.msra.mxu1 %v10369_v56 }
 0x27e   : > { %v1233_v27 = vsel %vm503_vm0, %v1222_v60, %v1223_v26  ;;  %v1323_v40 = vsel %vm503_vm0, %v1312_v21, %v1313_v15  ;;  %v1397_v38 = vpop.permute.xlu0 %1396 }
 0x27f   : > { %v1234_v7 = vsel %vm15637_vm7, %v13167_v49, %v1233_v27  ;;  %v1324_v23 = vsel %vm15638_vm2, %v13169_v2, %v1323_v40  ;;  %v1487_v6 = vpop.permute.xlu1 %1486  ;;  %v1403_v55 = vrot.slane %v1397_v38, 4  ;;  %vm15651_vm7 = vcmask 498688  }
 0x280   : > { %1244 = vst [vmem:[#allocation3 + $0xc0] sm:$0x33] %v1234_v7  ;;  %1334 = vst [vmem:[#allocation3 + $0xc0] sm:$0xcc] %v1324_v23  ;;  %v1493_v47 = vrot.slane %v1487_v6, 4  ;;  %vm15653_vm2 = vcmask 490496  }
 0x281   : > { %v1413_v60 = vsel %vm503_vm0, %v1402_v25, %v1403_v55 }
 0x282   : > { %v1503_v21 = vsel %vm503_vm0, %v1492_v52, %v1493_v47  ;;  %v1414_v49 = vsel %vm15639_vm12, %v13194_v10, %v1413_v60  ;;  %v13411_v3 = vpop.permute.xlu0 %4774  ;;  %v15641_v52 = vld [vmem:[#allocation30_spill] sm:$0xff]  ;;  %vm15654_vm12 = vcmask 564224  }
 0x283   : > { %v1504_v2 = vsel %vm15640_vm8, %v13196_v28, %v1503_v21  ;;  %v857_v42 = vpop.permute.xlu1 %856  ;;  %v10370_v0 = vld [vmem:[#allocation3 + $0x114] ss:$40 sps:$4 sm:$0xff]   ;;  %v10372_v17 = vld [vmem:[#allocation3 + $0x110] ss:$40 sps:$4 sm:$0xff]   ;;  %1424 = vst [vmem:[#allocation3 + $0xe8] sm:$0x33] %v1414_v49 }
 0x284   : > { %1514 = vst [vmem:[#allocation3 + $0xe8] sm:$0xcc] %v1504_v2  ;;  %v4782_v62 = vrot.slane %v13411_v3, 4  ;;  %v863_v25 = vrot.slane %v857_v42, 4  ;;  %5793 = vmatprep.subr.bf16.mxu0 %v10370_v0  ;;  %v15642_v16 = vrot.slane %v15641_v52, 4  ;;  %v15652_v2 = vrot.slane %v12597_v20, 4 }
 0x285   : > { %5794 = vmatpush1.bf16.msra.mxu0 %v10372_v17  ;;  %vm15655_vm8 = vcmask 556032  }
 0x286   : > { %v4791_v10 = vsel %vm503_vm0, %v15642_v16, %v4782_v62  ;;  %v873_v28 = vsel %vm503_vm0, %v862_v43, %v863_v25  ;;  %v947_v46 = vpop.permute.xlu0 %946 }
 0x287   : > { %v4792_v11 = vsel %vm15643_vm9, %v15641_v52, %v4791_v10  ;;  %v874_v36 = vsel %vm865_vm14, %v13255_v61, %v873_v28  ;;  %v1037_v34 = vpop.permute.xlu1 %1036  ;;  %v953_v19 = vrot.slane %v947_v46, 4  ;;  %vm15656_vm9 = vcmask 547840  }
 0x288   : > { %4803 = vst [vmem:[#allocation3 + $0x3d8] sm:$0x33] %v4792_v11  ;;  %884 = vst [vmem:[#allocation3 + $0x70] sm:$0x33] %v874_v36  ;;  %v1043_v9 = vrot.slane %v1037_v34, 4 }
 0x289   : > { %v963_v54 = vsel %vm503_vm0, %v952_v1, %v953_v19 }
 0x28a   : > { %v1053_v43 = vsel %vm503_vm0, %v1042_v22, %v1043_v9  ;;  %v964_v12 = vsel %vm955_vm15, %v13257_v44, %v963_v54  ;;  %v1127_v8 = vpop.permute.xlu0 %1126  ;;  %v15645_v44 = vrot.slane %v12566_v41, 4 }
 0x28b   : > { %v1054_v61 = vsel %vm15644_vm10, %v13280_v58, %v1053_v43  ;;  %v13436_v50 = vpop.permute.xlu1 %4415  ;;  %v10373_v18 = vld [vmem:[#allocation3 + $0xc4] ss:$40 sps:$4 sm:$0xff]   ;;  %v10375_v32 = vld [vmem:[#allocation3 + $0xc0] ss:$40 sps:$4 sm:$0xff]   ;;  %974 = vst [vmem:[#allocation3 + $0x70] sm:$0xcc] %v964_v12 }
 0x28c   : > { %1064 = vst [vmem:[#allocation3 + $0x98] sm:$0x33] %v1054_v61  ;;  %v1133_v30 = vrot.slane %v1127_v8, 4  ;;  %v4423_v1 = vrot.slane %v13436_v50, 4  ;;  %5795 = vmatprep.subr.bf16.mxu0 %v10373_v18  ;;  %vm15658_vm10 = vcmask 539648  }
 0x28d   : > { %5796 = vmatpush1.bf16.msra.mxu0 %v10375_v32 }
 0x28e   : > { %v1143_v22 = vsel %vm503_vm0, %v1132_v35, %v1133_v30  ;;  %v4431_v58 = vsel %vm503_vm0, %v15645_v44, %v4423_v1  ;;  %v13451_v24 = vpop.permute.xlu0 %4504 }
 0x28f   : > { %v1144_v13 = vsel %vm15646_vm11, %v13282_v37, %v1143_v22  ;;  %v4432_v29 = vsel %vm15647_vm1, %v12566_v41, %v4431_v58  ;;  %v13453_v56 = vpop.permute.xlu1 %4594  ;;  %v4930_v26 = vld [vmem:[#allocation3 + $0x3d8] sm:$0x33]  ;;  %v4512_v35 = vrot.slane %v13451_v24, 4  ;;  %v15648_v37 = vrot.slane %v12568_v33, 4 }
 0x290   : > { %1154 = vst [vmem:[#allocation3 + $0x98] sm:$0xcc] %v1144_v13  ;;  %4443 = vst [vmem:[#allocation3 + $0x388] sm:$0x33] %v4432_v29  ;;  %v4602_v15 = vrot.slane %v13453_v56, 4  ;;  %v9810_v27 = vcombine.high %v4930_v26, %v4930_v26  ;;  %v9809_v40 = vcombine.low %v4930_v26, %v4930_v26  ;;  %v15649_v41 = vrot.slane %v12595_v48, 4 }
 0x291   : > { %v4521_v7 = vsel %vm503_vm0, %v15648_v37, %v4512_v35  ;;  %vm15659_vm11 = vcmask 670720   ;;  %vm15663_vm1 = vcmask 662528  }
 0x292   : > { %v4611_v23 = vsel %vm503_vm0, %v15649_v41, %v4602_v15  ;;  %9819 = vmatprep.subr.msk.bf16.mxu1 %vm5582_vm13, %v9810_v27  ;;  %v5602_v38 = vsel %vm5582_vm13, %v9809_v40, 0  ;;  %v4522_v6 = vsel %vm15650_vm6, %v12568_v33, %v4521_v7  ;;  %v13473_v47 = vpop.permute.xlu0 %4684  ;;  %v15664_v27 = vld [vmem:[#allocation9_spill] sm:$0xff]  ;;  %vm15668_vm6 = vcmask 703488  }
 0x293   : > { %v4612_v55 = vsel %vm15651_vm7, %v12595_v48, %v4611_v23  ;;  %5765 = vmatpush2.bf16.msra.mxu1 %v5602_v38  ;;  %v496_v60 = vpop.permute.xlu1 %495  ;;  %4533 = vst [vmem:[#allocation3 + $0x388] sm:$0xcc] %v4522_v6  ;;  %v4692_v21 = vrot.slane %v13473_v47, 4  ;;  %v15665_v40 = vrot.slane %v15664_v27, 4  ;;  %vm15673_vm7 = vcmask 695296  }
 0x294   : > { %4623 = vst [vmem:[#allocation3 + $0x3b0] sm:$0x33] %v4612_v55  ;;  %v502_v49 = vrot.slane %v496_v60, 4 }
 0x295   : > { %v4701_v42 = vsel %vm503_vm0, %v15652_v2, %v4692_v21 }
 0x296   : > { %v513_v33 = vsel %vm503_vm0, %v501_v39, %v502_v49  ;;  %v4702_v48 = vsel %vm15653_vm2, %v12597_v20, %v4701_v42  ;;  %v587_v17 = vpop.permute.xlu0 %586  ;;  %vm15674_vm2 = vcmask 687104  }
 0x297   : > { %v514_v0 = vsel %vm15654_vm12, %v13331_v14, %v513_v33  ;;  %v677_v25 = vpop.permute.xlu1 %676  ;;  %v10378_v52 = vld [vmem:[#allocation3 + $0x74] ss:$40 sps:$4 sm:$0xff]   ;;  %v10380_v16 = vld [vmem:[#allocation3 + $0x70] ss:$40 sps:$4 sm:$0xff]   ;;  %4713 = vst [vmem:[#allocation3 + $0x3b0] sm:$0xcc] %v4702_v48 }
 0x298   : > { %524 = vst [vmem:[#allocation3 + $0x20] sm:$0x33] %v514_v0  ;;  %v593_v10 = vrot.slane %v587_v17, 4  ;;  %v683_v28 = vrot.slane %v677_v25, 4  ;;  %5797 = vmatprep.subr.bf16.mxu0 %v10378_v52  ;;  %v15669_v33 = vld [vmem:[#allocation11_spill] sm:$0xff]  ;;  %v15671_v17 = vld [vmem:[#allocation12_spill] sm:$0xff] }
 0x299   : > { %5798 = vmatpush1.bf16.msra.mxu0 %v10380_v16  ;;  %v15670_v48 = vrot.slane %v15669_v33, 4  ;;  %v15672_v25 = vrot.slane %v15671_v17, 4  ;;  %vm15677_vm12 = vcmask 678912  }
 0x29a   : > { %v603_v11 = vsel %vm503_vm0, %v592_v57, %v593_v10  ;;  %v693_v20 = vsel %vm503_vm0, %v682_v4, %v683_v28  ;;  %v767_v36 = vpop.permute.xlu0 %766  ;;  %v15657_v4 = vrot.slane %v12682_v51, 4 }
 0x29b   : > { %v604_v14 = vsel %vm15655_vm8, %v13333_v45, %v603_v11  ;;  %v694_v39 = vsel %vm15656_vm9, %v13351_v59, %v693_v20  ;;  %v13498_v46 = vpop.permute.xlu1 %4057  ;;  %v773_v34 = vrot.slane %v767_v36, 4  ;;  %vm15678_vm8 = vcmask 482304  }
 0x29c   : > { %614 = vst [vmem:[#allocation3 + $0x20] sm:$0xcc] %v604_v14  ;;  %704 = vst [vmem:[#allocation3 + $0x48] sm:$0x33] %v694_v39  ;;  %v4065_v19 = vrot.slane %v13498_v46, 4  ;;  %v15675_v39 = vld [vmem:[#allocation13_spill] sm:$0xff] }
 0x29d   : > { %v783_v57 = vsel %vm503_vm0, %v772_v31, %v773_v34  ;;  %v15676_v36 = vrot.slane %v15675_v39, 4  ;;  %vm15683_vm9 = vcmask 859136  }
 0x29e   : > { %v4074_v45 = vsel %vm503_vm0, %v15657_v4, %v4065_v19  ;;  %v784_v59 = vsel %vm15658_vm10, %v13353_v53, %v783_v57  ;;  %v13513_v54 = vpop.permute.xlu0 %4147  ;;  %v10381_v12 = vld [vmem:[#allocation3 + $0x388] ss:$40 sps:$4 sm:$0xff]   ;;  %v10383_v61 = vld [vmem:[#allocation3 + $0x38c] ss:$40 sps:$4 sm:$0xff]   ;;  %v15660_v53 = vrot.slane %v12684_v63, 4  ;;  %vm15684_vm10 = vcmask 850944  }
 0x29f   : > { %v4075_v9 = vsel %vm15659_vm11, %v12682_v51, %v4074_v45  ;;  %v13515_v43 = vpop.permute.xlu1 %4237  ;;  %794 = vst [vmem:[#allocation3 + $0x48] sm:$0xcc] %v784_v59  ;;  %v4155_v31 = vrot.slane %v13513_v54, 4  ;;  %5766 = vmatprep.subr.bf16.mxu1 %v10383_v61  ;;  %v15661_v51 = vld [vmem:[#allocation8_spill] sm:$0xff]  ;;  %vm15689_vm11 = vcmask 842752  }
 0x2a0   : > { %4086 = vst [vmem:[#allocation3 + $0x338] sm:$0x33] %v4075_v9  ;;  %v4245_v8 = vrot.slane %v13515_v43, 4  ;;  %v15662_v32 = vrot.slane %v15661_v51, 4  ;;  %5767 = vmatpush2.bf16.msra.mxu1 %v10381_v12 }
 0x2a1   : > { %v4164_v18 = vsel %vm503_vm0, %v15660_v53, %v4155_v31 }
 0x2a2   : > { %v4253_v30 = vsel %vm503_vm0, %v15662_v32, %v4245_v8  ;;  %v4165_v22 = vsel %vm15663_vm1, %v12684_v63, %v4164_v18  ;;  %v13533_v58 = vpop.permute.xlu0 %4326  ;;  %v15666_v63 = vld [vmem:[#allocation10_spill] sm:$0xff]  ;;  %vm15690_vm1 = vcmask 711680  }
 0x2a3   : > { %v4254_v44 = vsel %vm865_vm14, %v15661_v51, %v4253_v30  ;;  %v13535_v13 = vpop.permute.xlu1 %3697  ;;  %4176 = vst [vmem:[#allocation3 + $0x338] sm:$0xcc] %v4165_v22  ;;  %v4334_v29 = vrot.slane %v13533_v58, 4  ;;  %v15667_v7 = vrot.slane %v15666_v63, 4 }
 0x2a4   : > { %4265 = vst [vmem:[#allocation3 + $0x360] sm:$0x33] %v4254_v44  ;;  %v3705_v26 = vrot.slane %v13535_v13, 4 }
 0x2a5   : > { %v4342_v37 = vsel %vm503_vm0, %v15665_v40, %v4334_v29 }
 0x2a6   : > { %v3714_v41 = vsel %vm503_vm0, %v15667_v7, %v3705_v26  ;;  %v4343_v23 = vsel %vm955_vm15, %v15664_v27, %v4342_v37  ;;  %v13553_v6 = vpop.permute.xlu0 %3787  ;;  %v10384_v60 = vld [vmem:[#allocation3 + $0x24] ss:$40 sps:$4 sm:$0xff]   ;;  %v10386_v49 = vld [vmem:[#allocation3 + $0x20] ss:$40 sps:$4 sm:$0xff]  }
 0x2a7   : > { %v3715_v38 = vsel %vm15668_vm6, %v15666_v63, %v3714_v41  ;;  %v13555_v55 = vpop.permute.xlu1 %3877  ;;  %4354 = vst [vmem:[#allocation3 + $0x360] sm:$0xcc] %v4343_v23  ;;  %v3795_v2 = vrot.slane %v13553_v6, 4  ;;  %5799 = vmatprep.subr.bf16.mxu0 %v10384_v60  ;;  %v15685_v41 = vld [vmem:[#allocation16_spill] sm:$0xff]  ;;  %v15687_v60 = vld [vmem:[#allocation17_spill] sm:$0xff]  ;;  %vm15691_vm6 = vcmask 515072  }
 0x2a8   : > { %3726 = vst [vmem:[#allocation3 + $0x2e8] sm:$0x33] %v3715_v38  ;;  %v3885_v42 = vrot.slane %v13555_v55, 4  ;;  %5800 = vmatpush1.bf16.msra.mxu0 %v10386_v49  ;;  %v15686_v23 = vrot.slane %v15685_v41, 4  ;;  %v15688_v49 = vrot.slane %v15687_v60, 4 }
 0x2a9   : > { %v3804_v0 = vsel %vm503_vm0, %v15670_v48, %v3795_v2 }
 0x2aa   : > { %v3894_v52 = vsel %vm503_vm0, %v15672_v25, %v3885_v42  ;;  %v3805_v16 = vsel %vm15673_vm7, %v15669_v33, %v3804_v0  ;;  %v13573_v28 = vpop.permute.xlu0 %3967  ;;  %vm15692_vm7 = vcmask 506880  }
 0x2ab   : > { %v3895_v10 = vsel %vm15674_vm2, %v15671_v17, %v3894_v52  ;;  %v4777_v11 = vpop.permute.xlu1 %4776  ;;  %3816 = vst [vmem:[#allocation3 + $0x2e8] sm:$0xcc] %v3805_v16  ;;  %v3975_v20 = vrot.slane %v13573_v28, 4  ;;  %vm15693_vm2 = vcmask 498688  }
 0x2ac   : > { %3906 = vst [vmem:[#allocation3 + $0x310] sm:$0x33] %v3895_v10  ;;  %v4783_v14 = vrot.slane %v4777_v11, 4 }
 0x2ad   : > { %v3984_v34 = vsel %vm503_vm0, %v15676_v36, %v3975_v20 }
 0x2ae   : > { %v4793_v57 = vsel %vm503_vm0, %v4782_v62, %v4783_v14  ;;  %v3985_v4 = vsel %vm15677_vm12, %v15675_v39, %v3984_v34  ;;  %v13588_v59 = vpop.permute.xlu0 %3337  ;;  %v10387_v12 = vld [vmem:[#allocation3 + $0x338] ss:$40 sps:$4 sm:$0xff]   ;;  %v10389_v61 = vld [vmem:[#allocation3 + $0x33c] ss:$40 sps:$4 sm:$0xff]   ;;  %vm15694_vm12 = vcmask 490496  }
 0x2af   : > { %v4794_v45 = vsel %vm15678_vm8, %v13411_v3, %v4793_v57  ;;  %v13590_v9 = vpop.permute.xlu1 %3427  ;;  %3996 = vst [vmem:[#allocation3 + $0x310] sm:$0xcc] %v3985_v4  ;;  %v3345_v53 = vrot.slane %v13588_v59, 4  ;;  %5768 = vmatprep.subr.bf16.mxu1 %v10389_v61  ;;  %v15679_v62 = vld [vmem:[#allocation14_spill] sm:$0xff]  ;;  %v15681_v3 = vld [vmem:[#allocation15_spill] sm:$0xff]  ;;  %vm15695_vm8 = vcmask 670720  }
 0x2b0   : > { %4804 = vst [vmem:[#allocation3 + $0x3e0] sm:$0x33] %v4794_v45  ;;  %v3435_v18 = vrot.slane %v13590_v9, 4  ;;  %v15680_v51 = vrot.slane %v15679_v62, 4  ;;  %v15682_v30 = vrot.slane %v15681_v3, 4  ;;  %5769 = vmatpush2.bf16.msra.mxu1 %v10387_v12 }
 0x2b2   : > { %v3354_v32 = vsel %vm503_vm0, %v15680_v51, %v3345_v53  ;;  %v3444_v22 = vsel %vm503_vm0, %v15682_v30, %v3435_v18  ;;  %v13608_v40 = vpop.permute.xlu0 %3517 }
 0x2b3   : > { %v3355_v44 = vsel %vm15683_vm9, %v15679_v62, %v3354_v32  ;;  %v3445_v27 = vsel %vm15684_vm10, %v15681_v3, %v3444_v22  ;;  %v13610_v37 = vpop.permute.xlu1 %3607  ;;  %v3525_v63 = vrot.slane %v13608_v40, 4  ;;  %vm15696_vm9 = vcmask 662528  }
 0x2b4   : > { %3366 = vst [vmem:[#allocation3 + $0x298] sm:$0x33] %v3355_v44  ;;  %3456 = vst [vmem:[#allocation3 + $0x298] sm:$0xcc] %v3445_v27  ;;  %v3615_v7 = vrot.slane %v13610_v37, 4  ;;  %vm15700_vm10 = vcmask 687104  }
 0x2b5   : > { %v3534_v38 = vsel %vm503_vm0, %v15686_v23, %v3525_v63 }
 0x2b6   : > { %v3624_v33 = vsel %vm503_vm0, %v15688_v49, %v3615_v7  ;;  %v3535_v48 = vsel %vm15689_vm11, %v15685_v41, %v3534_v38  ;;  %v4418_v17 = vpop.permute.xlu0 %4417  ;;  %v10390_v52 = vld [vmem:[#allocation3 + $0x2e8] ss:$40 sps:$4 sm:$0xff]   ;;  %v10392_v16 = vld [vmem:[#allocation3 + $0x2ec] ss:$40 sps:$4 sm:$0xff]   ;;  %vm15701_vm11 = vcmask 678912  }
 0x2b7   : > { %v3625_v0 = vsel %vm15690_vm1, %v15687_v60, %v3624_v33  ;;  %v4507_v25 = vpop.permute.xlu1 %4506  ;;  %3546 = vst [vmem:[#allocation3 + $0x2c0] sm:$0x33] %v3535_v48  ;;  %v4424_v10 = vrot.slane %v4418_v17, 4  ;;  %v4931_v14 = vld [vmem:[#allocation3 + $0x3e0] sm:$0x33]  ;;  %5770 = vmatprep.subr.bf16.mxu1 %v10392_v16  ;;  %vm15702_vm1 = vcmask 859136  }
 0x2b8   : > { %3636 = vst [vmem:[#allocation3 + $0x2c0] sm:$0xcc] %v3625_v0  ;;  %v4513_v11 = vrot.slane %v4507_v25, 4  ;;  %v9812_v39 = vcombine.high %v4931_v14, %v4931_v14  ;;  %v9811_v36 = vcombine.low %v4931_v14, %v4931_v14  ;;  %5771 = vmatpush2.bf16.msra.mxu1 %v10390_v52 }
 0x2b9   : > { %v4433_v34 = vsel %vm503_vm0, %v4423_v1, %v4424_v10 }
 0x2ba   : > { %v4523_v57 = vsel %vm503_vm0, %v4512_v35, %v4513_v11  ;;  %v4434_v4 = vsel %vm15691_vm6, %v13436_v50, %v4433_v34  ;;  %9821 = vmatprep.subr.msk.bf16.mxu0 %vm5582_vm13, %v9812_v39  ;;  %v4597_v12 = vpop.permute.xlu0 %4596  ;;  %v5608_v61 = vsel %vm5582_vm13, %v9811_v36, 0  ;;  %vm15703_vm6 = vcmask 850944  }
 0x2bb   : > { %v4524_v45 = vsel %vm15692_vm7, %v13451_v24, %v4523_v57  ;;  %v4687_v62 = vpop.permute.xlu1 %4686  ;;  %4444 = vst [vmem:[#allocation3 + $0x390] sm:$0x33] %v4434_v4  ;;  %v4603_v1 = vrot.slane %v4597_v12, 4  ;;  %5808 = vmatpush2.bf16.msra.mxu0 %v5608_v61  ;;  %vm15704_vm7 = vcmask 842752  }
 0x2bc   : > { %4534 = vst [vmem:[#allocation3 + $0x390] sm:$0xcc] %v4524_v45  ;;  %v4693_v51 = vrot.slane %v4687_v62, 4 }
 0x2bd   : > { %v4613_v35 = vsel %vm503_vm0, %v4602_v15, %v4603_v1 }
 0x2be   : > { %v4703_v50 = vsel %vm503_vm0, %v4692_v21, %v4693_v51  ;;  %v4614_v24 = vsel %vm15693_vm2, %v13453_v56, %v4613_v35  ;;  %v4060_v3 = vpop.permute.xlu0 %4059  ;;  %vm15705_vm2 = vcmask 711680  }
 0x2bf   : > { %v4704_v32 = vsel %vm15694_vm12, %v13473_v47, %v4703_v50  ;;  %v4150_v30 = vpop.permute.xlu1 %4149  ;;  %v10395_v22 = vld [vmem:[#allocation3 + $0x298] ss:$40 sps:$4 sm:$0xff]   ;;  %v10397_v44 = vld [vmem:[#allocation3 + $0x29c] ss:$40 sps:$4 sm:$0xff]   ;;  %4624 = vst [vmem:[#allocation3 + $0x3b8] sm:$0x33] %v4614_v24 }
 0x2c0   : > { %4714 = vst [vmem:[#allocation3 + $0x3b8] sm:$0xcc] %v4704_v32  ;;  %v4066_v27 = vrot.slane %v4060_v3, 4  ;;  %v4156_v41 = vrot.slane %v4150_v30, 4  ;;  %5772 = vmatprep.subr.bf16.mxu1 %v10397_v44  ;;  %vm6077_vm12 = vcmask 130048  }
 0x2c1   : > { %5773 = vmatpush2.bf16.msra.mxu1 %v10395_v22 }
 0x2c2   : > { %v4076_v15 = vsel %vm503_vm0, %v4065_v19, %v4066_v27  ;;  %v4166_v56 = vsel %vm503_vm0, %v4155_v31, %v4156_v41  ;;  %v4240_v23 = vpop.permute.xlu0 %4239  ;;  %v13663_v19 = vld [vmem:[%s15509_s28] ss:$8 sps:$4 sm:$0xff]   ;;  %v15697_v31 = vmov 0  }
 0x2c3   : > { %v4077_v47 = vsel %vm15695_vm8, %v13498_v46, %v4076_v15  ;;  %v4167_v21 = vsel %vm15696_vm9, %v13513_v54, %v4166_v56  ;;  %v4329_v38 = vpop.permute.xlu1 %4328  ;;  %v4246_v60 = vrot.slane %v4240_v23, 4  ;;  %v15706_v27 = vld [vmem:[#allocation7_spill] sm:$0xff]  ;;  %vm15711_vm8 = vcmask 187392   ;;  %vm15712_vm9 = vmmov %vm15702_vm1 }
 0x2c4   : > { %4087 = vst [vmem:[#allocation3 + $0x340] sm:$0x33] %v4077_v47  ;;  %4177 = vst [vmem:[#allocation3 + $0x340] sm:$0xcc] %v4167_v21  ;;  %v4335_v49 = vrot.slane %v4329_v38, 4  ;;  %5775 = vmatmul.mubr.bf16.vlgmr.msra.gmra.mxu1 %v13663_v19  ;;  %v5880_v41 = vsub.s32 2, %v15706_v27 }
 0x2c5   : > { %v4255_v46 = vsel %vm503_vm0, %v4245_v8, %v4246_v60  ;;  %6113 = vmatprep.mubr.bf16.mxu1 %v15697_v31  ;;  %v5884_v21 = vsub.s32 3, %v15706_v27 }
 0x2c6   : > { %v4344_v54 = vsel %vm503_vm0, %v4334_v29, %v4335_v49  ;;  %v4256_v33 = vsel %vm865_vm14, %v13515_v43, %v4255_v46  ;;  %v3700_v0 = vpop.permute.xlu0 %3699  ;;  %vm15698_vm14 = vcmask 703488   ;;  %v5872_v46 = vsub.s32 0, %v15706_v27 }
 0x2c7   : > { %v4345_v48 = vsel %vm955_vm15, %v13533_v58, %v4344_v54  ;;  %v3790_v17 = vpop.permute.xlu1 %3789  ;;  %v10398_v25 = vld [vmem:[#allocation3 + $0x390] ss:$40 sps:$4 sm:$0xff]   ;;  %v10400_v52 = vld [vmem:[#allocation3 + $0x394] ss:$40 sps:$4 sm:$0xff]   ;;  %4266 = vst [vmem:[#allocation3 + $0x368] sm:$0x33] %v4256_v33 }
 0x2c8   : > { %4355 = vst [vmem:[#allocation3 + $0x368] sm:$0xcc] %v4345_v48  ;;  %v3706_v16 = vrot.slane %v3700_v0, 4  ;;  %v3796_v8 = vrot.slane %v3790_v17, 4  ;;  %5809 = vmatprep.subr.bf16.mxu0 %v10400_v52  ;;  %vm15699_vm15 = vcmask 695296  }
 0x2c9   : > { %5810 = vmatpush2.bf16.msra.mxu0 %v10398_v25 }
 0x2ca   : > { %v3716_v29 = vsel %vm503_vm0, %v3705_v26, %v3706_v16  ;;  %v3806_v43 = vsel %vm503_vm0, %v3795_v2, %v3796_v8  ;;  %v3880_v11 = vpop.permute.xlu0 %3879 }
 0x2cb   : > { %v3717_v58 = vsel %vm15698_vm14, %v13535_v13, %v3716_v29  ;;  %v3807_v10 = vsel %vm15699_vm15, %v13553_v6, %v3806_v43  ;;  %v3970_v14 = vpop.permute.xlu1 %3969  ;;  %v3886_v39 = vrot.slane %v3880_v11, 4  ;;  %vm15713_vm14 = vcmask 171008  }
 0x2cc   : > { %3727 = vst [vmem:[#allocation3 + $0x2f0] sm:$0x33] %v3717_v58  ;;  %3817 = vst [vmem:[#allocation3 + $0x2f0] sm:$0xcc] %v3807_v10  ;;  %v3976_v36 = vrot.slane %v3970_v14, 4  ;;  %vm15714_vm15 = vcmask 179200  }
 0x2cd   : > { %v3896_v26 = vsel %vm503_vm0, %v3885_v42, %v3886_v39 }
 0x2ce   : > { %v3986_v2 = vsel %vm503_vm0, %v3975_v20, %v3976_v36  ;;  %v3897_v13 = vsel %vm15700_vm10, %v13555_v55, %v3896_v26  ;;  %v3340_v34 = vpop.permute.xlu0 %3339  ;;  %v5647_v20 = vpop.f32.mrf.mxu0  ;;  %vm15715_vm10 = vcmask 7168  }
 0x2cf   : > { %v3987_v6 = vsel %vm15701_vm11, %v13573_v28, %v3986_v2  ;;  %v3430_v57 = vpop.permute.xlu1 %3429  ;;  %v10401_v4 = vld [vmem:[#allocation3 + $0x340] ss:$40 sps:$4 sm:$0xff]   ;;  %v10403_v45 = vld [vmem:[#allocation3 + $0x344] ss:$40 sps:$4 sm:$0xff]   ;;  %3907 = vst [vmem:[#allocation3 + $0x318] sm:$0x33] %v3897_v13  ;;  %v5690_v28 = vpop.f32.mrf.mxu1  ;;  %vm15716_vm11 = vmmov %vm15702_vm1 }
 0x2d0   : > { %3997 = vst [vmem:[#allocation3 + $0x318] sm:$0xcc] %v3987_v6  ;;  %v3346_v12 = vrot.slane %v3340_v34, 4  ;;  %v3436_v61 = vrot.slane %v3430_v57, 4  ;;  %5811 = vmatprep.subr.bf16.mxu0 %v10403_v45  ;;  %v5649_v22 = vpop.f32.mrf.mxu0 }
 0x2d1   : > { %5812 = vmatpush2.bf16.msra.mxu0 %v10401_v4  ;;  %v5692_v32 = vpop.f32.mrf.mxu1 }
 0x2d2   : > { %v3356_v42 = vsel %vm503_vm0, %v3345_v53, %v3346_v12  ;;  %v3446_v55 = vsel %vm503_vm0, %v3435_v18, %v3436_v61  ;;  %v3520_v51 = vpop.permute.xlu0 %3519 }
 0x2d3   : > { %v3357_v62 = vsel %vm15702_vm1, %v13588_v59, %v3356_v42  ;;  %v3447_v1 = vsel %vm15703_vm6, %v13590_v9, %v3446_v55  ;;  %v3610_v35 = vpop.permute.xlu1 %3609  ;;  %v3526_v50 = vrot.slane %v3520_v51, 4  ;;  %v5694_v44 = vpop.f32.mrf.mxu1  ;;  %vm15717_vm1 = vmmov %vm15711_vm8  ;;  %vm6946_vm6 = vcmask 293888  }
 0x2d4   : > { %3367 = vst [vmem:[#allocation3 + $0x2a0] sm:$0x33] %v3357_v62  ;;  %3457 = vst [vmem:[#allocation3 + $0x2a0] sm:$0xcc] %v3447_v1  ;;  %v3616_v24 = vrot.slane %v3610_v35, 4 }
 0x2d5   : > { %v3536_v53 = vsel %vm503_vm0, %v3525_v63, %v3526_v50  ;;  %v5651_v63 = vpop.f32.mrf.mxu0  ;;  %v5696_v15 = vpop.f32.mrf.mxu1 }
 0x2d6   : > { %v3626_v18 = vsel %vm503_vm0, %v3615_v7, %v3616_v24  ;;  %v3537_v59 = vsel %vm15704_vm7, %v13608_v40, %v3536_v53  ;;  %v5876_v7 = vsub.s32 1, %v15706_v27  ;;  %v13722_v40 = vld [vmem:[%s15707_s17] sm:$0xff]  ;;  %vm15719_vm7 = vmmov %vm15714_vm15 }
 0x2d7   : > { %v3627_v9 = vsel %vm15705_vm2, %v13610_v37, %v3626_v18  ;;  %v10404_v3 = vld [vmem:[#allocation3 + $0x2f0] ss:$40 sps:$4 sm:$0xff]   ;;  %v10406_v30 = vld [vmem:[#allocation3 + $0x2f4] ss:$40 sps:$4 sm:$0xff]   ;;  %3547 = vst [vmem:[#allocation3 + $0x2c8] sm:$0x33] %v3537_v59  ;;  %v5653_v37 = vpop.f32.mrf.mxu0  ;;  %v13730_v60 = vrot.slane %v13722_v40, %v5880_v41  ;;  %v13747_v43 = vrot.slane %v13722_v40, %v5884_v21  ;;  %v13752_v39 = vrot.slane %v13722_v40, %v5872_v46  ;;  %vm15720_vm2 = vmmov %vm15713_vm14 }
 0x2d8   : > { %3637 = vst [vmem:[#allocation3 + $0x2c8] sm:$0xcc] %v3627_v9  ;;  %5813 = vmatprep.subr.bf16.mxu0 %v10406_v30  ;;  %v13735_v49 = vrot.slane %v13722_v40, %v5876_v7  ;;  %v13767_v53 = vld [vmem:[%s15708_s29] sm:$0x3]  ;;  %v5888_v59 = vsub.s32 4, %v15706_v27  ;;  %s15786_s29 = sld [smem:[#allocation43_spill]] }
 0x2d9   : > { %5814 = vmatpush2.bf16.msra.mxu0 %v10404_v3 }
 0x2dd   : > { %v13725_v23 = vpop.permute.xlu0 %4936 }
 0x2de   : > { %v13727_v38 = vpop.permute.xlu1 %4941  ;;  %v5691_v54 = vadd.f32 %v5690_v28, %v13725_v23  ;;  %v5693_v33 = vadd.f32 %v5692_v32, %v13725_v23  ;;  %v5650_v17 = vadd.f32 %v5649_v22, %v13725_v23  ;;  %v5648_v52 = vadd.f32 %v5647_v20, %v13725_v23  ;;  %s14879_s30 = scalar_lea.vmem %s15786_s29, %s10107_s12 }
 0x2df   : > { %v10407_v56 = vld [vmem:[#allocation3 + $0x2a0] ss:$40 sps:$4 sm:$0xff]   ;;  %v10409_v47 = vld [vmem:[#allocation3 + $0x2a4] ss:$40 sps:$4 sm:$0xff]   ;;  %v5695_v48 = vadd.f32 %v5694_v44, %v13727_v38  ;;  %v5697_v0 = vadd.f32 %v5696_v15, %v13727_v38  ;;  %v5654_v25 = vadd.f32 %v5653_v37, %v13727_v38  ;;  %v5652_v16 = vadd.f32 %v5651_v63, %v13727_v38 }
 0x2e0   : > { %5815 = vmatprep.subr.bf16.mxu0 %v10409_v47  ;;  %v5830_v8 = vmul.f32 0.01, %v5691_v54  ;;  %v5831_v29 = vmul.f32 0.01, %v5693_v33  ;;  %v5829_v11 = vmul.f32 0.01, %v5650_v17  ;;  %v13781_v37 = vrot.slane %v13722_v40, %v5888_v59 }
 0x2e1   : > { %5816 = vmatpush2.bf16.msra.mxu0 %v10407_v56  ;;  %v5840_v58 = vmul.f32 0.01, %v5695_v48  ;;  %v5841_v10 = vmul.f32 0.01, %v5697_v0  ;;  %v5839_v14 = vmul.f32 0.01, %v5654_v25 }
 0x2e2   : > { %v5850_v36 = vmax.f32 %v5691_v54, %v5830_v8  ;;  %v5851_v26 = vmax.f32 %v5693_v33, %v5831_v29  ;;  %v5828_v13 = vmul.f32 0.01, %v5648_v52  ;;  %v5849_v34 = vmax.f32 %v5650_v17, %v5829_v11 }
 0x2e3   : > { %v5860_v2 = vmax.f32 %v5695_v48, %v5840_v58  ;;  %v5861_v6 = vmax.f32 %v5697_v0, %v5841_v10  ;;  %v5859_v57 = vmax.f32 %v5654_v25, %v5839_v14  ;;  %v5838_v4 = vmul.f32 0.01, %v5652_v16  ;;  %v6588_v10 = vld [vmem:[#allocation2 + $0x2c] sm:$0x3] }
 0x2e4   : > { %5818 = vmatmul.mubr.bf16.vlgmr.msra.gmra.mxu0 %v13663_v19  ;;  %v5923_v45 = vmul.f32 %v13747_v43, %v5851_v26  ;;  %v5848_v12 = vmax.f32 %v5648_v52, %v5828_v13  ;;  %v5921_v42 = vmul.f32 %v13735_v49, %v5849_v34  ;;  %v5922_v19 = vmul.f32 %v13730_v60, %v5850_v36  ;;  %v6750_v14 = vld [vmem:[#allocation2 + $0x2c] sm:$0x3] }
 0x2e5   : > { %7053 = vmatprep.mubr.bf16.mxu0 %v15697_v31  ;;  %v5933_v61 = vmul.f32 %v13747_v43, %v5861_v6  ;;  %v5931_v55 = vmul.f32 %v13735_v49, %v5859_v57  ;;  %v5858_v20 = vmax.f32 %v5652_v16, %v5838_v4  ;;  %v5932_v62 = vmul.f32 %v13730_v60, %v5860_v2  ;;  %v6694_v36 = vld [vmem:[#allocation2 + $0x2c] sm:$0x3] }
 0x2e6   : > { %v5920_v28 = vmul.f32 %v13752_v39, %v5848_v12  ;;  %v5892_v22 = vsub.s32 5, %v15706_v27  ;;  %v6600_v11 = vrot.slane %v6588_v10, 6  ;;  %6767 = vrot.lane.b32.xlu0 %v6750_v14, %s15343_s6  ;;  %v6706_v26 = vrot.slane %v6694_v36, 6  ;;  %v6644_v2 = vld [vmem:[#allocation2 + $0x2c] sm:$0x3]  ;;  %v13832_v10 = vpop.permute.xlu1 %6024 }
 0x2e7   : > { %v10096_v1 = vpack.c.bf16 %v5931_v55, %v5921_v42  ;;  %v5930_v51 = vmul.f32 %v13752_v39, %v5858_v20  ;;  %v10098_v35 = vpack.c.bf16 %v5933_v61, %v5923_v45  ;;  %v10097_v24 = vpack.c.bf16 %v5932_v62, %v5922_v19 }
 0x2e8   : > { %v13784_v21 = vrot.slane %v13722_v40, %v5892_v22  ;;  %6611 = vrot.lane.b32.xlu1 %v6600_v11, %s15382_s7  ;;  %v5900_v12 = vsub.s32 7, %v15706_v27  ;;  %v5896_v55 = vsub.s32 6, %v15706_v27 }
 0x2e9   : > { %6095 = vmatprep.subr.bf16.mxu1 %v10096_v1  ;;  %v10095_v50 = vpack.c.bf16 %v5930_v51, %v5920_v28 }
 0x2ea   : > { %6661 = vrot.lane.b32.xlu0 %v6644_v2, %s15368_s4  ;;  %v13805_v1 = vrot.slane %v13722_v40, %v5900_v12 }
 0x2eb   : > { %6096 = vmatpush1.bf16.msra.mxu1 %v10095_v50 }
 0x2ec   : > { %6136 = vmatprep.subr.bf16.mxu1 %v10098_v35  ;;  %6717 = vrot.lane.b32.xlu1 %v6706_v26, %s15369_s9 }
 0x2ee   : > { %9843 = vmatmul.mubr.msk.bf16.vlgmr.msra.gmra.mxu1 %vm6077_vm12, %v13767_v53 }
 0x2ef   : > { %6137 = vmatpush1.bf16.msra.mxu1 %v10097_v24  ;;  %6154 = vmatprep.mubr.bf16.mxu1 %v15697_v31  ;;  %v13808_v24 = vrot.slane %v13722_v40, %v5896_v55 }
 0x2f6   : > { %9844 = vmatmul.mubr.msk.bf16.vlgmr.msra.gmra.mxu1 %vm6077_vm12, %v13767_v53 }
 0x2f7   : > { %6195 = vmatprep.mubr.bf16.mxu1 %v15697_v31 }
 0x2fd   : > { %v5733_v18 = vpop.f32.mrf.mxu0 }
 0x2fe   : > { %v5734_v32 = vadd.f32 %v5733_v18, %v13725_v23 }
 0x2ff   : > { %v5735_v9 = vpop.f32.mrf.mxu0 }
 0x300   : > { %v5832_v3 = vmul.f32 0.01, %v5734_v32  ;;  %v5736_v30 = vadd.f32 %v5735_v9, %v13725_v23 }
 0x301   : > { %v5737_v44 = vpop.f32.mrf.mxu0 }
 0x302   : > { %v5833_v63 = vmul.f32 0.01, %v5736_v30  ;;  %v5738_v41 = vadd.f32 %v5737_v44, %v13727_v38  ;;  %v5852_v15 = vmax.f32 %v5734_v32, %v5832_v3 }
 0x303   : > { %v5739_v56 = vpop.f32.mrf.mxu0 }
 0x304   : > { %v5853_v47 = vmax.f32 %v5736_v30, %v5833_v63  ;;  %v5842_v54 = vmul.f32 0.01, %v5738_v41  ;;  %v5740_v33 = vadd.f32 %v5739_v56, %v13727_v38  ;;  %v5924_v17 = vmul.f32 %v13781_v37, %v5852_v15 }
 0x306   : > { %v5862_v48 = vmax.f32 %v5738_v41, %v5842_v54  ;;  %v5843_v0 = vmul.f32 0.01, %v5740_v33  ;;  %v5925_v25 = vmul.f32 %v13784_v21, %v5853_v47 }
 0x308   : > { %v5934_v52 = vmul.f32 %v13781_v37, %v5862_v48  ;;  %v5863_v16 = vmax.f32 %v5740_v33, %v5843_v0  ;;  %v433_v48 = vld [vmem:[%s15707_s17 + $0x8] sm:$0x3] }
 0x30a   : > { %v5935_v8 = vmul.f32 %v13784_v21, %v5863_v16  ;;  %v10099_v29 = vpack.c.bf16 %v5934_v52, %v5924_v17  ;;  %v13826_v52 = vrot.slane %v433_v48, %v5876_v7 }
 0x30c   : > { %v10100_v58 = vpack.c.bf16 %v5935_v8, %v5925_v25 }
 0x30e   : > { %6177 = vmatprep.subr.bf16.mxu1 %v10100_v58 }
 0x30f   : > { %6178 = vmatpush1.bf16.msra.mxu1 %v10099_v29  ;;  %v13830_v29 = vrot.slane %v433_v48, %v5872_v46 }
 0x312   : > { %9845 = vmatmul.mubr.msk.bf16.vlgmr.msra.gmra.mxu1 %vm6077_vm12, %v13767_v53 }
 0x313   : > { %6236 = vmatprep.mubr.bf16.mxu1 %v15697_v31 }
 0x384   : > { %v5776_v13 = vpop.f32.mrf.mxu1 }
 0x385   : > { %v5777_v6 = vadd.f32 %v5776_v13, %v13725_v23 }
 0x386   : > { %v5778_v34 = vpop.f32.mrf.mxu1 }
 0x387   : > { %v5779_v57 = vadd.f32 %v5778_v34, %v13725_v23  ;;  %v5834_v42 = vmul.f32 0.01, %v5777_v6 }
 0x388   : > { %v5780_v4 = vpop.f32.mrf.mxu1 }
 0x389   : > { %v5835_v45 = vmul.f32 0.01, %v5779_v57  ;;  %v5781_v61 = vadd.f32 %v5780_v4, %v13727_v38  ;;  %v5854_v50 = vmax.f32 %v5777_v6, %v5834_v42 }
 0x38a   : > { %v5782_v20 = vpop.f32.mrf.mxu1 }
 0x38b   : > { %v5844_v28 = vmul.f32 0.01, %v5781_v61  ;;  %v5783_v19 = vadd.f32 %v5782_v20, %v13727_v38  ;;  %v5855_v62 = vmax.f32 %v5779_v57, %v5835_v45  ;;  %v5926_v3 = vmul.f32 %v13808_v24, %v5854_v50 }
 0x38d   : > { %v5864_v51 = vmax.f32 %v5781_v61, %v5844_v28  ;;  %v5845_v35 = vmul.f32 0.01, %v5783_v19  ;;  %v5927_v59 = vmul.f32 %v13805_v1, %v5855_v62 }
 0x38f   : > { %v5865_v18 = vmax.f32 %v5783_v19, %v5845_v35  ;;  %v5936_v32 = vmul.f32 %v13808_v24, %v5864_v51 }
 0x391   : > { %v5937_v9 = vmul.f32 %v13805_v1, %v5865_v18  ;;  %v10101_v22 = vpack.c.bf16 %v5936_v32, %v5926_v3 }
 0x393   : > { %v10102_v30 = vpack.c.bf16 %v5937_v9, %v5927_v59 }
 0x395   : > { %6218 = vmatprep.subr.bf16.mxu1 %v10102_v30 }
 0x396   : > { %6219 = vmatpush1.bf16.msra.mxu1 %v10101_v22 }
 0x399   : > { %9846 = vmatmul.mubr.msk.bf16.vlgmr.msra.gmra.mxu1 %vm6077_vm12, %v13767_v53 }
 0x39a   : > { %6277 = vmatprep.mubr.bf16.mxu1 %v15697_v31 }
 0x3a4   : > { %v5819_v40 = vpop.f32.mrf.mxu0 }
 0x3a5   : > { %v5820_v44 = vadd.f32 %v5819_v40, %v13725_v23 }
 0x3a6   : > { %v5821_v63 = vpop.f32.mrf.mxu0 }
 0x3a7   : > { %v5822_v41 = vadd.f32 %v5821_v63, %v13725_v23  ;;  %v5836_v54 = vmul.f32 0.01, %v5820_v44 }
 0x3a8   : > { %v5823_v15 = vpop.f32.mrf.mxu0 }
 0x3a9   : > { %v5837_v56 = vmul.f32 0.01, %v5822_v41  ;;  %v5824_v47 = vadd.f32 %v5823_v15, %v13727_v38  ;;  %v5856_v8 = vmax.f32 %v5820_v44, %v5836_v54 }
 0x3aa   : > { %v5825_v33 = vpop.f32.mrf.mxu0 }
 0x3ab   : > { %v5846_v0 = vmul.f32 0.01, %v5824_v47  ;;  %v5826_v17 = vadd.f32 %v5825_v33, %v13727_v38  ;;  %v5857_v25 = vmax.f32 %v5822_v41, %v5837_v56  ;;  %v5928_v26 = vmul.f32 %v13830_v29, %v5856_v8 }
 0x3ad   : > { %v5866_v16 = vmax.f32 %v5824_v47, %v5846_v0  ;;  %v5847_v23 = vmul.f32 0.01, %v5826_v17  ;;  %v5929_v38 = vmul.f32 %v13826_v52, %v5857_v25 }
 0x3ae   : > { %v6115_v14 = vpop.f32.mrf.mxu1 }
 0x3af   : > { %v5867_v58 = vmax.f32 %v5826_v17, %v5847_v23  ;;  %v5938_v11 = vmul.f32 %v13830_v29, %v5866_v16  ;;  %v6116_v7 = vadd.f32 %v6115_v14, %v13832_v10 }
 0x3b0   : > { %v6117_v2 = vpop.f32.mrf.mxu1 }
 0x3b1   : > { %v5939_v36 = vmul.f32 %v13826_v52, %v5867_v58  ;;  %v6286_v13 = vmul.f32 0.01, %v6116_v7  ;;  %v6118_v27 = vadd.f32 %v6117_v2, %v13832_v10  ;;  %v10103_v6 = vpack.c.bf16 %v5938_v11, %v5928_v26 }
 0x3b2   : > { %v6119_v34 = vpop.f32.mrf.mxu1 }
 0x3b3   : > { %v10104_v46 = vpack.c.bf16 %v5939_v36, %v5929_v38  ;;  %v6296_v57 = vmax.f32 %v6116_v7, %v6286_v13  ;;  %v6287_v4 = vmul.f32 0.01, %v6118_v27 }
 0x3b4   : > { %v6120_v45 = vpop.f32.mrf.mxu1 }
 0x3b5   : > { %6259 = vmatprep.subr.bf16.mxu1 %v10104_v46  ;;  %v6297_v12 = vmax.f32 %v6118_v27, %v6287_v4  ;;  %v6306_v42 = vmul.f32 %v6296_v57, %v13752_v39 }
 0x3b6   : > { %6260 = vmatpush1.bf16.msra.mxu1 %v10103_v6  ;;  %v6156_v61 = vpop.f32.mrf.mxu1 }
 0x3b7   : > { %v6307_v55 = vmul.f32 %v6297_v12, %v13735_v49  ;;  %v6157_v20 = vadd.f32 %v6156_v61, %v13832_v10 }
 0x3b8   : > { %v6158_v28 = vpop.f32.mrf.mxu1 }
 0x3b9   : > { %9847 = vmatmul.mubr.msk.bf16.vlgmr.msra.gmra.mxu1 %vm6077_vm12, %v13767_v53  ;;  %v10070_v19 = vpack.c.bf16 %v6307_v55, %v6306_v42  ;;  %v6288_v62 = vmul.f32 0.01, %v6157_v20  ;;  %v6159_v51 = vadd.f32 %v6158_v28, %v13832_v10 }
 0x3ba   : > { %7012 = vmatprep.mubr.bf16.mxu1 %v15697_v31  ;;  %v6160_v35 = vpop.f32.mrf.mxu1 }
 0x3bb   : > { %6356 = vst [vmem:[#allocation2 + $0x4] sm:$0x33] %v10070_v19  ;;  %v6298_v50 = vmax.f32 %v6157_v20, %v6288_v62  ;;  %v6289_v18 = vmul.f32 0.01, %v6159_v51 }
 0x3bc   : > { %v6161_v32 = vpop.f32.mrf.mxu1 }
 0x3bd   : > { %v6299_v59 = vmax.f32 %v6159_v51, %v6289_v18  ;;  %v6308_v9 = vmul.f32 %v6298_v50, %v13730_v60 }
 0x3bf   : > { %v6309_v3 = vmul.f32 %v6299_v59, %v13747_v43 }
 0x3c1   : > { %v10071_v30 = vpack.c.bf16 %v6309_v3, %v6308_v9 }
 0x3c2   : > { %v6573_v22 = vld [vmem:[#allocation2 + $0x4] sm:$0x33] }
 0x3c3   : > { %v6745_v53 = vld [vmem:[#allocation2 + $0x4] sm:$0x33]  ;;  %6578 = vst [vmem:[#allocation3 + $0x50] sm:$0x33] %v6573_v22  ;;  %6357 = vst [vmem:[#allocation2 + $0xc] sm:$0x33] %v10071_v30 }
 0x3c4   : > { %v6361_v40 = vld [vmem:[#allocation2] sm:$0x33]  ;;  %6757 = vrot.lane.b32.xlu0 %v6745_v53, %s15343_s6  ;;  %v13877_v53 = vpop.permute.xlu0 %6767 }
 0x3c5   : > { %6373 = vrot.lane.b32.xlu1 %v6361_v40, %s15289_s25  ;;  %v6639_v44 = vld [vmem:[#allocation2 + $0x4] sm:$0x33]  ;;  %v13879_v40 = vpop.permute.xlu1 %6611 }
 0x3c6   : > { %v6467_v63 = vld [vmem:[#allocation2] sm:$0x33] }
 0x3c7   : > { %v6583_v41 = vld [vmem:[#allocation2 + $0x4] sm:$0x33] }
 0x3c8   : > { %v6411_v15 = vld [vmem:[#allocation2] sm:$0x33]  ;;  %6651 = vrot.lane.b32.xlu0 %v6639_v44, %s15368_s4  ;;  %v6595_v56 = vrot.slane %v6583_v41, 6  ;;  %v13881_v44 = vpop.permute.xlu0 %6661 }
 0x3c9   : > { %6479 = vrot.lane.b32.xlu1 %v6467_v63, %s15291_s23  ;;  %v6423_v47 = vrot.slane %v6411_v15, 6  ;;  %v6689_v33 = vld [vmem:[#allocation2 + $0x4] sm:$0x33]  ;;  %v13883_v63 = vpop.permute.xlu1 %6717 }
 0x3ca   : > { %v6574_v54 = vld [vmem:[#allocation2 + $0xc] sm:$0x33]  ;;  %v6517_v48 = vld [vmem:[#allocation2] sm:$0x33]  ;;  %v6701_v0 = vrot.slane %v6689_v33, 6 }
 0x3cb   : > { %6579 = vst [vmem:[#allocation3 + $0x58] sm:$0x33] %v6574_v54  ;;  %v6529_v17 = vrot.slane %v6517_v48, 6  ;;  %v6362_v23 = vld [vmem:[#allocation2 + $0x8] sm:$0x33] }
 0x3cc   : > { %6601 = vrot.lane.b32.xlu0 %v6595_v56, %s15382_s7  ;;  %v6746_v8 = vld [vmem:[#allocation2 + $0xc] sm:$0x33] }
 0x3cd   : > { %6429 = vrot.lane.b32.xlu1 %v6423_v47, %s15709_s16  ;;  %v6468_v26 = vld [vmem:[#allocation2 + $0x8] sm:$0x33] }
 0x3ce   : > { %v6640_v2 = vld [vmem:[#allocation2 + $0xc] sm:$0x33] }
 0x3cf   : > { %v6412_v13 = vld [vmem:[#allocation2 + $0x8] sm:$0x33] }
 0x3d0   : > { %6707 = vrot.lane.b32.xlu0 %v6701_v0, %s15369_s9  ;;  %v6584_v27 = vld [vmem:[#allocation2 + $0xc] sm:$0x33]  ;;  %v6424_v4 = vrot.slane %v6412_v13, 6 }
 0x3d1   : > { %6535 = vrot.lane.b32.xlu1 %v6529_v17, %s15710_s14  ;;  %v6596_v45 = vrot.slane %v6584_v27, 6  ;;  %v6518_v12 = vld [vmem:[#allocation2 + $0x8] sm:$0x33] }
 0x3d2   : > { %v6197_v25 = vpop.f32.mrf.mxu1  ;;  %v6690_v61 = vld [vmem:[#allocation2 + $0xc] sm:$0x33]  ;;  %v6530_v55 = vrot.slane %v6518_v12, 6 }
 0x3d3   : > { %v6198_v16 = vadd.f32 %v6197_v25, %v13832_v10  ;;  %v6702_v20 = vrot.slane %v6690_v61, 6 }
 0x3d4   : > { %v6199_v58 = vpop.f32.mrf.mxu1  ;;  %6375 = vrot.lane.b32.xlu0 %v6362_v23, %s15289_s25 }
 0x3d5   : > { %v6290_v11 = vmul.f32 0.01, %v6198_v16  ;;  %6759 = vrot.lane.b32.xlu1 %v6746_v8, %s15343_s6  ;;  %v6200_v14 = vadd.f32 %v6199_v58, %v13832_v10 }
 0x3d6   : > { %v6201_v38 = vpop.f32.mrf.mxu1 }
 0x3d7   : > { %v6300_v36 = vmax.f32 %v6198_v16, %v6290_v11  ;;  %v6291_v7 = vmul.f32 0.01, %v6200_v14 }
 0x3d8   : > { %v6202_v46 = vpop.f32.mrf.mxu1  ;;  %6481 = vrot.lane.b32.xlu0 %v6468_v26, %s15291_s23 }
 0x3d9   : > { %v6301_v6 = vmax.f32 %v6200_v14, %v6291_v7  ;;  %6653 = vrot.lane.b32.xlu1 %v6640_v2, %s15368_s4  ;;  %v6310_v34 = vmul.f32 %v6300_v36, %v13781_v37 }
 0x3db   : > { %v6311_v57 = vmul.f32 %v6301_v6, %v13784_v21 }
 0x3dc   : > { %6431 = vrot.lane.b32.xlu0 %v6424_v4, %s15709_s16 }
 0x3dd   : > { %v10072_v42 = vpack.c.bf16 %v6311_v57, %v6310_v34  ;;  %6603 = vrot.lane.b32.xlu1 %v6596_v45, %s15382_s7 }
 0x3df   : > { %6358 = vst [vmem:[#allocation2 + $0x14] sm:$0x33] %v10072_v42 }
 0x3e0   : > { %6537 = vrot.lane.b32.xlu0 %v6530_v55, %s15710_s14 }
 0x3e1   : > { %6709 = vrot.lane.b32.xlu1 %v6702_v20, %s15369_s9 }
 0x3e6   : > { %v6575_v28 = vld [vmem:[#allocation2 + $0x14] sm:$0x33] }
 0x3e7   : > { %v6747_v19 = vld [vmem:[#allocation2 + $0x14] sm:$0x33]  ;;  %6580 = vst [vmem:[#allocation3 + $0x60] sm:$0x33] %v6575_v28 }
 0x3e8   : > { %v6585_v62 = vld [vmem:[#allocation2 + $0x14] sm:$0x33]  ;;  %6761 = vrot.lane.b32.xlu0 %v6747_v19, %s15343_s6 }
 0x3e9   : > { %v6597_v51 = vrot.slane %v6585_v62, 6  ;;  %v6691_v35 = vld [vmem:[#allocation2 + $0x14] sm:$0x33] }
 0x3ea   : > { %v6641_v50 = vld [vmem:[#allocation2 + $0x14] sm:$0x33]  ;;  %v6703_v18 = vrot.slane %v6691_v35, 6 }
 0x3eb   : > { %6605 = vrot.lane.b32.xlu1 %v6597_v51, %s15382_s7  ;;  %v6413_v32 = vld [vmem:[#allocation2 + $0x10] sm:$0x33] }
 0x3ec   : > { %6655 = vrot.lane.b32.xlu0 %v6641_v50, %s15368_s4  ;;  %v6363_v59 = vld [vmem:[#allocation2 + $0x10] sm:$0x33]  ;;  %v6425_v9 = vrot.slane %v6413_v32, 6 }
 0x3ed   : > { %v6519_v3 = vld [vmem:[#allocation2 + $0x10] sm:$0x33] }
 0x3ee   : > { %v6469_v30 = vld [vmem:[#allocation2 + $0x10] sm:$0x33]  ;;  %v6531_v22 = vrot.slane %v6519_v3, 6 }
 0x3ef   : > { %6711 = vrot.lane.b32.xlu1 %v6703_v18, %s15369_s9 }
 0x3f0   : > { %6377 = vrot.lane.b32.xlu0 %v6363_v59, %s15289_s25 }
 0x3f3   : > { %6433 = vrot.lane.b32.xlu1 %v6425_v9, %s15709_s16 }
 0x3f4   : > { %6483 = vrot.lane.b32.xlu0 %v6469_v30, %s15291_s23 }
 0x3f7   : > { %6539 = vrot.lane.b32.xlu1 %v6531_v22, %s15710_s14 }
 0x436   : > { %v6758_v41 = vpop.permute.xlu0 %6757 }
 0x437   : > { %v6374_v15 = vpop.permute.xlu1 %6373  ;;  %v6769_v16 = vrot.slane %v6758_v41, 4 }
 0x438   : > { %v6385_v23 = vrot.slane %v6374_v15, 4 }
 0x43a   : > { %v6652_v56 = vpop.permute.xlu0 %6651 }
 0x43b   : > { %v6480_v47 = vpop.permute.xlu1 %6479  ;;  %v6663_v2 = vrot.slane %v6652_v56, 4 }
 0x43c   : > { %v6491_v13 = vrot.slane %v6480_v47, 4 }
 0x43e   : > { %v6602_v54 = vpop.permute.xlu0 %6601 }
 0x43f   : > { %v6430_v33 = vpop.permute.xlu1 %6429  ;;  %v6613_v61 = vrot.slane %v6602_v54, 4 }
 0x440   : > { %v6441_v42 = vrot.slane %v6430_v33, 4 }
 0x442   : > { %v6708_v48 = vpop.permute.xlu0 %6707 }
 0x443   : > { %v6536_v0 = vpop.permute.xlu1 %6535  ;;  %v6719_v62 = vrot.slane %v6708_v48, 4 }
 0x444   : > { %v6547_v51 = vrot.slane %v6536_v0, 4 }
 0x446   : > { %v13885_v17 = vpop.permute.xlu0 %6375 }
 0x447   : > { %v13887_v25 = vpop.permute.xlu1 %6759  ;;  %v6386_v8 = vrot.slane %v13885_v17, 4 }
 0x448   : > { %v6770_v58 = vrot.slane %v13887_v25, 4 }
 0x449   : > { %v6391_v11 = vsel %vm503_vm0, %v6385_v23, %v6386_v8 }
 0x44a   : > { %v6775_v14 = vsel %vm503_vm0, %v6769_v16, %v6770_v58  ;;  %v6392_v38 = vsel %vm15711_vm8, %v6374_v15, %v6391_v11  ;;  %v13897_v7 = vpop.permute.xlu0 %6481  ;;  %vm15721_vm8 = vmmov %vm15715_vm10 }
 0x44b   : > { %v6776_v36 = vsel %vm15712_vm9, %v6758_v41, %v6775_v14  ;;  %v13899_v26 = vpop.permute.xlu1 %6653  ;;  %6406 = vst [vmem:[#allocation3] sm:$0x33] %v6392_v38  ;;  %v6492_v27 = vrot.slane %v13897_v7, 4 }
 0x44c   : > { %6790 = vst [vmem:[#allocation3 + $0xa0] sm:$0x33] %v6776_v36  ;;  %v6664_v46 = vrot.slane %v13899_v26, 4 }
 0x44d   : > { %v6497_v6 = vsel %vm503_vm0, %v6491_v13, %v6492_v27 }
 0x44e   : > { %v6669_v34 = vsel %vm503_vm0, %v6663_v2, %v6664_v46  ;;  %v6498_v57 = vsel %vm15713_vm14, %v6480_v47, %v6497_v6  ;;  %v13911_v45 = vpop.permute.xlu0 %6431  ;;  %vm15722_vm14 = vmmov %vm15717_vm1 }
 0x44f   : > { %v6670_v4 = vsel %vm3168_vm3, %v6652_v56, %v6669_v34  ;;  %v6604_v12 = vpop.permute.xlu1 %6603  ;;  %6512 = vst [vmem:[#allocation3 + $0x28] sm:$0x33] %v6498_v57  ;;  %v6442_v55 = vrot.slane %v13911_v45, 4 }
 0x450   : > { %6684 = vst [vmem:[#allocation3 + $0x78] sm:$0x33] %v6670_v4  ;;  %v6614_v20 = vrot.slane %v6604_v12, 4 }
 0x451   : > { %v6447_v28 = vsel %vm503_vm0, %v6441_v42, %v6442_v55 }
 0x452   : > { %v6619_v19 = vsel %vm503_vm0, %v6613_v61, %v6614_v20  ;;  %v6448_v35 = vsel %vm15714_vm15, %v6430_v33, %v6447_v28  ;;  %v13920_v18 = vpop.permute.xlu0 %6537  ;;  %vm15723_vm15 = vmmov %vm15719_vm7 }
 0x453   : > { %v6620_v50 = vsel %vm2718_vm5, %v6602_v54, %v6619_v19  ;;  %v6710_v32 = vpop.permute.xlu1 %6709  ;;  %v6816_v59 = vld [vmem:[#allocation3 + $0xa0] sm:$0x33]  ;;  %6462 = vst [vmem:[#allocation3] sm:$0xcc] %v6448_v35  ;;  %v6548_v9 = vrot.slane %v13920_v18, 4 }
 0x454   : > { %6634 = vst [vmem:[#allocation3 + $0x50] sm:$0xcc] %v6620_v50  ;;  %v6720_v3 = vrot.slane %v6710_v32, 4  ;;  %v9874_v30 = vcombine.high %v6816_v59, %v6816_v59  ;;  %v9873_v22 = vcombine.low %v6816_v59, %v6816_v59 }
 0x455   : > { %v6553_v41 = vsel %vm503_vm0, %v6547_v51, %v6548_v9 }
 0x456   : > { %v6725_v15 = vsel %vm503_vm0, %v6719_v62, %v6720_v3  ;;  %9883 = vmatprep.subr.msk.bf16.mxu1 %vm5582_vm13, %v9874_v30  ;;  %v6951_v56 = vsel %vm5582_vm13, %v9873_v22, 0  ;;  %v6554_v47 = vsel %vm15715_vm10, %v6536_v0, %v6553_v41  ;;  %vm15724_vm10 = vmmov %vm15720_vm2 }
 0x457   : > { %v6726_v54 = vsel %vm3258_vm4, %v6708_v48, %v6725_v15  ;;  %6991 = vmatpush1.bf16.msra.mxu1 %v6951_v56  ;;  %6568 = vst [vmem:[#allocation3 + $0x28] sm:$0xcc] %v6554_v47 }
 0x458   : > { %6740 = vst [vmem:[#allocation3 + $0x78] sm:$0xcc] %v6726_v54 }
 0x459   : > { %v6238_v16 = vpop.f32.mrf.mxu1 }
 0x45a   : > { %v13931_v33 = vpop.permute.xlu0 %6761  ;;  %v6239_v11 = vadd.f32 %v6238_v16, %v13832_v10 }
 0x45b   : > { %v6771_v23 = vrot.slane %v13931_v33, 4  ;;  %v6240_v38 = vpop.f32.mrf.mxu1 }
 0x45c   : > { %v6292_v0 = vmul.f32 0.01, %v6239_v11  ;;  %v6241_v2 = vadd.f32 %v6240_v38, %v13832_v10 }
 0x45d   : > { %v13935_v14 = vpop.permute.xlu1 %6605  ;;  %v6777_v36 = vsel %vm503_vm0, %v6770_v58, %v6771_v23  ;;  %v6242_v34 = vpop.f32.mrf.mxu1 }
 0x45e   : > { %v6615_v48 = vrot.slane %v13935_v14, 4  ;;  %v6778_v13 = vsel %vm15716_vm11, %v13887_v25, %v6777_v36  ;;  %v13944_v6 = vpop.permute.xlu0 %6655  ;;  %v6302_v57 = vmax.f32 %v6239_v11, %v6292_v0  ;;  %v6293_v61 = vmul.f32 0.01, %v6241_v2  ;;  %v13963_v59 = vld [vmem:[#allocation3 + $0x4] ss:$40 sps:$4 sm:$0xff]   ;;  %vm15725_vm11 = vmmov %vm15721_vm8 }
 0x45f   : > { %6791 = vst [vmem:[#allocation3 + $0xa8] sm:$0x33] %v6778_v13  ;;  %v6665_v58 = vrot.slane %v13944_v6, 4  ;;  %v10412_v19 = vld [vmem:[#allocation3 + $0x54] ss:$40 sps:$4 sm:$0xff]   ;;  %v6243_v51 = vpop.f32.mrf.mxu1 }
 0x460   : > { %v6621_v4 = vsel %vm503_vm0, %v6614_v20, %v6615_v48  ;;  %v10414_v62 = vld [vmem:[#allocation3 + $0x50] ss:$40 sps:$4 sm:$0xff]   ;;  %v6303_v25 = vmax.f32 %v6241_v2, %v6293_v61  ;;  %6992 = vmatprep.subr.bf16.mxu1 %v10412_v19  ;;  %v6312_v30 = vmul.f32 %v6302_v57, %v13808_v24 }
 0x461   : > { %v6622_v42 = vsel %vm2718_vm5, %v6604_v12, %v6621_v4  ;;  %v13951_v28 = vpop.permute.xlu1 %6711  ;;  %v6671_v35 = vsel %vm503_vm0, %v6664_v46, %v6665_v58  ;;  %6993 = vmatpush1.bf16.msra.mxu1 %v10414_v62 }
 0x462   : > { %6635 = vst [vmem:[#allocation3 + $0x58] sm:$0xcc] %v6622_v42  ;;  %v6721_v20 = vrot.slane %v13951_v28, 4  ;;  %v6672_v50 = vsel %vm3168_vm3, %v13899_v26, %v6671_v35  ;;  %v13961_v12 = vpop.permute.xlu0 %6377  ;;  %v6313_v22 = vmul.f32 %v6303_v25, %v13805_v1  ;;  %6994 = vmatprep.subr.bf16.mxu1 %v13963_v59 }
 0x463   : > { %6685 = vst [vmem:[#allocation3 + $0x80] sm:$0x33] %v6672_v50  ;;  %v6387_v46 = vrot.slane %v13961_v12, 4 }
 0x464   : > { %v6727_v41 = vsel %vm503_vm0, %v6720_v3, %v6721_v20  ;;  %v10073_v56 = vpack.c.bf16 %v6313_v22, %v6312_v30  ;;  %v13981_v3 = vld [vmem:[#allocation3] ss:$40 sps:$4 sm:$0xff]  }
 0x465   : > { %v6728_v15 = vsel %vm3258_vm4, %v6710_v32, %v6727_v41  ;;  %v13973_v26 = vpop.permute.xlu1 %6433  ;;  %v6393_v47 = vsel %vm503_vm0, %v6386_v8, %v6387_v46  ;;  %6995 = vmatpush1.bf16.msra.mxu1 %v13981_v3 }
 0x466   : > { %6741 = vst [vmem:[#allocation3 + $0x80] sm:$0xcc] %v6728_v15  ;;  %v6443_v54 = vrot.slane %v13973_v26, 4  ;;  %v6394_v16 = vsel %vm15717_vm1, %v13885_v17, %v6393_v47  ;;  %v13985_v32 = vpop.permute.xlu0 %6483  ;;  %v6817_v11 = vld [vmem:[#allocation3 + $0xa8] sm:$0x33]  ;;  %vm15726_vm1 = vmmov %vm15712_vm9 }
 0x467   : > { %6359 = vst [vmem:[#allocation2 + $0x1c] sm:$0x33] %v10073_v56  ;;  %6407 = vst [vmem:[#allocation3 + $0x8] sm:$0x33] %v6394_v16  ;;  %v6493_v8 = vrot.slane %v13985_v32, 4  ;;  %v9876_v36 = vcombine.high %v6817_v11, %v6817_v11  ;;  %v9875_v0 = vcombine.low %v6817_v11, %v6817_v11 }
 0x468   : > { %v6449_v38 = vsel %vm503_vm0, %v6442_v55, %v6443_v54  ;;  %v13997_v17 = vld [vmem:[%s15718_s1] sm:$0x3] }
 0x469   : > { %v6450_v2 = vsel %vm15719_vm7, %v13911_v45, %v6449_v38  ;;  %v14001_v13 = vpop.permute.xlu1 %6539  ;;  %v6499_v55 = vsel %vm503_vm0, %v6492_v27, %v6493_v8  ;;  %9885 = vmatprep.subr.msk.bf16.mxu0 %vm5582_vm13, %v9876_v36  ;;  %v6957_v57 = vsel %vm5582_vm13, %v9875_v0, 0  ;;  %9884 = vmatmul.mubr.msk.bf16.vlgmr.msra.gmra.mxu1 %vm6946_vm6, %v13997_v17  ;;  %vm15727_vm7 = vmmov %vm15726_vm1 }
 0x46a   : > { %6463 = vst [vmem:[#allocation3 + $0x8] sm:$0xcc] %v6450_v2  ;;  %v6549_v34 = vrot.slane %v14001_v13, 4  ;;  %v6500_v4 = vsel %vm15720_vm2, %v13897_v7, %v6499_v55  ;;  %7032 = vmatpush1.bf16.msra.mxu0 %v6957_v57  ;;  %7094 = vmatprep.mubr.bf16.mxu1 %v15697_v31  ;;  %vm15728_vm2 = vmmov %vm15722_vm14 }
 0x46b   : > { %6513 = vst [vmem:[#allocation3 + $0x30] sm:$0x33] %v6500_v4 }
 0x46c   : > { %v6555_v27 = vsel %vm503_vm0, %v6548_v9, %v6549_v34 }
 0x46d   : > { %v6556_v45 = vsel %vm15721_vm8, %v13920_v18, %v6555_v27  ;;  %v10420_v61 = vld [vmem:[#allocation3 + $0x5c] ss:$40 sps:$4 sm:$0xff]   ;;  %v10422_v42 = vld [vmem:[#allocation3 + $0x58] ss:$40 sps:$4 sm:$0xff]   ;;  %vm15729_vm8 = vmmov %vm15723_vm15 }
 0x46e   : > { %6569 = vst [vmem:[#allocation3 + $0x30] sm:$0xcc] %v6556_v45  ;;  %v6576_v7 = vld [vmem:[#allocation2 + $0x1c] sm:$0x33]  ;;  %7033 = vmatprep.subr.bf16.mxu0 %v10420_v61 }
 0x46f   : > { %v6748_v19 = vld [vmem:[#allocation2 + $0x1c] sm:$0x33]  ;;  %6581 = vst [vmem:[#allocation3 + $0x68] sm:$0x33] %v6576_v7  ;;  %7034 = vmatpush1.bf16.msra.mxu0 %v10422_v42 }
 0x470   : > { %v6586_v62 = vld [vmem:[#allocation2 + $0x1c] sm:$0x33]  ;;  %6763 = vrot.lane.b32.xlu0 %v6748_v19, %s15343_s6 }
 0x471   : > { %v6598_v51 = vrot.slane %v6586_v62, 6  ;;  %v6692_v25 = vld [vmem:[#allocation2 + $0x1c] sm:$0x33] }
 0x472   : > { %v6642_v9 = vld [vmem:[#allocation2 + $0x1c] sm:$0x33]  ;;  %v6704_v35 = vrot.slane %v6692_v25, 6 }
 0x473   : > { %6607 = vrot.lane.b32.xlu1 %v6598_v51, %s15382_s7  ;;  %v6414_v18 = vld [vmem:[#allocation2 + $0x18] sm:$0x33] }
 0x474   : > { %6657 = vrot.lane.b32.xlu0 %v6642_v9, %s15368_s4  ;;  %v6364_v22 = vld [vmem:[#allocation2 + $0x18] sm:$0x33]  ;;  %v6426_v41 = vrot.slane %v6414_v18, 6 }
 0x475   : > { %v10423_v50 = vld [vmem:[#allocation3 + $0xc] ss:$40 sps:$4 sm:$0xff]   ;;  %v10425_v30 = vld [vmem:[#allocation3 + $0x8] ss:$40 sps:$4 sm:$0xff]   ;;  %v6520_v15 = vld [vmem:[#allocation2 + $0x18] sm:$0x33] }
 0x476   : > { %7035 = vmatprep.subr.bf16.mxu0 %v10423_v50  ;;  %v6470_v47 = vld [vmem:[#allocation2 + $0x18] sm:$0x33]  ;;  %v6532_v11 = vrot.slane %v6520_v15, 6 }
 0x477   : > { %6713 = vrot.lane.b32.xlu1 %v6704_v35, %s15369_s9  ;;  %7036 = vmatpush1.bf16.msra.mxu0 %v10425_v30 }
 0x478   : > { %6379 = vrot.lane.b32.xlu0 %v6364_v22, %s15289_s25 }
 0x479   : > { %v6279_v56 = vpop.f32.mrf.mxu1 }
 0x47a   : > { %9886 = vmatmul.mubr.msk.bf16.vlgmr.msra.gmra.mxu0 %vm6946_vm6, %v13997_v17  ;;  %v6280_v16 = vadd.f32 %v6279_v56, %v13832_v10 }
 0x47b   : > { %6435 = vrot.lane.b32.xlu1 %v6426_v41, %s15709_s16  ;;  %7135 = vmatprep.mubr.bf16.mxu0 %v15697_v31  ;;  %v6281_v38 = vpop.f32.mrf.mxu1 }
 0x47c   : > { %6485 = vrot.lane.b32.xlu0 %v6470_v47, %s15291_s23  ;;  %v6294_v36 = vmul.f32 0.01, %v6280_v16  ;;  %v6282_v0 = vadd.f32 %v6281_v38, %v13832_v10 }
 0x47d   : > { %v6283_v2 = vpop.f32.mrf.mxu1 }
 0x47e   : > { %v6304_v55 = vmax.f32 %v6280_v16, %v6294_v36  ;;  %v6295_v57 = vmul.f32 0.01, %v6282_v0 }
 0x47f   : > { %6541 = vrot.lane.b32.xlu1 %v6532_v11, %s15710_s14  ;;  %v6284_v4 = vpop.f32.mrf.mxu1 }
 0x480   : > { %v6305_v27 = vmax.f32 %v6282_v0, %v6295_v57  ;;  %v6314_v45 = vmul.f32 %v6304_v55, %v13830_v29 }
 0x482   : > { %v6315_v61 = vmul.f32 %v6305_v27, %v13826_v52 }
 0x484   : > { %v10074_v42 = vpack.c.bf16 %v6315_v61, %v6314_v45 }
 0x486   : > { %6360 = vst [vmem:[#allocation2 + $0x24] sm:$0x33] %v10074_v42 }
 0x48d   : > { %v6577_v7 = vld [vmem:[#allocation2 + $0x24] sm:$0x33] }
 0x48e   : > { %v6749_v19 = vld [vmem:[#allocation2 + $0x24] sm:$0x33]  ;;  %6582 = vst [vmem:[#allocation3 + $0x70] sm:$0x33] %v6577_v7 }
 0x48f   : > { %v6587_v62 = vld [vmem:[#allocation2 + $0x24] sm:$0x33]  ;;  %6765 = vrot.lane.b32.xlu0 %v6749_v19, %s15343_s6 }
 0x490   : > { %v6599_v10 = vrot.slane %v6587_v62, 6  ;;  %v6693_v51 = vld [vmem:[#allocation2 + $0x24] sm:$0x33] }
 0x491   : > { %v6643_v25 = vld [vmem:[#allocation2 + $0x24] sm:$0x33]  ;;  %v6705_v9 = vrot.slane %v6693_v51, 6 }
 0x492   : > { %6609 = vrot.lane.b32.xlu1 %v6599_v10, %s15382_s7  ;;  %v6415_v35 = vld [vmem:[#allocation2 + $0x20] sm:$0x33]  ;;  %v6416_v15 = vld [vmem:[#allocation2 + $0x28] sm:$0x3] }
 0x493   : > { %6659 = vrot.lane.b32.xlu0 %v6643_v25, %s15368_s4  ;;  %v6365_v18 = vld [vmem:[#allocation2 + $0x20] sm:$0x33]  ;;  %v6427_v50 = vrot.slane %v6415_v35, 6  ;;  %v6366_v56 = vld [vmem:[#allocation2 + $0x28] sm:$0x3]  ;;  %v6428_v47 = vrot.slane %v6416_v15, 6 }
 0x494   : > { %v6521_v30 = vld [vmem:[#allocation2 + $0x20] sm:$0x33]  ;;  %v6522_v16 = vld [vmem:[#allocation2 + $0x28] sm:$0x3] }
 0x495   : > { %v6471_v22 = vld [vmem:[#allocation2 + $0x20] sm:$0x33]  ;;  %v6533_v41 = vrot.slane %v6521_v30, 6  ;;  %v6472_v11 = vld [vmem:[#allocation2 + $0x28] sm:$0x3]  ;;  %v6534_v38 = vrot.slane %v6522_v16, 6 }
 0x496   : > { %6715 = vrot.lane.b32.xlu1 %v6705_v9, %s15369_s9 }
 0x497   : > { %6381 = vrot.lane.b32.xlu0 %v6365_v18, %s15289_s25 }
 0x49a   : > { %6437 = vrot.lane.b32.xlu1 %v6427_v50, %s15709_s16 }
 0x49b   : > { %6487 = vrot.lane.b32.xlu0 %v6471_v22, %s15291_s23 }
 0x49e   : > { %6543 = vrot.lane.b32.xlu1 %v6533_v41, %s15710_s14 }
 0x49f   : > { %6383 = vrot.lane.b32.xlu0 %v6366_v56, %s15289_s25 }
 0x4a2   : > { %6439 = vrot.lane.b32.xlu1 %v6428_v47, %s15709_s16 }
 0x4a3   : > { %6489 = vrot.lane.b32.xlu0 %v6472_v11, %s15291_s23  ;;  %v6774_v11 = vrot.slane %v13877_v53, 4 }
 0x4a6   : > { %6545 = vrot.lane.b32.xlu1 %v6534_v38, %s15710_s14 }
 0x4e2   : > { %v14050_v36 = vpop.permute.xlu0 %6763 }
 0x4e3   : > { %v6772_v0 = vrot.slane %v14050_v36, 4 }
 0x4e5   : > { %v14053_v2 = vpop.permute.xlu1 %6607  ;;  %v6779_v55 = vsel %vm503_vm0, %v6771_v23, %v6772_v0 }
 0x4e6   : > { %v6616_v57 = vrot.slane %v14053_v2, 4  ;;  %v6780_v4 = vsel %vm15712_vm9, %v13931_v33, %v6779_v55  ;;  %v14061_v27 = vpop.permute.xlu0 %6657  ;;  %vm15730_vm9 = vmmov %vm15724_vm10 }
 0x4e7   : > { %6792 = vst [vmem:[#allocation3 + $0xb0] sm:$0x33] %v6780_v4  ;;  %v6666_v61 = vrot.slane %v14061_v27, 4 }
 0x4e8   : > { %v6623_v45 = vsel %vm503_vm0, %v6615_v48, %v6616_v57 }
 0x4e9   : > { %v6624_v42 = vsel %vm2718_vm5, %v13935_v14, %v6623_v45  ;;  %v14071_v23 = vpop.permute.xlu1 %6713  ;;  %v6673_v33 = vsel %vm503_vm0, %v6665_v58, %v6666_v61 }
 0x4ea   : > { %6636 = vst [vmem:[#allocation3 + $0x60] sm:$0xcc] %v6624_v42  ;;  %v6722_v7 = vrot.slane %v14071_v23, 4  ;;  %v6674_v19 = vsel %vm3168_vm3, %v13944_v6, %v6673_v33  ;;  %v14081_v48 = vpop.permute.xlu0 %6379 }
 0x4eb   : > { %6686 = vst [vmem:[#allocation3 + $0x88] sm:$0x33] %v6674_v19  ;;  %v6388_v62 = vrot.slane %v14081_v48, 4 }
 0x4ec   : > { %v6729_v14 = vsel %vm503_vm0, %v6721_v20, %v6722_v7 }
 0x4ed   : > { %v6730_v10 = vsel %vm3258_vm4, %v13951_v28, %v6729_v14  ;;  %v14091_v58 = vpop.permute.xlu1 %6435  ;;  %v6395_v6 = vsel %vm503_vm0, %v6387_v46, %v6388_v62  ;;  %v6668_v14 = vrot.slane %v13881_v44, 4 }
 0x4ee   : > { %6742 = vst [vmem:[#allocation3 + $0x88] sm:$0xcc] %v6730_v10  ;;  %v6444_v51 = vrot.slane %v14091_v58, 4  ;;  %v6396_v25 = vsel %vm15722_vm14, %v13961_v12, %v6395_v6  ;;  %v14101_v20 = vpop.permute.xlu0 %6485  ;;  %v6818_v9 = vld [vmem:[#allocation3 + $0xb0] sm:$0x33]  ;;  %vm15731_vm14 = vmmov %vm15725_vm11 }
 0x4ef   : > { %6408 = vst [vmem:[#allocation3 + $0x10] sm:$0x33] %v6396_v25  ;;  %v6494_v35 = vrot.slane %v14101_v20, 4  ;;  %v9878_v18 = vcombine.high %v6818_v9, %v6818_v9  ;;  %v9877_v50 = vcombine.low %v6818_v9, %v6818_v9  ;;  %v6724_v25 = vrot.slane %v13883_v63, 4 }
 0x4f0   : > { %v6451_v28 = vsel %vm503_vm0, %v6443_v54, %v6444_v51 }
 0x4f1   : > { %v6452_v46 = vsel %vm15723_vm15, %v13973_v26, %v6451_v28  ;;  %v14111_v30 = vpop.permute.xlu1 %6541  ;;  %v6501_v12 = vsel %vm503_vm0, %v6493_v8, %v6494_v35  ;;  %9887 = vmatprep.subr.msk.bf16.mxu1 %vm5582_vm13, %v9878_v18  ;;  %v6963_v54 = vsel %vm5582_vm13, %v9877_v50, 0  ;;  %vm15732_vm15 = vmmov %vm15728_vm2 }
 0x4f2   : > { %6464 = vst [vmem:[#allocation3 + $0x10] sm:$0xcc] %v6452_v46  ;;  %v6550_v22 = vrot.slane %v14111_v30, 4  ;;  %v6502_v41 = vsel %vm15724_vm10, %v13985_v32, %v6501_v12  ;;  %7073 = vmatpush1.bf16.msra.mxu1 %v6963_v54  ;;  %vm15733_vm10 = vmmov %vm15729_vm8 }
 0x4f3   : > { %6514 = vst [vmem:[#allocation3 + $0x38] sm:$0x33] %v6502_v41 }
 0x4f4   : > { %v6557_v26 = vsel %vm503_vm0, %v6549_v34, %v6550_v22 }
 0x4f5   : > { %v6558_v8 = vsel %vm15725_vm11, %v14001_v13, %v6557_v26  ;;  %v10428_v15 = vld [vmem:[#allocation3 + $0x64] ss:$40 sps:$4 sm:$0xff]   ;;  %v10430_v56 = vld [vmem:[#allocation3 + $0x60] ss:$40 sps:$4 sm:$0xff]   ;;  %v6618_v13 = vrot.slane %v13879_v40, 4  ;;  %vm15734_vm11 = vmmov %vm15730_vm9 }
 0x4f6   : > { %6570 = vst [vmem:[#allocation3 + $0x38] sm:$0xcc] %v6558_v8  ;;  %7074 = vmatprep.subr.bf16.mxu1 %v10428_v15 }
 0x4f7   : > { %7075 = vmatpush1.bf16.msra.mxu1 %v10430_v56 }
 0x4fd   : > { %v10431_v47 = vld [vmem:[#allocation3 + $0x14] ss:$40 sps:$4 sm:$0xff]   ;;  %v10433_v16 = vld [vmem:[#allocation3 + $0x10] ss:$40 sps:$4 sm:$0xff]  }
 0x4fe   : > { %7076 = vmatprep.subr.bf16.mxu1 %v10431_v47 }
 0x4ff   : > { %7077 = vmatpush1.bf16.msra.mxu1 %v10433_v16 }
 0x501   : > { %v6766_v32 = vpop.permute.xlu0 %6765 }
 0x502   : > { %9888 = vmatmul.mubr.msk.bf16.vlgmr.msra.gmra.mxu1 %vm6946_vm6, %v13997_v17  ;;  %v6773_v38 = vrot.slane %v6766_v32, 4 }
 0x503   : > { %7176 = vmatprep.mubr.bf16.mxu1 %v15697_v31 }
 0x504   : > { %v6610_v34 = vpop.permute.xlu1 %6609  ;;  %v6781_v55 = vsel %vm503_vm0, %v6772_v0, %v6773_v38  ;;  %v6783_v4 = vsel %vm503_vm0, %v6773_v38, %v6774_v11 }
 0x505   : > { %v6617_v45 = vrot.slane %v6610_v34, 4  ;;  %v6782_v42 = vsel %vm15726_vm1, %v14050_v36, %v6781_v55  ;;  %v6784_v33 = vsel %vm15727_vm7, %v6766_v32, %v6783_v4  ;;  %v6660_v19 = vpop.permute.xlu0 %6659  ;;  %vm15735_vm1 = vmmov %vm15731_vm14 }
 0x506   : > { %6793 = vst [vmem:[#allocation3 + $0xb8] sm:$0x33] %v6782_v42  ;;  %6794 = vst [vmem:[#allocation3 + $0xc0] sm:$0x33] %v6784_v33  ;;  %v6667_v0 = vrot.slane %v6660_v19, 4 }
 0x507   : > { %v6625_v53 = vsel %vm503_vm0, %v6616_v57, %v6617_v45  ;;  %v6627_v40 = vsel %vm503_vm0, %v6617_v45, %v6618_v13 }
 0x508   : > { %v6626_v10 = vsel %vm2718_vm5, %v14053_v2, %v6625_v53  ;;  %v6628_v6 = vsel %vm2718_vm5, %v6610_v34, %v6627_v40  ;;  %v6716_v36 = vpop.permute.xlu1 %6715  ;;  %v6675_v44 = vsel %vm503_vm0, %v6666_v61, %v6667_v0  ;;  %v6677_v9 = vsel %vm503_vm0, %v6667_v0, %v6668_v14 }
 0x509   : > { %6637 = vst [vmem:[#allocation3 + $0x68] sm:$0xcc] %v6626_v10  ;;  %6638 = vst [vmem:[#allocation3 + $0x70] sm:$0xcc] %v6628_v6  ;;  %v6723_v57 = vrot.slane %v6716_v36, 4  ;;  %v6676_v28 = vsel %vm3168_vm3, %v14061_v27, %v6675_v44  ;;  %v6678_v18 = vsel %vm3168_vm3, %v6660_v19, %v6677_v9  ;;  %v6382_v2 = vpop.permute.xlu0 %6381 }
 0x50a   : > { %6687 = vst [vmem:[#allocation3 + $0x90] sm:$0x33] %v6676_v28  ;;  %6688 = vst [vmem:[#allocation3 + $0x98] sm:$0x33] %v6678_v18  ;;  %v6389_v46 = vrot.slane %v6382_v2, 4 }
 0x50b   : > { %v6731_v63 = vsel %vm503_vm0, %v6722_v7, %v6723_v57  ;;  %v6733_v50 = vsel %vm503_vm0, %v6723_v57, %v6724_v25 }
 0x50c   : > { %v6732_v61 = vsel %vm3258_vm4, %v14071_v23, %v6731_v63  ;;  %v6734_v12 = vsel %vm3258_vm4, %v6716_v36, %v6733_v50  ;;  %v6438_v54 = vpop.permute.xlu1 %6437  ;;  %v6397_v27 = vsel %vm503_vm0, %v6388_v62, %v6389_v46 }
 0x50d   : > { %6743 = vst [vmem:[#allocation3 + $0x90] sm:$0xcc] %v6732_v61  ;;  %6744 = vst [vmem:[#allocation3 + $0x98] sm:$0xcc] %v6734_v12  ;;  %v6445_v41 = vrot.slane %v6438_v54, 4  ;;  %v6398_v26 = vsel %vm15728_vm2, %v14081_v48, %v6397_v27  ;;  %v6488_v7 = vpop.permute.xlu0 %6487 }
 0x50e   : > { %v6819_v8 = vld [vmem:[#allocation3 + $0xb8] sm:$0x33]  ;;  %v6820_v15 = vld [vmem:[#allocation3 + $0xc0] sm:$0x33]  ;;  %6409 = vst [vmem:[#allocation3 + $0x18] sm:$0x33] %v6398_v26 }
 0x50f   : > { %v6453_v23 = vsel %vm503_vm0, %v6444_v51, %v6445_v41  ;;  %v6495_v56 = vrot.slane %v6488_v7, 4  ;;  %v9880_v47 = vcombine.high %v6819_v8, %v6819_v8  ;;  %v9882_v16 = vcombine.high %v6820_v15, %v6820_v15 }
 0x510   : > { %v6454_v32 = vsel %vm15729_vm8, %v14091_v58, %v6453_v23  ;;  %v6544_v11 = vpop.permute.xlu1 %6543  ;;  %v9879_v62 = vcombine.low %v6819_v8, %v6819_v8  ;;  %v9881_v38 = vcombine.low %v6820_v15, %v6820_v15  ;;  %vm15736_vm8 = vmmov %vm15730_vm9 }
 0x511   : > { %6465 = vst [vmem:[#allocation3 + $0x18] sm:$0xcc] %v6454_v32  ;;  %v6503_v48 = vsel %vm503_vm0, %v6494_v35, %v6495_v56  ;;  %v6551_v34 = vrot.slane %v6544_v11, 4  ;;  %9889 = vmatprep.subr.msk.bf16.mxu0 %vm5582_vm13, %v9880_v47  ;;  %9891 = vmatprep.subr.msk.bf16.mxu1 %vm5582_vm13, %v9882_v16  ;;  %v6384_v13 = vpop.permute.xlu0 %6383 }
 0x512   : > { %v6504_v51 = vsel %vm15730_vm9, %v14101_v20, %v6503_v48  ;;  %v6969_v55 = vsel %vm5582_vm13, %v9879_v62, 0  ;;  %v6975_v58 = vsel %vm5582_vm13, %v9881_v38, 0  ;;  %v6390_v45 = vrot.slane %v6384_v13, 4  ;;  %vm15737_vm9 = vmmov %vm15735_vm1 }
 0x513   : > { %6515 = vst [vmem:[#allocation3 + $0x40] sm:$0x33] %v6504_v51  ;;  %v6559_v4 = vsel %vm503_vm0, %v6550_v22, %v6551_v34  ;;  %7114 = vmatpush1.bf16.msra.mxu0 %v6969_v55  ;;  %7155 = vmatpush1.bf16.msra.mxu1 %v6975_v58 }
 0x514   : > { %v6560_v35 = vsel %vm15731_vm14, %v14111_v30, %v6559_v4  ;;  %v6440_v42 = vpop.permute.xlu1 %6439  ;;  %v10438_v33 = vld [vmem:[#allocation3 + $0x6c] ss:$40 sps:$4 sm:$0xff]   ;;  %v6399_v20 = vsel %vm503_vm0, %v6389_v46, %v6390_v45  ;;  %v10442_v53 = vld [vmem:[#allocation3 + $0x68] ss:$40 sps:$4 sm:$0xff]   ;;  %vm15738_vm14 = vmmov %vm15733_vm10 }
 0x515   : > { %6571 = vst [vmem:[#allocation3 + $0x40] sm:$0xcc] %v6560_v35  ;;  %v6446_v19 = vrot.slane %v6440_v42, 4  ;;  %v10440_v14 = vld [vmem:[#allocation3 + $0x74] ss:$40 sps:$4 sm:$0xff]   ;;  %v6400_v40 = vsel %vm15732_vm15, %v6382_v2, %v6399_v20  ;;  %v6490_v0 = vpop.permute.xlu0 %6489  ;;  %7115 = vmatprep.subr.bf16.mxu0 %v10438_v33  ;;  %vm7984_vm15 = vcmask 588800  }
 0x516   : > { %v10443_v10 = vld [vmem:[#allocation3 + $0x70] ss:$40 sps:$4 sm:$0xff]   ;;  %6410 = vst [vmem:[#allocation3 + $0x20] sm:$0x33] %v6400_v40  ;;  %v6496_v6 = vrot.slane %v6490_v0, 4  ;;  %7156 = vmatprep.subr.bf16.mxu1 %v10440_v14 }
 0x517   : > { %v6455_v22 = vsel %vm503_vm0, %v6445_v41, %v6446_v19  ;;  %7116 = vmatpush1.bf16.msra.mxu0 %v10442_v53  ;;  %7157 = vmatpush1.bf16.msra.mxu1 %v10443_v10 }
 0x518   : > { %v6456_v30 = vsel %vm15733_vm10, %v6438_v54, %v6455_v22  ;;  %v6546_v36 = vpop.permute.xlu1 %6545  ;;  %v6505_v25 = vsel %vm503_vm0, %v6495_v56, %v6496_v6  ;;  %vm15740_vm10 = vmmov %vm15727_vm7 }
 0x519   : > { %6466 = vst [vmem:[#allocation3 + $0x20] sm:$0xcc] %v6456_v30  ;;  %v6552_v44 = vrot.slane %v6546_v36, 4  ;;  %v6506_v9 = vsel %vm15734_vm11, %v6488_v7, %v6505_v25  ;;  %vm15741_vm11 = vmmov %vm15728_vm2 }
 0x51a   : > { %6516 = vst [vmem:[#allocation3 + $0x48] sm:$0x33] %v6506_v9 }
 0x51b   : > { %v6561_v57 = vsel %vm503_vm0, %v6551_v34, %v6552_v44 }
 0x51c   : > { %v6562_v28 = vsel %vm15735_vm1, %v6544_v11, %v6561_v57  ;;  %v10444_v18 = vld [vmem:[#allocation3 + $0x1c] ss:$40 sps:$4 sm:$0xff]   ;;  %v10446_v2 = vld [vmem:[#allocation3 + $0x18] ss:$40 sps:$4 sm:$0xff]  }
 0x51d   : > { %6572 = vst [vmem:[#allocation3 + $0x48] sm:$0xcc] %v6562_v28  ;;  %7117 = vmatprep.subr.bf16.mxu0 %v10444_v18 }
 0x51e   : > { %7118 = vmatpush1.bf16.msra.mxu0 %v10446_v2 }
 0x521   : > { %9890 = vmatmul.mubr.msk.bf16.vlgmr.msra.gmra.mxu0 %vm6946_vm6, %v13997_v17 }
 0x522   : > { %8051 = vmatprep.mubr.bf16.mxu0 %v15697_v31 }
 0x524   : > { %v10447_v63 = vld [vmem:[#allocation3 + $0x24] ss:$40 sps:$4 sm:$0xff]   ;;  %v10449_v50 = vld [vmem:[#allocation3 + $0x20] ss:$40 sps:$4 sm:$0xff]  }
 0x525   : > { %7158 = vmatprep.subr.bf16.mxu1 %v10447_v63 }
 0x526   : > { %7159 = vmatpush1.bf16.msra.mxu1 %v10449_v50 }
 0x529   : > { %9892 = vmatmul.mubr.msk.bf16.vlgmr.msra.gmra.mxu1 %vm6946_vm6, %v13997_v17  ;;  %v7014_v46 = vpop.f32.mrf.mxu1 }
 0x52a   : > { %8092 = vmatprep.mubr.bf16.mxu1 %v15697_v31  ;;  %v7185_v61 = vmax.f32 %v7014_v46, 0.0 }
 0x52b   : > { %v7016_v12 = vpop.f32.mrf.mxu1 }
 0x52c   : > { %v7195_v54 = vmul.f32 %v7185_v61, %v13752_v39  ;;  %v7186_v27 = vmax.f32 %v7016_v12, 0.0 }
 0x52d   : > { %v7018_v41 = vpop.f32.mrf.mxu1 }
 0x52e   : > { %v7196_v26 = vmul.f32 %v7186_v27, %v13735_v49 }
 0x52f   : > { %v7019_v7 = vpop.f32.mrf.mxu1 }
 0x530   : > { %v10075_v8 = vpack.c.bf16 %v7196_v26, %v7195_v54 }
 0x532   : > { %v7240_v15 = vrot.slane %v10075_v8, 6 }
 0x534   : > { %7250 = vst [vmem:[#allocation2 + $0x4] sm:$0xcc] %v7240_v15 }
 0x53a   : > { %v7055_v23 = vpop.f32.mrf.mxu0 }
 0x53b   : > { %v7187_v56 = vmax.f32 %v7055_v23, 0.0  ;;  %v7479_v47 = vld [vmem:[#allocation2 + $0x4] sm:$0xcc] }
 0x53c   : > { %v7057_v16 = vpop.f32.mrf.mxu0  ;;  %v7663_v17 = vld [vmem:[#allocation2 + $0x4] sm:$0xcc]  ;;  %7484 = vst [vmem:[#allocation3 + $0xf0] sm:$0xcc] %v7479_v47 }
 0x53d   : > { %v7197_v32 = vmul.f32 %v7187_v56, %v13730_v60  ;;  %v7188_v11 = vmax.f32 %v7057_v16, 0.0  ;;  %7675 = vrot.lane.b32.xlu0 %v7663_v17, %s15343_s6  ;;  %v7551_v62 = vld [vmem:[#allocation2 + $0x4] sm:$0xcc] }
 0x53e   : > { %v7059_v38 = vpop.f32.mrf.mxu0  ;;  %v7255_v13 = vld [vmem:[#allocation2] sm:$0xcc] }
 0x53f   : > { %v7198_v48 = vmul.f32 %v7188_v11, %v13747_v43  ;;  %v7367_v58 = vld [vmem:[#allocation2] sm:$0xcc] }
 0x540   : > { %v7060_v34 = vpop.f32.mrf.mxu0  ;;  %v7601_v4 = vld [vmem:[#allocation2 + $0x4] sm:$0xcc] }
 0x541   : > { %v10076_v51 = vpack.c.bf16 %v7198_v48, %v7197_v32  ;;  %7563 = vrot.lane.b32.xlu0 %v7551_v62, %s15368_s4  ;;  %v9916_v45 = vrot.slane %v7601_v4, 10  ;;  %v7417_v35 = vld [vmem:[#allocation2] sm:$0xcc] }
 0x542   : > { %v9904_v20 = vrot.slane %v7417_v35, 10  ;;  %v7489_v14 = vld [vmem:[#allocation2 + $0x4] sm:$0xcc] }
 0x543   : > { %v7241_v55 = vrot.slane %v10076_v51, 6  ;;  %v9910_v53 = vrot.slane %v7489_v14, 10  ;;  %v7305_v0 = vld [vmem:[#allocation2] sm:$0xcc] }
 0x544   : > { %v9898_v10 = vrot.slane %v7305_v0, 10 }
 0x545   : > { %7251 = vst [vmem:[#allocation2 + $0xc] sm:$0xcc] %v7241_v55  ;;  %7267 = vrot.lane.b32.xlu0 %v7255_v13, %s15289_s25 }
 0x549   : > { %7379 = vrot.lane.b32.xlu0 %v7367_v58, %s15291_s23 }
 0x54c   : > { %v7480_v42 = vld [vmem:[#allocation2 + $0xc] sm:$0xcc] }
 0x54d   : > { %v7664_v33 = vld [vmem:[#allocation2 + $0xc] sm:$0xcc]  ;;  %7485 = vst [vmem:[#allocation3 + $0xf8] sm:$0xcc] %v7480_v42  ;;  %7625 = vrot.lane.b32.xlu0 %v9916_v45, %s15369_s9 }
 0x54e   : > { %7677 = vrot.lane.b32.xlu1 %v7664_v33, %s15343_s6  ;;  %v7552_v19 = vld [vmem:[#allocation2 + $0xc] sm:$0xcc] }
 0x54f   : > { %v7256_v40 = vld [vmem:[#allocation2 + $0x8] sm:$0xcc] }
 0x550   : > { %v7368_v22 = vld [vmem:[#allocation2 + $0x8] sm:$0xcc] }
 0x551   : > { %7441 = vrot.lane.b32.xlu0 %v9904_v20, %s15710_s14  ;;  %v7602_v6 = vld [vmem:[#allocation2 + $0xc] sm:$0xcc] }
 0x552   : > { %7565 = vrot.lane.b32.xlu1 %v7552_v19, %s15368_s4  ;;  %v9917_v30 = vrot.slane %v7602_v6, 10  ;;  %v7418_v36 = vld [vmem:[#allocation2 + $0x8] sm:$0xcc] }
 0x553   : > { %v9905_v25 = vrot.slane %v7418_v36, 10  ;;  %v7490_v44 = vld [vmem:[#allocation2 + $0xc] sm:$0xcc] }
 0x554   : > { %v9911_v9 = vrot.slane %v7490_v44, 10  ;;  %v7306_v57 = vld [vmem:[#allocation2 + $0x8] sm:$0xcc] }
 0x555   : > { %7513 = vrot.lane.b32.xlu0 %v9910_v53, %s15382_s7  ;;  %v9899_v28 = vrot.slane %v7306_v57, 10 }
 0x556   : > { %7269 = vrot.lane.b32.xlu1 %v7256_v40, %s15289_s25 }
 0x559   : > { %7329 = vrot.lane.b32.xlu0 %v9898_v10, %s15709_s16 }
 0x55a   : > { %7381 = vrot.lane.b32.xlu1 %v7368_v22, %s15291_s23 }
 0x55e   : > { %7627 = vrot.lane.b32.xlu1 %v9917_v30, %s15369_s9 }
 0x562   : > { %7443 = vrot.lane.b32.xlu1 %v9905_v25, %s15710_s14 }
 0x566   : > { %7515 = vrot.lane.b32.xlu1 %v9911_v9, %s15382_s7 }
 0x56a   : > { %7331 = vrot.lane.b32.xlu1 %v9899_v28, %s15709_s16 }
 0x5af   : > { %v7676_v18 = vpop.permute.xlu0 %7675 }
 0x5b0   : > { %v7687_v50 = vrot.slane %v7676_v18, 4 }
 0x5b3   : > { %v7564_v2 = vpop.permute.xlu0 %7563 }
 0x5b4   : > { %v7575_v26 = vrot.slane %v7564_v2, 4 }
 0x5b7   : > { %v7268_v63 = vpop.permute.xlu0 %7267 }
 0x5b8   : > { %v7279_v62 = vrot.slane %v7268_v63, 4 }
 0x5bb   : > { %v7380_v61 = vpop.permute.xlu0 %7379 }
 0x5bc   : > { %v7391_v4 = vrot.slane %v7380_v61, 4 }
 0x5bf   : > { %v7626_v16 = vpop.permute.xlu0 %7625 }
 0x5c0   : > { %v14221_v46 = vpop.permute.xlu1 %7677  ;;  %v7637_v19 = vrot.slane %v7626_v16, 4 }
 0x5c1   : > { %v7688_v12 = vrot.slane %v14221_v46, 4 }
 0x5c2   : > { %v7096_v54 = vpop.f32.mrf.mxu1 }
 0x5c3   : > { %v7693_v27 = vsel %vm503_vm0, %v7687_v50, %v7688_v12  ;;  %v7189_v41 = vmax.f32 %v7096_v54, 0.0  ;;  %v7442_v42 = vpop.permute.xlu0 %7441 }
 0x5c4   : > { %v7694_v7 = vsel %vm15727_vm7, %v7676_v18, %v7693_v27  ;;  %v14228_v8 = vpop.permute.xlu1 %7565  ;;  %v7098_v15 = vpop.f32.mrf.mxu1  ;;  %v7453_v22 = vrot.slane %v7442_v42, 4  ;;  %vm15742_vm7 = vmmov %vm15736_vm8 }
 0x5c5   : > { %7708 = vst [vmem:[#allocation3 + $0x140] sm:$0xcc] %v7694_v7  ;;  %v7199_v23 = vmul.f32 %v7189_v41, %v13781_v37  ;;  %v7576_v56 = vrot.slane %v14228_v8, 4  ;;  %v7190_v47 = vmax.f32 %v7098_v15, 0.0 }
 0x5c6   : > { %v7100_v17 = vpop.f32.mrf.mxu1 }
 0x5c7   : > { %v7581_v32 = vsel %vm503_vm0, %v7575_v26, %v7576_v56  ;;  %v7200_v11 = vmul.f32 %v7190_v47, %v13784_v21  ;;  %v7514_v0 = vpop.permute.xlu0 %7513 }
 0x5c8   : > { %v7582_v38 = vsel %vm3168_vm3, %v7564_v2, %v7581_v32  ;;  %v14237_v48 = vpop.permute.xlu1 %7269  ;;  %v7101_v34 = vpop.f32.mrf.mxu1  ;;  %v7525_v2 = vrot.slane %v7514_v0, 4 }
 0x5c9   : > { %7596 = vst [vmem:[#allocation3 + $0x118] sm:$0xcc] %v7582_v38  ;;  %v10077_v51 = vpack.c.bf16 %v7200_v11, %v7199_v23  ;;  %v7280_v13 = vrot.slane %v14237_v48, 4 }
 0x5cb   : > { %v7242_v55 = vrot.slane %v10077_v51, 6  ;;  %v7285_v58 = vsel %vm503_vm0, %v7279_v62, %v7280_v13  ;;  %v7330_v54 = vpop.permute.xlu0 %7329 }
 0x5cc   : > { %v7286_v45 = vsel %vm15728_vm2, %v7268_v63, %v7285_v58  ;;  %v14244_v35 = vpop.permute.xlu1 %7381  ;;  %v7341_v15 = vrot.slane %v7330_v54, 4  ;;  %vm15743_vm2 = vmmov %vm15738_vm14 }
 0x5cd   : > { %7252 = vst [vmem:[#allocation2 + $0x14] sm:$0xcc] %v7242_v55  ;;  %7300 = vst [vmem:[#allocation3 + $0xa0] sm:$0xcc] %v7286_v45  ;;  %v7392_v33 = vrot.slane %v14244_v35, 4 }
 0x5cf   : > { %v7397_v20 = vsel %vm503_vm0, %v7391_v4, %v7392_v33 }
 0x5d0   : > { %v7398_v14 = vsel %vm15736_vm8, %v7380_v61, %v7397_v20  ;;  %v14251_v53 = vpop.permute.xlu1 %7627  ;;  %vm15744_vm8 = vmmov %vm15740_vm10 }
 0x5d1   : > { %7412 = vst [vmem:[#allocation3 + $0xc8] sm:$0xcc] %v7398_v14  ;;  %v7638_v40 = vrot.slane %v14251_v53, 4 }
 0x5d3   : > { %v7643_v10 = vsel %vm503_vm0, %v7637_v19, %v7638_v40 }
 0x5d4   : > { %v7481_v6 = vld [vmem:[#allocation2 + $0x14] sm:$0xcc]  ;;  %v7644_v30 = vsel %vm3258_vm4, %v7626_v16, %v7643_v10  ;;  %v14258_v36 = vpop.permute.xlu1 %7443 }
 0x5d5   : > { %v7665_v25 = vld [vmem:[#allocation2 + $0x14] sm:$0xcc]  ;;  %7486 = vst [vmem:[#allocation3 + $0x100] sm:$0xcc] %v7481_v6  ;;  %7658 = vst [vmem:[#allocation3 + $0x140] sm:$0x33] %v7644_v30 }
 0x5d6   : > { %v7553_v44 = vld [vmem:[#allocation2 + $0x14] sm:$0xcc]  ;;  %v7454_v9 = vrot.slane %v14258_v36, 4  ;;  %7679 = vrot.lane.b32.xlu1 %v7665_v25, %s15343_s6 }
 0x5d7   : > { %7567 = vrot.lane.b32.xlu0 %v7553_v44, %s15368_s4  ;;  %v7603_v57 = vld [vmem:[#allocation2 + $0x14] sm:$0xcc] }
 0x5d8   : > { %v9918_v28 = vrot.slane %v7603_v57, 10  ;;  %v7459_v18 = vsel %vm503_vm0, %v7453_v22, %v7454_v9  ;;  %v14267_v50 = vpop.permute.xlu1 %7515  ;;  %v7257_v61 = vld [vmem:[#allocation2 + $0x10] sm:$0xcc] }
 0x5d9   : > { %v7460_v63 = vsel %vm15737_vm9, %v7442_v42, %v7459_v18  ;;  %v7419_v27 = vld [vmem:[#allocation2 + $0x10] sm:$0xcc]  ;;  %v7526_v41 = vrot.slane %v14267_v50, 4  ;;  %vm15745_vm9 = vmmov %vm15741_vm11 }
 0x5da   : > { %7474 = vst [vmem:[#allocation3 + $0xf0] sm:$0x33] %v7460_v63  ;;  %7271 = vrot.lane.b32.xlu1 %v7257_v61, %s15289_s25  ;;  %v7491_v26 = vld [vmem:[#allocation2 + $0x14] sm:$0xcc]  ;;  %v9906_v23 = vrot.slane %v7419_v27, 10 }
 0x5db   : > { %7629 = vrot.lane.b32.xlu0 %v9918_v28, %s15369_s9  ;;  %v7531_v7 = vsel %vm503_vm0, %v7525_v2, %v7526_v41  ;;  %v7369_v17 = vld [vmem:[#allocation2 + $0x10] sm:$0xcc]  ;;  %v9912_v38 = vrot.slane %v7491_v26, 10 }
 0x5dc   : > { %v7532_v47 = vsel %vm2718_vm5, %v7514_v0, %v7531_v7  ;;  %v14276_v16 = vpop.permute.xlu1 %7331  ;;  %v7307_v32 = vld [vmem:[#allocation2 + $0x10] sm:$0xcc]  ;;  %v7754_v11 = vld [vmem:[#allocation3 + $0x140] sm:$0xff] }
 0x5dd   : > { %7546 = vst [vmem:[#allocation3 + $0x118] sm:$0x33] %v7532_v47  ;;  %v7342_v62 = vrot.slane %v14276_v16, 4  ;;  %v9963_v34 = vcombine.high %v7754_v11, %v7754_v11  ;;  %v9962_v51 = vcombine.low %v7754_v11, %v7754_v11  ;;  %v9900_v58 = vrot.slane %v7307_v32, 10  ;;  %v14298_v11 = vld [vmem:[%s15739_s8] sm:$0xf] }
 0x5de   : > { %7383 = vrot.lane.b32.xlu1 %v7369_v17, %s15291_s23 }
 0x5df   : > { %7445 = vrot.lane.b32.xlu0 %v9906_v23, %s15710_s14  ;;  %v7347_v55 = vsel %vm503_vm0, %v7341_v15, %v7342_v62  ;;  %9972 = vmatprep.subr.msk.bf16.mxu0 %vm503_vm0, %v9963_v34  ;;  %v7990_v4 = vsel %vm503_vm0, %v9962_v51, 0  ;;  %v10558_v23 = vld [vmem:[#allocation3 + $0x50] ss:$40 sps:$4 sm:$0xff]  }
 0x5e0   : > { %v7348_v45 = vsel %vm15738_vm14, %v7330_v54, %v7347_v55  ;;  %8026 = vmatpush1.bf16.msra.mxu0 %v7990_v4  ;;  %v10557_v54 = vld [vmem:[#allocation3 + $0x54] ss:$40 sps:$4 sm:$0xff]   ;;  %vm15746_vm14 = vmmov %vm15742_vm7 }
 0x5e1   : > { %7362 = vst [vmem:[#allocation3 + $0xc8] sm:$0x33] %v7348_v45  ;;  %v7137_v42 = vpop.f32.mrf.mxu0 }
 0x5e2   : > { %7517 = vrot.lane.b32.xlu1 %v9912_v38, %s15382_s7  ;;  %v7191_v20 = vmax.f32 %v7137_v42, 0.0 }
 0x5e3   : > { %7333 = vrot.lane.b32.xlu0 %v9900_v58, %s15709_s16  ;;  %v7139_v19 = vpop.f32.mrf.mxu0 }
 0x5e4   : > { %v10452_v14 = vld [vmem:[#allocation3 + $0xf0] ss:$40 sps:$4 sm:$0xff]   ;;  %v10454_v0 = vld [vmem:[#allocation3 + $0xf4] ss:$40 sps:$4 sm:$0xff]   ;;  %v7192_v10 = vmax.f32 %v7139_v19, 0.0  ;;  %v7201_v6 = vmul.f32 %v7191_v20, %v13808_v24 }
 0x5e5   : > { %v7141_v22 = vpop.f32.mrf.mxu0  ;;  %8027 = vmatprep.subr.bf16.mxu0 %v10454_v0  ;;  %v7606_v19 = vld [vmem:[#allocation2 + $0x2c] sm:$0xc] }
 0x5e6   : > { %v7202_v30 = vmul.f32 %v7192_v10, %v13805_v1  ;;  %8028 = vmatpush1.bf16.msra.mxu0 %v10452_v14  ;;  %v9921_v22 = vrot.slane %v7606_v19, 10 }
 0x5e7   : > { %v7142_v25 = vpop.f32.mrf.mxu0 }
 0x5e8   : > { %v10455_v44 = vld [vmem:[#allocation3 + $0xa0] ss:$40 sps:$4 sm:$0xff]   ;;  %v10457_v57 = vld [vmem:[#allocation3 + $0xa4] ss:$40 sps:$4 sm:$0xff]   ;;  %v10078_v28 = vpack.c.bf16 %v7202_v30, %v7201_v6 }
 0x5e9   : > { %v7178_v18 = vpop.f32.mrf.mxu1  ;;  %8029 = vmatprep.subr.bf16.mxu0 %v10457_v57 }
 0x5ea   : > { %v7243_v2 = vrot.slane %v10078_v28, 6  ;;  %v7193_v63 = vmax.f32 %v7178_v18, 0.0  ;;  %8030 = vmatpush1.bf16.msra.mxu0 %v10455_v44 }
 0x5eb   : > { %v7180_v61 = vpop.f32.mrf.mxu1  ;;  %8031 = vmatprep.subr.bf16.mxu0 %v10557_v54  ;;  %v7494_v54 = vld [vmem:[#allocation2 + $0x2c] sm:$0xc] }
 0x5ec   : > { %7253 = vst [vmem:[#allocation2 + $0x1c] sm:$0xcc] %v7243_v2  ;;  %v7194_v27 = vmax.f32 %v7180_v61, 0.0  ;;  %v7203_v7 = vmul.f32 %v7193_v63, %v13830_v29  ;;  %v7668_v61 = vld [vmem:[#allocation2 + $0x2c] sm:$0xc] }
 0x5ed   : > { %v7182_v26 = vpop.f32.mrf.mxu1 }
 0x5ee   : > { %v7204_v15 = vmul.f32 %v7194_v27, %v13826_v52  ;;  %8032 = vmatpush1.bf16.msra.mxu0 %v10558_v23  ;;  %v7556_v23 = vld [vmem:[#allocation2 + $0x2c] sm:$0xc] }
 0x5ef   : > { %v7183_v47 = vpop.f32.mrf.mxu1  ;;  %8033 = vmatprep.subr.bf16.mxu0 %v13963_v59 }
 0x5f0   : > { %v10079_v17 = vpack.c.bf16 %v7204_v15, %v7203_v7  ;;  %v9915_v7 = vrot.slane %v7494_v54, 10 }
 0x5f2   : > { %v7244_v32 = vrot.slane %v10079_v17, 6  ;;  %8034 = vmatpush1.bf16.msra.mxu0 %v13981_v3 }
 0x5f3   : > { %v7482_v38 = vld [vmem:[#allocation2 + $0x1c] sm:$0xcc] }
 0x5f4   : > { %v7666_v34 = vld [vmem:[#allocation2 + $0x1c] sm:$0xcc]  ;;  %7487 = vst [vmem:[#allocation3 + $0x108] sm:$0xcc] %v7482_v38  ;;  %7254 = vst [vmem:[#allocation2 + $0x24] sm:$0xcc] %v7244_v32 }
 0x5f5   : > { %v7554_v51 = vld [vmem:[#allocation2 + $0x1c] sm:$0xcc]  ;;  %7681 = vrot.lane.b32.xlu1 %v7666_v34, %s15343_s6  ;;  %9973 = vmatmul.mubr.msk.bf16.vlgmr.msra.gmra.mxu0 %vm7984_vm15, %v14298_v11 }
 0x5f6   : > { %7569 = vrot.lane.b32.xlu0 %v7554_v51, %s15368_s4  ;;  %8133 = vmatprep.mubr.bf16.mxu0 %v15697_v31  ;;  %v7258_v59 = vld [vmem:[#allocation2 + $0x18] sm:$0xcc] }
 0x5f7   : > { %v7370_v3 = vld [vmem:[#allocation2 + $0x18] sm:$0xcc] }
 0x5f8   : > { %v7604_v4 = vld [vmem:[#allocation2 + $0x1c] sm:$0xcc] }
 0x5f9   : > { %7273 = vrot.lane.b32.xlu1 %v7258_v59, %s15289_s25  ;;  %v9919_v45 = vrot.slane %v7604_v4, 10  ;;  %v7420_v20 = vld [vmem:[#allocation2 + $0x18] sm:$0xcc] }
 0x5fa   : > { %v9907_v14 = vrot.slane %v7420_v20, 10  ;;  %v7492_v10 = vld [vmem:[#allocation2 + $0x1c] sm:$0xcc] }
 0x5fb   : > { %v7483_v55 = vld [vmem:[#allocation2 + $0x24] sm:$0xcc]  ;;  %v9913_v6 = vrot.slane %v7492_v10, 10  ;;  %v7308_v30 = vld [vmem:[#allocation2 + $0x18] sm:$0xcc] }
 0x5fc   : > { %v7555_v58 = vld [vmem:[#allocation2 + $0x24] sm:$0xcc]  ;;  %7488 = vst [vmem:[#allocation3 + $0x110] sm:$0xcc] %v7483_v55  ;;  %v9901_v25 = vrot.slane %v7308_v30, 10 }
 0x5fd   : > { %7385 = vrot.lane.b32.xlu1 %v7370_v3, %s15291_s23  ;;  %7571 = vrot.lane.b32.xlu0 %v7555_v58, %s15368_s4  ;;  %v7667_v42 = vld [vmem:[#allocation2 + $0x24] sm:$0xcc] }
 0x5fe   : > { %v7259_v0 = vld [vmem:[#allocation2 + $0x20] sm:$0xcc]  ;;  %v7260_v47 = vld [vmem:[#allocation2 + $0x28] sm:$0xc] }
 0x5ff   : > { %v7371_v44 = vld [vmem:[#allocation2 + $0x20] sm:$0xcc]  ;;  %v7422_v17 = vld [vmem:[#allocation2 + $0x28] sm:$0xc] }
 0x600   : > { %v7605_v57 = vld [vmem:[#allocation2 + $0x24] sm:$0xcc]  ;;  %v9909_v32 = vrot.slane %v7422_v17, 10  ;;  %v10469_v17 = vld [vmem:[#allocation3 + $0xc] ss:$40 sps:$4 sm:$0xff]  }
 0x601   : > { %7683 = vrot.lane.b32.xlu1 %v7667_v42, %s15343_s6  ;;  %7631 = vrot.lane.b32.xlu0 %v9919_v45, %s15369_s9  ;;  %v7493_v28 = vld [vmem:[#allocation2 + $0x24] sm:$0xcc]  ;;  %v9920_v18 = vrot.slane %v7605_v57, 10 }
 0x602   : > { %v9914_v2 = vrot.slane %v7493_v28, 10  ;;  %v7421_v63 = vld [vmem:[#allocation2 + $0x20] sm:$0xcc]  ;;  %v7372_v38 = vld [vmem:[#allocation2 + $0x28] sm:$0xc] }
 0x603   : > { %v9908_v27 = vrot.slane %v7421_v63, 10  ;;  %v7309_v26 = vld [vmem:[#allocation2 + $0x20] sm:$0xcc]  ;;  %v7310_v34 = vld [vmem:[#allocation2 + $0x28] sm:$0xc] }
 0x604   : > { %v9902_v15 = vrot.slane %v7309_v26, 10  ;;  %v9903_v51 = vrot.slane %v7310_v34, 10  ;;  %v10466_v26 = vld [vmem:[#allocation3 + $0x5c] ss:$40 sps:$4 sm:$0xff]  }
 0x605   : > { %7447 = vrot.lane.b32.xlu0 %v9907_v14, %s15710_s14  ;;  %7275 = vrot.lane.b32.xlu1 %v7259_v0, %s15289_s25 }
 0x609   : > { %7635 = vrot.lane.b32.xlu0 %v9921_v22, %s15369_s9  ;;  %7519 = vrot.lane.b32.xlu1 %v9913_v6, %s15382_s7 }
 0x60d   : > { %7335 = vrot.lane.b32.xlu0 %v9901_v25, %s15709_s16  ;;  %7387 = vrot.lane.b32.xlu1 %v7371_v44, %s15291_s23 }
 0x611   : > { %7633 = vrot.lane.b32.xlu0 %v9920_v18, %s15369_s9  ;;  %7521 = vrot.lane.b32.xlu1 %v9914_v2, %s15382_s7 }
 0x615   : > { %7449 = vrot.lane.b32.xlu0 %v9908_v27, %s15710_s14  ;;  %7685 = vrot.lane.b32.xlu1 %v7668_v61, %s15343_s6 }
 0x619   : > { %7337 = vrot.lane.b32.xlu0 %v9902_v15, %s15709_s16  ;;  %7523 = vrot.lane.b32.xlu1 %v9915_v7, %s15382_s7 }
 0x61d   : > { %7573 = vrot.lane.b32.xlu0 %v7556_v23, %s15368_s4  ;;  %7277 = vrot.lane.b32.xlu1 %v7260_v47, %s15289_s25  ;;  %v10468_v47 = vld [vmem:[#allocation3 + $0x58] ss:$40 sps:$4 sm:$0xff]  }
 0x621   : > { %7451 = vrot.lane.b32.xlu0 %v9909_v32, %s15710_s14  ;;  %7389 = vrot.lane.b32.xlu1 %v7372_v38, %s15291_s23 }
 0x625   : > { %7339 = vrot.lane.b32.xlu0 %v9903_v51, %s15709_s16 }
 0x648   : > { %v14329_v3 = vpop.permute.xlu1 %7679 }
 0x649   : > { %v14327_v59 = vpop.permute.xlu0 %7567  ;;  %v7689_v58 = vrot.slane %v14329_v3, 4 }
 0x64a   : > { %v7577_v55 = vrot.slane %v14327_v59, 4 }
 0x64b   : > { %v7695_v45 = vsel %vm503_vm0, %v7688_v12, %v7689_v58 }
 0x64c   : > { %v7583_v4 = vsel %vm503_vm0, %v7576_v56, %v7577_v55  ;;  %v7696_v20 = vsel %vm15740_vm10, %v14221_v46, %v7695_v45  ;;  %v14345_v14 = vpop.permute.xlu1 %7271  ;;  %vm15747_vm10 = vmmov %vm15744_vm8 }
 0x64d   : > { %v7584_v42 = vsel %vm3168_vm3, %v14228_v8, %v7583_v4  ;;  %v14343_v19 = vpop.permute.xlu0 %7629  ;;  %7709 = vst [vmem:[#allocation3 + $0x148] sm:$0xcc] %v7696_v20  ;;  %v7281_v56 = vrot.slane %v14345_v14, 4 }
 0x64e   : > { %7597 = vst [vmem:[#allocation3 + $0x120] sm:$0xcc] %v7584_v42  ;;  %v7639_v0 = vrot.slane %v14343_v19, 4  ;;  %v10471_v42 = vld [vmem:[#allocation3 + $0x8] ss:$40 sps:$4 sm:$0xff]  }
 0x64f   : > { %v7287_v46 = vsel %vm503_vm0, %v7280_v13, %v7281_v56 }
 0x650   : > { %v7645_v12 = vsel %vm503_vm0, %v7638_v40, %v7639_v0  ;;  %v7288_v10 = vsel %vm15741_vm11, %v14237_v48, %v7287_v46  ;;  %v14363_v6 = vpop.permute.xlu1 %7383  ;;  %vm15748_vm11 = vmmov %vm15735_vm1 }
 0x651   : > { %v7646_v8 = vsel %vm3258_vm4, %v14251_v53, %v7645_v12  ;;  %v14361_v22 = vpop.permute.xlu0 %7445  ;;  %7301 = vst [vmem:[#allocation3 + $0xa8] sm:$0xcc] %v7288_v10  ;;  %v7393_v40 = vrot.slane %v14363_v6, 4 }
 0x652   : > { %7659 = vst [vmem:[#allocation3 + $0x148] sm:$0x33] %v7646_v8  ;;  %v7455_v30 = vrot.slane %v14361_v22, 4 }
 0x653   : > { %v7399_v48 = vsel %vm503_vm0, %v7392_v33, %v7393_v40 }
 0x654   : > { %v7461_v13 = vsel %vm503_vm0, %v7454_v9, %v7455_v30  ;;  %v7400_v25 = vsel %vm15742_vm7, %v14244_v35, %v7399_v48  ;;  %v14381_v57 = vpop.permute.xlu1 %7517  ;;  %vm15750_vm7 = vmmov %vm15743_vm2 }
 0x655   : > { %v7462_v53 = vsel %vm15735_vm1, %v14258_v36, %v7461_v13  ;;  %v14379_v44 = vpop.permute.xlu0 %7333  ;;  %7413 = vst [vmem:[#allocation3 + $0xd0] sm:$0xcc] %v7400_v25  ;;  %v7527_v9 = vrot.slane %v14381_v57, 4  ;;  %vm15749_vm1 = vmmov %vm15745_vm9 }
 0x656   : > { %7475 = vst [vmem:[#allocation3 + $0xf8] sm:$0x33] %v7462_v53  ;;  %v7343_v28 = vrot.slane %v14379_v44, 4 }
 0x657   : > { %v7533_v35 = vsel %vm503_vm0, %v7526_v41, %v7527_v9 }
 0x658   : > { %v7349_v33 = vsel %vm503_vm0, %v7342_v62, %v7343_v28  ;;  %v7534_v18 = vsel %vm2718_vm5, %v14267_v50, %v7533_v35 }
 0x659   : > { %v7350_v36 = vsel %vm15743_vm2, %v14276_v16, %v7349_v33  ;;  %v7755_v2 = vld [vmem:[#allocation3 + $0x148] sm:$0xff]  ;;  %7547 = vst [vmem:[#allocation3 + $0x120] sm:$0x33] %v7534_v18  ;;  %vm15751_vm2 = vmmov %vm15746_vm14 }
 0x65a   : > { %7363 = vst [vmem:[#allocation3 + $0xd0] sm:$0x33] %v7350_v36  ;;  %v9965_v63 = vcombine.high %v7755_v2, %v7755_v2  ;;  %v9964_v61 = vcombine.low %v7755_v2, %v7755_v2 }
 0x65c   : > { %9974 = vmatprep.subr.msk.bf16.mxu1 %vm503_vm0, %v9965_v63  ;;  %v7996_v62 = vsel %vm503_vm0, %v9964_v61, 0 }
 0x65d   : > { %8067 = vmatpush1.bf16.msra.mxu1 %v7996_v62 }
 0x660   : > { %v10460_v54 = vld [vmem:[#allocation3 + $0xf8] ss:$40 sps:$4 sm:$0xff]   ;;  %v10462_v27 = vld [vmem:[#allocation3 + $0xfc] ss:$40 sps:$4 sm:$0xff]  }
 0x661   : > { %8068 = vmatprep.subr.bf16.mxu1 %v10462_v27  ;;  %v10465_v41 = vld [vmem:[#allocation3 + $0xac] ss:$40 sps:$4 sm:$0xff]   ;;  %v10463_v16 = vld [vmem:[#allocation3 + $0xa8] ss:$40 sps:$4 sm:$0xff]  }
 0x662   : > { %8069 = vmatpush1.bf16.msra.mxu1 %v10460_v54 }
 0x663   : > { %8070 = vmatprep.subr.bf16.mxu1 %v10465_v41 }
 0x666   : > { %8071 = vmatpush1.bf16.msra.mxu1 %v10463_v16 }
 0x667   : > { %v7682_v7 = vpop.permute.xlu1 %7681  ;;  %8072 = vmatprep.subr.bf16.mxu1 %v10466_v26 }
 0x668   : > { %v7570_v50 = vpop.permute.xlu0 %7569  ;;  %v7690_v23 = vrot.slane %v7682_v7, 4 }
 0x669   : > { %v7578_v15 = vrot.slane %v7570_v50, 4 }
 0x66a   : > { %v7697_v38 = vsel %vm503_vm0, %v7689_v58, %v7690_v23  ;;  %8073 = vmatpush1.bf16.msra.mxu1 %v10468_v47 }
 0x66b   : > { %v7585_v32 = vsel %vm503_vm0, %v7577_v55, %v7578_v15  ;;  %v7698_v51 = vsel %vm15744_vm8, %v14329_v3, %v7697_v38  ;;  %v7274_v4 = vpop.permute.xlu1 %7273  ;;  %8074 = vmatprep.subr.bf16.mxu1 %v10469_v17  ;;  %vm15752_vm8 = vmmov %vm15748_vm11 }
 0x66c   : > { %v7586_v34 = vsel %vm3168_vm3, %v14327_v59, %v7585_v32  ;;  %7710 = vst [vmem:[#allocation3 + $0x150] sm:$0xcc] %v7698_v51  ;;  %v7282_v45 = vrot.slane %v7274_v4, 4 }
 0x66d   : > { %7598 = vst [vmem:[#allocation3 + $0x128] sm:$0xcc] %v7586_v34 }
 0x66e   : > { %v7289_v20 = vsel %vm503_vm0, %v7281_v56, %v7282_v45  ;;  %8075 = vmatpush1.bf16.msra.mxu1 %v10471_v42 }
 0x66f   : > { %v7290_v55 = vsel %vm15745_vm9, %v14345_v14, %v7289_v20  ;;  %v14410_v58 = vpop.permute.xlu0 %7571  ;;  %v7386_v12 = vpop.permute.xlu1 %7385  ;;  %vm15753_vm9 = vmmov %vm15747_vm10 }
 0x670   : > { %7302 = vst [vmem:[#allocation3 + $0xb0] sm:$0xcc] %v7290_v55  ;;  %v7579_v59 = vrot.slane %v14410_v58, 4  ;;  %v7394_v46 = vrot.slane %v7386_v12, 4 }
 0x671   : > { %9975 = vmatmul.mubr.msk.bf16.vlgmr.msra.gmra.mxu1 %vm7984_vm15, %v14298_v11 }
 0x672   : > { %v7587_v3 = vsel %vm503_vm0, %v7578_v15, %v7579_v59  ;;  %v7401_v56 = vsel %vm503_vm0, %v7393_v40, %v7394_v46  ;;  %8174 = vmatprep.mubr.bf16.mxu1 %v15697_v31 }
 0x673   : > { %v7588_v14 = vsel %vm3168_vm3, %v7570_v50, %v7587_v3  ;;  %v7402_v8 = vsel %vm15746_vm14, %v14363_v6, %v7401_v56  ;;  %v7632_v10 = vpop.permute.xlu0 %7631  ;;  %v14423_v13 = vpop.permute.xlu1 %7683  ;;  %vm15754_vm14 = vmmov %vm15750_vm7 }
 0x674   : > { %7599 = vst [vmem:[#allocation3 + $0x130] sm:$0xcc] %v7588_v14  ;;  %7414 = vst [vmem:[#allocation3 + $0xd8] sm:$0xcc] %v7402_v8  ;;  %v7640_v48 = vrot.slane %v7632_v10, 4  ;;  %v7691_v53 = vrot.slane %v14423_v13, 4 }
 0x676   : > { %v7647_v25 = vsel %vm503_vm0, %v7639_v0, %v7640_v48  ;;  %v7699_v40 = vsel %vm503_vm0, %v7690_v23, %v7691_v53 }
 0x677   : > { %v7648_v33 = vsel %vm3258_vm4, %v14343_v19, %v7647_v25  ;;  %v7700_v35 = vsel %vm15747_vm10, %v7682_v7, %v7699_v40  ;;  %v7448_v6 = vpop.permute.xlu0 %7447  ;;  %v14433_v36 = vpop.permute.xlu1 %7275  ;;  %vm15755_vm10 = vmmov %vm15749_vm1 }
 0x678   : > { %7660 = vst [vmem:[#allocation3 + $0x150] sm:$0x33] %v7648_v33  ;;  %7711 = vst [vmem:[#allocation3 + $0x158] sm:$0xcc] %v7700_v35  ;;  %v7456_v18 = vrot.slane %v7448_v6, 4  ;;  %v7283_v2 = vrot.slane %v14433_v36, 4 }
 0x67a   : > { %v7463_v63 = vsel %vm503_vm0, %v7455_v30, %v7456_v18  ;;  %v7291_v0 = vsel %vm503_vm0, %v7282_v45, %v7283_v2 }
 0x67b   : > { %v7464_v19 = vsel %vm15748_vm11, %v14361_v22, %v7463_v63  ;;  %v7292_v61 = vsel %vm15749_vm1, %v7274_v4, %v7291_v0  ;;  %v7636_v62 = vpop.permute.xlu0 %7635  ;;  %v7520_v54 = vpop.permute.xlu1 %7519  ;;  %vm15756_vm11 = vmmov %vm15752_vm8 }
 0x67c   : > { %7476 = vst [vmem:[#allocation3 + $0x100] sm:$0x33] %v7464_v19  ;;  %7303 = vst [vmem:[#allocation3 + $0xb8] sm:$0xcc] %v7292_v61  ;;  %v7528_v27 = vrot.slane %v7520_v54, 4  ;;  %v7642_v51 = vrot.slane %v7636_v62, 4 }
 0x67d   : > { %vm15757_vm1 = vmmov %vm15751_vm2 }
 0x67e   : > { %v7535_v41 = vsel %vm503_vm0, %v7527_v9, %v7528_v27 }
 0x67f   : > { %v7536_v30 = vsel %vm2718_vm5, %v14381_v57, %v7535_v41  ;;  %v7336_v16 = vpop.permute.xlu0 %7335  ;;  %v14450_v26 = vpop.permute.xlu1 %7387  ;;  %v7756_v50 = vld [vmem:[#allocation3 + $0x150] sm:$0xff] }
 0x680   : > { %7548 = vst [vmem:[#allocation3 + $0x128] sm:$0x33] %v7536_v30  ;;  %v7344_v22 = vrot.slane %v7336_v16, 4  ;;  %v7395_v7 = vrot.slane %v14450_v26, 4  ;;  %v9967_v15 = vcombine.high %v7756_v50, %v7756_v50  ;;  %v9966_v23 = vcombine.low %v7756_v50, %v7756_v50 }
 0x682   : > { %v7351_v47 = vsel %vm503_vm0, %v7343_v28, %v7344_v22  ;;  %v7403_v9 = vsel %vm503_vm0, %v7394_v46, %v7395_v7  ;;  %9976 = vmatprep.subr.msk.bf16.mxu0 %vm503_vm0, %v9967_v15  ;;  %v8002_v57 = vsel %vm503_vm0, %v9966_v23, 0 }
 0x683   : > { %v7352_v17 = vsel %vm15750_vm7, %v14379_v44, %v7351_v47  ;;  %v7404_v32 = vsel %vm15751_vm2, %v7386_v12, %v7403_v9  ;;  %v7634_v38 = vpop.permute.xlu0 %7633  ;;  %8108 = vmatpush1.bf16.msra.mxu0 %v8002_v57  ;;  %v7522_v34 = vpop.permute.xlu1 %7521  ;;  %v10483_v47 = vld [vmem:[#allocation3 + $0x60] ss:$40 sps:$4 sm:$0xff]   ;;  %v10485_v57 = vld [vmem:[#allocation3 + $0x14] ss:$40 sps:$4 sm:$0xff]   ;;  %vm15764_vm2 = vmmov %vm15757_vm1 }
 0x684   : > { %7364 = vst [vmem:[#allocation3 + $0xd8] sm:$0x33] %v7352_v17  ;;  %7415 = vst [vmem:[#allocation3 + $0xe0] sm:$0xcc] %v7404_v32  ;;  %v7641_v28 = vrot.slane %v7634_v38, 4  ;;  %v7529_v4 = vrot.slane %v7522_v34, 4 }
 0x686   : > { %v7649_v45 = vsel %vm503_vm0, %v7640_v48, %v7641_v28  ;;  %v7651_v42 = vsel %vm503_vm0, %v7641_v28, %v7642_v51  ;;  %v7537_v20 = vsel %vm503_vm0, %v7528_v27, %v7529_v4 }
 0x687   : > { %v7650_v55 = vsel %vm3258_vm4, %v7632_v10, %v7649_v45  ;;  %v7652_v44 = vsel %vm3258_vm4, %v7634_v38, %v7651_v42  ;;  %v7538_v12 = vsel %vm2718_vm5, %v7520_v54, %v7537_v20  ;;  %v14470_v46 = vpop.permute.xlu0 %7449  ;;  %v7686_v3 = vpop.permute.xlu1 %7685  ;;  %v10474_v56 = vld [vmem:[#allocation3 + $0x100] ss:$40 sps:$4 sm:$0xff]   ;;  %v10476_v14 = vld [vmem:[#allocation3 + $0x104] ss:$40 sps:$4 sm:$0xff]  }
 0x688   : > { %7661 = vst [vmem:[#allocation3 + $0x158] sm:$0x33] %v7650_v55  ;;  %7662 = vst [vmem:[#allocation3 + $0x160] sm:$0x33] %v7652_v44  ;;  %v7457_v8 = vrot.slane %v14470_v46, 4  ;;  %v7692_v48 = vrot.slane %v7686_v3, 4  ;;  %8109 = vmatprep.subr.bf16.mxu0 %v10476_v14 }
 0x689   : > { %7549 = vst [vmem:[#allocation3 + $0x130] sm:$0x33] %v7538_v12  ;;  %8110 = vmatpush1.bf16.msra.mxu0 %v10474_v56 }
 0x68a   : > { %v7465_v25 = vsel %vm503_vm0, %v7456_v18, %v7457_v8  ;;  %v7701_v10 = vsel %vm503_vm0, %v7691_v53, %v7692_v48  ;;  %v10480_v18 = vld [vmem:[#allocation3 + $0x64] ss:$40 sps:$4 sm:$0xff]  }
 0x68b   : > { %v7466_v40 = vsel %vm15752_vm8, %v7448_v6, %v7465_v25  ;;  %v7702_v33 = vsel %vm15753_vm9, %v14423_v13, %v7701_v10  ;;  %v14478_v35 = vpop.permute.xlu0 %7337  ;;  %v7524_v63 = vpop.permute.xlu1 %7523  ;;  %v10477_v0 = vld [vmem:[#allocation3 + $0xb0] ss:$40 sps:$4 sm:$0xff]   ;;  %v10479_v19 = vld [vmem:[#allocation3 + $0xb4] ss:$40 sps:$4 sm:$0xff]   ;;  %vm15765_vm8 = vmmov %vm15750_vm7 }
 0x68c   : > { %7477 = vst [vmem:[#allocation3 + $0x108] sm:$0x33] %v7466_v40  ;;  %7712 = vst [vmem:[#allocation3 + $0x160] sm:$0xcc] %v7702_v33  ;;  %v7345_v61 = vrot.slane %v14478_v35, 4  ;;  %v7530_v62 = vrot.slane %v7524_v63, 4  ;;  %8111 = vmatprep.subr.bf16.mxu0 %v10479_v19 }
 0x68d   : > { %8112 = vmatpush1.bf16.msra.mxu0 %v10477_v0  ;;  %v10496_v48 = vld [vmem:[#allocation3 + $0x6c] ss:$40 sps:$4 sm:$0xff]   ;;  %v10498_v25 = vld [vmem:[#allocation3 + $0x68] ss:$40 sps:$4 sm:$0xff]   ;;  %v10499_v10 = vld [vmem:[#allocation3 + $0x1c] ss:$40 sps:$4 sm:$0xff]  }
 0x68e   : > { %v7353_v53 = vsel %vm503_vm0, %v7344_v22, %v7345_v61  ;;  %v7539_v54 = vsel %vm503_vm0, %v7529_v4, %v7530_v62  ;;  %8113 = vmatprep.subr.bf16.mxu0 %v10480_v18  ;;  %v10490_v4 = vld [vmem:[#allocation3 + $0x10] ss:$40 sps:$4 sm:$0xff]   ;;  %v10511_v62 = vld [vmem:[#allocation3 + $0x24] ss:$40 sps:$4 sm:$0xff]   ;;  %v10513_v18 = vld [vmem:[#allocation3 + $0x20] ss:$40 sps:$4 sm:$0xff]  }
 0x68f   : > { %v7354_v6 = vsel %vm15754_vm14, %v7336_v16, %v7353_v53  ;;  %v7540_v13 = vsel %vm2718_vm5, %v7522_v34, %v7539_v54  ;;  %v7574_v27 = vpop.permute.xlu0 %7573  ;;  %v7278_v41 = vpop.permute.xlu1 %7277  ;;  %v7757_v30 = vld [vmem:[#allocation3 + $0x158] sm:$0xff] }
 0x690   : > { %7365 = vst [vmem:[#allocation3 + $0xe0] sm:$0x33] %v7354_v6  ;;  %7550 = vst [vmem:[#allocation3 + $0x138] sm:$0x33] %v7540_v13  ;;  %v7580_v50 = vrot.slane %v7574_v27, 4  ;;  %v7284_v15 = vrot.slane %v7278_v41, 4  ;;  %v9969_v23 = vcombine.high %v7757_v30, %v7757_v30  ;;  %v9968_v9 = vcombine.low %v7757_v30, %v7757_v30 }
 0x691   : > { %8114 = vmatpush1.bf16.msra.mxu0 %v10483_v47  ;;  %v10504_v63 = vld [vmem:[#allocation3 + $0x18] ss:$40 sps:$4 sm:$0xff]  }
 0x692   : > { %v7589_v22 = vsel %vm503_vm0, %v7579_v59, %v7580_v50  ;;  %v7293_v16 = vsel %vm503_vm0, %v7283_v2, %v7284_v15  ;;  %9978 = vmatprep.subr.msk.bf16.mxu1 %vm503_vm0, %v9969_v23  ;;  %v8008_v17 = vsel %vm503_vm0, %v9968_v9, 0  ;;  %8115 = vmatprep.subr.bf16.mxu0 %v10485_v57  ;;  %v8290_v23 = vld [vmem:[#allocation2 + $0x4] sm:$0xff] }
 0x693   : > { %v7590_v32 = vsel %vm3168_vm3, %v14410_v58, %v7589_v22  ;;  %v7294_v38 = vsel %vm15755_vm10, %v14433_v36, %v7293_v16  ;;  %v7452_v34 = vpop.permute.xlu0 %7451  ;;  %8149 = vmatpush1.bf16.msra.mxu1 %v8008_v17  ;;  %v7390_v51 = vpop.permute.xlu1 %7389  ;;  %v10489_v59 = vld [vmem:[#allocation3 + $0x10c] ss:$40 sps:$4 sm:$0xff]   ;;  %v7758_v45 = vld [vmem:[#allocation3 + $0x160] sm:$0xff]  ;;  %v10487_v42 = vld [vmem:[#allocation3 + $0x108] ss:$40 sps:$4 sm:$0xff]  }
 0x694   : > { %7600 = vst [vmem:[#allocation3 + $0x138] sm:$0xcc] %v7590_v32  ;;  %7304 = vst [vmem:[#allocation3 + $0xc0] sm:$0xcc] %v7294_v38  ;;  %v7458_v28 = vrot.slane %v7452_v34, 4  ;;  %v7396_v2 = vrot.slane %v7390_v51, 4  ;;  %8150 = vmatprep.subr.bf16.mxu1 %v10489_v59  ;;  %v9971_v20 = vcombine.high %v7758_v45, %v7758_v45  ;;  %v9970_v55 = vcombine.low %v7758_v45, %v7758_v45 }
 0x695   : > { %8116 = vmatpush1.bf16.msra.mxu0 %v10490_v4 }
 0x696   : > { %v7467_v58 = vsel %vm503_vm0, %v7457_v8, %v7458_v28  ;;  %v7405_v36 = vsel %vm503_vm0, %v7395_v7, %v7396_v2  ;;  %9980 = vmatprep.subr.msk.bf16.mxu0 %vm503_vm0, %v9971_v20  ;;  %v8014_v7 = vsel %vm503_vm0, %v9970_v55, 0  ;;  %v8291_v28 = vld [vmem:[#allocation2 + $0xc] sm:$0xff] }
 0x697   : > { %v7468_v44 = vsel %vm15756_vm11, %v14470_v46, %v7467_v58  ;;  %v7406_v12 = vsel %vm15757_vm1, %v14450_v26, %v7405_v36  ;;  %v7340_v3 = vpop.permute.xlu0 %7339  ;;  %8151 = vmatpush1.bf16.msra.mxu1 %v10487_v42  ;;  %v10494_v56 = vld [vmem:[#allocation3 + $0xbc] ss:$40 sps:$4 sm:$0xff]   ;;  %v10492_v8 = vld [vmem:[#allocation3 + $0xb8] ss:$40 sps:$4 sm:$0xff]  }
 0x698   : > { %7478 = vst [vmem:[#allocation3 + $0x110] sm:$0x33] %v7468_v44  ;;  %7416 = vst [vmem:[#allocation3 + $0xe8] sm:$0xcc] %v7406_v12  ;;  %v7346_v14 = vrot.slane %v7340_v3, 4  ;;  %9977 = vmatmul.mubr.msk.bf16.vlgmr.msra.gmra.mxu0 %vm7984_vm15, %v14298_v11  ;;  %8152 = vmatprep.subr.bf16.mxu1 %v10494_v56  ;;  %v8292_v56 = vld [vmem:[#allocation2 + $0x14] sm:$0xff] }
 0x699   : > { %8190 = vmatpush1.bf16.msra.mxu0 %v8014_v7  ;;  %8215 = vmatprep.mubr.bf16.mxu0 %v15697_v31 }
 0x69a   : > { %v7355_v46 = vsel %vm503_vm0, %v7345_v61, %v7346_v14  ;;  %v10508_v61 = vld [vmem:[#allocation3 + $0x74] ss:$40 sps:$4 sm:$0xff]  }
 0x69b   : > { %v7356_v26 = vsel %vm15750_vm7, %v14478_v35, %v7355_v46  ;;  %8153 = vmatpush1.bf16.msra.mxu1 %v10492_v8  ;;  %v10510_v35 = vld [vmem:[#allocation3 + $0x70] ss:$40 sps:$4 sm:$0xff]   ;;  %vm15771_vm7 = vmmov %vm15755_vm10 }
 0x69c   : > { %7366 = vst [vmem:[#allocation3 + $0xe8] sm:$0x33] %v7356_v26  ;;  %8154 = vmatprep.subr.bf16.mxu1 %v10496_v48 }
 0x69f   : > { %8155 = vmatpush1.bf16.msra.mxu1 %v10498_v25  ;;  %v10501_v40 = vld [vmem:[#allocation3 + $0x110] ss:$40 sps:$4 sm:$0xff]   ;;  %v10503_v33 = vld [vmem:[#allocation3 + $0x114] ss:$40 sps:$4 sm:$0xff]  }
 0x6a0   : > { %8156 = vmatprep.subr.bf16.mxu1 %v10499_v10  ;;  %8191 = vmatprep.subr.bf16.mxu0 %v10503_v33 }
 0x6a1   : > { %8192 = vmatpush1.bf16.msra.mxu0 %v10501_v40 }
 0x6a3   : > { %8157 = vmatpush1.bf16.msra.mxu1 %v10504_v63  ;;  %v10505_v0 = vld [vmem:[#allocation3 + $0xc0] ss:$40 sps:$4 sm:$0xff]   ;;  %v10507_v19 = vld [vmem:[#allocation3 + $0xc4] ss:$40 sps:$4 sm:$0xff]  }
 0x6a4   : > { %8193 = vmatprep.subr.bf16.mxu0 %v10507_v19 }
 0x6a5   : > { %8194 = vmatpush1.bf16.msra.mxu0 %v10505_v0  ;;  %v8293_v0 = vld [vmem:[#allocation2 + $0x1c] sm:$0xff] }
 0x6a6   : > { %9979 = vmatmul.mubr.msk.bf16.vlgmr.msra.gmra.mxu1 %vm7984_vm15, %v14298_v11  ;;  %8195 = vmatprep.subr.bf16.mxu0 %v10508_v61 }
 0x6a7   : > { %8385 = vmatprep.mubr.bf16.mxu1 %v15697_v31 }
 0x6a9   : > { %8196 = vmatpush1.bf16.msra.mxu0 %v10510_v35 }
 0x6aa   : > { %8197 = vmatprep.subr.bf16.mxu0 %v10511_v62 }
 0x6ad   : > { %8198 = vmatpush1.bf16.msra.mxu0 %v10513_v18 }
 0x6b0   : > { %9981 = vmatmul.mubr.msk.bf16.vlgmr.msra.gmra.mxu0 %vm7984_vm15, %v14298_v11  ;;  %v14524_v11 = vld [vmem:[%s15758_s22] sm:$0x3]  ;;  %vm15763_vm15 = vmmov %vm15755_vm10 }
 0x6b1   : > { %8508 = vmatprep.mubr.bf16.mxu0 %v15697_v31 }
 0x6b5   : > { %v8053_v53 = vpop.f32.mrf.mxu0 }
 0x6b6   : > { %v8224_v54 = vmax.f32 %v8053_v53, 0.0 }
 0x6b7   : > { %v8055_v6 = vpop.f32.mrf.mxu0 }
 0x6b8   : > { %v8234_v13 = vmul.f32 %v8224_v54, %v13752_v39  ;;  %v8225_v27 = vmax.f32 %v8055_v6, 0.0 }
 0x6b9   : > { %v8057_v41 = vpop.f32.mrf.mxu0 }
 0x6ba   : > { %v8235_v30 = vmul.f32 %v8225_v27, %v13735_v49 }
 0x6bb   : > { %v8058_v50 = vpop.f32.mrf.mxu0 }
 0x6bc   : > { %v10080_v15 = vpack.c.bf16 %v8235_v30, %v8234_v13  ;;  %v8294_v30 = vld [vmem:[#allocation2 + $0x24] sm:$0xff] }
 0x6be   : > { %v9987_v47 = vcombine.low %v8290_v23, %v10080_v15  ;;  %v9988_v9 = vcombine.high %v8290_v23, %v10080_v15  ;;  %v8568_v23 = vld [vmem:[#allocation2 + $0x4] sm:$0x33] }
 0x6c0   : > { %8367 = vmatprep.subr.bf16.mxu1 %v9988_v9 }
 0x6c1   : > { %8368 = vmatpush1.bf16.msra.mxu1 %v9987_v47 }
 0x6c4   : > { %9997 = vmatmul.mubr.msk.bf16.vlgmr.msra.gmra.mxu1 %vm6077_vm12, %v14524_v11 }
 0x6c5   : > { %8426 = vmatprep.mubr.bf16.mxu1 %v15697_v31 }
 0x731   : > { %v8094_v57 = vpop.f32.mrf.mxu1 }
 0x732   : > { %v8226_v22 = vmax.f32 %v8094_v57, 0.0  ;;  %v8573_v57 = vunpack.c.l.bf16 %v8568_v23 }
 0x733   : > { %v8096_v16 = vpop.f32.mrf.mxu1 }
 0x734   : > { %v8236_v17 = vmul.f32 %v8226_v22, %v13730_v60  ;;  %v8227_v32 = vmax.f32 %v8096_v16, 0.0  ;;  %v9085_v16 = vld [vmem:[#allocation2 + $0x2c] sm:$0x3] }
 0x735   : > { %v8098_v38 = vpop.f32.mrf.mxu1  ;;  %9102 = vrot.lane.b32.xlu1 %v9085_v16, %s15343_s6 }
 0x736   : > { %v8237_v34 = vmul.f32 %v8227_v32, %v13747_v43  ;;  %v8574_v38 = vunpack.c.h.bf16 %v8568_v23 }
 0x737   : > { %v8099_v51 = vpop.f32.mrf.mxu1 }
 0x738   : > { %v10081_v59 = vpack.c.bf16 %v8237_v34, %v8236_v17  ;;  %v8923_v51 = vld [vmem:[#allocation2 + $0x2c] sm:$0x3] }
 0x73a   : > { %v9989_v2 = vcombine.low %v8291_v28, %v10081_v59  ;;  %v9990_v4 = vcombine.high %v8291_v28, %v10081_v59  ;;  %v8935_v28 = vrot.slane %v8923_v51, 6 }
 0x73c   : > { %8408 = vmatprep.subr.bf16.mxu1 %v9990_v4  ;;  %8946 = vrot.lane.b32.xlu1 %v8935_v28, %s15382_s7 }
 0x73d   : > { %8409 = vmatpush1.bf16.msra.mxu1 %v9989_v2 }
 0x740   : > { %9998 = vmatmul.mubr.msk.bf16.vlgmr.msra.gmra.mxu1 %vm6077_vm12, %v14524_v11 }
 0x741   : > { %8467 = vmatprep.mubr.bf16.mxu1 %v15697_v31 }
 0x758   : > { %v8135_v45 = vpop.f32.mrf.mxu0 }
 0x759   : > { %v8228_v42 = vmax.f32 %v8135_v45, 0.0  ;;  %v8979_v45 = vld [vmem:[#allocation2 + $0x2c] sm:$0x3] }
 0x75a   : > { %v8137_v20 = vpop.f32.mrf.mxu0  ;;  %8996 = vrot.lane.b32.xlu1 %v8979_v45, %s15368_s4 }
 0x75b   : > { %v8229_v55 = vmax.f32 %v8137_v20, 0.0  ;;  %v8238_v36 = vmul.f32 %v8228_v42, %v13781_v37  ;;  %v9029_v20 = vld [vmem:[#allocation2 + $0x2c] sm:$0x3] }
 0x75c   : > { %v8139_v58 = vpop.f32.mrf.mxu0 }
 0x75d   : > { %v8239_v44 = vmul.f32 %v8229_v55, %v13784_v21  ;;  %v9041_v55 = vrot.slane %v9029_v20, 6 }
 0x75e   : > { %v8140_v12 = vpop.f32.mrf.mxu0 }
 0x75f   : > { %v10082_v3 = vpack.c.bf16 %v8239_v44, %v8238_v36  ;;  %9052 = vrot.lane.b32.xlu1 %v9041_v55, %s15369_s9 }
 0x761   : > { %v9991_v14 = vcombine.low %v8292_v56, %v10082_v3  ;;  %v9992_v8 = vcombine.high %v8292_v56, %v10082_v3 }
 0x763   : > { %8449 = vmatprep.subr.bf16.mxu1 %v9992_v8 }
 0x764   : > { %8450 = vmatpush1.bf16.msra.mxu1 %v9991_v14 }
 0x766   : > { %v8176_v7 = vpop.f32.mrf.mxu1 }
 0x767   : > { %v8230_v46 = vmax.f32 %v8176_v7, 0.0  ;;  %9999 = vmatmul.mubr.msk.bf16.vlgmr.msra.gmra.mxu1 %vm6077_vm12, %v14524_v11 }
 0x768   : > { %v8178_v48 = vpop.f32.mrf.mxu1  ;;  %8549 = vmatprep.mubr.bf16.mxu1 %v15697_v31 }
 0x769   : > { %v8240_v26 = vmul.f32 %v8230_v46, %v13808_v24  ;;  %v8231_v25 = vmax.f32 %v8178_v48, 0.0 }
 0x76a   : > { %v8180_v10 = vpop.f32.mrf.mxu1 }
 0x76b   : > { %v8241_v40 = vmul.f32 %v8231_v25, %v13805_v1 }
 0x76c   : > { %v8181_v33 = vpop.f32.mrf.mxu1 }
 0x76d   : > { %v10083_v63 = vpack.c.bf16 %v8241_v40, %v8240_v26  ;;  %v8569_v26 = vld [vmem:[#allocation2 + $0xc] sm:$0x33] }
 0x76e   : > { %v8575_v40 = vunpack.c.l.bf16 %v8569_v26 }
 0x76f   : > { %v9993_v19 = vcombine.low %v8293_v0, %v10083_v63  ;;  %v9994_v61 = vcombine.high %v8293_v0, %v10083_v63 }
 0x770   : > { %v8217_v35 = vpop.f32.mrf.mxu0 }
 0x771   : > { %8490 = vmatprep.subr.bf16.mxu0 %v9994_v61  ;;  %v8232_v62 = vmax.f32 %v8217_v35, 0.0 }
 0x772   : > { %8491 = vmatpush1.bf16.msra.mxu0 %v9993_v19  ;;  %v8219_v18 = vpop.f32.mrf.mxu0  ;;  %v8576_v19 = vunpack.c.h.bf16 %v8569_v26 }
 0x773   : > { %v8242_v53 = vmul.f32 %v8232_v62, %v13830_v29  ;;  %v8233_v54 = vmax.f32 %v8219_v18, 0.0 }
 0x774   : > { %v8221_v6 = vpop.f32.mrf.mxu0 }
 0x775   : > { %10000 = vmatmul.mubr.msk.bf16.vlgmr.msra.gmra.mxu0 %vm6077_vm12, %v14524_v11  ;;  %v8243_v13 = vmul.f32 %v8233_v54, %v13826_v52 }
 0x776   : > { %9352 = vmatprep.mubr.bf16.mxu0 %v15697_v31  ;;  %v8222_v27 = vpop.f32.mrf.mxu0 }
 0x777   : > { %v10084_v41 = vpack.c.bf16 %v8243_v13, %v8242_v53 }
 0x779   : > { %v9995_v50 = vcombine.low %v8294_v30, %v10084_v41  ;;  %v9996_v15 = vcombine.high %v8294_v30, %v10084_v41 }
 0x77b   : > { %8531 = vmatprep.subr.bf16.mxu1 %v9996_v15 }
 0x77c   : > { %8532 = vmatpush1.bf16.msra.mxu1 %v9995_v50 }
 0x77f   : > { %10001 = vmatmul.mubr.msk.bf16.vlgmr.msra.gmra.mxu1 %vm6077_vm12, %v14524_v11  ;;  %vm15762_vm12 = vmmov %vm15753_vm9 }
 0x780   : > { %9393 = vmatprep.mubr.bf16.mxu1 %v15697_v31  ;;  %vm15766_vm9 = vmmov %vm15756_vm11 }
 0x781   : > { %vm15768_vm14 = vmmov %vm15762_vm12 }
 0x782   : > { %vm15769_vm11 = vmmov %vm15757_vm1 }
 0x783   : > { %vm15770_vm1 = vmmov %vm15762_vm12 }
 0x784   : > { %v8387_v47 = vpop.f32.mrf.mxu1 }
 0x785   : > { %v8558_v9 = vmax.f32 %v8387_v47, 0.0 }
 0x786   : > { %v8389_v22 = vpop.f32.mrf.mxu1 }
 0x787   : > { %v8583_v17 = vadd.f32 %v8573_v57, %v8558_v9  ;;  %v8559_v32 = vmax.f32 %v8389_v22, 0.0  ;;  %v8570_v57 = vld [vmem:[#allocation2 + $0x14] sm:$0x33] }
 0x788   : > { %v8391_v34 = vpop.f32.mrf.mxu1 }
 0x789   : > { %v8584_v59 = vadd.f32 %v8574_v38, %v8559_v32  ;;  %v8593_v11 = vmul.f32 %v8583_v17, %v13752_v39  ;;  %v8577_v32 = vunpack.c.l.bf16 %v8570_v57 }
 0x78a   : > { %v8392_v2 = vpop.f32.mrf.mxu1 }
 0x78b   : > { %v8594_v4 = vmul.f32 %v8584_v59, %v13735_v49  ;;  %v8578_v2 = vunpack.c.h.bf16 %v8570_v57 }
 0x78d   : > { %v10002_v42 = vpack.c.bf16 %v8594_v4, %v8593_v11 }
 0x78f   : > { %8691 = vst [vmem:[#allocation2 + $0x4] sm:$0x33] %v10002_v42  ;;  %v8631_v6 = vrot.slane %v10002_v42, %v10693_v5 }
 0x796   : > { %v9080_v58 = vld [vmem:[#allocation2 + $0x4] sm:$0x33] }
 0x797   : > { %9092 = vrot.lane.b32.xlu0 %v9080_v58, %s15343_s6  ;;  %v8908_v36 = vld [vmem:[#allocation2 + $0x4] sm:$0x33] }
 0x798   : > { %v8974_v44 = vld [vmem:[#allocation2 + $0x4] sm:$0x33]  ;;  %8913 = vst [vmem:[#allocation3 + $0x50] sm:$0x33] %v8908_v36  ;;  %v8571_v36 = vld [vmem:[#allocation2 + $0x1c] sm:$0x33] }
 0x799   : > { %v8696_v49 = vld [vmem:[#allocation2] sm:$0x33] }
 0x79a   : > { %v8802_v39 = vld [vmem:[#allocation2] sm:$0x33] }
 0x79b   : > { %8986 = vrot.lane.b32.xlu0 %v8974_v44, %s15368_s4  ;;  %v8918_v12 = vld [vmem:[#allocation2 + $0x4] sm:$0x33] }
 0x79c   : > { %v8930_v3 = vrot.slane %v8918_v12, 6  ;;  %v9024_v56 = vld [vmem:[#allocation2 + $0x4] sm:$0x33] }
 0x79d   : > { %v9036_v14 = vrot.slane %v9024_v56, 6  ;;  %v8746_v8 = vld [vmem:[#allocation2] sm:$0x33] }
 0x79e   : > { %v8758_v7 = vrot.slane %v8746_v8, 6  ;;  %v8852_v46 = vld [vmem:[#allocation2] sm:$0x33] }
 0x79f   : > { %8708 = vrot.lane.b32.xlu0 %v8696_v49, %s15289_s25  ;;  %v8864_v48 = vrot.slane %v8852_v46, 6 }
 0x7a3   : > { %8814 = vrot.lane.b32.xlu0 %v8802_v39, %s15291_s23  ;;  %v8579_v39 = vunpack.c.l.bf16 %v8571_v36 }
 0x7a7   : > { %8936 = vrot.lane.b32.xlu0 %v8930_v3, %s15382_s7 }
 0x7ab   : > { %9042 = vrot.lane.b32.xlu0 %v9036_v14, %s15369_s9  ;;  %v8580_v14 = vunpack.c.h.bf16 %v8571_v36 }
 0x7af   : > { %8764 = vrot.lane.b32.xlu0 %v8758_v7, %s15709_s16 }
 0x7b3   : > { %8870 = vrot.lane.b32.xlu0 %v8864_v48, %s15710_s14 }
 0x800   : > { %v8428_v25 = vpop.f32.mrf.mxu1 }
 0x801   : > { %v8560_v10 = vmax.f32 %v8428_v25, 0.0 }
 0x802   : > { %v8430_v33 = vpop.f32.mrf.mxu1 }
 0x803   : > { %v8585_v63 = vadd.f32 %v8575_v40, %v8560_v10  ;;  %v8561_v0 = vmax.f32 %v8430_v33, 0.0  ;;  %v8572_v40 = vld [vmem:[#allocation2 + $0x24] sm:$0x33] }
 0x804   : > { %v8432_v61 = vpop.f32.mrf.mxu1 }
 0x805   : > { %v8586_v35 = vadd.f32 %v8576_v19, %v8561_v0  ;;  %v8595_v18 = vmul.f32 %v8585_v63, %v13730_v60  ;;  %v8581_v61 = vunpack.c.l.bf16 %v8572_v40 }
 0x806   : > { %v8433_v62 = vpop.f32.mrf.mxu1 }
 0x807   : > { %v8596_v53 = vmul.f32 %v8586_v35, %v13747_v43 }
 0x809   : > { %v10003_v54 = vpack.c.bf16 %v8596_v53, %v8595_v18  ;;  %v8582_v53 = vunpack.c.h.bf16 %v8572_v40 }
 0x80b   : > { %v8638_v13 = vrot.slane %v10003_v54, %v10693_v5  ;;  %8692 = vst [vmem:[#allocation2 + $0xc] sm:$0x33] %v10003_v54 }
 0x80d   : > { %v8639_v27 = vcombine.low %v8631_v6, %v8638_v13 }
 0x80f   : > { %8668 = vst [vmem:[%s14571_s5] sm:$0xff] %v8639_v27 }
 0x812   : > { %v9081_v41 = vld [vmem:[#allocation2 + $0xc] sm:$0x33] }
 0x813   : > { %9094 = vrot.lane.b32.xlu1 %v9081_v41, %s15343_s6  ;;  %v8909_v60 = vld [vmem:[#allocation2 + $0xc] sm:$0x33] }
 0x814   : > { %v8975_v43 = vld [vmem:[#allocation2 + $0xc] sm:$0x33]  ;;  %8914 = vst [vmem:[#allocation3 + $0x58] sm:$0x33] %v8909_v60 }
 0x815   : > { %v8697_v30 = vld [vmem:[#allocation2 + $0x8] sm:$0x33] }
 0x816   : > { %v8803_v50 = vld [vmem:[#allocation2 + $0x8] sm:$0x33] }
 0x817   : > { %8988 = vrot.lane.b32.xlu1 %v8975_v43, %s15368_s4  ;;  %v8919_v15 = vld [vmem:[#allocation2 + $0xc] sm:$0x33] }
 0x818   : > { %v8931_v23 = vrot.slane %v8919_v15, 6  ;;  %v9025_v47 = vld [vmem:[#allocation2 + $0xc] sm:$0x33] }
 0x819   : > { %v9037_v9 = vrot.slane %v9025_v47, 6  ;;  %v8747_v22 = vld [vmem:[#allocation2 + $0x8] sm:$0x33] }
 0x81a   : > { %v8759_v38 = vrot.slane %v8747_v22, 6  ;;  %v8853_v51 = vld [vmem:[#allocation2 + $0x8] sm:$0x33] }
 0x81b   : > { %8710 = vrot.lane.b32.xlu1 %v8697_v30, %s15289_s25  ;;  %v8865_v45 = vrot.slane %v8853_v51, 6 }
 0x81f   : > { %8816 = vrot.lane.b32.xlu1 %v8803_v50, %s15291_s23 }
 0x823   : > { %8938 = vrot.lane.b32.xlu1 %v8931_v23, %s15382_s7 }
 0x827   : > { %9044 = vrot.lane.b32.xlu1 %v9037_v9, %s15369_s9  ;;  %v8469_v16 = vpop.f32.mrf.mxu1 }
 0x828   : > { %v8562_v17 = vmax.f32 %v8469_v16, 0.0 }
 0x829   : > { %v8471_v34 = vpop.f32.mrf.mxu1 }
 0x82a   : > { %v8587_v59 = vadd.f32 %v8577_v32, %v8562_v17  ;;  %v8563_v28 = vmax.f32 %v8471_v34, 0.0 }
 0x82b   : > { %8766 = vrot.lane.b32.xlu1 %v8759_v38, %s15709_s16  ;;  %v8473_v11 = vpop.f32.mrf.mxu1 }
 0x82c   : > { %v8588_v4 = vadd.f32 %v8578_v2, %v8563_v28  ;;  %v8597_v20 = vmul.f32 %v8587_v59, %v13781_v37 }
 0x82d   : > { %v8474_v42 = vpop.f32.mrf.mxu1 }
 0x82e   : > { %v8598_v55 = vmul.f32 %v8588_v4, %v13784_v21 }
 0x82f   : > { %8872 = vrot.lane.b32.xlu1 %v8865_v45, %s15710_s14 }
 0x830   : > { %v10004_v58 = vpack.c.bf16 %v8598_v55, %v8597_v20 }
 0x832   : > { %8693 = vst [vmem:[#allocation2 + $0x14] sm:$0x33] %v10004_v58  ;;  %v8648_v33 = vrot.slane %v10004_v58, %v10693_v5 }
 0x835   : > { %v8510_v44 = vpop.f32.mrf.mxu0 }
 0x836   : > { %v8564_v49 = vmax.f32 %v8510_v44, 0.0 }
 0x837   : > { %v8512_v12 = vpop.f32.mrf.mxu0 }
 0x838   : > { %v8589_v3 = vadd.f32 %v8579_v39, %v8564_v49  ;;  %v8565_v56 = vmax.f32 %v8512_v12, 0.0 }
 0x839   : > { %v8514_v8 = vpop.f32.mrf.mxu0  ;;  %v9082_v46 = vld [vmem:[#allocation2 + $0x14] sm:$0x33] }
 0x83a   : > { %v8590_v7 = vadd.f32 %v8580_v14, %v8565_v56  ;;  %9096 = vrot.lane.b32.xlu0 %v9082_v46, %s15343_s6  ;;  %v8599_v21 = vmul.f32 %v8589_v3, %v13808_v24  ;;  %v8910_v26 = vld [vmem:[#allocation2 + $0x14] sm:$0x33]  ;;  %v14615_v56 = vpop.permute.xlu1 %9102 }
 0x83b   : > { %v8515_v37 = vpop.f32.mrf.mxu0  ;;  %v8976_v10 = vld [vmem:[#allocation2 + $0x14] sm:$0x33]  ;;  %8915 = vst [vmem:[#allocation3 + $0x60] sm:$0x33] %v8910_v26  ;;  %v9093_v26 = vpop.permute.xlu0 %9092 }
 0x83c   : > { %v8600_v48 = vmul.f32 %v8590_v7, %v13805_v1  ;;  %v8698_v62 = vld [vmem:[#allocation2 + $0x10] sm:$0x33] }
 0x83d   : > { %v8804_v13 = vld [vmem:[#allocation2 + $0x10] sm:$0x33] }
 0x83e   : > { %v10005_v25 = vpack.c.bf16 %v8600_v48, %v8599_v21  ;;  %8990 = vrot.lane.b32.xlu0 %v8976_v10, %s15368_s4  ;;  %v8920_v27 = vld [vmem:[#allocation2 + $0x14] sm:$0x33]  ;;  %v14620_v48 = vpop.permute.xlu1 %8946 }
 0x83f   : > { %v8551_v0 = vpop.f32.mrf.mxu1  ;;  %v8932_v50 = vrot.slane %v8920_v27, 6  ;;  %v9026_v15 = vld [vmem:[#allocation2 + $0x14] sm:$0x33] }
 0x840   : > { %v8655_v63 = vrot.slane %v10005_v25, %v10693_v5  ;;  %8694 = vst [vmem:[#allocation2 + $0x1c] sm:$0x33] %v10005_v25  ;;  %v8566_v19 = vmax.f32 %v8551_v0, 0.0  ;;  %v8748_v9 = vld [vmem:[#allocation2 + $0x10] sm:$0x33] }
 0x841   : > { %v8553_v24 = vpop.f32.mrf.mxu1  ;;  %v8760_v57 = vrot.slane %v8748_v9, 6  ;;  %v8854_v22 = vld [vmem:[#allocation2 + $0x10] sm:$0x33] }
 0x842   : > { %v8656_v35 = vcombine.low %v8648_v33, %v8655_v63  ;;  %v8591_v1 = vadd.f32 %v8581_v61, %v8566_v19  ;;  %v8567_v18 = vmax.f32 %v8553_v24, 0.0  ;;  %8712 = vrot.lane.b32.xlu0 %v8698_v62, %s15289_s25  ;;  %v8866_v32 = vrot.slane %v8854_v22, 6  ;;  %v14627_v40 = vpop.permute.xlu1 %8996  ;;  %v8987_v33 = vpop.permute.xlu0 %8986 }
 0x843   : > { %v8555_v54 = vpop.f32.mrf.mxu1  ;;  %v9104_v61 = vrot.slane %v9093_v26, 4 }
 0x844   : > { %8669 = vst [vmem:[%s14571_s5 + $0x8] sm:$0xff] %v8656_v35  ;;  %v8592_v6 = vadd.f32 %v8582_v53, %v8567_v18  ;;  %v8601_v5 = vmul.f32 %v8591_v1, %v13830_v29  ;;  %v9038_v29 = vrot.slane %v9026_v15, 6  ;;  %v8998_v53 = vrot.slane %v8987_v33, 4 }
 0x845   : > { %v8556_v41 = vpop.f32.mrf.mxu1 }
 0x846   : > { %v8602_v60 = vmul.f32 %v8592_v6, %v13826_v52  ;;  %8818 = vrot.lane.b32.xlu0 %v8804_v13, %s15291_s23  ;;  %v14629_v63 = vpop.permute.xlu1 %9052  ;;  %v8709_v0 = vpop.permute.xlu0 %8708 }
 0x847   : > { %v9083_v43 = vld [vmem:[#allocation2 + $0x1c] sm:$0x33] }
 0x848   : > { %9098 = vrot.lane.b32.xlu1 %v9083_v43, %s15343_s6  ;;  %v10006_v30 = vpack.c.bf16 %v8602_v60, %v8601_v5  ;;  %v8911_v23 = vld [vmem:[#allocation2 + $0x1c] sm:$0x33]  ;;  %v8720_v5 = vrot.slane %v8709_v0, 4 }
 0x849   : > { %v8977_v47 = vld [vmem:[#allocation2 + $0x1c] sm:$0x33]  ;;  %8916 = vst [vmem:[#allocation3 + $0x68] sm:$0x33] %v8911_v23 }
 0x84a   : > { %10007 = vst.sshfl [vmem:[%s14571_s5 + $0x10] sm:$0x33 pattern:$0x76325410] %v10006_v30  ;;  %8695 = vst [vmem:[#allocation2 + $0x24] sm:$0x33] %v10006_v30  ;;  %8940 = vrot.lane.b32.xlu0 %v8932_v50, %s15382_s7  ;;  %v8815_v24 = vpop.permute.xlu0 %8814 }
 0x84b   : > { %v8699_v52 = vld [vmem:[#allocation2 + $0x18] sm:$0x33]  ;;  %v8826_v23 = vrot.slane %v8815_v24, 4 }
 0x84c   : > { %8992 = vrot.lane.b32.xlu1 %v8977_v47, %s15368_s4  ;;  %v8805_v16 = vld [vmem:[#allocation2 + $0x18] sm:$0x33] }
 0x84d   : > { %v8921_v17 = vld [vmem:[#allocation2 + $0x1c] sm:$0x33] }
 0x84e   : > { %9046 = vrot.lane.b32.xlu0 %v9038_v29, %s15369_s9  ;;  %v8933_v38 = vrot.slane %v8921_v17, 6  ;;  %v9027_v34 = vld [vmem:[#allocation2 + $0x1c] sm:$0x33]  ;;  %v8937_v13 = vpop.permute.xlu0 %8936 }
 0x84f   : > { %v9039_v28 = vrot.slane %v9027_v34, 6  ;;  %v8749_v2 = vld [vmem:[#allocation2 + $0x18] sm:$0x33] }
 0x850   : > { %8714 = vrot.lane.b32.xlu1 %v8699_v52, %s15289_s25  ;;  %v8761_v4 = vrot.slane %v8749_v2, 6  ;;  %v8855_v45 = vld [vmem:[#allocation2 + $0x18] sm:$0x33] }
 0x851   : > { %v8912_v51 = vld [vmem:[#allocation2 + $0x24] sm:$0x33]  ;;  %v8867_v20 = vrot.slane %v8855_v45, 6 }
 0x852   : > { %8768 = vrot.lane.b32.xlu0 %v8760_v57, %s15709_s16  ;;  %8917 = vst [vmem:[#allocation3 + $0x70] sm:$0x33] %v8912_v51  ;;  %v9084_v59 = vld [vmem:[#allocation2 + $0x24] sm:$0x33]  ;;  %v9043_v52 = vpop.permute.xlu0 %9042 }
 0x853   : > { %v8978_v11 = vld [vmem:[#allocation2 + $0x24] sm:$0x33]  ;;  %v9054_v2 = vrot.slane %v9043_v52, 4 }
 0x854   : > { %8820 = vrot.lane.b32.xlu1 %v8805_v16, %s15291_s23  ;;  %v8700_v42 = vld [vmem:[#allocation2 + $0x20] sm:$0x33]  ;;  %v8701_v36 = vld [vmem:[#allocation2 + $0x28] sm:$0x3] }
 0x855   : > { %v8806_v55 = vld [vmem:[#allocation2 + $0x20] sm:$0x33]  ;;  %v8807_v39 = vld [vmem:[#allocation2 + $0x28] sm:$0x3] }
 0x856   : > { %8874 = vrot.lane.b32.xlu0 %v8866_v32, %s15710_s14  ;;  %v8922_v58 = vld [vmem:[#allocation2 + $0x24] sm:$0x33]  ;;  %v8948_v32 = vrot.slane %v8937_v13, 4  ;;  %v8765_v51 = vpop.permute.xlu0 %8764 }
 0x857   : > { %v8934_v44 = vrot.slane %v8922_v58, 6  ;;  %v9028_v49 = vld [vmem:[#allocation2 + $0x24] sm:$0x33] }
 0x858   : > { %8942 = vrot.lane.b32.xlu1 %v8933_v38, %s15382_s7  ;;  %v8751_v12 = vld [vmem:[#allocation2 + $0x28] sm:$0x3]  ;;  %v9040_v3 = vrot.slane %v9028_v49, 6  ;;  %v8750_v8 = vld [vmem:[#allocation2 + $0x20] sm:$0x33] }
 0x859   : > { %v8763_v14 = vrot.slane %v8751_v12, 6  ;;  %v8857_v7 = vld [vmem:[#allocation2 + $0x28] sm:$0x3]  ;;  %v8762_v46 = vrot.slane %v8750_v8, 6  ;;  %v8856_v21 = vld [vmem:[#allocation2 + $0x20] sm:$0x33] }
 0x85a   : > { %9100 = vrot.lane.b32.xlu0 %v9084_v59, %s15343_s6  ;;  %v8869_v37 = vrot.slane %v8857_v7, 6  ;;  %v8868_v25 = vrot.slane %v8856_v21, 6  ;;  %v8871_v58 = vpop.permute.xlu0 %8870 }
 0x85c   : > { %9048 = vrot.lane.b32.xlu1 %v9039_v28, %s15369_s9 }
 0x85e   : > { %8994 = vrot.lane.b32.xlu0 %v8978_v11, %s15368_s4 }
 0x860   : > { %8770 = vrot.lane.b32.xlu1 %v8761_v4, %s15709_s16 }
 0x862   : > { %8716 = vrot.lane.b32.xlu0 %v8700_v42, %s15289_s25 }
 0x864   : > { %8876 = vrot.lane.b32.xlu1 %v8867_v20, %s15710_s14  ;;  %v8776_v20 = vrot.slane %v8765_v51, 4 }
 0x866   : > { %8822 = vrot.lane.b32.xlu0 %v8806_v55, %s15291_s23 }
 0x868   : > { %8718 = vrot.lane.b32.xlu1 %v8701_v36, %s15289_s25  ;;  %s15767_s25 = sld [smem:[#allocation40_spill]] }
 0x86a   : > { %8944 = vrot.lane.b32.xlu0 %v8934_v44, %s15382_s7  ;;  %s15761_s7 = sld [smem:[#allocation41_spill]] }
 0x86c   : > { %8824 = vrot.lane.b32.xlu1 %v8807_v39, %s15291_s23  ;;  %v8882_v39 = vrot.slane %v8871_v58, 4 }
 0x86e   : > { %9050 = vrot.lane.b32.xlu0 %v9040_v3, %s15369_s9 }
 0x870   : > { %8774 = vrot.lane.b32.xlu1 %v8763_v14, %s15709_s16  ;;  %v9156_v10 = vld [vmem:[%s15761_s7] sm:$0xff] }
 0x872   : > { %8772 = vrot.lane.b32.xlu0 %v8762_v46, %s15709_s16 }
 0x874   : > { %8880 = vrot.lane.b32.xlu1 %v8869_v37, %s15710_s14 }
 0x876   : > { %8878 = vrot.lane.b32.xlu0 %v8868_v25, %s15710_s14 }
 0x87a   : > { %9159 = vperm.xlu0 %10163, %v9156_v10   ;;  %v14695_v10 = vld [vmem:[%s15767_s25] sm:$0xf] }
 0x885   : > { %v14631_v19 = vpop.permute.xlu1 %9094 }
 0x886   : > { %v9105_v35 = vrot.slane %v14631_v19, 4 }
 0x888   : > { %v9110_v62 = vsel %vm503_vm0, %v9104_v61, %v9105_v35 }
 0x889   : > { %v9111_v1 = vsel %vm15762_vm12, %v9093_v26, %v9110_v62  ;;  %v14638_v18 = vpop.permute.xlu1 %8988  ;;  %vm15772_vm12 = vmmov %vm15765_vm8 }
 0x88a   : > { %9125 = vst [vmem:[#allocation3 + $0xa0] sm:$0x33] %v9111_v1  ;;  %v8999_v54 = vrot.slane %v14638_v18, 4 }
 0x88c   : > { %v9004_v6 = vsel %vm503_vm0, %v8998_v53, %v8999_v54 }
 0x88d   : > { %v9005_v27 = vsel %vm3168_vm3, %v8987_v33, %v9004_v6  ;;  %v14645_v41 = vpop.permute.xlu1 %8710 }
 0x88e   : > { %9019 = vst [vmem:[#allocation3 + $0x78] sm:$0x33] %v9005_v27  ;;  %v8721_v60 = vrot.slane %v14645_v41, 4 }
 0x890   : > { %v8726_v43 = vsel %vm503_vm0, %v8720_v5, %v8721_v60 }
 0x891   : > { %v8727_v30 = vsel %vm15763_vm15, %v8709_v0, %v8726_v43  ;;  %v14652_v50 = vpop.permute.xlu1 %8816  ;;  %v9151_v15 = vld [vmem:[#allocation3 + $0xa0] sm:$0x33]  ;;  %vm15773_vm15 = vmmov %vm15764_vm2 }
 0x892   : > { %8741 = vst [vmem:[#allocation3] sm:$0x33] %v8727_v30  ;;  %v8827_v47 = vrot.slane %v14652_v50, 4  ;;  %v10034_v29 = vcombine.high %v9151_v15, %v9151_v15  ;;  %v10033_v9 = vcombine.low %v9151_v15, %v9151_v15 }
 0x894   : > { %v8832_v57 = vsel %vm503_vm0, %v8826_v23, %v8827_v47  ;;  %10043 = vmatprep.subr.msk.bf16.mxu0 %vm5582_vm13, %v10034_v29  ;;  %v9291_v22 = vsel %vm5582_vm13, %v10033_v9, 0 }
 0x895   : > { %v8833_v16 = vsel %vm15764_vm2, %v8815_v24, %v8832_v57  ;;  %9331 = vmatpush1.bf16.msra.mxu0 %v9291_v22  ;;  %v14661_v17 = vpop.permute.xlu1 %8938  ;;  %vm15774_vm2 = vmmov %vm15766_vm9 }
 0x896   : > { %8847 = vst [vmem:[#allocation3 + $0x28] sm:$0x33] %v8833_v16  ;;  %v8949_v38 = vrot.slane %v14661_v17, 4 }
 0x898   : > { %v8954_v34 = vsel %vm503_vm0, %v8948_v32, %v8949_v38 }
 0x899   : > { %v8955_v59 = vsel %vm2718_vm5, %v8937_v13, %v8954_v34  ;;  %v14668_v28 = vpop.permute.xlu1 %9044 }
 0x89a   : > { %8969 = vst [vmem:[#allocation3 + $0x50] sm:$0xcc] %v8955_v59  ;;  %v9055_v11 = vrot.slane %v14668_v28, 4 }
 0x89c   : > { %v9060_v4 = vsel %vm503_vm0, %v9054_v2, %v9055_v11 }
 0x89d   : > { %v9061_v45 = vsel %vm3258_vm4, %v9043_v52, %v9060_v4  ;;  %v14675_v42 = vpop.permute.xlu1 %8766 }
 0x89e   : > { %9075 = vst [vmem:[#allocation3 + $0x78] sm:$0xcc] %v9061_v45  ;;  %v8777_v55 = vrot.slane %v14675_v42, 4 }
 0x8a0   : > { %v8782_v36 = vsel %vm503_vm0, %v8776_v20, %v8777_v55 }
 0x8a1   : > { %v8783_v44 = vsel %vm15765_vm8, %v8765_v51, %v8782_v36  ;;  %v14682_v49 = vpop.permute.xlu1 %8872  ;;  %vm15775_vm8 = vmmov %vm15770_vm1 }
 0x8a2   : > { %8797 = vst [vmem:[#allocation3] sm:$0xcc] %v8783_v44  ;;  %v8883_v12 = vrot.slane %v14682_v49, 4 }
 0x8a4   : > { %v8888_v3 = vsel %vm503_vm0, %v8882_v39, %v8883_v12 }
 0x8a5   : > { %v8889_v14 = vsel %vm15766_vm9, %v8871_v58, %v8888_v3  ;;  %v10516_v8 = vld [vmem:[#allocation3 + $0x50] ss:$40 sps:$4 sm:$0xff]   ;;  %v10518_v7 = vld [vmem:[#allocation3 + $0x54] ss:$40 sps:$4 sm:$0xff]   ;;  %vm15776_vm9 = vmmov %vm15770_vm1 }
 0x8a6   : > { %8903 = vst [vmem:[#allocation3 + $0x28] sm:$0xcc] %v8889_v14  ;;  %9332 = vmatprep.subr.bf16.mxu0 %v10518_v7 }
 0x8a7   : > { %9333 = vmatpush1.bf16.msra.mxu0 %v10516_v8 }
 0x8ac   : > { %v9097_v46 = vpop.permute.xlu0 %9096 }
 0x8ad   : > { %v10519_v37 = vld [vmem:[#allocation3] ss:$40 sps:$4 sm:$0xff]   ;;  %v10521_v21 = vld [vmem:[#allocation3 + $0x4] ss:$40 sps:$4 sm:$0xff]   ;;  %v9106_v26 = vrot.slane %v9097_v46, 4 }
 0x8ae   : > { %9334 = vmatprep.subr.bf16.mxu0 %v10521_v21 }
 0x8af   : > { %v9112_v25 = vsel %vm503_vm0, %v9105_v35, %v9106_v26  ;;  %9335 = vmatpush1.bf16.msra.mxu0 %v10519_v37 }
 0x8b0   : > { %v9113_v33 = vsel %vm15768_vm14, %v14631_v19, %v9112_v25  ;;  %v8991_v0 = vpop.permute.xlu0 %8990  ;;  %vm15777_vm14 = vmmov %vm15772_vm12 }
 0x8b1   : > { %9126 = vst [vmem:[#allocation3 + $0xa8] sm:$0x33] %v9113_v33  ;;  %v9000_v61 = vrot.slane %v8991_v0, 4 }
 0x8b2   : > { %10044 = vmatmul.mubr.msk.bf16.vlgmr.msra.gmra.mxu0 %vm6946_vm6, %v14695_v10 }
 0x8b3   : > { %v9006_v24 = vsel %vm503_vm0, %v8999_v54, %v9000_v61  ;;  %9434 = vmatprep.mubr.bf16.mxu0 %v15697_v31 }
 0x8b4   : > { %v9007_v35 = vsel %vm3168_vm3, %v14638_v18, %v9006_v24  ;;  %v8713_v62 = vpop.permute.xlu0 %8712  ;;  %v9109_v24 = vrot.slane %v14615_v56, 4 }
 0x8b5   : > { %9020 = vst [vmem:[#allocation3 + $0x80] sm:$0x33] %v9007_v35  ;;  %v8722_v1 = vrot.slane %v8713_v62, 4 }
 0x8b7   : > { %v8728_v19 = vsel %vm503_vm0, %v8721_v60, %v8722_v1 }
 0x8b8   : > { %v8729_v53 = vsel %vm15755_vm10, %v14645_v41, %v8728_v19  ;;  %v8819_v6 = vpop.permute.xlu0 %8818  ;;  %v9152_v13 = vld [vmem:[#allocation3 + $0xa8] sm:$0x33]  ;;  %vm15779_vm10 = vmmov %vm15774_vm2 }
 0x8b9   : > { %8742 = vst [vmem:[#allocation3 + $0x8] sm:$0x33] %v8729_v53  ;;  %v8828_v27 = vrot.slane %v8819_v6, 4  ;;  %v10036_v5 = vcombine.high %v9152_v13, %v9152_v13  ;;  %v10035_v43 = vcombine.low %v9152_v13, %v9152_v13 }
 0x8ba   : > { %v14712_v54 = vpop.permute.xlu1 %9098 }
 0x8bb   : > { %v9107_v18 = vrot.slane %v14712_v54, 4  ;;  %v8834_v30 = vsel %vm503_vm0, %v8827_v47, %v8828_v27  ;;  %10045 = vmatprep.subr.msk.bf16.mxu1 %vm5582_vm13, %v10036_v5  ;;  %v9297_v60 = vsel %vm5582_vm13, %v10035_v43, 0 }
 0x8bc   : > { %v8835_v41 = vsel %vm15769_vm11, %v14652_v50, %v8834_v30  ;;  %v8941_v23 = vpop.permute.xlu0 %8940  ;;  %9372 = vmatpush1.bf16.msra.mxu1 %v9297_v60 }
 0x8bd   : > { %v9114_v15 = vsel %vm503_vm0, %v9106_v26, %v9107_v18  ;;  %8848 = vst [vmem:[#allocation3 + $0x30] sm:$0x33] %v8835_v41  ;;  %v8950_v9 = vrot.slane %v8941_v23, 4 }
 0x8be   : > { %v9115_v29 = vsel %vm15770_vm1, %v9097_v46, %v9114_v15  ;;  %v14726_v52 = vpop.permute.xlu1 %8992 }
 0x8bf   : > { %9127 = vst [vmem:[#allocation3 + $0xb0] sm:$0x33] %v9115_v29  ;;  %v9001_v47 = vrot.slane %v14726_v52, 4  ;;  %v8956_v57 = vsel %vm503_vm0, %v8949_v38, %v8950_v9 }
 0x8c0   : > { %v8957_v50 = vsel %vm2718_vm5, %v14661_v17, %v8956_v57  ;;  %v9047_v16 = vpop.permute.xlu0 %9046 }
 0x8c1   : > { %v9008_v22 = vsel %vm503_vm0, %v9000_v61, %v9001_v47  ;;  %8970 = vst [vmem:[#allocation3 + $0x58] sm:$0xcc] %v8957_v50  ;;  %v9056_v34 = vrot.slane %v9047_v16, 4 }
 0x8c2   : > { %v9009_v32 = vsel %vm3168_vm3, %v8991_v0, %v9008_v22  ;;  %v14738_v51 = vpop.permute.xlu1 %8714 }
 0x8c3   : > { %9021 = vst [vmem:[#allocation3 + $0x88] sm:$0x33] %v9009_v32  ;;  %v8723_v59 = vrot.slane %v14738_v51, 4  ;;  %v9062_v38 = vsel %vm503_vm0, %v9055_v11, %v9056_v34 }
 0x8c4   : > { %v9063_v17 = vsel %vm3258_vm4, %v14668_v28, %v9062_v38  ;;  %v14749_v4 = vpop.permute.xlu0 %8768 }
 0x8c5   : > { %v8730_v2 = vsel %vm503_vm0, %v8722_v1, %v8723_v59  ;;  %9076 = vst [vmem:[#allocation3 + $0x80] sm:$0xcc] %v9063_v17  ;;  %v8778_v20 = vrot.slane %v14749_v4, 4 }
 0x8c6   : > { %v8731_v45 = vsel %vm15771_vm7, %v8713_v62, %v8730_v2  ;;  %v14753_v58 = vpop.permute.xlu1 %8820  ;;  %v9153_v36 = vld [vmem:[#allocation3 + $0xb0] sm:$0x33] }
 0x8c7   : > { %8743 = vst [vmem:[#allocation3 + $0x10] sm:$0x33] %v8731_v45  ;;  %v8829_v11 = vrot.slane %v14753_v58, 4  ;;  %v10038_v44 = vcombine.high %v9153_v36, %v9153_v36  ;;  %v10037_v39 = vcombine.low %v9153_v36, %v9153_v36  ;;  %v8784_v28 = vsel %vm503_vm0, %v8777_v55, %v8778_v20 }
 0x8c8   : > { %v8785_v3 = vsel %vm15772_vm12, %v14675_v42, %v8784_v28  ;;  %v8875_v8 = vpop.permute.xlu0 %8874 }
 0x8c9   : > { %v8836_v14 = vsel %vm503_vm0, %v8828_v27, %v8829_v11  ;;  %10047 = vmatprep.subr.msk.bf16.mxu0 %vm5582_vm13, %v10038_v44  ;;  %v9303_v7 = vsel %vm5582_vm13, %v10037_v39, 0  ;;  %8798 = vst [vmem:[#allocation3 + $0x8] sm:$0xcc] %v8785_v3  ;;  %v8884_v37 = vrot.slane %v8875_v8, 4  ;;  %v9003_v27 = vrot.slane %v14627_v40, 4 }
 0x8ca   : > { %v8837_v46 = vsel %vm15773_vm15, %v8819_v6, %v8836_v14  ;;  %9413 = vmatpush1.bf16.msra.mxu0 %v9303_v7  ;;  %v14767_v21 = vpop.permute.xlu1 %8942 }
 0x8cb   : > { %8849 = vst [vmem:[#allocation3 + $0x38] sm:$0x33] %v8837_v46  ;;  %v8951_v55 = vrot.slane %v14767_v21, 4  ;;  %v8890_v42 = vsel %vm503_vm0, %v8883_v12, %v8884_v37 }
 0x8cc   : > { %v8891_v26 = vsel %vm15774_vm2, %v14682_v49, %v8890_v42  ;;  %v9101_v33 = vpop.permute.xlu0 %9100  ;;  %v10526_v0 = vld [vmem:[#allocation3 + $0x58] ss:$40 sps:$4 sm:$0xff]   ;;  %v10528_v61 = vld [vmem:[#allocation3 + $0x5c] ss:$40 sps:$4 sm:$0xff]  }
 0x8cd   : > { %v8958_v25 = vsel %vm503_vm0, %v8950_v9, %v8951_v55  ;;  %8904 = vst [vmem:[#allocation3 + $0x30] sm:$0xcc] %v8891_v26  ;;  %v9108_v62 = vrot.slane %v9101_v33, 4  ;;  %9373 = vmatprep.subr.bf16.mxu1 %v10528_v61  ;;  %v9059_v26 = vrot.slane %v14629_v63, 4 }
 0x8ce   : > { %v8959_v35 = vsel %vm2718_vm5, %v8941_v23, %v8958_v25  ;;  %v14780_v1 = vpop.permute.xlu1 %9048  ;;  %9374 = vmatpush1.bf16.msra.mxu1 %v10526_v0 }
 0x8cf   : > { %8971 = vst [vmem:[#allocation3 + $0x60] sm:$0xcc] %v8959_v35  ;;  %v9057_v12 = vrot.slane %v14780_v1, 4  ;;  %v9116_v49 = vsel %vm503_vm0, %v9107_v18, %v9108_v62  ;;  %v9118_v19 = vsel %vm503_vm0, %v9108_v62, %v9109_v24 }
 0x8d0   : > { %v9117_v56 = vsel %vm15775_vm8, %v14712_v54, %v9116_v49  ;;  %v9119_v53 = vsel %vm15776_vm9, %v9101_v33, %v9118_v19  ;;  %v8995_v13 = vpop.permute.xlu0 %8994 }
 0x8d1   : > { %v9064_v6 = vsel %vm503_vm0, %v9056_v34, %v9057_v12  ;;  %9128 = vst [vmem:[#allocation3 + $0xb8] sm:$0x33] %v9117_v56  ;;  %9129 = vst [vmem:[#allocation3 + $0xc0] sm:$0x33] %v9119_v53  ;;  %v9002_v43 = vrot.slane %v8995_v13, 4 }
 0x8d2   : > { %v9065_v5 = vsel %vm3258_vm4, %v9047_v16, %v9064_v6  ;;  %v14795_v18 = vpop.permute.xlu1 %8770 }
 0x8d3   : > { %9077 = vst [vmem:[#allocation3 + $0x88] sm:$0xcc] %v9065_v5  ;;  %v8779_v30 = vrot.slane %v14795_v18, 4  ;;  %v9010_v54 = vsel %vm503_vm0, %v9001_v47, %v9002_v43  ;;  %v9012_v60 = vsel %vm503_vm0, %v9002_v43, %v9003_v27 }
 0x8d4   : > { %v9011_v41 = vsel %vm3168_vm3, %v14726_v52, %v9010_v54  ;;  %v9013_v40 = vsel %vm3168_vm3, %v8995_v13, %v9012_v60  ;;  %v8717_v23 = vpop.permute.xlu0 %8716  ;;  %v10529_v29 = vld [vmem:[#allocation3 + $0x8] ss:$40 sps:$4 sm:$0xff]   ;;  %v10531_v9 = vld [vmem:[#allocation3 + $0xc] ss:$40 sps:$4 sm:$0xff]   ;;  %vm15778_vm3 = vmmov %vm15771_vm7 }
 0x8d5   : > { %v8786_v15 = vsel %vm503_vm0, %v8778_v20, %v8779_v30  ;;  %9022 = vst [vmem:[#allocation3 + $0x90] sm:$0x33] %v9011_v41  ;;  %9023 = vst [vmem:[#allocation3 + $0x98] sm:$0x33] %v9013_v40  ;;  %v8724_v47 = vrot.slane %v8717_v23, 4  ;;  %9375 = vmatprep.subr.bf16.mxu1 %v10531_v9 }
 0x8d6   : > { %v8787_v57 = vsel %vm15777_vm14, %v14749_v4, %v8786_v15  ;;  %v14810_v50 = vpop.permute.xlu1 %8876  ;;  %9376 = vmatpush1.bf16.msra.mxu1 %v10529_v29  ;;  %vm15780_vm1 = vmmov %vm15778_vm3 }
 0x8d7   : > { %8799 = vst [vmem:[#allocation3 + $0x10] sm:$0xcc] %v8787_v57  ;;  %v8885_v52 = vrot.slane %v14810_v50, 4  ;;  %v8732_v22 = vsel %vm503_vm0, %v8723_v59, %v8724_v47  ;;  %vm15781_vm7 = vmmov %vm15769_vm11 }
 0x8d8   : > { %v8733_v16 = vsel %vm15778_vm3, %v14738_v51, %v8732_v22  ;;  %v8823_v34 = vpop.permute.xlu0 %8822  ;;  %v9154_v38 = vld [vmem:[#allocation3 + $0xb8] sm:$0x33]  ;;  %v9155_v61 = vld [vmem:[#allocation3 + $0xc0] sm:$0x33] }
 0x8d9   : > { %v8892_v32 = vsel %vm503_vm0, %v8884_v37, %v8885_v52  ;;  %8744 = vst [vmem:[#allocation3 + $0x18] sm:$0x33] %v8733_v16  ;;  %v8830_v2 = vrot.slane %v8823_v34, 4  ;;  %v10040_v36 = vcombine.high %v9154_v38, %v9154_v38  ;;  %v10039_v44 = vcombine.low %v9154_v38, %v9154_v38  ;;  %10046 = vmatmul.mubr.msk.bf16.vlgmr.msra.gmra.mxu1 %vm6946_vm6, %v14695_v10 }
 0x8da   : > { %v8893_v17 = vsel %vm15779_vm10, %v8875_v8, %v8892_v32  ;;  %v8719_v4 = vpop.permute.xlu1 %8718  ;;  %v10532_v45 = vld [vmem:[#allocation3 + $0x60] ss:$40 sps:$4 sm:$0xff]   ;;  %v10534_v20 = vld [vmem:[#allocation3 + $0x64] ss:$40 sps:$4 sm:$0xff]   ;;  %v8953_v8 = vrot.slane %v14620_v48, 4  ;;  %9475 = vmatprep.mubr.bf16.mxu1 %v15697_v31  ;;  %v10042_v19 = vcombine.high %v9155_v61, %v9155_v61  ;;  %v10041_v56 = vcombine.low %v9155_v61, %v9155_v61 }
 0x8db   : > { %8905 = vst [vmem:[#allocation3 + $0x38] sm:$0xcc] %v8893_v17  ;;  %v8725_v59 = vrot.slane %v8719_v4, 4  ;;  %v8838_v51 = vsel %vm503_vm0, %v8829_v11, %v8830_v2  ;;  %9414 = vmatprep.subr.bf16.mxu0 %v10534_v20  ;;  %10049 = vmatprep.subr.msk.bf16.mxu1 %vm5582_vm13, %v10040_v36  ;;  %v9309_v39 = vsel %vm5582_vm13, %v10039_v44, 0 }
 0x8dc   : > { %v8839_v28 = vsel %vm15769_vm11, %v14753_v58, %v8838_v51  ;;  %v8945_v14 = vpop.permute.xlu0 %8944  ;;  %9415 = vmatpush1.bf16.msra.mxu0 %v10532_v45  ;;  %9454 = vmatpush1.bf16.msra.mxu1 %v9309_v39 }
 0x8dd   : > { %v8734_v3 = vsel %vm503_vm0, %v8724_v47, %v8725_v59  ;;  %8850 = vst [vmem:[#allocation3 + $0x40] sm:$0x33] %v8839_v28  ;;  %v8952_v46 = vrot.slane %v8945_v14, 4 }
 0x8de   : > { %v8735_v7 = vsel %vm15780_vm1, %v8717_v23, %v8734_v3  ;;  %v8825_v11 = vpop.permute.xlu1 %8824 }
 0x8df   : > { %8745 = vst [vmem:[#allocation3 + $0x20] sm:$0x33] %v8735_v7  ;;  %v8831_v37 = vrot.slane %v8825_v11, 4  ;;  %v8960_v58 = vsel %vm503_vm0, %v8951_v55, %v8952_v46  ;;  %v8962_v42 = vsel %vm503_vm0, %v8952_v46, %v8953_v8 }
 0x8e0   : > { %v8961_v48 = vsel %vm2718_vm5, %v14767_v21, %v8960_v58  ;;  %v8963_v25 = vsel %vm2718_vm5, %v8945_v14, %v8962_v42  ;;  %v9051_v0 = vpop.permute.xlu0 %9050 }
 0x8e1   : > { %v8840_v33 = vsel %vm503_vm0, %v8830_v2, %v8831_v37  ;;  %8972 = vst [vmem:[#allocation3 + $0x68] sm:$0xcc] %v8961_v48  ;;  %8973 = vst [vmem:[#allocation3 + $0x70] sm:$0xcc] %v8963_v25  ;;  %v9058_v35 = vrot.slane %v9051_v0, 4 }
 0x8e2   : > { %v8841_v24 = vsel %vm15781_vm7, %v8823_v34, %v8840_v33  ;;  %v8775_v62 = vpop.permute.xlu1 %8774  ;;  %v10537_v55 = vld [vmem:[#allocation3 + $0x10] ss:$40 sps:$4 sm:$0xff]   ;;  %v10539_v49 = vld [vmem:[#allocation3 + $0x14] ss:$40 sps:$4 sm:$0xff]  }
 0x8e3   : > { %8851 = vst [vmem:[#allocation3 + $0x48] sm:$0x33] %v8841_v24  ;;  %v9066_v63 = vsel %vm503_vm0, %v9057_v12, %v9058_v35  ;;  %v9068_v21 = vsel %vm503_vm0, %v9058_v35, %v9059_v26  ;;  %9416 = vmatprep.subr.bf16.mxu0 %v10539_v49  ;;  %v8781_v27 = vrot.slane %v8775_v62, 4 }
 0x8e4   : > { %v9067_v53 = vsel %vm3258_vm4, %v14780_v1, %v9066_v63  ;;  %v9069_v6 = vsel %vm3258_vm4, %v9051_v0, %v9068_v21  ;;  %v8773_v13 = vpop.permute.xlu0 %8772  ;;  %9417 = vmatpush1.bf16.msra.mxu0 %v10537_v55  ;;  %v9315_v1 = vsel %vm5582_vm13, %v10041_v56, 0  ;;  %vm15782_vm4 = vmmov %vm15772_vm12 }
 0x8e5   : > { %9078 = vst [vmem:[#allocation3 + $0x90] sm:$0xcc] %v9067_v53  ;;  %9079 = vst [vmem:[#allocation3 + $0x98] sm:$0xcc] %v9069_v6  ;;  %v8780_v5 = vrot.slane %v8773_v13, 4  ;;  %10051 = vmatprep.subr.msk.bf16.mxu0 %vm5582_vm13, %v10042_v19 }
 0x8e6   : > { %v8881_v43 = vpop.permute.xlu1 %8880  ;;  %vm15783_vm5 = vmmov %vm15782_vm4 }
 0x8e7   : > { %v8788_v12 = vsel %vm503_vm0, %v8779_v30, %v8780_v5  ;;  %v8790_v54 = vsel %vm503_vm0, %v8780_v5, %v8781_v27  ;;  %10048 = vmatmul.mubr.msk.bf16.vlgmr.msra.gmra.mxu0 %vm6946_vm6, %v14695_v10  ;;  %v8887_v15 = vrot.slane %v8881_v43, 4  ;;  %vm15784_vm13 = vmmov %vm15774_vm2 }
 0x8e8   : > { %v8789_v60 = vsel %vm15782_vm4, %v14795_v18, %v8788_v12  ;;  %v8791_v41 = vsel %vm15783_vm5, %v8773_v13, %v8790_v54  ;;  %v8879_v40 = vpop.permute.xlu0 %8878  ;;  %9495 = vmatpush1.bf16.msra.mxu0 %v9315_v1  ;;  %9516 = vmatprep.mubr.bf16.mxu0 %v15697_v31  ;;  %vm15785_vm12 = vmmov %vm15774_vm2 }
 0x8e9   : > { %8800 = vst [vmem:[#allocation3 + $0x18] sm:$0xcc] %v8789_v60  ;;  %8801 = vst [vmem:[#allocation3 + $0x20] sm:$0xcc] %v8791_v41  ;;  %v8886_v30 = vrot.slane %v8879_v40, 4 }
 0x8eb   : > { %v8894_v23 = vsel %vm503_vm0, %v8885_v52, %v8886_v30  ;;  %v8896_v29 = vsel %vm503_vm0, %v8886_v30, %v8887_v15 }
 0x8ec   : > { %v8895_v9 = vsel %vm15784_vm13, %v14810_v50, %v8894_v23  ;;  %v8897_v18 = vsel %vm15785_vm12, %v8879_v40, %v8896_v29  ;;  %v10542_v57 = vld [vmem:[#allocation3 + $0x68] ss:$40 sps:$4 sm:$0xff]   ;;  %v10544_v47 = vld [vmem:[#allocation3 + $0x6c] ss:$40 sps:$4 sm:$0xff]  }
 0x8ed   : > { %8906 = vst [vmem:[#allocation3 + $0x40] sm:$0xcc] %v8895_v9  ;;  %8907 = vst [vmem:[#allocation3 + $0x48] sm:$0xcc] %v8897_v18  ;;  %v10545_v31 = vld [vmem:[#allocation3 + $0x70] ss:$40 sps:$4 sm:$0xff]   ;;  %9455 = vmatprep.subr.bf16.mxu1 %v10544_v47 }
 0x8ee   : > { %v10547_v22 = vld [vmem:[#allocation3 + $0x74] ss:$40 sps:$4 sm:$0xff]   ;;  %9456 = vmatpush1.bf16.msra.mxu1 %v10542_v57 }
 0x8ef   : > { %9496 = vmatprep.subr.bf16.mxu0 %v10547_v22 }
 0x8f0   : > { %9497 = vmatpush1.bf16.msra.mxu0 %v10545_v31 }
 0x8f4   : > { %v10548_v16 = vld [vmem:[#allocation3 + $0x18] ss:$40 sps:$4 sm:$0xff]   ;;  %v10550_v52 = vld [vmem:[#allocation3 + $0x1c] ss:$40 sps:$4 sm:$0xff]  }
 0x8f5   : > { %v10551_v32 = vld [vmem:[#allocation3 + $0x20] ss:$40 sps:$4 sm:$0xff]   ;;  %v10553_v34 = vld [vmem:[#allocation3 + $0x24] ss:$40 sps:$4 sm:$0xff]   ;;  %9457 = vmatprep.subr.bf16.mxu1 %v10550_v52  ;;  %v9160_v50 = vpop.permute.xlu0 %9159 }
 0x8f6   : > { %9498 = vmatprep.subr.bf16.mxu0 %v10553_v34  ;;  %9458 = vmatpush1.bf16.msra.mxu1 %v10548_v16 }
 0x8f7   : > { %9499 = vmatpush1.bf16.msra.mxu0 %v10551_v32 }
 0x8f9   : > { %10050 = vmatmul.mubr.msk.bf16.vlgmr.msra.gmra.mxu1 %vm6946_vm6, %v14695_v10 }
 0x8fa   : > { %10052 = vmatmul.mubr.msk.bf16.vlgmr.msra.gmra.mxu0 %vm6946_vm6, %v14695_v10 }
 0x972   : > { %v9354_v38 = vpop.f32.mrf.mxu0 }
 0x973   : > { %v9355_v17 = vadd.f32 %v9354_v38, %v9160_v50 }
 0x974   : > { %v9356_v2 = vpop.f32.mrf.mxu0 }
 0x975   : > { %v9357_v4 = vadd.f32 %v9356_v2, %v9160_v50  ;;  %v9525_v20 = vmax.f32 %v9355_v17, 0.0 }
 0x976   : > { %v9358_v45 = vpop.f32.mrf.mxu0 }
 0x977   : > { %v9526_v36 = vmax.f32 %v9357_v4, 0.0 }
 0x978   : > { %v9359_v44 = vpop.f32.mrf.mxu0 }
 0x979   : > { %v10090_v59 = vpack.c.bf16 %v9526_v36, %v9525_v20 }
 0x97b   : > { %9575 = vst [vmem:[%s14879_s30] sm:$0xff] %v10090_v59 }
 0x999   : > { %v9395_v10 = vpop.f32.mrf.mxu1 }
 0x99a   : > { %v9396_v51 = vadd.f32 %v9395_v10, %v9160_v50 }
 0x99b   : > { %v9397_v39 = vpop.f32.mrf.mxu1 }
 0x99c   : > { %v9398_v28 = vadd.f32 %v9397_v39, %v9160_v50  ;;  %v9527_v14 = vmax.f32 %v9396_v51, 0.0 }
 0x99d   : > { %v9399_v3 = vpop.f32.mrf.mxu1 }
 0x99e   : > { %v9528_v8 = vmax.f32 %v9398_v28, 0.0 }
 0x99f   : > { %v9400_v7 = vpop.f32.mrf.mxu1 }
 0x9a0   : > { %v10091_v46 = vpack.c.bf16 %v9528_v8, %v9527_v14 }
 0x9a2   : > { %9576 = vst [vmem:[%s14879_s30 + $0x8] sm:$0xff] %v10091_v46 }
 0x9a7   : > { %v9436_v11 = vpop.f32.mrf.mxu0 }
 0x9a8   : > { %v9437_v37 = vadd.f32 %v9436_v11, %v9160_v50 }
 0x9a9   : > { %v9438_v58 = vpop.f32.mrf.mxu0 }
 0x9aa   : > { %v9439_v42 = vadd.f32 %v9438_v58, %v9160_v50  ;;  %v9529_v48 = vmax.f32 %v9437_v37, 0.0 }
 0x9ab   : > { %v9440_v26 = vpop.f32.mrf.mxu0 }
 0x9ac   : > { %v9530_v25 = vmax.f32 %v9439_v42, 0.0 }
 0x9ad   : > { %v9441_v33 = vpop.f32.mrf.mxu0 }
 0x9ae   : > { %v10092_v0 = vpack.c.bf16 %v9530_v25, %v9529_v48 }
 0x9b0   : > { %9577 = vst [vmem:[%s14879_s30 + $0x10] sm:$0xff] %v10092_v0 }
 0x9b9   : > { %v9477_v61 = vpop.f32.mrf.mxu1 }
 0x9ba   : > { %v9478_v24 = vadd.f32 %v9477_v61, %v9160_v50  ;;  %v9518_v35 = vpop.f32.mrf.mxu0 }
 0x9bb   : > { %v9519_v62 = vadd.f32 %v9518_v35, %v9160_v50  ;;  %v9479_v55 = vpop.f32.mrf.mxu1 }
 0x9bc   : > { %v9480_v49 = vadd.f32 %v9479_v55, %v9160_v50  ;;  %v9520_v63 = vpop.f32.mrf.mxu0  ;;  %v9531_v56 = vmax.f32 %v9478_v24, 0.0 }
 0x9bd   : > { %v9521_v21 = vadd.f32 %v9520_v63, %v9160_v50  ;;  %v9481_v19 = vpop.f32.mrf.mxu1  ;;  %v9533_v13 = vmax.f32 %v9519_v62, 0.0 }
 0x9be   : > { %v9532_v53 = vmax.f32 %v9480_v49, 0.0  ;;  %v9522_v6 = vpop.f32.mrf.mxu0 }
 0x9bf   : > { %v9534_v27 = vmax.f32 %v9521_v21, 0.0  ;;  %v9482_v5 = vpop.f32.mrf.mxu1 }
 0x9c0   : > { %v10093_v43 = vpack.c.bf16 %v9532_v53, %v9531_v56  ;;  %v9523_v12 = vpop.f32.mrf.mxu0 }
 0x9c1   : > { %v10094_v54 = vpack.c.bf16 %v9534_v27, %v9533_v13 }
 0x9c2   : > { %9578 = vst [vmem:[%s14879_s30 + $0x18] sm:$0xff] %v10093_v43 }
 0x9c3   : > { %9579 = vst [vmem:[%s14879_s30 + $0x20] sm:$0xff] %v10094_v54 }
 0x9c4 PF: > { %s15787_s28 = sld [smem:[#allocation5_spill]] }
 0x9ca   : > { %s23_s21 = sadd.s32 1, %s15787_s28  }
 0x9cb   : > { %p20_p4 = scmp.ge.s32.totalorder %s23_s21, 4  }
 0x9cd   :  { %22 = sbr.rel (!%p20_p4) target bundleno = 14 (0xe), region = 106 }

</bundles_post_ra>
